<compile_context>
chip_gen: v5e
topology: v5e:2x2
jax: 0.10.0
libtpu: 0.0.40
codegen_flags: <defaults>
</compile_context>

<pallas_src>
import functools

import jax
import jax.numpy as jnp
from jax import lax
from jax.experimental import pallas as pl
from jax.experimental.pallas import tpu as pltpu


# ------------------------------- fused kernel ------------------------------

def _resnext_block_kernel(x_ref, w1_ref, s1_ref, b1_ref,
                          w2_ref, s2_ref, b2_ref,
                          w3_ref, s3_ref, b3_ref,
                          ws_ref, ss_ref, bs_ref,
                          msk_ref, sel_ref, o_ref,
                          *, shifts, groups):
    """One batch element per grid step.  x_ref: (1, H*W, Cin) bf16 (NHWC rows)."""
    f32 = jnp.float32
    bf16 = jnp.bfloat16

    x2 = x_ref[0]                                   # (H*W, Cin)  bf16, resident in VMEM
    sel = sel_ref[...]                              # (Ho*Wo, H*W) 0/1 stride-s row select

    # ---- shortcut: strided 1x1 conv + BN, gathered from the already-loaded x tile
    xs = jnp.dot(sel, x2.astype(f32), preferred_element_type=f32)        # (Ho*Wo, Cin)
    y = jnp.dot(xs.astype(bf16), ws_ref[...], preferred_element_type=f32)
    y = y * ss_ref[...] + bs_ref[...]                                    # (Ho*Wo, Cout2)

    hw = x2.shape[0]
    c2g = w2_ref.shape[-1]

    for g in range(groups):                         # unrolled at trace time
        # ---- conv1 (1x1) + BN + ReLU, restricted to the channels feeding group g
        h1 = jnp.dot(x2, w1_ref[g], preferred_element_type=f32)          # (H*W, c1g)
        h1 = jnp.maximum(h1 * s1_ref[g] + b1_ref[g], 0.0)

        # ---- conv2 (3x3, grouped, pad=1) at stride 1 via 9 rolled + masked taps
        acc = jnp.zeros((hw, c2g), f32)
        for t in range(9):
            if shifts[t] == 0:                      # center tap: no shift, no border
                tap = h1
            else:
                tap = pltpu.roll(h1, shift=shifts[t], axis=0) * msk_ref[t]
            acc = acc + jnp.dot(tap.astype(bf16), w2_ref[t, g],
                                preferred_element_type=f32)

        # ---- stride-s spatial subsample (selection matmul) + BN + ReLU
        h2 = jnp.dot(sel, acc, preferred_element_type=f32)               # (Ho*Wo, c2g)
        h2 = jnp.maximum(h2 * s2_ref[g] + b2_ref[g], 0.0)

        # ---- conv3 (1x1): this group's slice of its input channels; BN scale applied
        y = y + jnp.dot(h2.astype(bf16), w3_ref[g],
                        preferred_element_type=f32) * s3_ref[...]

    y = y + b3_ref[...]                              # conv3 bias + BN shift (folded)
    o_ref[0] = jnp.maximum(y, 0.0).astype(o_ref.dtype)


# ------------------------------ host-side glue -----------------------------

def _conv2_geometry(H, W, stride):
    """Static roll shifts, 0/1 border masks (9, H*W, 1) and the stride-s row selector."""
    Ho = (H + 2 - 3) // stride + 1
    Wo = (W + 2 - 3) // stride + 1
    HW = H * W
    r = jnp.arange(HW)
    yy = r // W
    xx = r % W
    shifts, masks = [], []
    for dy in range(3):
        for dx in range(3):
            s = (dy - 1) * W + (dx - 1)
            shifts.append((-s) % HW)                # roll(h1, shift)[r] == h1[r + s]
            iy = yy + dy - 1
            ix = xx + dx - 1
            valid = (iy >= 0) & (iy < H) & (ix >= 0) & (ix < W)
            masks.append(valid.astype(jnp.float32))
    masks = jnp.stack(masks).reshape(9, HW, 1)
    ro = jnp.arange(Ho * Wo)
    src = (ro // Wo) * stride * W + (ro % Wo) * stride
    sel = jax.nn.one_hot(src, HW, dtype=jnp.float32)        # (Ho*Wo, H*W)
    return Ho, Wo, tuple(shifts), masks, sel


def _const_spec(arr):
    zeros = (0,) * arr.ndim
    return pl.BlockSpec(arr.shape, lambda n, _z=zeros: _z)


def resnext_block_forward_nhwc(x_nhwc, p, *, stride, cardinality):
    """NHWC entry point (preferred: avoids the NCHW<->NHWC boundary transposes)."""
    N, H, W, Cin = x_nhwc.shape
    Ho, Wo, shifts, masks, sel = _conv2_geometry(H, W, stride)
    HW = H * W
    Cout2 = p["w3"].shape[-1]

    x2d = x_nhwc.reshape(N, HW, Cin).astype(jnp.bfloat16)
    kernel = functools.partial(_resnext_block_kernel, shifts=shifts, groups=cardinality)

    out2d = pl.pallas_call(
        kernel,
        out_shape=jax.ShapeDtypeStruct((N, Ho * Wo, Cout2), jnp.float32),
        grid_spec=pltpu.PrefetchScalarGridSpec(
            num_scalar_prefetch=0,
            grid=(N,),
            in_specs=[
                pl.BlockSpec((1, HW, Cin), lambda n: (n, 0, 0)),
                _const_spec(p["w1"]), _const_spec(p["s1"]), _const_spec(p["b1"]),
                _const_spec(p["w2"]), _const_spec(p["s2"]), _const_spec(p["b2"]),
                _const_spec(p["w3"]), _const_spec(p["s3"]), _const_spec(p["b3"]),
                _const_spec(p["ws"]), _const_spec(p["ss"]), _const_spec(p["bs"]),
                _const_spec(masks), _const_spec(sel),
            ],
            out_specs=pl.BlockSpec((1, Ho * Wo, Cout2), lambda n: (n, 0, 0)),
        ),
        compiler_params=pltpu.CompilerParams(dimension_semantics=("parallel",)),
    )(x2d, p["w1"], p["s1"], p["b1"], p["w2"], p["s2"], p["b2"],
      p["w3"], p["s3"], p["b3"], p["ws"], p["ss"], p["bs"], masks, sel)

    return out2d.reshape(N, Ho, Wo, Cout2)


@functools.partial(jax.jit, static_argnames=("stride", "cardinality"))
def resnext_block_forward(x_nchw, p, *, stride, cardinality):
    """PyTorch-layout (NCHW) wrapper kept for spec parity."""
    x = jnp.transpose(x_nchw, (0, 2, 3, 1))
    y = resnext_block_forward_nhwc(x, p, stride=stride, cardinality=cardinality)
    return jnp.transpose(y, (0, 3, 1, 2))


# --------------------- parameter preparation (from torch layout) -----------

def bn_fold(bn_prm, conv_bias=None, eps=1e-5):
    gamma, beta, mean, var = bn_prm
    scale = gamma / jnp.sqrt(var + eps)
    bias = beta - mean * scale
    if conv_bias is not None:
        bias = bias + conv_bias * scale
    return scale, bias


def prepare_params(raw, cardinality):
    groups = cardinality
    bf16 = jnp.bfloat16

    # conv1: 1x1, Cin -> Cg.  Split output channels by the conv2 group they feed.
    w1 = raw["w1"][:, :, 0, 0].T                               # (Cin, Cg)
    Cin, Cg = w1.shape
    assert Cg % groups == 0
    c1g = Cg // groups
    s1, b1 = bn_fold(raw["bn1"])
    w1 = w1.reshape(Cin, groups, c1g).transpose(1, 0, 2)       # (groups, Cin, c1g)
    s1 = s1.reshape(groups, 1, c1g)
    b1 = b1.reshape(groups, 1, c1g)

    # conv2: 3x3 grouped -- keep per-tap / per-group weights (no densification).
    w2t = raw["w2"]                                            # (Cg, Cin_g, 3, 3)
    cin_g = w2t.shape[1]
    c2g = Cg // groups
    w2 = (w2t.reshape(groups, c2g, cin_g, 3, 3)
             .transpose(3, 4, 0, 2, 1)                         # (3, 3, g, ci, co)
             .reshape(9, groups, cin_g, c2g))
    s2, b2 = bn_fold(raw["bn2"])
    s2 = s2.reshape(groups, 1, c2g)
    b2 = b2.reshape(groups, 1, c2g)

    # conv3: 1x1 with bias, Cg -> 2*Cg, then self.bn (conv bias folded into BN shift).
    Cout2 = raw["w3"].shape[0]
    w3 = raw["w3"][:, :, 0, 0].T.reshape(groups, c2g, Cout2)   # split by input group
    s3, b3 = bn_fold(raw["bn3"], conv_bias=raw["b3"])

    # shortcut: strided 1x1, Cin -> 2*Cg, + BN.
    ws = raw["ws"][:, :, 0, 0].T                               # (Cin, Cout2)
    ss, bs = bn_fold(raw["bns"])

    return dict(
        w1=w1.astype(bf16), s1=s1, b1=b1,
        w2=w2.astype(bf16), s2=s2, b2=b2,
        w3=w3.astype(bf16), s3=s3.reshape(1, Cout2), b3=b3.reshape(1, Cout2),
        ws=ws.astype(bf16), ss=ss.reshape(1, Cout2), bs=bs.reshape(1, Cout2),
    )


# ----------------------------- pure-JAX reference --------------------------

def _ref_forward(x_nchw, raw, stride, cardinality):
    eps = 1e-5

    def bn(y, prm):
        g, b, m, v = prm
        shp = (1, -1, 1, 1)
        return g.reshape(shp) * (y - m.reshape(shp)) / jnp.sqrt(v.reshape(shp) + eps) \
            + b.reshape(shp)

    dn = ("NCHW", "OIHW", "NCHW")

    def conv(x, w, s, p, fg=1):
        return lax.conv_general_dilated(x, w, (s, s), [(p, p), (p, p)],
                                        dimension_numbers=dn, feature_group_count=fg)

    h = jax.nn.relu(bn(conv(x_nchw, raw["w1"], 1, 0), raw["bn1"]))
    h = jax.nn.relu(bn(conv(h, raw["w2"], stride, 1, cardinality), raw["bn2"]))
    h = bn(conv(h, raw["w3"], 1, 0) + raw["b3"].reshape(1, -1, 1, 1), raw["bn3"])
    sc = bn(conv(x_nchw, raw["ws"], stride, 0), raw["bns"])
    return jax.nn.relu(h + sc)


# ------------------------------------ main ---------------------------------

if __name__ == "__main__":
    key = jax.random.PRNGKey(0)
    N, Cin, H, W = 2, 8, 16, 16
    cardinality, group_depth, stride = 2, 4, 2
    Cg = cardinality * group_depth              # 8
    Cout2 = 2 * Cg                              # 16

    ks = jax.random.split(key, 16)
    f32 = jnp.float32

    def bn_params(k, c):
        k0, k1, k2, k3 = jax.random.split(k, 4)
        gamma = jax.random.uniform(k0, (c,), f32, 0.5, 1.5)
        beta = 0.1 * jax.random.normal(k1, (c,), f32)
        mean = 0.1 * jax.random.normal(k2, (c,), f32)
        var = jax.random.uniform(k3, (c,), f32, 0.5, 1.5)
        return (gamma, beta, mean, var)

    raw = dict(
        w1=0.1 * jax.random.normal(ks[0], (Cg, Cin, 1, 1), f32),
        bn1=bn_params(ks[1], Cg),
        w2=0.1 * jax.random.normal(ks[2], (Cg, Cg // cardinality, 3, 3), f32),
        bn2=bn_params(ks[3], Cg),
        w3=0.1 * jax.random.normal(ks[4], (Cout2, Cg, 1, 1), f32),
        b3=0.1 * jax.random.normal(ks[5], (Cout2,), f32),
        bn3=bn_params(ks[6], Cout2),
        ws=0.1 * jax.random.normal(ks[7], (Cout2, Cin, 1, 1), f32),
        bns=bn_params(ks[8], Cout2),
    )
    params = prepare_params(raw, cardinality)
    x = jax.random.normal(ks[9], (N, Cin, H, W), f32)

    y = resnext_block_forward(x, params, stride=stride, cardinality=cardinality)
    y = jax.block_until_ready(y)

    assert y.shape == (N, Cout2, H // stride, W // stride)
    assert bool(jnp.all(jnp.isfinite(y)))

    y_ref = _ref_forward(x, raw, stride, cardinality)
    err = float(jnp.max(jnp.abs(y - y_ref)))
    assert err < 1e-1, f"mismatch vs reference: {err}"

    print("KERNEL_OK")
</pallas_src>

<mosaic_0001>
module attributes {stable_mosaic.version = 11 : i64} {
  func.func @_resnext_block_kernel(%arg0: i32, %arg1: memref<1x256x8xbf16, #tpu.memory_space<vmem>>, %arg2: memref<2x8x4xbf16, #tpu.memory_space<vmem>>, %arg3: memref<2x1x4xf32, #tpu.memory_space<vmem>>, %arg4: memref<2x1x4xf32, #tpu.memory_space<vmem>>, %arg5: memref<9x2x4x4xbf16, #tpu.memory_space<vmem>>, %arg6: memref<2x1x4xf32, #tpu.memory_space<vmem>>, %arg7: memref<2x1x4xf32, #tpu.memory_space<vmem>>, %arg8: memref<2x4x16xbf16, #tpu.memory_space<vmem>>, %arg9: memref<1x16xf32, #tpu.memory_space<vmem>>, %arg10: memref<1x16xf32, #tpu.memory_space<vmem>>, %arg11: memref<8x16xbf16, #tpu.memory_space<vmem>>, %arg12: memref<1x16xf32, #tpu.memory_space<vmem>>, %arg13: memref<1x16xf32, #tpu.memory_space<vmem>>, %arg14: memref<9x256x1xf32, #tpu.memory_space<vmem>>, %arg15: memref<64x256xf32, #tpu.memory_space<vmem>>, %arg16: memref<1x64x16xf32, #tpu.memory_space<vmem>>) attributes {dimension_semantics = [#tpu.dimension_semantics<parallel>], iteration_bounds = array<i64: 2>, scalar_prefetch = 0 : i64, scratch_operands = 0 : i64, tpu.core_type = #tpu.core_type<tc>, window_params = [{transform_indices = @transform_0, window_bounds = array<i64: 1, 256, 8>}, {pipeline_mode = #tpu.pipeline_mode<synchronous>, transform_indices = @transform_1, window_bounds = array<i64: 2, 8, 4>}, {pipeline_mode = #tpu.pipeline_mode<synchronous>, transform_indices = @transform_2, window_bounds = array<i64: 2, 1, 4>}, {pipeline_mode = #tpu.pipeline_mode<synchronous>, transform_indices = @transform_3, window_bounds = array<i64: 2, 1, 4>}, {pipeline_mode = #tpu.pipeline_mode<synchronous>, transform_indices = @transform_4, window_bounds = array<i64: 9, 2, 4, 4>}, {pipeline_mode = #tpu.pipeline_mode<synchronous>, transform_indices = @transform_5, window_bounds = array<i64: 2, 1, 4>}, {pipeline_mode = #tpu.pipeline_mode<synchronous>, transform_indices = @transform_6, window_bounds = array<i64: 2, 1, 4>}, {pipeline_mode = #tpu.pipeline_mode<synchronous>, transform_indices = @transform_7, window_bounds = array<i64: 2, 4, 16>}, {pipeline_mode = #tpu.pipeline_mode<synchronous>, transform_indices = @transform_8, window_bounds = array<i64: 1, 16>}, {pipeline_mode = #tpu.pipeline_mode<synchronous>, transform_indices = @transform_9, window_bounds = array<i64: 1, 16>}, {pipeline_mode = #tpu.pipeline_mode<synchronous>, transform_indices = @transform_10, window_bounds = array<i64: 8, 16>}, {pipeline_mode = #tpu.pipeline_mode<synchronous>, transform_indices = @transform_11, window_bounds = array<i64: 1, 16>}, {pipeline_mode = #tpu.pipeline_mode<synchronous>, transform_indices = @transform_12, window_bounds = array<i64: 1, 16>}, {pipeline_mode = #tpu.pipeline_mode<synchronous>, transform_indices = @transform_13, window_bounds = array<i64: 9, 256, 1>}, {pipeline_mode = #tpu.pipeline_mode<synchronous>, transform_indices = @transform_14, window_bounds = array<i64: 64, 256>}, {transform_indices = @transform_15, window_bounds = array<i64: 1, 64, 16>}]} {
    %c0 = arith.constant 0 : index
    %c0_0 = arith.constant 0 : index
    %c0_1 = arith.constant 0 : index
    %0 = vector.load %arg1[%c0, %c0_0, %c0_1] : memref<1x256x8xbf16, #tpu.memory_space<vmem>>, vector<1x256x8xbf16>
    %1 = vector.shape_cast %0 : vector<1x256x8xbf16> to vector<256x8xbf16>
    %c0_2 = arith.constant 0 : index
    %c0_3 = arith.constant 0 : index
    %2 = vector.load %arg15[%c0_2, %c0_3] : memref<64x256xf32, #tpu.memory_space<vmem>>, vector<64x256xf32>
    %3 = arith.extf %1 : vector<256x8xbf16> to vector<256x8xf32>
    %cst = arith.constant dense<0.000000e+00> : vector<64x8xf32>
    %4 = tpu.matmul %2, %3, %cst {dimension_numbers = #tpu.dot_dimension_numbers<[1], [0], [0], [1], [0, 0, 1, 1], [], []>} : vector<64x256xf32>, vector<256x8xf32>, vector<64x8xf32> -> vector<64x8xf32>
    %5 = arith.truncf %4 : vector<64x8xf32> to vector<64x8xbf16>
    %c0_4 = arith.constant 0 : index
    %c0_5 = arith.constant 0 : index
    %6 = vector.load %arg11[%c0_4, %c0_5] : memref<8x16xbf16, #tpu.memory_space<vmem>>, vector<8x16xbf16>
    %cst_6 = arith.constant dense<0.000000e+00> : vector<64x16xf32>
    %7 = tpu.matmul %5, %6, %cst_6 {dimension_numbers = #tpu.dot_dimension_numbers<[1], [0], [0], [1], [0, 0, 1, 1], [], []>} : vector<64x8xbf16>, vector<8x16xbf16>, vector<64x16xf32> -> vector<64x16xf32>
    %c0_7 = arith.constant 0 : index
    %c0_8 = arith.constant 0 : index
    %8 = vector.load %arg12[%c0_7, %c0_8] : memref<1x16xf32, #tpu.memory_space<vmem>>, vector<1x16xf32>
    %9 = vector.broadcast %8 : vector<1x16xf32> to vector<64x16xf32>
    %10 = arith.mulf %7, %9 : vector<64x16xf32>
    %c0_9 = arith.constant 0 : index
    %c0_10 = arith.constant 0 : index
    %11 = vector.load %arg13[%c0_9, %c0_10] : memref<1x16xf32, #tpu.memory_space<vmem>>, vector<1x16xf32>
    %12 = vector.broadcast %11 : vector<1x16xf32> to vector<64x16xf32>
    %13 = arith.addf %10, %12 : vector<64x16xf32>
    %c0_11 = arith.constant 0 : index
    %c0_12 = arith.constant 0 : index
    %c0_13 = arith.constant 0 : index
    %14 = vector.load %arg2[%c0_11, %c0_12, %c0_13] : memref<2x8x4xbf16, #tpu.memory_space<vmem>>, vector<1x8x4xbf16>
    %15 = vector.shape_cast %14 : vector<1x8x4xbf16> to vector<8x4xbf16>
    %cst_14 = arith.constant dense<0.000000e+00> : vector<256x4xf32>
    %16 = tpu.matmul %1, %15, %cst_14 {dimension_numbers = #tpu.dot_dimension_numbers<[1], [0], [0], [1], [0, 0, 1, 1], [], []>} : vector<256x8xbf16>, vector<8x4xbf16>, vector<256x4xf32> -> vector<256x4xf32>
    %c0_15 = arith.constant 0 : index
    %c0_16 = arith.constant 0 : index
    %c0_17 = arith.constant 0 : index
    %17 = vector.load %arg3[%c0_15, %c0_16, %c0_17] : memref<2x1x4xf32, #tpu.memory_space<vmem>>, vector<1x1x4xf32>
    %18 = vector.shape_cast %17 : vector<1x1x4xf32> to vector<1x4xf32>
    %19 = vector.broadcast %18 : vector<1x4xf32> to vector<256x4xf32>
    %20 = arith.mulf %16, %19 : vector<256x4xf32>
    %c0_18 = arith.constant 0 : index
    %c0_19 = arith.constant 0 : index
    %c0_20 = arith.constant 0 : index
    %21 = vector.load %arg4[%c0_18, %c0_19, %c0_20] : memref<2x1x4xf32, #tpu.memory_space<vmem>>, vector<1x1x4xf32>
    %22 = vector.shape_cast %21 : vector<1x1x4xf32> to vector<1x4xf32>
    %23 = vector.broadcast %22 : vector<1x4xf32> to vector<256x4xf32>
    %24 = arith.addf %20, %23 : vector<256x4xf32>
    %cst_21 = arith.constant 0.000000e+00 : f32
    %25 = vector.broadcast %cst_21 : f32 to vector<256x4xf32>
    %26 = arith.maximumf %24, %25 : vector<256x4xf32>
    %cst_22 = arith.constant 0.000000e+00 : f32
    %27 = vector.broadcast %cst_22 : f32 to vector<256x4xf32>
    %c17_i32 = arith.constant 17 : i32
    %28 = tpu.dynamic_rotate %26 by %c17_i32 dim 0 : vector<256x4xf32>, i32 -> vector<256x4xf32>
    %c0_23 = arith.constant 0 : index
    %c0_24 = arith.constant 0 : index
    %c0_25 = arith.constant 0 : index
    %29 = vector.load %arg14[%c0_23, %c0_24, %c0_25] : memref<9x256x1xf32, #tpu.memory_space<vmem>>, vector<1x256x1xf32>
    %30 = vector.shape_cast %29 : vector<1x256x1xf32> to vector<256x1xf32>
    %31 = vector.broadcast %30 : vector<256x1xf32> to vector<256x4xf32>
    %32 = arith.mulf %28, %31 : vector<256x4xf32>
    %33 = arith.truncf %32 : vector<256x4xf32> to vector<256x4xbf16>
    %c0_26 = arith.constant 0 : index
    %c0_27 = arith.constant 0 : index
    %c0_28 = arith.constant 0 : index
    %c0_29 = arith.constant 0 : index
    %34 = vector.load %arg5[%c0_26, %c0_27, %c0_28, %c0_29] : memref<9x2x4x4xbf16, #tpu.memory_space<vmem>>, vector<1x1x4x4xbf16>
    %35 = vector.shape_cast %34 : vector<1x1x4x4xbf16> to vector<4x4xbf16>
    %cst_30 = arith.constant dense<0.000000e+00> : vector<256x4xf32>
    %36 = tpu.matmul %33, %35, %cst_30 {dimension_numbers = #tpu.dot_dimension_numbers<[1], [0], [0], [1], [0, 0, 1, 1], [], []>} : vector<256x4xbf16>, vector<4x4xbf16>, vector<256x4xf32> -> vector<256x4xf32>
    %37 = arith.addf %27, %36 : vector<256x4xf32>
    %c16_i32 = arith.constant 16 : i32
    %38 = tpu.dynamic_rotate %26 by %c16_i32 dim 0 : vector<256x4xf32>, i32 -> vector<256x4xf32>
    %c1 = arith.constant 1 : index
    %c0_31 = arith.constant 0 : index
    %c0_32 = arith.constant 0 : index
    %39 = vector.load %arg14[%c1, %c0_31, %c0_32] : memref<9x256x1xf32, #tpu.memory_space<vmem>>, vector<1x256x1xf32>
    %40 = vector.shape_cast %39 : vector<1x256x1xf32> to vector<256x1xf32>
    %41 = vector.broadcast %40 : vector<256x1xf32> to vector<256x4xf32>
    %42 = arith.mulf %38, %41 : vector<256x4xf32>
    %43 = arith.truncf %42 : vector<256x4xf32> to vector<256x4xbf16>
    %c1_33 = arith.constant 1 : index
    %c0_34 = arith.constant 0 : index
    %c0_35 = arith.constant 0 : index
    %c0_36 = arith.constant 0 : index
    %44 = vector.load %arg5[%c1_33, %c0_34, %c0_35, %c0_36] : memref<9x2x4x4xbf16, #tpu.memory_space<vmem>>, vector<1x1x4x4xbf16>
    %45 = vector.shape_cast %44 : vector<1x1x4x4xbf16> to vector<4x4xbf16>
    %cst_37 = arith.constant dense<0.000000e+00> : vector<256x4xf32>
    %46 = tpu.matmul %43, %45, %cst_37 {dimension_numbers = #tpu.dot_dimension_numbers<[1], [0], [0], [1], [0, 0, 1, 1], [], []>} : vector<256x4xbf16>, vector<4x4xbf16>, vector<256x4xf32> -> vector<256x4xf32>
    %47 = arith.addf %37, %46 : vector<256x4xf32>
    %c15_i32 = arith.constant 15 : i32
    %48 = tpu.dynamic_rotate %26 by %c15_i32 dim 0 : vector<256x4xf32>, i32 -> vector<256x4xf32>
    %c2 = arith.constant 2 : index
    %c0_38 = arith.constant 0 : index
    %c0_39 = arith.constant 0 : index
    %49 = vector.load %arg14[%c2, %c0_38, %c0_39] : memref<9x256x1xf32, #tpu.memory_space<vmem>>, vector<1x256x1xf32>
    %50 = vector.shape_cast %49 : vector<1x256x1xf32> to vector<256x1xf32>
    %51 = vector.broadcast %50 : vector<256x1xf32> to vector<256x4xf32>
    %52 = arith.mulf %48, %51 : vector<256x4xf32>
    %53 = arith.truncf %52 : vector<256x4xf32> to vector<256x4xbf16>
    %c2_40 = arith.constant 2 : index
    %c0_41 = arith.constant 0 : index
    %c0_42 = arith.constant 0 : index
    %c0_43 = arith.constant 0 : index
    %54 = vector.load %arg5[%c2_40, %c0_41, %c0_42, %c0_43] : memref<9x2x4x4xbf16, #tpu.memory_space<vmem>>, vector<1x1x4x4xbf16>
    %55 = vector.shape_cast %54 : vector<1x1x4x4xbf16> to vector<4x4xbf16>
    %cst_44 = arith.constant dense<0.000000e+00> : vector<256x4xf32>
    %56 = tpu.matmul %53, %55, %cst_44 {dimension_numbers = #tpu.dot_dimension_numbers<[1], [0], [0], [1], [0, 0, 1, 1], [], []>} : vector<256x4xbf16>, vector<4x4xbf16>, vector<256x4xf32> -> vector<256x4xf32>
    %57 = arith.addf %47, %56 : vector<256x4xf32>
    %c1_i32 = arith.constant 1 : i32
    %58 = tpu.dynamic_rotate %26 by %c1_i32 dim 0 : vector<256x4xf32>, i32 -> vector<256x4xf32>
    %c3 = arith.constant 3 : index
    %c0_45 = arith.constant 0 : index
    %c0_46 = arith.constant 0 : index
    %59 = vector.load %arg14[%c3, %c0_45, %c0_46] : memref<9x256x1xf32, #tpu.memory_space<vmem>>, vector<1x256x1xf32>
    %60 = vector.shape_cast %59 : vector<1x256x1xf32> to vector<256x1xf32>
    %61 = vector.broadcast %60 : vector<256x1xf32> to vector<256x4xf32>
    %62 = arith.mulf %58, %61 : vector<256x4xf32>
    %63 = arith.truncf %62 : vector<256x4xf32> to vector<256x4xbf16>
    %c3_47 = arith.constant 3 : index
    %c0_48 = arith.constant 0 : index
    %c0_49 = arith.constant 0 : index
    %c0_50 = arith.constant 0 : index
    %64 = vector.load %arg5[%c3_47, %c0_48, %c0_49, %c0_50] : memref<9x2x4x4xbf16, #tpu.memory_space<vmem>>, vector<1x1x4x4xbf16>
    %65 = vector.shape_cast %64 : vector<1x1x4x4xbf16> to vector<4x4xbf16>
    %cst_51 = arith.constant dense<0.000000e+00> : vector<256x4xf32>
    %66 = tpu.matmul %63, %65, %cst_51 {dimension_numbers = #tpu.dot_dimension_numbers<[1], [0], [0], [1], [0, 0, 1, 1], [], []>} : vector<256x4xbf16>, vector<4x4xbf16>, vector<256x4xf32> -> vector<256x4xf32>
    %67 = arith.addf %57, %66 : vector<256x4xf32>
    %68 = arith.truncf %26 : vector<256x4xf32> to vector<256x4xbf16>
    %c4 = arith.constant 4 : index
    %c0_52 = arith.constant 0 : index
    %c0_53 = arith.constant 0 : index
    %c0_54 = arith.constant 0 : index
    %69 = vector.load %arg5[%c4, %c0_52, %c0_53, %c0_54] : memref<9x2x4x4xbf16, #tpu.memory_space<vmem>>, vector<1x1x4x4xbf16>
    %70 = vector.shape_cast %69 : vector<1x1x4x4xbf16> to vector<4x4xbf16>
    %cst_55 = arith.constant dense<0.000000e+00> : vector<256x4xf32>
    %71 = tpu.matmul %68, %70, %cst_55 {dimension_numbers = #tpu.dot_dimension_numbers<[1], [0], [0], [1], [0, 0, 1, 1], [], []>} : vector<256x4xbf16>, vector<4x4xbf16>, vector<256x4xf32> -> vector<256x4xf32>
    %72 = arith.addf %67, %71 : vector<256x4xf32>
    %c255_i32 = arith.constant 255 : i32
    %73 = tpu.dynamic_rotate %26 by %c255_i32 dim 0 : vector<256x4xf32>, i32 -> vector<256x4xf32>
    %c5 = arith.constant 5 : index
    %c0_56 = arith.constant 0 : index
    %c0_57 = arith.constant 0 : index
    %74 = vector.load %arg14[%c5, %c0_56, %c0_57] : memref<9x256x1xf32, #tpu.memory_space<vmem>>, vector<1x256x1xf32>
    %75 = vector.shape_cast %74 : vector<1x256x1xf32> to vector<256x1xf32>
    %76 = vector.broadcast %75 : vector<256x1xf32> to vector<256x4xf32>
    %77 = arith.mulf %73, %76 : vector<256x4xf32>
    %78 = arith.truncf %77 : vector<256x4xf32> to vector<256x4xbf16>
    %c5_58 = arith.constant 5 : index
    %c0_59 = arith.constant 0 : index
    %c0_60 = arith.constant 0 : index
    %c0_61 = arith.constant 0 : index
    %79 = vector.load %arg5[%c5_58, %c0_59, %c0_60, %c0_61] : memref<9x2x4x4xbf16, #tpu.memory_space<vmem>>, vector<1x1x4x4xbf16>
    %80 = vector.shape_cast %79 : vector<1x1x4x4xbf16> to vector<4x4xbf16>
    %cst_62 = arith.constant dense<0.000000e+00> : vector<256x4xf32>
    %81 = tpu.matmul %78, %80, %cst_62 {dimension_numbers = #tpu.dot_dimension_numbers<[1], [0], [0], [1], [0, 0, 1, 1], [], []>} : vector<256x4xbf16>, vector<4x4xbf16>, vector<256x4xf32> -> vector<256x4xf32>
    %82 = arith.addf %72, %81 : vector<256x4xf32>
    %c241_i32 = arith.constant 241 : i32
    %83 = tpu.dynamic_rotate %26 by %c241_i32 dim 0 : vector<256x4xf32>, i32 -> vector<256x4xf32>
    %c6 = arith.constant 6 : index
    %c0_63 = arith.constant 0 : index
    %c0_64 = arith.constant 0 : index
    %84 = vector.load %arg14[%c6, %c0_63, %c0_64] : memref<9x256x1xf32, #tpu.memory_space<vmem>>, vector<1x256x1xf32>
    %85 = vector.shape_cast %84 : vector<1x256x1xf32> to vector<256x1xf32>
    %86 = vector.broadcast %85 : vector<256x1xf32> to vector<256x4xf32>
    %87 = arith.mulf %83, %86 : vector<256x4xf32>
    %88 = arith.truncf %87 : vector<256x4xf32> to vector<256x4xbf16>
    %c6_65 = arith.constant 6 : index
    %c0_66 = arith.constant 0 : index
    %c0_67 = arith.constant 0 : index
    %c0_68 = arith.constant 0 : index
    %89 = vector.load %arg5[%c6_65, %c0_66, %c0_67, %c0_68] : memref<9x2x4x4xbf16, #tpu.memory_space<vmem>>, vector<1x1x4x4xbf16>
    %90 = vector.shape_cast %89 : vector<1x1x4x4xbf16> to vector<4x4xbf16>
    %cst_69 = arith.constant dense<0.000000e+00> : vector<256x4xf32>
    %91 = tpu.matmul %88, %90, %cst_69 {dimension_numbers = #tpu.dot_dimension_numbers<[1], [0], [0], [1], [0, 0, 1, 1], [], []>} : vector<256x4xbf16>, vector<4x4xbf16>, vector<256x4xf32> -> vector<256x4xf32>
    %92 = arith.addf %82, %91 : vector<256x4xf32>
    %c240_i32 = arith.constant 240 : i32
    %93 = tpu.dynamic_rotate %26 by %c240_i32 dim 0 : vector<256x4xf32>, i32 -> vector<256x4xf32>
    %c7 = arith.constant 7 : index
    %c0_70 = arith.constant 0 : index
    %c0_71 = arith.constant 0 : index
    %94 = vector.load %arg14[%c7, %c0_70, %c0_71] : memref<9x256x1xf32, #tpu.memory_space<vmem>>, vector<1x256x1xf32>
    %95 = vector.shape_cast %94 : vector<1x256x1xf32> to vector<256x1xf32>
    %96 = vector.broadcast %95 : vector<256x1xf32> to vector<256x4xf32>
    %97 = arith.mulf %93, %96 : vector<256x4xf32>
    %98 = arith.truncf %97 : vector<256x4xf32> to vector<256x4xbf16>
    %c7_72 = arith.constant 7 : index
    %c0_73 = arith.constant 0 : index
    %c0_74 = arith.constant 0 : index
    %c0_75 = arith.constant 0 : index
    %99 = vector.load %arg5[%c7_72, %c0_73, %c0_74, %c0_75] : memref<9x2x4x4xbf16, #tpu.memory_space<vmem>>, vector<1x1x4x4xbf16>
    %100 = vector.shape_cast %99 : vector<1x1x4x4xbf16> to vector<4x4xbf16>
    %cst_76 = arith.constant dense<0.000000e+00> : vector<256x4xf32>
    %101 = tpu.matmul %98, %100, %cst_76 {dimension_numbers = #tpu.dot_dimension_numbers<[1], [0], [0], [1], [0, 0, 1, 1], [], []>} : vector<256x4xbf16>, vector<4x4xbf16>, vector<256x4xf32> -> vector<256x4xf32>
    %102 = arith.addf %92, %101 : vector<256x4xf32>
    %c239_i32 = arith.constant 239 : i32
    %103 = tpu.dynamic_rotate %26 by %c239_i32 dim 0 : vector<256x4xf32>, i32 -> vector<256x4xf32>
    %c8 = arith.constant 8 : index
    %c0_77 = arith.constant 0 : index
    %c0_78 = arith.constant 0 : index
    %104 = vector.load %arg14[%c8, %c0_77, %c0_78] : memref<9x256x1xf32, #tpu.memory_space<vmem>>, vector<1x256x1xf32>
    %105 = vector.shape_cast %104 : vector<1x256x1xf32> to vector<256x1xf32>
    %106 = vector.broadcast %105 : vector<256x1xf32> to vector<256x4xf32>
    %107 = arith.mulf %103, %106 : vector<256x4xf32>
    %108 = arith.truncf %107 : vector<256x4xf32> to vector<256x4xbf16>
    %c8_79 = arith.constant 8 : index
    %c0_80 = arith.constant 0 : index
    %c0_81 = arith.constant 0 : index
    %c0_82 = arith.constant 0 : index
    %109 = vector.load %arg5[%c8_79, %c0_80, %c0_81, %c0_82] : memref<9x2x4x4xbf16, #tpu.memory_space<vmem>>, vector<1x1x4x4xbf16>
    %110 = vector.shape_cast %109 : vector<1x1x4x4xbf16> to vector<4x4xbf16>
    %cst_83 = arith.constant dense<0.000000e+00> : vector<256x4xf32>
    %111 = tpu.matmul %108, %110, %cst_83 {dimension_numbers = #tpu.dot_dimension_numbers<[1], [0], [0], [1], [0, 0, 1, 1], [], []>} : vector<256x4xbf16>, vector<4x4xbf16>, vector<256x4xf32> -> vector<256x4xf32>
    %112 = arith.addf %102, %111 : vector<256x4xf32>
    %cst_84 = arith.constant dense<0.000000e+00> : vector<64x4xf32>
    %113 = tpu.matmul %2, %112, %cst_84 {dimension_numbers = #tpu.dot_dimension_numbers<[1], [0], [0], [1], [0, 0, 1, 1], [], []>} : vector<64x256xf32>, vector<256x4xf32>, vector<64x4xf32> -> vector<64x4xf32>
    %c0_85 = arith.constant 0 : index
    %c0_86 = arith.constant 0 : index
    %c0_87 = arith.constant 0 : index
    %114 = vector.load %arg6[%c0_85, %c0_86, %c0_87] : memref<2x1x4xf32, #tpu.memory_space<vmem>>, vector<1x1x4xf32>
    %115 = vector.shape_cast %114 : vector<1x1x4xf32> to vector<1x4xf32>
    %116 = vector.broadcast %115 : vector<1x4xf32> to vector<64x4xf32>
    %117 = arith.mulf %113, %116 : vector<64x4xf32>
    %c0_88 = arith.constant 0 : index
    %c0_89 = arith.constant 0 : index
    %c0_90 = arith.constant 0 : index
    %118 = vector.load %arg7[%c0_88, %c0_89, %c0_90] : memref<2x1x4xf32, #tpu.memory_space<vmem>>, vector<1x1x4xf32>
    %119 = vector.shape_cast %118 : vector<1x1x4xf32> to vector<1x4xf32>
    %120 = vector.broadcast %119 : vector<1x4xf32> to vector<64x4xf32>
    %121 = arith.addf %117, %120 : vector<64x4xf32>
    %cst_91 = arith.constant 0.000000e+00 : f32
    %122 = vector.broadcast %cst_91 : f32 to vector<64x4xf32>
    %123 = arith.maximumf %121, %122 : vector<64x4xf32>
    %124 = arith.truncf %123 : vector<64x4xf32> to vector<64x4xbf16>
    %c0_92 = arith.constant 0 : index
    %c0_93 = arith.constant 0 : index
    %c0_94 = arith.constant 0 : index
    %125 = vector.load %arg8[%c0_92, %c0_93, %c0_94] : memref<2x4x16xbf16, #tpu.memory_space<vmem>>, vector<1x4x16xbf16>
    %126 = vector.shape_cast %125 : vector<1x4x16xbf16> to vector<4x16xbf16>
    %cst_95 = arith.constant dense<0.000000e+00> : vector<64x16xf32>
    %127 = tpu.matmul %124, %126, %cst_95 {dimension_numbers = #tpu.dot_dimension_numbers<[1], [0], [0], [1], [0, 0, 1, 1], [], []>} : vector<64x4xbf16>, vector<4x16xbf16>, vector<64x16xf32> -> vector<64x16xf32>
    %c0_96 = arith.constant 0 : index
    %c0_97 = arith.constant 0 : index
    %128 = vector.load %arg9[%c0_96, %c0_97] : memref<1x16xf32, #tpu.memory_space<vmem>>, vector<1x16xf32>
    %129 = vector.broadcast %128 : vector<1x16xf32> to vector<64x16xf32>
    %130 = arith.mulf %127, %129 : vector<64x16xf32>
    %131 = arith.addf %13, %130 : vector<64x16xf32>
    %c1_98 = arith.constant 1 : index
    %c0_99 = arith.constant 0 : index
    %c0_100 = arith.constant 0 : index
    %132 = vector.load %arg2[%c1_98, %c0_99, %c0_100] : memref<2x8x4xbf16, #tpu.memory_space<vmem>>, vector<1x8x4xbf16>
    %133 = vector.shape_cast %132 : vector<1x8x4xbf16> to vector<8x4xbf16>
    %cst_101 = arith.constant dense<0.000000e+00> : vector<256x4xf32>
    %134 = tpu.matmul %1, %133, %cst_101 {dimension_numbers = #tpu.dot_dimension_numbers<[1], [0], [0], [1], [0, 0, 1, 1], [], []>} : vector<256x8xbf16>, vector<8x4xbf16>, vector<256x4xf32> -> vector<256x4xf32>
    %c1_102 = arith.constant 1 : index
    %c0_103 = arith.constant 0 : index
    %c0_104 = arith.constant 0 : index
    %135 = vector.load %arg3[%c1_102, %c0_103, %c0_104] : memref<2x1x4xf32, #tpu.memory_space<vmem>>, vector<1x1x4xf32>
    %136 = vector.shape_cast %135 : vector<1x1x4xf32> to vector<1x4xf32>
    %137 = vector.broadcast %136 : vector<1x4xf32> to vector<256x4xf32>
    %138 = arith.mulf %134, %137 : vector<256x4xf32>
    %c1_105 = arith.constant 1 : index
    %c0_106 = arith.constant 0 : index
    %c0_107 = arith.constant 0 : index
    %139 = vector.load %arg4[%c1_105, %c0_106, %c0_107] : memref<2x1x4xf32, #tpu.memory_space<vmem>>, vector<1x1x4xf32>
    %140 = vector.shape_cast %139 : vector<1x1x4xf32> to vector<1x4xf32>
    %141 = vector.broadcast %140 : vector<1x4xf32> to vector<256x4xf32>
    %142 = arith.addf %138, %141 : vector<256x4xf32>
    %cst_108 = arith.constant 0.000000e+00 : f32
    %143 = vector.broadcast %cst_108 : f32 to vector<256x4xf32>
    %144 = arith.maximumf %142, %143 : vector<256x4xf32>
    %cst_109 = arith.constant 0.000000e+00 : f32
    %145 = vector.broadcast %cst_109 : f32 to vector<256x4xf32>
    %c17_i32_110 = arith.constant 17 : i32
    %146 = tpu.dynamic_rotate %144 by %c17_i32_110 dim 0 : vector<256x4xf32>, i32 -> vector<256x4xf32>
    %c0_111 = arith.constant 0 : index
    %c0_112 = arith.constant 0 : index
    %c0_113 = arith.constant 0 : index
    %147 = vector.load %arg14[%c0_111, %c0_112, %c0_113] : memref<9x256x1xf32, #tpu.memory_space<vmem>>, vector<1x256x1xf32>
    %148 = vector.shape_cast %147 : vector<1x256x1xf32> to vector<256x1xf32>
    %149 = vector.broadcast %148 : vector<256x1xf32> to vector<256x4xf32>
    %150 = arith.mulf %146, %149 : vector<256x4xf32>
    %151 = arith.truncf %150 : vector<256x4xf32> to vector<256x4xbf16>
    %c0_114 = arith.constant 0 : index
    %c1_115 = arith.constant 1 : index
    %c0_116 = arith.constant 0 : index
    %c0_117 = arith.constant 0 : index
    %152 = vector.load %arg5[%c0_114, %c1_115, %c0_116, %c0_117] : memref<9x2x4x4xbf16, #tpu.memory_space<vmem>>, vector<1x1x4x4xbf16>
    %153 = vector.shape_cast %152 : vector<1x1x4x4xbf16> to vector<4x4xbf16>
    %cst_118 = arith.constant dense<0.000000e+00> : vector<256x4xf32>
    %154 = tpu.matmul %151, %153, %cst_118 {dimension_numbers = #tpu.dot_dimension_numbers<[1], [0], [0], [1], [0, 0, 1, 1], [], []>} : vector<256x4xbf16>, vector<4x4xbf16>, vector<256x4xf32> -> vector<256x4xf32>
    %155 = arith.addf %145, %154 : vector<256x4xf32>
    %c16_i32_119 = arith.constant 16 : i32
    %156 = tpu.dynamic_rotate %144 by %c16_i32_119 dim 0 : vector<256x4xf32>, i32 -> vector<256x4xf32>
    %c1_120 = arith.constant 1 : index
    %c0_121 = arith.constant 0 : index
    %c0_122 = arith.constant 0 : index
    %157 = vector.load %arg14[%c1_120, %c0_121, %c0_122] : memref<9x256x1xf32, #tpu.memory_space<vmem>>, vector<1x256x1xf32>
    %158 = vector.shape_cast %157 : vector<1x256x1xf32> to vector<256x1xf32>
    %159 = vector.broadcast %158 : vector<256x1xf32> to vector<256x4xf32>
    %160 = arith.mulf %156, %159 : vector<256x4xf32>
    %161 = arith.truncf %160 : vector<256x4xf32> to vector<256x4xbf16>
    %c1_123 = arith.constant 1 : index
    %c1_124 = arith.constant 1 : index
    %c0_125 = arith.constant 0 : index
    %c0_126 = arith.constant 0 : index
    %162 = vector.load %arg5[%c1_123, %c1_124, %c0_125, %c0_126] : memref<9x2x4x4xbf16, #tpu.memory_space<vmem>>, vector<1x1x4x4xbf16>
    %163 = vector.shape_cast %162 : vector<1x1x4x4xbf16> to vector<4x4xbf16>
    %cst_127 = arith.constant dense<0.000000e+00> : vector<256x4xf32>
    %164 = tpu.matmul %161, %163, %cst_127 {dimension_numbers = #tpu.dot_dimension_numbers<[1], [0], [0], [1], [0, 0, 1, 1], [], []>} : vector<256x4xbf16>, vector<4x4xbf16>, vector<256x4xf32> -> vector<256x4xf32>
    %165 = arith.addf %155, %164 : vector<256x4xf32>
    %c15_i32_128 = arith.constant 15 : i32
    %166 = tpu.dynamic_rotate %144 by %c15_i32_128 dim 0 : vector<256x4xf32>, i32 -> vector<256x4xf32>
    %c2_129 = arith.constant 2 : index
    %c0_130 = arith.constant 0 : index
    %c0_131 = arith.constant 0 : index
    %167 = vector.load %arg14[%c2_129, %c0_130, %c0_131] : memref<9x256x1xf32, #tpu.memory_space<vmem>>, vector<1x256x1xf32>
    %168 = vector.shape_cast %167 : vector<1x256x1xf32> to vector<256x1xf32>
    %169 = vector.broadcast %168 : vector<256x1xf32> to vector<256x4xf32>
    %170 = arith.mulf %166, %169 : vector<256x4xf32>
    %171 = arith.truncf %170 : vector<256x4xf32> to vector<256x4xbf16>
    %c2_132 = arith.constant 2 : index
    %c1_133 = arith.constant 1 : index
    %c0_134 = arith.constant 0 : index
    %c0_135 = arith.constant 0 : index
    %172 = vector.load %arg5[%c2_132, %c1_133, %c0_134, %c0_135] : memref<9x2x4x4xbf16, #tpu.memory_space<vmem>>, vector<1x1x4x4xbf16>
    %173 = vector.shape_cast %172 : vector<1x1x4x4xbf16> to vector<4x4xbf16>
    %cst_136 = arith.constant dense<0.000000e+00> : vector<256x4xf32>
    %174 = tpu.matmul %171, %173, %cst_136 {dimension_numbers = #tpu.dot_dimension_numbers<[1], [0], [0], [1], [0, 0, 1, 1], [], []>} : vector<256x4xbf16>, vector<4x4xbf16>, vector<256x4xf32> -> vector<256x4xf32>
    %175 = arith.addf %165, %174 : vector<256x4xf32>
    %c1_i32_137 = arith.constant 1 : i32
    %176 = tpu.dynamic_rotate %144 by %c1_i32_137 dim 0 : vector<256x4xf32>, i32 -> vector<256x4xf32>
    %c3_138 = arith.constant 3 : index
    %c0_139 = arith.constant 0 : index
    %c0_140 = arith.constant 0 : index
    %177 = vector.load %arg14[%c3_138, %c0_139, %c0_140] : memref<9x256x1xf32, #tpu.memory_space<vmem>>, vector<1x256x1xf32>
    %178 = vector.shape_cast %177 : vector<1x256x1xf32> to vector<256x1xf32>
    %179 = vector.broadcast %178 : vector<256x1xf32> to vector<256x4xf32>
    %180 = arith.mulf %176, %179 : vector<256x4xf32>
    %181 = arith.truncf %180 : vector<256x4xf32> to vector<256x4xbf16>
    %c3_141 = arith.constant 3 : index
    %c1_142 = arith.constant 1 : index
    %c0_143 = arith.constant 0 : index
    %c0_144 = arith.constant 0 : index
    %182 = vector.load %arg5[%c3_141, %c1_142, %c0_143, %c0_144] : memref<9x2x4x4xbf16, #tpu.memory_space<vmem>>, vector<1x1x4x4xbf16>
    %183 = vector.shape_cast %182 : vector<1x1x4x4xbf16> to vector<4x4xbf16>
    %cst_145 = arith.constant dense<0.000000e+00> : vector<256x4xf32>
    %184 = tpu.matmul %181, %183, %cst_145 {dimension_numbers = #tpu.dot_dimension_numbers<[1], [0], [0], [1], [0, 0, 1, 1], [], []>} : vector<256x4xbf16>, vector<4x4xbf16>, vector<256x4xf32> -> vector<256x4xf32>
    %185 = arith.addf %175, %184 : vector<256x4xf32>
    %186 = arith.truncf %144 : vector<256x4xf32> to vector<256x4xbf16>
    %c4_146 = arith.constant 4 : index
    %c1_147 = arith.constant 1 : index
    %c0_148 = arith.constant 0 : index
    %c0_149 = arith.constant 0 : index
    %187 = vector.load %arg5[%c4_146, %c1_147, %c0_148, %c0_149] : memref<9x2x4x4xbf16, #tpu.memory_space<vmem>>, vector<1x1x4x4xbf16>
    %188 = vector.shape_cast %187 : vector<1x1x4x4xbf16> to vector<4x4xbf16>
    %cst_150 = arith.constant dense<0.000000e+00> : vector<256x4xf32>
    %189 = tpu.matmul %186, %188, %cst_150 {dimension_numbers = #tpu.dot_dimension_numbers<[1], [0], [0], [1], [0, 0, 1, 1], [], []>} : vector<256x4xbf16>, vector<4x4xbf16>, vector<256x4xf32> -> vector<256x4xf32>
    %190 = arith.addf %185, %189 : vector<256x4xf32>
    %c255_i32_151 = arith.constant 255 : i32
    %191 = tpu.dynamic_rotate %144 by %c255_i32_151 dim 0 : vector<256x4xf32>, i32 -> vector<256x4xf32>
    %c5_152 = arith.constant 5 : index
    %c0_153 = arith.constant 0 : index
    %c0_154 = arith.constant 0 : index
    %192 = vector.load %arg14[%c5_152, %c0_153, %c0_154] : memref<9x256x1xf32, #tpu.memory_space<vmem>>, vector<1x256x1xf32>
    %193 = vector.shape_cast %192 : vector<1x256x1xf32> to vector<256x1xf32>
    %194 = vector.broadcast %193 : vector<256x1xf32> to vector<256x4xf32>
    %195 = arith.mulf %191, %194 : vector<256x4xf32>
    %196 = arith.truncf %195 : vector<256x4xf32> to vector<256x4xbf16>
    %c5_155 = arith.constant 5 : index
    %c1_156 = arith.constant 1 : index
    %c0_157 = arith.constant 0 : index
    %c0_158 = arith.constant 0 : index
    %197 = vector.load %arg5[%c5_155, %c1_156, %c0_157, %c0_158] : memref<9x2x4x4xbf16, #tpu.memory_space<vmem>>, vector<1x1x4x4xbf16>
    %198 = vector.shape_cast %197 : vector<1x1x4x4xbf16> to vector<4x4xbf16>
    %cst_159 = arith.constant dense<0.000000e+00> : vector<256x4xf32>
    %199 = tpu.matmul %196, %198, %cst_159 {dimension_numbers = #tpu.dot_dimension_numbers<[1], [0], [0], [1], [0, 0, 1, 1], [], []>} : vector<256x4xbf16>, vector<4x4xbf16>, vector<256x4xf32> -> vector<256x4xf32>
    %200 = arith.addf %190, %199 : vector<256x4xf32>
    %c241_i32_160 = arith.constant 241 : i32
    %201 = tpu.dynamic_rotate %144 by %c241_i32_160 dim 0 : vector<256x4xf32>, i32 -> vector<256x4xf32>
    %c6_161 = arith.constant 6 : index
    %c0_162 = arith.constant 0 : index
    %c0_163 = arith.constant 0 : index
    %202 = vector.load %arg14[%c6_161, %c0_162, %c0_163] : memref<9x256x1xf32, #tpu.memory_space<vmem>>, vector<1x256x1xf32>
    %203 = vector.shape_cast %202 : vector<1x256x1xf32> to vector<256x1xf32>
    %204 = vector.broadcast %203 : vector<256x1xf32> to vector<256x4xf32>
    %205 = arith.mulf %201, %204 : vector<256x4xf32>
    %206 = arith.truncf %205 : vector<256x4xf32> to vector<256x4xbf16>
    %c6_164 = arith.constant 6 : index
    %c1_165 = arith.constant 1 : index
    %c0_166 = arith.constant 0 : index
    %c0_167 = arith.constant 0 : index
    %207 = vector.load %arg5[%c6_164, %c1_165, %c0_166, %c0_167] : memref<9x2x4x4xbf16, #tpu.memory_space<vmem>>, vector<1x1x4x4xbf16>
    %208 = vector.shape_cast %207 : vector<1x1x4x4xbf16> to vector<4x4xbf16>
    %cst_168 = arith.constant dense<0.000000e+00> : vector<256x4xf32>
    %209 = tpu.matmul %206, %208, %cst_168 {dimension_numbers = #tpu.dot_dimension_numbers<[1], [0], [0], [1], [0, 0, 1, 1], [], []>} : vector<256x4xbf16>, vector<4x4xbf16>, vector<256x4xf32> -> vector<256x4xf32>
    %210 = arith.addf %200, %209 : vector<256x4xf32>
    %c240_i32_169 = arith.constant 240 : i32
    %211 = tpu.dynamic_rotate %144 by %c240_i32_169 dim 0 : vector<256x4xf32>, i32 -> vector<256x4xf32>
    %c7_170 = arith.constant 7 : index
    %c0_171 = arith.constant 0 : index
    %c0_172 = arith.constant 0 : index
    %212 = vector.load %arg14[%c7_170, %c0_171, %c0_172] : memref<9x256x1xf32, #tpu.memory_space<vmem>>, vector<1x256x1xf32>
    %213 = vector.shape_cast %212 : vector<1x256x1xf32> to vector<256x1xf32>
    %214 = vector.broadcast %213 : vector<256x1xf32> to vector<256x4xf32>
    %215 = arith.mulf %211, %214 : vector<256x4xf32>
    %216 = arith.truncf %215 : vector<256x4xf32> to vector<256x4xbf16>
    %c7_173 = arith.constant 7 : index
    %c1_174 = arith.constant 1 : index
    %c0_175 = arith.constant 0 : index
    %c0_176 = arith.constant 0 : index
    %217 = vector.load %arg5[%c7_173, %c1_174, %c0_175, %c0_176] : memref<9x2x4x4xbf16, #tpu.memory_space<vmem>>, vector<1x1x4x4xbf16>
    %218 = vector.shape_cast %217 : vector<1x1x4x4xbf16> to vector<4x4xbf16>
    %cst_177 = arith.constant dense<0.000000e+00> : vector<256x4xf32>
    %219 = tpu.matmul %216, %218, %cst_177 {dimension_numbers = #tpu.dot_dimension_numbers<[1], [0], [0], [1], [0, 0, 1, 1], [], []>} : vector<256x4xbf16>, vector<4x4xbf16>, vector<256x4xf32> -> vector<256x4xf32>
    %220 = arith.addf %210, %219 : vector<256x4xf32>
    %c239_i32_178 = arith.constant 239 : i32
    %221 = tpu.dynamic_rotate %144 by %c239_i32_178 dim 0 : vector<256x4xf32>, i32 -> vector<256x4xf32>
    %c8_179 = arith.constant 8 : index
    %c0_180 = arith.constant 0 : index
    %c0_181 = arith.constant 0 : index
    %222 = vector.load %arg14[%c8_179, %c0_180, %c0_181] : memref<9x256x1xf32, #tpu.memory_space<vmem>>, vector<1x256x1xf32>
    %223 = vector.shape_cast %222 : vector<1x256x1xf32> to vector<256x1xf32>
    %224 = vector.broadcast %223 : vector<256x1xf32> to vector<256x4xf32>
    %225 = arith.mulf %221, %224 : vector<256x4xf32>
    %226 = arith.truncf %225 : vector<256x4xf32> to vector<256x4xbf16>
    %c8_182 = arith.constant 8 : index
    %c1_183 = arith.constant 1 : index
    %c0_184 = arith.constant 0 : index
    %c0_185 = arith.constant 0 : index
    %227 = vector.load %arg5[%c8_182, %c1_183, %c0_184, %c0_185] : memref<9x2x4x4xbf16, #tpu.memory_space<vmem>>, vector<1x1x4x4xbf16>
    %228 = vector.shape_cast %227 : vector<1x1x4x4xbf16> to vector<4x4xbf16>
    %cst_186 = arith.constant dense<0.000000e+00> : vector<256x4xf32>
    %229 = tpu.matmul %226, %228, %cst_186 {dimension_numbers = #tpu.dot_dimension_numbers<[1], [0], [0], [1], [0, 0, 1, 1], [], []>} : vector<256x4xbf16>, vector<4x4xbf16>, vector<256x4xf32> -> vector<256x4xf32>
    %230 = arith.addf %220, %229 : vector<256x4xf32>
    %cst_187 = arith.constant dense<0.000000e+00> : vector<64x4xf32>
    %231 = tpu.matmul %2, %230, %cst_187 {dimension_numbers = #tpu.dot_dimension_numbers<[1], [0], [0], [1], [0, 0, 1, 1], [], []>} : vector<64x256xf32>, vector<256x4xf32>, vector<64x4xf32> -> vector<64x4xf32>
    %c1_188 = arith.constant 1 : index
    %c0_189 = arith.constant 0 : index
    %c0_190 = arith.constant 0 : index
    %232 = vector.load %arg6[%c1_188, %c0_189, %c0_190] : memref<2x1x4xf32, #tpu.memory_space<vmem>>, vector<1x1x4xf32>
    %233 = vector.shape_cast %232 : vector<1x1x4xf32> to vector<1x4xf32>
    %234 = vector.broadcast %233 : vector<1x4xf32> to vector<64x4xf32>
    %235 = arith.mulf %231, %234 : vector<64x4xf32>
    %c1_191 = arith.constant 1 : index
    %c0_192 = arith.constant 0 : index
    %c0_193 = arith.constant 0 : index
    %236 = vector.load %arg7[%c1_191, %c0_192, %c0_193] : memref<2x1x4xf32, #tpu.memory_space<vmem>>, vector<1x1x4xf32>
    %237 = vector.shape_cast %236 : vector<1x1x4xf32> to vector<1x4xf32>
    %238 = vector.broadcast %237 : vector<1x4xf32> to vector<64x4xf32>
    %239 = arith.addf %235, %238 : vector<64x4xf32>
    %cst_194 = arith.constant 0.000000e+00 : f32
    %240 = vector.broadcast %cst_194 : f32 to vector<64x4xf32>
    %241 = arith.maximumf %239, %240 : vector<64x4xf32>
    %242 = arith.truncf %241 : vector<64x4xf32> to vector<64x4xbf16>
    %c1_195 = arith.constant 1 : index
    %c0_196 = arith.constant 0 : index
    %c0_197 = arith.constant 0 : index
    %243 = vector.load %arg8[%c1_195, %c0_196, %c0_197] : memref<2x4x16xbf16, #tpu.memory_space<vmem>>, vector<1x4x16xbf16>
    %244 = vector.shape_cast %243 : vector<1x4x16xbf16> to vector<4x16xbf16>
    %cst_198 = arith.constant dense<0.000000e+00> : vector<64x16xf32>
    %245 = tpu.matmul %242, %244, %cst_198 {dimension_numbers = #tpu.dot_dimension_numbers<[1], [0], [0], [1], [0, 0, 1, 1], [], []>} : vector<64x4xbf16>, vector<4x16xbf16>, vector<64x16xf32> -> vector<64x16xf32>
    %c0_199 = arith.constant 0 : index
    %c0_200 = arith.constant 0 : index
    %246 = vector.load %arg9[%c0_199, %c0_200] : memref<1x16xf32, #tpu.memory_space<vmem>>, vector<1x16xf32>
    %247 = vector.broadcast %246 : vector<1x16xf32> to vector<64x16xf32>
    %248 = arith.mulf %245, %247 : vector<64x16xf32>
    %249 = arith.addf %131, %248 : vector<64x16xf32>
    %c0_201 = arith.constant 0 : index
    %c0_202 = arith.constant 0 : index
    %250 = vector.load %arg10[%c0_201, %c0_202] : memref<1x16xf32, #tpu.memory_space<vmem>>, vector<1x16xf32>
    %251 = vector.broadcast %250 : vector<1x16xf32> to vector<64x16xf32>
    %252 = arith.addf %249, %251 : vector<64x16xf32>
    %cst_203 = arith.constant 0.000000e+00 : f32
    %253 = vector.broadcast %cst_203 : f32 to vector<64x16xf32>
    %254 = arith.maximumf %252, %253 : vector<64x16xf32>
    %c0_204 = arith.constant 0 : index
    %c0_205 = arith.constant 0 : index
    %c0_206 = arith.constant 0 : index
    %255 = vector.load %arg16[%c0_204, %c0_205, %c0_206] : memref<1x64x16xf32, #tpu.memory_space<vmem>>, vector<1x64x16xf32>
    %256 = vector.shape_cast %255 : vector<1x64x16xf32> to vector<64x16xf32>
    %257 = vector.shape_cast %254 : vector<64x16xf32> to vector<1x64x16xf32>
    tpu.vector_store %arg16[%c0_204, %c0_205, %c0_206], %257 {strides = array<i32>} : memref<1x64x16xf32, #tpu.memory_space<vmem>>, vector<1x64x16xf32>,
    return
  }
  func.func @transform_0(%arg0: i32) -> (i32, i32, i32) {
    %c0_i32 = arith.constant 0 : i32
    %c0_i32_0 = arith.constant 0 : i32
    %c0_i32_1 = arith.constant 0 : i32
    return %arg0, %c0_i32, %c0_i32_0 : i32, i32, i32
  }
  func.func @transform_1(%arg0: i32) -> (i32, i32, i32) {
    %c0_i32 = arith.constant 0 : i32
    %c0_i32_0 = arith.constant 0 : i32
    %c0_i32_1 = arith.constant 0 : i32
    %c0_i32_2 = arith.constant 0 : i32
    return %c0_i32, %c0_i32_0, %c0_i32_1 : i32, i32, i32
  }
  func.func @transform_2(%arg0: i32) -> (i32, i32, i32) {
    %c0_i32 = arith.constant 0 : i32
    %c0_i32_0 = arith.constant 0 : i32
    %c0_i32_1 = arith.constant 0 : i32
    %c0_i32_2 = arith.constant 0 : i32
    return %c0_i32, %c0_i32_0, %c0_i32_1 : i32, i32, i32
  }
  func.func @transform_3(%arg0: i32) -> (i32, i32, i32) {
    %c0_i32 = arith.constant 0 : i32
    %c0_i32_0 = arith.constant 0 : i32
    %c0_i32_1 = arith.constant 0 : i32
    %c0_i32_2 = arith.constant 0 : i32
    return %c0_i32, %c0_i32_0, %c0_i32_1 : i32, i32, i32
  }
  func.func @transform_4(%arg0: i32) -> (i32, i32, i32, i32) {
    %c0_i32 = arith.constant 0 : i32
    %c0_i32_0 = arith.constant 0 : i32
    %c0_i32_1 = arith.constant 0 : i32
    %c0_i32_2 = arith.constant 0 : i32
    %c0_i32_3 = arith.constant 0 : i32
    return %c0_i32, %c0_i32_0, %c0_i32_1, %c0_i32_2 : i32, i32, i32, i32
  }
  func.func @transform_5(%arg0: i32) -> (i32, i32, i32) {
    %c0_i32 = arith.constant 0 : i32
    %c0_i32_0 = arith.constant 0 : i32
    %c0_i32_1 = arith.constant 0 : i32
    %c0_i32_2 = arith.constant 0 : i32
    return %c0_i32, %c0_i32_0, %c0_i32_1 : i32, i32, i32
  }
  func.func @transform_6(%arg0: i32) -> (i32, i32, i32) {
    %c0_i32 = arith.constant 0 : i32
    %c0_i32_0 = arith.constant 0 : i32
    %c0_i32_1 = arith.constant 0 : i32
    %c0_i32_2 = arith.constant 0 : i32
    return %c0_i32, %c0_i32_0, %c0_i32_1 : i32, i32, i32
  }
  func.func @transform_7(%arg0: i32) -> (i32, i32, i32) {
    %c0_i32 = arith.constant 0 : i32
    %c0_i32_0 = arith.constant 0 : i32
    %c0_i32_1 = arith.constant 0 : i32
    %c0_i32_2 = arith.constant 0 : i32
    return %c0_i32, %c0_i32_0, %c0_i32_1 : i32, i32, i32
  }
  func.func @transform_8(%arg0: i32) -> (i32, i32) {
    %c0_i32 = arith.constant 0 : i32
    %c0_i32_0 = arith.constant 0 : i32
    %c0_i32_1 = arith.constant 0 : i32
    return %c0_i32, %c0_i32_0 : i32, i32
  }
  func.func @transform_9(%arg0: i32) -> (i32, i32) {
    %c0_i32 = arith.constant 0 : i32
    %c0_i32_0 = arith.constant 0 : i32
    %c0_i32_1 = arith.constant 0 : i32
    return %c0_i32, %c0_i32_0 : i32, i32
  }
  func.func @transform_10(%arg0: i32) -> (i32, i32) {
    %c0_i32 = arith.constant 0 : i32
    %c0_i32_0 = arith.constant 0 : i32
    %c0_i32_1 = arith.constant 0 : i32
    return %c0_i32, %c0_i32_0 : i32, i32
  }
  func.func @transform_11(%arg0: i32) -> (i32, i32) {
    %c0_i32 = arith.constant 0 : i32
    %c0_i32_0 = arith.constant 0 : i32
    %c0_i32_1 = arith.constant 0 : i32
    return %c0_i32, %c0_i32_0 : i32, i32
  }
  func.func @transform_12(%arg0: i32) -> (i32, i32) {
    %c0_i32 = arith.constant 0 : i32
    %c0_i32_0 = arith.constant 0 : i32
    %c0_i32_1 = arith.constant 0 : i32
    return %c0_i32, %c0_i32_0 : i32, i32
  }
  func.func @transform_13(%arg0: i32) -> (i32, i32, i32) {
    %c0_i32 = arith.constant 0 : i32
    %c0_i32_0 = arith.constant 0 : i32
    %c0_i32_1 = arith.constant 0 : i32
    %c0_i32_2 = arith.constant 0 : i32
    return %c0_i32, %c0_i32_0, %c0_i32_1 : i32, i32, i32
  }
  func.func @transform_14(%arg0: i32) -> (i32, i32) {
    %c0_i32 = arith.constant 0 : i32
    %c0_i32_0 = arith.constant 0 : i32
    %c0_i32_1 = arith.constant 0 : i32
    return %c0_i32, %c0_i32_0 : i32, i32
  }
  func.func @transform_15(%arg0: i32) -> (i32, i32, i32) {
    %c0_i32 = arith.constant 0 : i32
    %c0_i32_0 = arith.constant 0 : i32
    %c0_i32_1 = arith.constant 0 : i32
    return %arg0, %c0_i32, %c0_i32_0 : i32, i32, i32
  }
}

</mosaic_0001>

<bundles_post_ra>
// kernel: resnext_block_forward.1
= control target key start
LH: loop header
LB: loop body
LE: loop exit
PB: predicated region body
PF: predicated region fallthrough
CT: control target
= control target key end

     0   :  { %s14071_s0 = inlined_call_operand.vmem [shape: bf16[2,256,8], index: 0, kind: input, shape index: {}]   ;;  %s14072_s1 = inlined_call_operand.vmem [shape: bf16[2,8,4], index: 1, kind: input, shape index: {}]   ;;  %s14073_s2 = inlined_call_operand.vmem [shape: f32[2,1,4], index: 2, kind: input, shape index: {}]   ;;  %s14074_s3 = inlined_call_operand.vmem [shape: f32[2,1,4], index: 3, kind: input, shape index: {}]   ;;  %s14075_s4 = inlined_call_operand.vmem [shape: bf16[9,2,4,4], index: 4, kind: input, shape index: {}]   ;;  %s14076_s5 = inlined_call_operand.vmem [shape: f32[2,1,4], index: 5, kind: input, shape index: {}]   ;;  %s14077_s6 = inlined_call_operand.vmem [shape: f32[2,1,4], index: 6, kind: input, shape index: {}]   ;;  %s14078_s7 = inlined_call_operand.vmem [shape: bf16[2,4,16], index: 7, kind: input, shape index: {}]   ;;  %s14079_s8 = inlined_call_operand.vmem [shape: f32[1,16], index: 8, kind: input, shape index: {}]   ;;  %s14080_s9 = inlined_call_operand.vmem [shape: f32[1,16], index: 9, kind: input, shape index: {}]   ;;  %s14081_s10 = inlined_call_operand.vmem [shape: bf16[8,16], index: 10, kind: input, shape index: {}]   ;;  %s14082_s11 = inlined_call_operand.vmem [shape: f32[1,16], index: 11, kind: input, shape index: {}]   ;;  %s14083_s12 = inlined_call_operand.vmem [shape: f32[1,16], index: 12, kind: input, shape index: {}]   ;;  %s14084_s13 = inlined_call_operand.vmem [shape: f32[9,256,1], index: 13, kind: input, shape index: {}]   ;;  %s14085_s14 = inlined_call_operand.vmem [shape: f32[64,256], index: 14, kind: input, shape index: {}]   ;;  %s14086_s15 = inlined_call_operand.hbm [shape: f32[2,64,16], index: 15, kind: output, shape index: {}]  }
   0x1   :  { %14738 = sst [smem:[#allocation337_spill]] %s14071_s0 }
   0x2   :  { %14739 = sst [smem:[#allocation338_spill]] %s14072_s1 }
   0x3   :  { %20 = vsyncpa [#allocation3], 0 }
   0x4   :  { %22 = vsyncpa [#allocation3 + $0x1], 0  ;;  %s8286_s18 = smov 0   ;;  %s8288_s19 = smov 0  }
   0x5   :  { %s8290_s20 = smov 0   ;;  %s8292_s21 = smov 0  }
   0x6 LB: > { %14740 = sst [smem:[#allocation5_spill]] %s8197_s20  ;;  %s8307_s22 = sadd.s32 4294967295, %s8201_s21   ;;  %s8201_s21 = sphi %s8292_s21, %s16333_s21   ;;  %s8197_s20 = sphi %s8290_s20, %s16335_s20   ;;  %s8193_s19 = sphi %s8288_s19, %s16337_s19   ;;  %s8189_s18 = sphi %s8286_s18, %s16336_s18  }
   0x7   : > { %s7336_s23 = sadd.s32 4294967294, %s8201_s21   ;;  %s8311_s24 = sadd.s32 1, %s8201_s21  }
   0x8   : > { %14741 = sst [smem:[#allocation6_spill]] %s8311_s24  ;;  %s355_s25 = sadd.s32 1, %s8197_s20 }
   0x9   : > { %s352_s26 = ssub.s32 %s8201_s21, %s8311_s24  ;;  %p365_p0 = scmp.ne.s32.totalorder %s8197_s20, %s8193_s19 }
   0xa   : > { %p353_p1 = scmp.eq.s32.totalorder %s352_s26, 0  ;;  %p366_p2 = scmp.eq.s32.totalorder %s8307_s22, 1 }
   0xb   : > { %p371_p3 = scmp.ne.s32.totalorder %s8193_s19, %s8189_s18  ;;  %p372_p4 = scmp.eq.s32.totalorder %s7336_s23, 1 }
   0xc   : > { %s8322_s27 = scalar_select %p353_p1, %s8197_s20, %s355_s25  }
   0xd   : > { %p8324_p5 = por %p366_p2, %p365_p0  ;;  %p8328_p6 = por %p372_p4, %p371_p3 }
   0xe   : > { %14742 = sst [smem:[#allocation7_spill]] %s8322_s27  ;;  %p7339_p7 = scmp.ge.s32.totalorder %s8201_s21, 1 }
   0xf   : > { %s14744_s29 = scalar_select %p8328_p6, 1, 0 }
  0x10   : > { %p440_p8 = scmp.lt.s32.totalorder %s8201_s21, 3 }
  0x11   : > { %14745 = sst [smem:[#allocation8_spill]] %s14744_s29 }
  0x12   : > { %p441_p9 = pnand %p7339_p7, %p440_p8 }
  0x14   : > { %444 = sbr.rel (%p441_p9) target bundleno = 3349 (0xd15), region = 80 }
  0x19   : > { %v7431_v0 = vld [vmem:[%s14084_s13 + $0x120] sm:$0xff]  ;;  %v7429_v1 = vld [vmem:[%s14084_s13 + $0x110] sm:$0xff]  ;;  %p488_p10 = scmp.lt.s32.totalorder %s8307_s22, 1  ;;  %v8203_v3 = vmov 0   ;;  %s14746_s0 = sld [smem:[#allocation337_spill]]  ;;  %v7432_v9 = vld [vmem:[%s14084_s13 + $0x128] sm:$0xff] }
  0x1a   : > { %v7427_v2 = vld [vmem:[%s14084_s13 + $0x100] sm:$0xff]  ;;  %8071 = vset.pattern.permute.xlu2 %v8203_v3  ;;  %8070 = vset.pattern.permute.xlu1 %v8203_v3  ;;  %v7430_v11 = vld [vmem:[%s14084_s13 + $0x118] sm:$0xff]  ;;  %v7428_v12 = vld [vmem:[%s14084_s13 + $0x108] sm:$0xff]  ;;  %vm674_vm0 = vcmask 1043456   ;;  %vm661_vm1 = vcmask 64512   ;;  %s14786_s1 = sld [smem:[#allocation338_spill]] }
  0x1b   : > { %8069 = vset.pattern.permute.xlu0 %v8203_v3  ;;  %1419 = vperm.xlu2 %8071, %v7431_v0   ;;  %s489_s27 = scalar_select %p488_p10, %s8307_s22, 1  ;;  %v7435_v24 = vld [vmem:[%s14084_s13 + $0x140] sm:$0xff]  ;;  %v7434_v25 = vld [vmem:[%s14084_s13 + $0x138] sm:$0xff]  ;;  %v7433_v28 = vld [vmem:[%s14084_s13 + $0x130] sm:$0xff]  ;;  %vm1656_vm4 = vcmask 1041408   ;;  %vm1607_vm5 = vcmask 31744  }
  0x1c   : > { %1409 = vperm.xlu1 %8070, %v7429_v1   ;;  %1399 = vperm.xlu0 %8069, %v7427_v2   ;;  %v7438_v39 = vld [vmem:[%s14084_s13 + $0x158] sm:$0xff]  ;;  %v7437_v41 = vld [vmem:[%s14084_s13 + $0x150] sm:$0xff]  ;;  %v7436_v42 = vld [vmem:[%s14084_s13 + $0x148] sm:$0xff]  ;;  %vm7249_vm6 = vcmask 130048   ;;  %s8008_s29 = sshll.u32 %s8307_s22, 6  ;;  %s8159_s17 = scalar_lea.hbm %s14086_s15, 128 }
  0x1d   : > { %s7991_s30 = sshll.u32 %s489_s27, 7  ;;  %v7441_v54 = vld [vmem:[%s14084_s13 + $0x170] sm:$0xff]  ;;  %v7440_v55 = vld [vmem:[%s14084_s13 + $0x168] sm:$0xff]  ;;  %v7439_v58 = vld [vmem:[%s14084_s13 + $0x160] sm:$0xff]  ;;  %s7270_s20 = scalar_lea.hbm %s14086_s15, %s8008_s29 }
  0x1e   : > { %v526_v1 = vld [vmem:[%s14085_s14] sm:$0xff]  ;;  %v527_v2 = vld [vmem:[%s14085_s14 + $0x8] sm:$0xff] }
  0x1f   : > { %s8348_s24 = scalar_lea.vmem %s14746_s0, %s7991_s30  ;;  %v7444_v3 = vld [vmem:[%s14084_s13 + $0x188] sm:$0xff]  ;;  %s485_s0 = sand.u32 1, %s8193_s19  }
  0x20   : > { %v8351_v4 = vld [vmem:[%s8348_s24 + $0x3c] sm:$0xff]   ;;  %v508_v6 = vld [vmem:[%s8348_s24 + $0x34] sm:$0xff]   ;;  %v506_v15 = vld [vmem:[%s8348_s24 + $0x2c] sm:$0xff]   ;;  %s7340_s25 = sshll.u32 %s485_s0, 6  ;;  %s7259_s22 = scalar_lea.sflag [#allocation3], %s485_s0 }
  0x21   : > { %v525_v5 = vld [vmem:[%s8348_s24 + $0x78] sm:$0xff]   ;;  %v557_v7 = vunpack.c.l.bf16 %v8351_v4  ;;  %v523_v10 = vld [vmem:[%s8348_s24 + $0x70] sm:$0xff]   ;;  %v556_v13 = vunpack.c.h.bf16 %v508_v6  ;;  %v555_v16 = vunpack.c.l.bf16 %v508_v6  ;;  %v521_v18 = vld [vmem:[%s8348_s24 + $0x68] sm:$0xff]   ;;  %v554_v19 = vunpack.c.h.bf16 %v506_v15  ;;  %s13993_s16 = scalar_lea.vmem [#allocation2], %s7340_s25 }
  0x22   : > { %v573_v8 = vunpack.c.h.bf16 %v525_v5  ;;  %v572_v14 = vunpack.c.l.bf16 %v525_v5  ;;  %v571_v17 = vunpack.c.h.bf16 %v523_v10  ;;  %v570_v20 = vunpack.c.l.bf16 %v523_v10  ;;  %v504_v21 = vld [vmem:[%s8348_s24 + $0x24] sm:$0xff]   ;;  %v502_v30 = vld [vmem:[%s8348_s24 + $0x1c] sm:$0xff]   ;;  %v500_v37 = vld [vmem:[%s8348_s24 + $0x14] sm:$0xff]   ;;  %s7271_s23 = sshll.u32 %s13993_s16, 4  ;;  %s7272_s23 = int_to_ptr.vmem [resolvable:$true] %s7271_s23 }
  0x23   : > { %574 = vmatpush.msra.mxu0 %v557_v7  ;;  %1424 = vperm.xlu2 %8071, %v7432_v9   ;;  %v553_v22 = vunpack.c.l.bf16 %v506_v15  ;;  %v569_v23 = vunpack.c.h.bf16 %v521_v18  ;;  %v552_v26 = vunpack.c.h.bf16 %v504_v21  ;;  %v519_v27 = vld [vmem:[%s8348_s24 + $0x60] sm:$0xff]   ;;  %v568_v29 = vunpack.c.l.bf16 %v521_v18  ;;  %v517_v34 = vld [vmem:[%s8348_s24 + $0x58] sm:$0xff]   ;;  %v515_v40 = vld [vmem:[%s8348_s24 + $0x50] sm:$0xff]  }
  0x24   : > { %615 = vmatpush.msra.mxu1 %v573_v8  ;;  %1414 = vperm.xlu1 %8070, %v7430_v11   ;;  %v551_v31 = vunpack.c.l.bf16 %v504_v21  ;;  %v567_v32 = vunpack.c.h.bf16 %v519_v27  ;;  %v550_v33 = vunpack.c.h.bf16 %v502_v30  ;;  %v566_v35 = vunpack.c.l.bf16 %v519_v27  ;;  %v498_v45 = vld [vmem:[%s8348_s24 + $0xc] sm:$0xff]   ;;  %v496_v51 = vld [vmem:[%s8348_s24 + $0x4] sm:$0xff]   ;;  %v494_v60 = vld [vmem:[%s8348_s24] sm:$0xf] }
  0x25   : > { %1404 = vperm.xlu0 %8069, %v7428_v12   ;;  %575 = vmatpush.msra.mxu0 %v556_v13  ;;  %v549_v36 = vunpack.c.l.bf16 %v502_v30  ;;  %v565_v38 = vunpack.c.h.bf16 %v517_v34  ;;  %v548_v43 = vunpack.c.h.bf16 %v500_v37  ;;  %v564_v44 = vunpack.c.l.bf16 %v517_v34  ;;  %v513_v48 = vld [vmem:[%s8348_s24 + $0x48] sm:$0xff]   ;;  %v511_v57 = vld [vmem:[%s8348_s24 + $0x44] sm:$0xf]  ;;  %v528_v6 = vld [vmem:[%s14085_s14 + $0x10] sm:$0xff] }
  0x26   : > { %616 = vmatpush.msra.mxu1 %v572_v14  ;;  %v547_v46 = vunpack.c.l.bf16 %v500_v37  ;;  %v563_v47 = vunpack.c.h.bf16 %v515_v40  ;;  %v546_v49 = vunpack.c.h.bf16 %v498_v45  ;;  %v562_v50 = vunpack.c.l.bf16 %v515_v40  ;;  %v7443_v5 = vld [vmem:[%s14084_s13 + $0x180] sm:$0xff]  ;;  %v529_v7 = vld [vmem:[%s14085_s14 + $0x18] sm:$0xff]  ;;  %v7445_v10 = vld [vmem:[%s14084_s13 + $0x190] sm:$0xff] }
  0x27   : > { %576 = vmatpush.msra.mxu0 %v555_v16  ;;  %v545_v52 = vunpack.c.l.bf16 %v498_v45  ;;  %v561_v53 = vunpack.c.h.bf16 %v513_v48  ;;  %v544_v56 = vunpack.c.h.bf16 %v496_v51  ;;  %v560_v59 = vunpack.c.l.bf16 %v513_v48  ;;  %v7447_v8 = vld [vmem:[%s14084_s13 + $0x1a0] sm:$0xff]  ;;  %v7446_v9 = vld [vmem:[%s14084_s13 + $0x198] sm:$0xff]  ;;  %v531_v12 = vld [vmem:[%s14085_s14 + $0x28] sm:$0xff] }
  0x28   : > { %617 = vmatpush.msra.mxu1 %v571_v17  ;;  %v543_v61 = vunpack.c.l.bf16 %v496_v51  ;;  %v559_v62 = vunpack.c.l.bf16 %v511_v57  ;;  %v542_v63 = vunpack.c.l.bf16 %v494_v60  ;;  %v558_v0 = vunpack.c.h.bf16 %v8351_v4  ;;  %v7442_v4 = vld [vmem:[%s14084_s13 + $0x178] sm:$0xff]  ;;  %v530_v11 = vld [vmem:[%s14085_s14 + $0x20] sm:$0xff]  ;;  %v7449_v14 = vld [vmem:[%s14084_s13 + $0x1b0] sm:$0xff] }
  0x29   : > { %577 = vmatpush.msra.mxu0 %v554_v19  ;;  %v7450_v13 = vld [vmem:[%s14084_s13 + $0x1b8] sm:$0xff]  ;;  %v7448_v15 = vld [vmem:[%s14084_s13 + $0x1a8] sm:$0xff]  ;;  %v532_v16 = vld [vmem:[%s14085_s14 + $0x30] sm:$0xff] }
  0x2a   : > { %618 = vmatpush.msra.mxu1 %v570_v20  ;;  %v533_v17 = vld [vmem:[%s14085_s14 + $0x38] sm:$0xff]  ;;  %v7453_v18 = vld [vmem:[%s14084_s13 + $0x1d0] sm:$0xff]  ;;  %v7452_v19 = vld [vmem:[%s14084_s13 + $0x1c8] sm:$0xff] }
  0x2b   : > { %578 = vmatpush.msra.mxu0 %v553_v22  ;;  %1439 = vperm.xlu2 %8071, %v7435_v24   ;;  %v7451_v20 = vld [vmem:[%s14084_s13 + $0x1c0] sm:$0xff]  ;;  %v535_v22 = vld [vmem:[%s14085_s14 + $0x48] sm:$0xff]  ;;  %v537_v27 = vld [vmem:[%s14085_s14 + $0x58] sm:$0xff] }
  0x2c   : > { %619 = vmatpush.msra.mxu1 %v569_v23  ;;  %1434 = vperm.xlu1 %8070, %v7434_v25   ;;  %v534_v21 = vld [vmem:[%s14085_s14 + $0x40] sm:$0xff]  ;;  %v7456_v23 = vld [vmem:[%s14084_s13 + $0x1e8] sm:$0xff]  ;;  %v7454_v25 = vld [vmem:[%s14084_s13 + $0x1d8] sm:$0xff] }
  0x2d   : > { %1429 = vperm.xlu0 %8069, %v7433_v28   ;;  %579 = vmatpush.msra.mxu0 %v552_v26  ;;  %v7455_v24 = vld [vmem:[%s14084_s13 + $0x1e0] sm:$0xff]  ;;  %v536_v26 = vld [vmem:[%s14085_s14 + $0x50] sm:$0xff]  ;;  %v7458_v28 = vld [vmem:[%s14084_s13 + $0x1f8] sm:$0xff] }
  0x2e   : > { %620 = vmatpush.msra.mxu1 %v568_v29  ;;  %v1149_v29 = vld [vmem:[%s14084_s13 + $0xd0] sm:$0xff]  ;;  %v1152_v34 = vld [vmem:[%s14084_s13 + $0xe8] sm:$0xff]  ;;  %v7541_v40 = vld [vmem:[%s14084_s13 + $0x300] sm:$0xff] }
  0x2f   : > { %580 = vmatpush.msra.mxu0 %v551_v31  ;;  %v7457_v30 = vld [vmem:[%s14084_s13 + $0x1f0] sm:$0xff]  ;;  %v538_v31 = vld [vmem:[%s14085_s14 + $0x60] sm:$0xff]  ;;  %v7542_v45 = vld [vmem:[%s14084_s13 + $0x308] sm:$0xff] }
  0x30   : > { %621 = vmatpush.msra.mxu1 %v567_v32  ;;  %v539_v32 = vld [vmem:[%s14085_s14 + $0x68] sm:$0xff]  ;;  %v540_v37 = vld [vmem:[%s14085_s14 + $0x70] sm:$0xff] }
  0x31   : > { %581 = vmatpush.msra.mxu0 %v550_v33  ;;  %v1151_v33 = vld [vmem:[%s14084_s13 + $0xe0] sm:$0xff]  ;;  %v7494_v48 = vld [vmem:[%s14084_s13 + $0x210] sm:$0xff] }
  0x32   : > { %622 = vmatpush.msra.mxu1 %v566_v35  ;;  %v1150_v35 = vld [vmem:[%s14084_s13 + $0xd8] sm:$0xff]  ;;  %v7547_v60 = vld [vmem:[%s14084_s13 + $0x330] sm:$0xff] }
  0x33   : > { %582 = vmatpush.msra.mxu0 %v549_v36  ;;  %1454 = vperm.xlu2 %8071, %v7438_v39   ;;  %v1154_v39 = vld [vmem:[%s14084_s13 + $0xf8] sm:$0xff] }
  0x34   : > { %623 = vmatpush.msra.mxu1 %v565_v38  ;;  %1449 = vperm.xlu1 %8070, %v7437_v41   ;;  %v541_v38 = vld [vmem:[%s14085_s14 + $0x78] sm:$0xff]  ;;  %v1153_v41 = vld [vmem:[%s14084_s13 + $0xf0] sm:$0xff] }
  0x35   : > { %1444 = vperm.xlu0 %8069, %v7436_v42   ;;  %583 = vmatpush.msra.mxu0 %v548_v43  ;;  %v7492_v43 = vld [vmem:[%s14084_s13 + $0x200] sm:$0xff] }
  0x36   : > { %624 = vmatpush.msra.mxu1 %v564_v44  ;;  %v7493_v44 = vld [vmem:[%s14084_s13 + $0x208] sm:$0xff] }
  0x37   : > { %584 = vmatpush.msra.mxu0 %v547_v46 }
  0x38   : > { %625 = vmatpush.msra.mxu1 %v563_v47  ;;  %v7544_v47 = vld [vmem:[%s14084_s13 + $0x318] sm:$0xff] }
  0x39   : > { %585 = vmatpush.msra.mxu0 %v546_v49  ;;  %v7543_v49 = vld [vmem:[%s14084_s13 + $0x310] sm:$0xff] }
  0x3a   : > { %626 = vmatpush.msra.mxu1 %v562_v50 }
  0x3b   : > { %586 = vmatpush.msra.mxu0 %v545_v52  ;;  %1469 = vperm.xlu2 %8071, %v7441_v54   ;;  %v7546_v54 = vld [vmem:[%s14084_s13 + $0x328] sm:$0xff] }
  0x3c   : > { %627 = vmatpush.msra.mxu1 %v561_v53  ;;  %1464 = vperm.xlu1 %8070, %v7440_v55   ;;  %v7545_v53 = vld [vmem:[%s14084_s13 + $0x320] sm:$0xff]  ;;  %v7495_v55 = vld [vmem:[%s14084_s13 + $0x218] sm:$0xff] }
  0x3d   : > { %1459 = vperm.xlu0 %8069, %v7439_v58   ;;  %587 = vmatpush.msra.mxu0 %v544_v56 }
  0x3e   : > { %628 = vmatpush.msra.mxu1 %v560_v59  ;;  %v7497_v59 = vld [vmem:[%s14084_s13 + $0x228] sm:$0xff] }
  0x3f   : > { %588 = vmatpush.msra.mxu0 %v543_v61  ;;  %v7496_v61 = vld [vmem:[%s14084_s13 + $0x220] sm:$0xff] }
  0x40   : > { %629 = vmatpush.msra.mxu1 %v559_v62 }
  0x41   : > { %589 = vmatpush.msra.mxu0 %v542_v63 }
  0x42   : > { %630 = vmatpush.msra.mxu1 %v558_v0  ;;  %590 = vmatmul.f32.vlgmr.msra.gmra.mxu0 %v526_v1  ;;  %v1124_v1 = vld [vmem:[%s14084_s13 + $0x8] sm:$0xff] }
  0x43   : > { %631 = vmatmul.f32.vlgmr.msra.gmra.mxu1 %v527_v2  ;;  %1484 = vperm.xlu2 %8071, %v7444_v3   ;;  %v1123_v2 = vld [vmem:[%s14084_s13] sm:$0xff]  ;;  %v7548_v3 = vld [vmem:[%s14084_s13 + $0x338] sm:$0xff] }
  0x44   : > { %1479 = vperm.xlu1 %8070, %v7443_v5  }
  0x45   : > { %1474 = vperm.xlu0 %8069, %v7442_v4  }
  0x4a   : > { %593 = vmatmul.f32.gmra.mxu0 %v528_v6 }
  0x4b   : > { %634 = vmatmul.f32.gmra.mxu1 %v529_v7  ;;  %1499 = vperm.xlu2 %8071, %v7447_v8   ;;  %v660_v7 = vld [vmem:[%s14081_s10] sm:$0xf] }
  0x4c   : > { %1494 = vperm.xlu1 %8070, %v7446_v9   ;;  %v7549_v8 = vld [vmem:[%s14084_s13 + $0x340] sm:$0xff]  ;;  %v7499_v9 = vld [vmem:[%s14084_s13 + $0x238] sm:$0xff] }
  0x4d   : > { %1489 = vperm.xlu0 %8069, %v7445_v10   ;;  %v676_v10 = vsel %vm674_vm0, %v660_v7, 0 }
  0x4e   : > { %685 = vmatpush.bf16.msra.mxu2 %v676_v10  ;;  %8009 = vmatpush.bf16.msra.mxu3 %v676_v10  ;;  %v7505_v10 = vld [vmem:[%s14084_s13 + $0x268] sm:$0xff] }
  0x52   : > { %596 = vmatmul.f32.gmra.mxu0 %v530_v11  ;;  %v7498_v11 = vld [vmem:[%s14084_s13 + $0x230] sm:$0xff] }
  0x53   : > { %637 = vmatmul.f32.gmra.mxu1 %v531_v12  ;;  %1514 = vperm.xlu2 %8071, %v7450_v13  }
  0x54   : > { %1509 = vperm.xlu1 %8070, %v7449_v14  }
  0x55   : > { %1504 = vperm.xlu0 %8069, %v7448_v15   ;;  %v1126_v15 = vld [vmem:[%s14084_s13 + $0x18] sm:$0xff] }
  0x5a   : > { %599 = vmatmul.f32.gmra.mxu0 %v532_v16  ;;  %v1125_v16 = vld [vmem:[%s14084_s13 + $0x10] sm:$0xff] }
  0x5b   : > { %640 = vmatmul.f32.gmra.mxu1 %v533_v17  ;;  %1529 = vperm.xlu2 %8071, %v7453_v18   ;;  %v7550_v17 = vld [vmem:[%s14084_s13 + $0x348] sm:$0xff] }
  0x5c   : > { %1524 = vperm.xlu1 %8070, %v7452_v19  }
  0x5d   : > { %1519 = vperm.xlu0 %8069, %v7451_v20  }
  0x62   : > { %602 = vmatmul.f32.gmra.mxu0 %v534_v21  ;;  %v7551_v21 = vld [vmem:[%s14084_s13 + $0x350] sm:$0xff] }
  0x63   : > { %643 = vmatmul.f32.gmra.mxu1 %v535_v22  ;;  %1544 = vperm.xlu2 %8071, %v7456_v23   ;;  %v7501_v22 = vld [vmem:[%s14084_s13 + $0x248] sm:$0xff]  ;;  %v7500_v23 = vld [vmem:[%s14084_s13 + $0x240] sm:$0xff] }
  0x64   : > { %1539 = vperm.xlu1 %8070, %v7455_v24  }
  0x65   : > { %1534 = vperm.xlu0 %8069, %v7454_v25  }
  0x6a   : > { %605 = vmatmul.f32.gmra.mxu0 %v536_v26 }
  0x6b   : > { %646 = vmatmul.f32.gmra.mxu1 %v537_v27  ;;  %1287 = vperm.xlu2 %8071, %v1149_v29   ;;  %v1128_v29 = vld [vmem:[%s14084_s13 + $0x28] sm:$0xff] }
  0x6c   : > { %1554 = vperm.xlu1 %8070, %v7458_v28  }
  0x6d   : > { %1549 = vperm.xlu0 %8069, %v7457_v30   ;;  %v1127_v30 = vld [vmem:[%s14084_s13 + $0x20] sm:$0xff] }
  0x72   : > { %608 = vmatmul.f32.gmra.mxu0 %v538_v31  ;;  %v7552_v31 = vld [vmem:[%s14084_s13 + $0x358] sm:$0xff] }
  0x73   : > { %649 = vmatmul.f32.gmra.mxu1 %v539_v32  ;;  %1302 = vperm.xlu2 %8071, %v1152_v34  }
  0x74   : > { %1297 = vperm.xlu1 %8070, %v1151_v33  }
  0x75   : > { %v8512_v36 = vpop.permute.xlu2 %1419  ;;  %1292 = vperm.xlu0 %8069, %v1150_v35  }
  0x76   : > { %14747 = vst [vmem:[#allocation9_spill] sm:$0xff] %v8512_v36 }
  0x7a   : > { %611 = vmatmul.f32.gmra.mxu0 %v540_v37 }
  0x7b   : > { %652 = vmatmul.f32.gmra.mxu1 %v541_v38  ;;  %2404 = vperm.xlu2 %8071, %v7541_v40   ;;  %v7553_v40 = vld [vmem:[%s14084_s13 + $0x360] sm:$0xff] }
  0x7c   : > { %1312 = vperm.xlu1 %8070, %v1154_v39  }
  0x7d   : > { %v8529_v42 = vpop.permute.xlu2 %1424  ;;  %1307 = vperm.xlu0 %8069, %v1153_v41   ;;  %v7503_v41 = vld [vmem:[%s14084_s13 + $0x258] sm:$0xff] }
  0x7e   : > { %14748 = vst [vmem:[#allocation10_spill] sm:$0xff] %v8529_v42 }
  0x83   : > { %1994 = vperm.xlu2 %8071, %v7493_v44  }
  0x84   : > { %1989 = vperm.xlu1 %8070, %v7492_v43   ;;  %v7502_v43 = vld [vmem:[%s14084_s13 + $0x250] sm:$0xff] }
  0x85   : > { %2409 = vperm.xlu0 %8069, %v7542_v45   ;;  %v8540_v46 = vpop.permute.xlu2 %1439 }
  0x86   : > { %14749 = vst [vmem:[#allocation11_spill] sm:$0xff] %v8540_v46 }
  0x8b   : > { %1999 = vperm.xlu2 %8071, %v7494_v48  }
  0x8c   : > { %2419 = vperm.xlu1 %8070, %v7544_v47  }
  0x8d   : > { %2414 = vperm.xlu0 %8069, %v7543_v49   ;;  %v8551_v50 = vpop.permute.xlu2 %1454 }
  0x8e   : > { %14750 = vst [vmem:[#allocation12_spill] sm:$0xff] %v8551_v50  ;;  %v8553_v51 = vpop.permute.xlu1 %1409  ;;  %v8555_v52 = vpop.permute.xlu0 %1399 }
  0x8f   : > { %14751 = vst [vmem:[#allocation13_spill] sm:$0xff] %v8553_v51 }
  0x90   : > { %14752 = vst [vmem:[#allocation14_spill] sm:$0xff] %v8555_v52 }
  0x93   : > { %2429 = vperm.xlu2 %8071, %v7546_v54   ;;  %v1130_v54 = vld [vmem:[%s14084_s13 + $0x38] sm:$0xff] }
  0x94   : > { %2424 = vperm.xlu1 %8070, %v7545_v53  }
  0x95   : > { %2004 = vperm.xlu0 %8069, %v7495_v55   ;;  %v8568_v57 = vpop.permute.xlu2 %1469  ;;  %v1129_v55 = vld [vmem:[%s14084_s13 + $0x30] sm:$0xff] }
  0x96   : > { %v8566_v56 = vpop.permute.xlu1 %1414  ;;  %14754 = vst [vmem:[#allocation16_spill] sm:$0xff] %v8568_v57  ;;  %v7998_v57 = vld [vmem:[%s8348_s24 + $0x30] sm:$0xff] }
  0x97   : > { %14753 = vst [vmem:[#allocation15_spill] sm:$0xff] %v8566_v56  ;;  %v8570_v58 = vpop.permute.xlu0 %1404 }
  0x98   : > { %14755 = vst [vmem:[#allocation17_spill] sm:$0xff] %v8570_v58 }
  0x9b   : > { %2434 = vperm.xlu2 %8071, %v7547_v60  }
  0x9c   : > { %2014 = vperm.xlu1 %8070, %v7497_v59   ;;  %v7554_v59 = vld [vmem:[%s14084_s13 + $0x368] sm:$0xff] }
  0x9d   : > { %2009 = vperm.xlu0 %8069, %v7496_v61   ;;  %v8583_v63 = vpop.permute.xlu2 %1484 }
  0x9e   : > { %v8581_v62 = vpop.permute.xlu1 %1434  ;;  %14757 = vst [vmem:[#allocation19_spill] sm:$0xff] %v8583_v63  ;;  %v7997_v63 = vld [vmem:[%s8348_s24 + $0x28] sm:$0xff] }
  0x9f   : > { %14756 = vst [vmem:[#allocation18_spill] sm:$0xff] %v8581_v62  ;;  %v8585_v0 = vpop.permute.xlu0 %1429 }
  0xa0   : > { %14758 = vst [vmem:[#allocation20_spill] sm:$0xff] %v8585_v0 }
  0xa3   : > { %1162 = vperm.xlu2 %8071, %v1124_v1  }
  0xa4   : > { %1157 = vperm.xlu1 %8070, %v1123_v2  }
  0xa5   : > { %2439 = vperm.xlu0 %8069, %v7548_v3   ;;  %v8596_v5 = vpop.permute.xlu2 %1499 }
  0xa6   : > { %14759 = vst [vmem:[#allocation21_spill] sm:$0xff] %v8596_v5  ;;  %v8598_v4 = vpop.permute.xlu1 %1449  ;;  %v7996_v5 = vld [vmem:[%s8348_s24 + $0x20] sm:$0xff] }
  0xa7   : > { %14760 = vst [vmem:[#allocation22_spill] sm:$0xff] %v8598_v4  ;;  %v8600_v6 = vpop.permute.xlu0 %1444 }
  0xa8   : > { %14761 = vst [vmem:[#allocation23_spill] sm:$0xff] %v8600_v6 }
  0xab   : > { %2444 = vperm.xlu2 %8071, %v7549_v8  }
  0xac   : > { %2024 = vperm.xlu1 %8070, %v7499_v9   ;;  %v7555_v9 = vld [vmem:[%s14084_s13 + $0x370] sm:$0xff] }
  0xad   : > { %2019 = vperm.xlu0 %8069, %v7498_v11   ;;  %v8615_v12 = vpop.permute.xlu2 %1514  ;;  %v7504_v11 = vld [vmem:[%s14084_s13 + $0x260] sm:$0xff] }
  0xae   : > { %14762 = vst [vmem:[#allocation24_spill] sm:$0xff] %v8615_v12  ;;  %v8617_v13 = vpop.permute.xlu1 %1464  ;;  %v7519_v12 = vld [vmem:[%s14084_s13 + $0x2d8] sm:$0xff] }
  0xaf   : > { %14763 = vst [vmem:[#allocation25_spill] sm:$0xff] %v8617_v13  ;;  %v8619_v14 = vpop.permute.xlu0 %1459  ;;  %v7711_v13 = vld [vmem:[%s14084_s13 + $0x730] sm:$0xff] }
  0xb0   : > { %14764 = vst [vmem:[#allocation26_spill] sm:$0xff] %v8619_v14 }
  0xb3   : > { %1172 = vperm.xlu2 %8071, %v1126_v15  }
  0xb4   : > { %1167 = vperm.xlu1 %8070, %v1125_v16  }
  0xb5   : > { %2449 = vperm.xlu0 %8069, %v7550_v17   ;;  %v8630_v18 = vpop.permute.xlu2 %1529 }
  0xb6   : > { %14765 = vst [vmem:[#allocation27_spill] sm:$0xff] %v8630_v18  ;;  %v8632_v19 = vpop.permute.xlu1 %1479  ;;  %v7995_v18 = vld [vmem:[%s8348_s24 + $0x18] sm:$0xff] }
  0xb7   : > { %14766 = vst [vmem:[#allocation28_spill] sm:$0xff] %v8632_v19  ;;  %v8634_v20 = vpop.permute.xlu0 %1474  ;;  %v7521_v19 = vld [vmem:[%s14084_s13 + $0x2e8] sm:$0xff] }
  0xb8   : > { %14767 = vst [vmem:[#allocation29_spill] sm:$0xff] %v8634_v20  ;;  %v7607_v20 = vld [vmem:[%s14084_s13 + $0x500] sm:$0xff] }
  0xbb   : > { %2454 = vperm.xlu2 %8071, %v7551_v21  }
  0xbc   : > { %2034 = vperm.xlu1 %8070, %v7501_v22  }
  0xbd   : > { %2029 = vperm.xlu0 %8069, %v7500_v23   ;;  %v8645_v24 = vpop.permute.xlu2 %1544 }
  0xbe   : > { %14768 = vst [vmem:[#allocation30_spill] sm:$0xff] %v8645_v24  ;;  %v8647_v25 = vpop.permute.xlu1 %1494  ;;  %v7517_v24 = vld [vmem:[%s14084_s13 + $0x2c8] sm:$0xff] }
  0xbf   : > { %14769 = vst [vmem:[#allocation31_spill] sm:$0xff] %v8647_v25  ;;  %v8649_v26 = vpop.permute.xlu0 %1489  ;;  %v591_v27 = vpop.f32.mrf.mxu0  ;;  %v1145_v25 = vld [vmem:[%s14084_s13 + $0xb0] sm:$0xff] }
  0xc0   : > { %14770 = vst [vmem:[#allocation32_spill] sm:$0xff] %v8649_v26  ;;  %v632_v28 = vpop.f32.mrf.mxu1  ;;  %v1146_v26 = vld [vmem:[%s14084_s13 + $0xb8] sm:$0xff] }
  0xc1   : > { %v633_v38 = vadd.f32 %v632_v28, %v591_v27  ;;  %v1132_v27 = vld [vmem:[%s14084_s13 + $0x48] sm:$0xff]  ;;  %v1131_v28 = vld [vmem:[%s14084_s13 + $0x40] sm:$0xff] }
  0xc3   : > { %1182 = vperm.xlu2 %8071, %v1128_v29   ;;  %v7556_v29 = vld [vmem:[%s14084_s13 + $0x378] sm:$0xff] }
  0xc4   : > { %1177 = vperm.xlu1 %8070, %v1127_v30  }
  0xc5   : > { %2459 = vperm.xlu0 %8069, %v7552_v31   ;;  %v8662_v33 = vpop.permute.xlu2 %1287 }
  0xc6   : > { %v8660_v32 = vpop.permute.xlu1 %1509  ;;  %14772 = vst [vmem:[#allocation34_spill] sm:$0xff] %v8662_v33  ;;  %v7994_v33 = vld [vmem:[%s8348_s24 + $0x10] sm:$0xff] }
  0xc7   : > { %14771 = vst [vmem:[#allocation33_spill] sm:$0xff] %v8660_v32  ;;  %v8664_v34 = vpop.permute.xlu0 %1504  ;;  %v594_v35 = vpop.f32.mrf.mxu0  ;;  %v7569_v32 = vld [vmem:[%s14084_s13 + $0x3e0] sm:$0xff] }
  0xc8   : > { %14773 = vst [vmem:[#allocation35_spill] sm:$0xff] %v8664_v34  ;;  %v635_v37 = vpop.f32.mrf.mxu1 }
  0xc9   : > { %v636_v39 = vadd.f32 %v635_v37, %v594_v35 }
  0xcb   : > { %v656_v44 = vpack.c.bf16 %v636_v39, %v633_v38  ;;  %2464 = vperm.xlu2 %8071, %v7553_v40   ;;  %v731_v38 = vld [vmem:[%s14786_s1] sm:$0xf] }
  0xcc   : > { %2044 = vperm.xlu1 %8070, %v7503_v41   ;;  %v861_v40 = vsel %vm674_vm0, %v731_v38, 0  ;;  %v7509_v38 = vld [vmem:[%s14084_s13 + $0x288] sm:$0xff] }
  0xcd   : > { %2039 = vperm.xlu0 %8069, %v7502_v43   ;;  %7343 = vmatmul.msk.bf16.vlgmr.msra.gmra.mxu2 %vm661_vm1, %v656_v44  ;;  %v8678_v47 = vpop.permute.xlu2 %1302  ;;  %v7557_v44 = vld [vmem:[%s14084_s13 + $0x380] sm:$0xff] }
  0xce   : > { %v8676_v45 = vpop.permute.xlu1 %1524  ;;  %14775 = vst [vmem:[#allocation37_spill] sm:$0xff] %v8678_v47  ;;  %870 = vmatpush.bf16.msrb.mxu3 %v861_v40  ;;  %v7515_v47 = vld [vmem:[%s14084_s13 + $0x2b8] sm:$0xff] }
  0xcf   : > { %14774 = vst [vmem:[#allocation36_spill] sm:$0xff] %v8676_v45  ;;  %v8680_v48 = vpop.permute.xlu0 %1519  ;;  %v597_v49 = vpop.f32.mrf.mxu0  ;;  %v1143_v45 = vld [vmem:[%s14084_s13 + $0xa0] sm:$0xff] }
  0xd0   : > { %14776 = vst [vmem:[#allocation38_spill] sm:$0xff] %v8680_v48  ;;  %v638_v53 = vpop.f32.mrf.mxu1  ;;  %v1144_v48 = vld [vmem:[%s14084_s13 + $0xa8] sm:$0xff] }
  0xd1   : > { %v639_v7 = vadd.f32 %v638_v53, %v597_v49  ;;  %v7507_v49 = vld [vmem:[%s14084_s13 + $0x278] sm:$0xff]  ;;  %v7506_v53 = vld [vmem:[%s14084_s13 + $0x270] sm:$0xff] }
  0xd3   : > { %1192 = vperm.xlu2 %8071, %v1130_v54  }
  0xd4   : > { %1187 = vperm.xlu1 %8070, %v1129_v55  }
  0xd5   : > { %2469 = vperm.xlu0 %8069, %v7554_v59   ;;  %v8693_v61 = vpop.permute.xlu2 %2404 }
  0xd6   : > { %v8691_v60 = vpop.permute.xlu1 %1539  ;;  %14778 = vst [vmem:[#allocation40_spill] sm:$0xff] %v8693_v61 }
  0xd7   : > { %14777 = vst [vmem:[#allocation39_spill] sm:$0xff] %v8691_v60  ;;  %v8695_v1 = vpop.permute.xlu0 %1534  ;;  %v600_v2 = vpop.f32.mrf.mxu0  ;;  %v7567_v60 = vld [vmem:[%s14084_s13 + $0x3d0] sm:$0xff] }
  0xd8   : > { %14779 = vst [vmem:[#allocation41_spill] sm:$0xff] %v8695_v1  ;;  %v641_v3 = vpop.f32.mrf.mxu1 }
  0xd9   : > { %v642_v8 = vadd.f32 %v641_v3, %v600_v2 }
  0xdb   : > { %v657_v15 = vpack.c.bf16 %v642_v8, %v639_v7  ;;  %2474 = vperm.xlu2 %8071, %v7555_v9   ;;  %v1134_v8 = vld [vmem:[%s14084_s13 + $0x58] sm:$0xff]  ;;  %v1133_v9 = vld [vmem:[%s14084_s13 + $0x50] sm:$0xff] }
  0xdc   : > { %2054 = vperm.xlu1 %8070, %v7505_v10   ;;  %v7558_v10 = vld [vmem:[%s14084_s13 + $0x388] sm:$0xff] }
  0xdd   : > { %2049 = vperm.xlu0 %8069, %v7504_v11   ;;  %7344 = vmatmul.msk.bf16.gmra.mxu2 %vm661_vm1, %v657_v15  ;;  %v8709_v17 = vpop.permute.xlu2 %1994 }
  0xde   : > { %v8707_v16 = vpop.permute.xlu1 %1554  ;;  %14781 = vst [vmem:[#allocation43_spill] sm:$0xff] %v8709_v17 }
  0xdf   : > { %14780 = vst [vmem:[#allocation42_spill] sm:$0xff] %v8707_v16  ;;  %v8711_v21 = vpop.permute.xlu0 %1549  ;;  %v603_v22 = vpop.f32.mrf.mxu0  ;;  %v1141_v16 = vld [vmem:[%s14084_s13 + $0x90] sm:$0xff] }
  0xe0   : > { %14782 = vst [vmem:[#allocation44_spill] sm:$0xff] %v8711_v21  ;;  %v644_v23 = vpop.f32.mrf.mxu1  ;;  %v1142_v21 = vld [vmem:[%s14084_s13 + $0x98] sm:$0xff] }
  0xe1   : > { %v645_v41 = vadd.f32 %v644_v23, %v603_v22 }
  0xe3   : > { %1202 = vperm.xlu2 %8071, %v1132_v27  }
  0xe4   : > { %1197 = vperm.xlu1 %8070, %v1131_v28  }
  0xe5   : > { %2479 = vperm.xlu0 %8069, %v7556_v29   ;;  %v8724_v31 = vpop.permute.xlu2 %1999 }
  0xe6   : > { %v8722_v30 = vpop.permute.xlu1 %1297  ;;  %14784 = vst [vmem:[#allocation46_spill] sm:$0xff] %v8724_v31 }
  0xe7   : > { %14783 = vst [vmem:[#allocation45_spill] sm:$0xff] %v8722_v30  ;;  %v8726_v35 = vpop.permute.xlu0 %1292  ;;  %v606_v37 = vpop.f32.mrf.mxu0  ;;  %v7565_v30 = vld [vmem:[%s14084_s13 + $0x3c0] sm:$0xff] }
  0xe8   : > { %14785 = vst [vmem:[#allocation47_spill] sm:$0xff] %v8726_v35  ;;  %v647_v39 = vpop.f32.mrf.mxu1 }
  0xe9   : > { %v648_v43 = vadd.f32 %v647_v39, %v606_v37  ;;  %v7559_v37 = vld [vmem:[%s14084_s13 + $0x390] sm:$0xff]  ;;  %v7508_v39 = vld [vmem:[%s14084_s13 + $0x280] sm:$0xff] }
  0xeb   : > { %v658_v54 = vpack.c.bf16 %v648_v43, %v645_v41  ;;  %2484 = vperm.xlu2 %8071, %v7557_v44  }
  0xec   : > { %2064 = vperm.xlu1 %8070, %v7507_v49   ;;  %v1136_v49 = vld [vmem:[%s14084_s13 + $0x68] sm:$0xff] }
  0xed   : > { %2059 = vperm.xlu0 %8069, %v7506_v53   ;;  %7345 = vmatmul.msk.bf16.gmra.mxu2 %vm661_vm1, %v658_v54  ;;  %v8744_v59 = vpop.permute.xlu2 %2429  ;;  %v1135_v53 = vld [vmem:[%s14084_s13 + $0x60] sm:$0xff]  ;;  %v7560_v54 = vld [vmem:[%s14084_s13 + $0x398] sm:$0xff] }
  0xee   : > { %v8742_v55 = vpop.permute.xlu1 %1312  ;;  %14788 = vst [vmem:[#allocation49_spill] sm:$0xff] %v8744_v59 }
  0xef   : > { %14787 = vst [vmem:[#allocation48_spill] sm:$0xff] %v8742_v55  ;;  %v8746_v2 = vpop.permute.xlu0 %1307  ;;  %v609_v3 = vpop.f32.mrf.mxu0  ;;  %v1139_v55 = vld [vmem:[%s14084_s13 + $0x80] sm:$0xff] }
  0xf0   : > { %14789 = vst [vmem:[#allocation50_spill] sm:$0xff] %v8746_v2  ;;  %v650_v7 = vpop.f32.mrf.mxu1  ;;  %v1140_v2 = vld [vmem:[%s14084_s13 + $0x88] sm:$0xff] }
  0xf1   : > { %v651_v28 = vadd.f32 %v650_v7, %v609_v3 }
  0xf3   : > { %1212 = vperm.xlu2 %8071, %v1134_v8  }
  0xf4   : > { %1207 = vperm.xlu1 %8070, %v1133_v9   ;;  %v7561_v9 = vld [vmem:[%s14084_s13 + $0x3a0] sm:$0xff] }
  0xf5   : > { %2489 = vperm.xlu0 %8069, %v7558_v10   ;;  %v8759_v15 = vpop.permute.xlu2 %2434  ;;  %v7511_v10 = vld [vmem:[%s14084_s13 + $0x298] sm:$0xff] }
  0xf6   : > { %v8757_v11 = vpop.permute.xlu1 %1989  ;;  %14791 = vst [vmem:[#allocation52_spill] sm:$0xff] %v8759_v15 }
  0xf7   : > { %14790 = vst [vmem:[#allocation51_spill] sm:$0xff] %v8757_v11  ;;  %v8761_v22 = vpop.permute.xlu0 %2409  ;;  %v612_v23 = vpop.f32.mrf.mxu0 }
  0xf8   : > { %14792 = vst [vmem:[#allocation53_spill] sm:$0xff] %v8761_v22  ;;  %v653_v27 = vpop.f32.mrf.mxu1 }
  0xf9   : > { %v654_v29 = vadd.f32 %v653_v27, %v612_v23  ;;  %v7992_v23 = vld [vmem:[%s8348_s24] sm:$0xff]  ;;  %v7510_v27 = vld [vmem:[%s14084_s13 + $0x290] sm:$0xff] }
  0xfb   : > { %v659_v40 = vpack.c.bf16 %v654_v29, %v651_v28  ;;  %2494 = vperm.xlu2 %8071, %v7559_v37  }
  0xfc   : > { %2074 = vperm.xlu1 %8070, %v7509_v38   ;;  %v1138_v38 = vld [vmem:[%s14084_s13 + $0x78] sm:$0xff] }
  0xfd   : > { %2069 = vperm.xlu0 %8069, %v7508_v39   ;;  %7346 = vmatmul.msk.bf16.vlgmr.msra.gmra.mxu3 %vm661_vm1, %v659_v40  ;;  %v8775_v43 = vpop.permute.xlu2 %1162  ;;  %v1137_v39 = vld [vmem:[%s14084_s13 + $0x70] sm:$0xff]  ;;  %v7562_v40 = vld [vmem:[%s14084_s13 + $0x3a8] sm:$0xff] }
  0xfe   : > { %v8773_v41 = vpop.permute.xlu1 %2419  ;;  %14794 = vst [vmem:[#allocation55_spill] sm:$0xff] %v8775_v43 }
  0xff   : > { %14793 = vst [vmem:[#allocation54_spill] sm:$0xff] %v8773_v41  ;;  %v8777_v44 = vpop.permute.xlu0 %2414 }
 0x100   : > { %14795 = vst [vmem:[#allocation56_spill] sm:$0xff] %v8777_v44 }
 0x103   : > { %1222 = vperm.xlu2 %8071, %v1136_v49  }
 0x104   : > { %1217 = vperm.xlu1 %8070, %v1135_v53  }
 0x105   : > { %2499 = vperm.xlu0 %8069, %v7560_v54   ;;  %v8790_v7 = vpop.permute.xlu2 %2444 }
 0x106   : > { %v8788_v3 = vpop.permute.xlu1 %2424  ;;  %14797 = vst [vmem:[#allocation58_spill] sm:$0xff] %v8790_v7 }
 0x107   : > { %14796 = vst [vmem:[#allocation57_spill] sm:$0xff] %v8788_v3  ;;  %v8792_v8 = vpop.permute.xlu0 %2004 }
 0x108   : > { %14798 = vst [vmem:[#allocation59_spill] sm:$0xff] %v8792_v8 }
 0x10b   : > { %2504 = vperm.xlu2 %8071, %v7561_v9   ;;  %v7563_v9 = vld [vmem:[%s14084_s13 + $0x3b0] sm:$0xff] }
 0x10c   : > { %2084 = vperm.xlu1 %8070, %v7511_v10   ;;  %v7513_v10 = vld [vmem:[%s14084_s13 + $0x2a8] sm:$0xff] }
 0x10d   : > { %2079 = vperm.xlu0 %8069, %v7510_v27   ;;  %7411 = vmatmul.msk.bf16.vlgmr.msrb.gmra.mxu3 %vm661_vm1, %v7992_v23  ;;  %v8807_v29 = vpop.permute.xlu2 %1172  ;;  %v7993_v23 = vld [vmem:[%s8348_s24 + $0x8] sm:$0xff]  ;;  %v7512_v27 = vld [vmem:[%s14084_s13 + $0x2a0] sm:$0xff] }
 0x10e   : > { %v8805_v28 = vpop.permute.xlu1 %2014  ;;  %14800 = vst [vmem:[#allocation61_spill] sm:$0xff] %v8807_v29 }
 0x10f   : > { %14799 = vst [vmem:[#allocation60_spill] sm:$0xff] %v8805_v28  ;;  %v8809_v37 = vpop.permute.xlu0 %2009 }
 0x110   : > { %14801 = vst [vmem:[#allocation62_spill] sm:$0xff] %v8809_v37 }
 0x113   : > { %1232 = vperm.xlu2 %8071, %v1138_v38  }
 0x114   : > { %1227 = vperm.xlu1 %8070, %v1137_v39  }
 0x115   : > { %2509 = vperm.xlu0 %8069, %v7562_v40   ;;  %v8820_v49 = vpop.permute.xlu2 %2454 }
 0x116   : > { %14802 = vst [vmem:[#allocation63_spill] sm:$0xff] %v8820_v49  ;;  %v8822_v53 = vpop.permute.xlu1 %1157 }
 0x117   : > { %14803 = vst [vmem:[#allocation64_spill] sm:$0xff] %v8822_v53  ;;  %v8824_v54 = vpop.permute.xlu0 %2439 }
 0x118   : > { %14804 = vst [vmem:[#allocation65_spill] sm:$0xff] %v8824_v54 }
 0x11b   : > { %2514 = vperm.xlu2 %8071, %v7563_v9   ;;  %v7564_v9 = vld [vmem:[%s14084_s13 + $0x3b8] sm:$0xff] }
 0x11c   : > { %2094 = vperm.xlu1 %8070, %v7513_v10  }
 0x11d   : > { %2089 = vperm.xlu0 %8069, %v7512_v27   ;;  %7412 = vmatmul.msk.bf16.gmra.mxu3 %vm661_vm1, %v7993_v23  ;;  %v8837_v38 = vpop.permute.xlu2 %1182 }
 0x11e   : > { %14805 = vst [vmem:[#allocation66_spill] sm:$0xff] %v8837_v38  ;;  %v8839_v39 = vpop.permute.xlu1 %2024 }
 0x11f   : > { %14806 = vst [vmem:[#allocation67_spill] sm:$0xff] %v8839_v39  ;;  %v8841_v40 = vpop.permute.xlu0 %2019 }
 0x120   : > { %14807 = vst [vmem:[#allocation68_spill] sm:$0xff] %v8841_v40 }
 0x123   : > { %1242 = vperm.xlu2 %8071, %v1140_v2  }
 0x124   : > { %1237 = vperm.xlu1 %8070, %v1139_v55   ;;  %v7514_v55 = vld [vmem:[%s14084_s13 + $0x2b0] sm:$0xff] }
 0x125   : > { %2519 = vperm.xlu0 %8069, %v7564_v9   ;;  %v8852_v10 = vpop.permute.xlu2 %2464 }
 0x126   : > { %14808 = vst [vmem:[#allocation69_spill] sm:$0xff] %v8852_v10  ;;  %v8854_v23 = vpop.permute.xlu1 %1167  ;;  %v8000_v10 = vld [vmem:[%s8348_s24 + $0x40] sm:$0xff] }
 0x127   : > { %14809 = vst [vmem:[#allocation70_spill] sm:$0xff] %v8854_v23  ;;  %v8856_v27 = vpop.permute.xlu0 %2449 }
 0x128   : > { %14810 = vst [vmem:[#allocation71_spill] sm:$0xff] %v8856_v27 }
 0x12b   : > { %2524 = vperm.xlu2 %8071, %v7565_v30  }
 0x12c   : > { %2104 = vperm.xlu1 %8070, %v7515_v47   ;;  %v7566_v47 = vld [vmem:[%s14084_s13 + $0x3c8] sm:$0xff] }
 0x12d   : > { %2099 = vperm.xlu0 %8069, %v7514_v55   ;;  %7413 = vmatmul.msk.bf16.gmra.mxu3 %vm661_vm1, %v7994_v33  ;;  %v8869_v2 = vpop.permute.xlu2 %1192 }
 0x12e   : > { %14811 = vst [vmem:[#allocation72_spill] sm:$0xff] %v8869_v2  ;;  %v8871_v9 = vpop.permute.xlu1 %2034 }
 0x12f   : > { %14812 = vst [vmem:[#allocation73_spill] sm:$0xff] %v8871_v9  ;;  %v8873_v35 = vpop.permute.xlu0 %2029 }
 0x130   : > { %14813 = vst [vmem:[#allocation74_spill] sm:$0xff] %v8873_v35 }
 0x133   : > { %1252 = vperm.xlu2 %8071, %v1142_v21  }
 0x134   : > { %1247 = vperm.xlu1 %8070, %v1141_v16   ;;  %v7516_v16 = vld [vmem:[%s14084_s13 + $0x2c0] sm:$0xff] }
 0x135   : > { %2529 = vperm.xlu0 %8069, %v7566_v47   ;;  %v8884_v33 = vpop.permute.xlu2 %2474 }
 0x136   : > { %14814 = vst [vmem:[#allocation75_spill] sm:$0xff] %v8884_v33  ;;  %v8886_v30 = vpop.permute.xlu1 %1177  ;;  %v1148_v33 = vld [vmem:[%s14084_s13 + $0xc8] sm:$0xff] }
 0x137   : > { %14815 = vst [vmem:[#allocation76_spill] sm:$0xff] %v8886_v30  ;;  %v8888_v55 = vpop.permute.xlu0 %2459 }
 0x138   : > { %14816 = vst [vmem:[#allocation77_spill] sm:$0xff] %v8888_v55 }
 0x13b   : > { %2534 = vperm.xlu2 %8071, %v7567_v60  }
 0x13c   : > { %2114 = vperm.xlu1 %8070, %v7517_v24   ;;  %v7568_v24 = vld [vmem:[%s14084_s13 + $0x3d8] sm:$0xff] }
 0x13d   : > { %2109 = vperm.xlu0 %8069, %v7516_v16   ;;  %7414 = vmatmul.msk.bf16.gmra.mxu3 %vm661_vm1, %v7995_v18  ;;  %v8901_v21 = vpop.permute.xlu2 %1202 }
 0x13e   : > { %14817 = vst [vmem:[#allocation78_spill] sm:$0xff] %v8901_v21  ;;  %v8903_v47 = vpop.permute.xlu1 %2044 }
 0x13f   : > { %14818 = vst [vmem:[#allocation79_spill] sm:$0xff] %v8903_v47  ;;  %v8905_v1 = vpop.permute.xlu0 %2039 }
 0x140   : > { %14819 = vst [vmem:[#allocation80_spill] sm:$0xff] %v8905_v1 }
 0x143   : > { %1262 = vperm.xlu2 %8071, %v1144_v48  }
 0x144   : > { %1257 = vperm.xlu1 %8070, %v1143_v45   ;;  %v7518_v45 = vld [vmem:[%s14084_s13 + $0x2d0] sm:$0xff] }
 0x145   : > { %2539 = vperm.xlu0 %8069, %v7568_v24   ;;  %v8916_v18 = vpop.permute.xlu2 %2484 }
 0x146   : > { %14820 = vst [vmem:[#allocation81_spill] sm:$0xff] %v8916_v18  ;;  %v8918_v60 = vpop.permute.xlu1 %1187  ;;  %v7571_v18 = vld [vmem:[%s14084_s13 + $0x3f0] sm:$0xff] }
 0x147   : > { %14821 = vst [vmem:[#allocation82_spill] sm:$0xff] %v8918_v60  ;;  %v8920_v16 = vpop.permute.xlu0 %2469 }
 0x148   : > { %14822 = vst [vmem:[#allocation83_spill] sm:$0xff] %v8920_v16 }
 0x14b   : > { %2544 = vperm.xlu2 %8071, %v7569_v32  }
 0x14c   : > { %2124 = vperm.xlu1 %8070, %v7519_v12   ;;  %v7570_v12 = vld [vmem:[%s14084_s13 + $0x3e8] sm:$0xff] }
 0x14d   : > { %2119 = vperm.xlu0 %8069, %v7518_v45   ;;  %7415 = vmatmul.msk.bf16.gmra.mxu3 %vm661_vm1, %v7996_v5  ;;  %v8933_v48 = vpop.permute.xlu2 %1212 }
 0x14e   : > { %14823 = vst [vmem:[#allocation84_spill] sm:$0xff] %v8933_v48  ;;  %v8935_v24 = vpop.permute.xlu1 %2054 }
 0x14f   : > { %14824 = vst [vmem:[#allocation85_spill] sm:$0xff] %v8935_v24  ;;  %v8937_v34 = vpop.permute.xlu0 %2049 }
 0x150   : > { %14825 = vst [vmem:[#allocation86_spill] sm:$0xff] %v8937_v34  ;;  %v7708_v34 = vld [vmem:[%s14084_s13 + $0x718] sm:$0xff] }
 0x153   : > { %1272 = vperm.xlu2 %8071, %v1146_v26  }
 0x154   : > { %1267 = vperm.xlu1 %8070, %v1145_v25   ;;  %v7520_v25 = vld [vmem:[%s14084_s13 + $0x2e0] sm:$0xff] }
 0x155   : > { %2549 = vperm.xlu0 %8069, %v7570_v12   ;;  %v8948_v5 = vpop.permute.xlu2 %2494 }
 0x156   : > { %14826 = vst [vmem:[#allocation87_spill] sm:$0xff] %v8948_v5  ;;  %v8950_v32 = vpop.permute.xlu1 %1197 }
 0x157   : > { %14827 = vst [vmem:[#allocation88_spill] sm:$0xff] %v8950_v32  ;;  %v8952_v45 = vpop.permute.xlu0 %2479 }
 0x158   : > { %14828 = vst [vmem:[#allocation89_spill] sm:$0xff] %v8952_v45  ;;  %v1147_v45 = vld [vmem:[%s14084_s13 + $0xc0] sm:$0xff] }
 0x15b   : > { %2554 = vperm.xlu2 %8071, %v7571_v18  }
 0x15c   : > { %2134 = vperm.xlu1 %8070, %v7521_v19   ;;  %v7572_v19 = vld [vmem:[%s14084_s13 + $0x3f8] sm:$0xff] }
 0x15d   : > { %2129 = vperm.xlu0 %8069, %v7520_v25   ;;  %7416 = vmatmul.msk.bf16.gmra.mxu3 %vm661_vm1, %v7997_v63  ;;  %v8965_v26 = vpop.permute.xlu2 %1222 }
 0x15e   : > { %14829 = vst [vmem:[#allocation90_spill] sm:$0xff] %v8965_v26  ;;  %v8967_v12 = vpop.permute.xlu1 %2064  ;;  %v1088_v26 = vlaneseq }
 0x15f   : > { %14830 = vst [vmem:[#allocation91_spill] sm:$0xff] %v8967_v12  ;;  %v8969_v5 = vpop.permute.xlu0 %2059  ;;  %v7523_v12 = vld [vmem:[%s14084_s13 + $0x2f8] sm:$0xff] }
 0x160   : > { %14831 = vst [vmem:[#allocation92_spill] sm:$0xff] %v8969_v5  ;;  %v7705_v5 = vld [vmem:[%s14084_s13 + $0x700] sm:$0xff] }
 0x163   : > { %1282 = vperm.xlu2 %8071, %v1148_v33   ;;  %v7522_v33 = vld [vmem:[%s14084_s13 + $0x2f0] sm:$0xff] }
 0x164   : > { %1277 = vperm.xlu1 %8070, %v1147_v45  }
 0x165   : > { %2559 = vperm.xlu0 %8069, %v7572_v19   ;;  %v8980_v63 = vpop.permute.xlu2 %2504 }
 0x166   : > { %14832 = vst [vmem:[#allocation93_spill] sm:$0xff] %v8980_v63  ;;  %v8982_v18 = vpop.permute.xlu1 %1207 }
 0x167   : > { %14833 = vst [vmem:[#allocation94_spill] sm:$0xff] %v8982_v18  ;;  %v8984_v25 = vpop.permute.xlu0 %2489 }
 0x168   : > { %14834 = vst [vmem:[#allocation95_spill] sm:$0xff] %v8984_v25  ;;  %v7608_v25 = vld [vmem:[%s14084_s13 + $0x508] sm:$0xff] }
 0x16b   : > { %3839 = vperm.xlu2 %8071, %v7705_v5   ;;  %v7706_v5 = vld [vmem:[%s14084_s13 + $0x708] sm:$0xff] }
 0x16c   : > { %2144 = vperm.xlu1 %8070, %v7523_v12  }
 0x16d   : > { %2139 = vperm.xlu0 %8069, %v7522_v33   ;;  %7417 = vmatmul.msk.bf16.gmra.mxu3 %vm661_vm1, %v7998_v57  ;;  %v8997_v45 = vpop.permute.xlu2 %1232 }
 0x16e   : > { %14835 = vst [vmem:[#allocation96_spill] sm:$0xff] %v8997_v45  ;;  %v8999_v19 = vpop.permute.xlu1 %2074  ;;  %v7999_v45 = vld [vmem:[%s8348_s24 + $0x38] sm:$0xff] }
 0x16f   : > { %14836 = vst [vmem:[#allocation97_spill] sm:$0xff] %v8999_v19  ;;  %v9001_v63 = vpop.permute.xlu0 %2069  ;;  %v7755_v19 = vld [vmem:[%s14084_s13 + $0x808] sm:$0xff] }
 0x170   : > { %14837 = vst [vmem:[#allocation98_spill] sm:$0xff] %v9001_v63  ;;  %v7656_v63 = vld [vmem:[%s14084_s13 + $0x600] sm:$0xff] }
 0x173   : > { %3014 = vperm.xlu2 %8071, %v7608_v25  }
 0x174   : > { %3009 = vperm.xlu1 %8070, %v7607_v20   ;;  %v7754_v20 = vld [vmem:[%s14084_s13 + $0x800] sm:$0xff] }
 0x175   : > { %3844 = vperm.xlu0 %8069, %v7706_v5   ;;  %v9012_v57 = vpop.permute.xlu2 %2514 }
 0x176   : > { %14838 = vst [vmem:[#allocation99_spill] sm:$0xff] %v9012_v57  ;;  %v9014_v12 = vpop.permute.xlu1 %1217 }
 0x177   : > { %14839 = vst [vmem:[#allocation100_spill] sm:$0xff] %v9014_v12  ;;  %v9016_v33 = vpop.permute.xlu0 %2499 }
 0x178   : > { %14840 = vst [vmem:[#allocation101_spill] sm:$0xff] %v9016_v33 }
 0x17b   : > { %3424 = vperm.xlu2 %8071, %v7656_v63   ;;  %v7707_v63 = vld [vmem:[%s14084_s13 + $0x710] sm:$0xff] }
 0x17c   : > { %4259 = vperm.xlu1 %8070, %v7755_v19  }
 0x17d   : > { %4254 = vperm.xlu0 %8069, %v7754_v20   ;;  %7418 = vmatmul.msk.bf16.gmra.mxu3 %vm661_vm1, %v7999_v45  ;;  %v9029_v25 = vpop.permute.xlu2 %1242  ;;  %v7657_v45 = vld [vmem:[%s14084_s13 + $0x608] sm:$0xff] }
 0x17e   : > { %14841 = vst [vmem:[#allocation102_spill] sm:$0xff] %v9029_v25  ;;  %v9031_v5 = vpop.permute.xlu1 %2084  ;;  %v7610_v25 = vld [vmem:[%s14084_s13 + $0x518] sm:$0xff] }
 0x17f   : > { %14842 = vst [vmem:[#allocation103_spill] sm:$0xff] %v9031_v5  ;;  %v9033_v57 = vpop.permute.xlu0 %2079  ;;  %v7756_v5 = vld [vmem:[%s14084_s13 + $0x810] sm:$0xff] }
 0x180   : > { %14843 = vst [vmem:[#allocation104_spill] sm:$0xff] %v9033_v57  ;;  %v9035_v33 = vpop.f32.mrf.mxu3 }
 0x181   : > { %14844 = vst [vmem:[#allocation105_spill] sm:$0xff] %v9035_v33 }
 0x183   : > { %3854 = vperm.xlu2 %8071, %v7708_v34   ;;  %v7609_v34 = vld [vmem:[%s14084_s13 + $0x510] sm:$0xff] }
 0x184   : > { %3849 = vperm.xlu1 %8070, %v7707_v63  }
 0x185   : > { %3429 = vperm.xlu0 %8069, %v7657_v45   ;;  %v9046_v19 = vpop.permute.xlu2 %2524 }
 0x186   : > { %14845 = vst [vmem:[#allocation106_spill] sm:$0xff] %v9046_v19  ;;  %v9048_v20 = vpop.permute.xlu1 %1227 }
 0x187   : > { %14846 = vst [vmem:[#allocation107_spill] sm:$0xff] %v9048_v20  ;;  %v9050_v33 = vpop.permute.xlu0 %2509  ;;  %v8001_v20 = vld [vmem:[%s8348_s24 + $0x48] sm:$0xff] }
 0x188   : > { %14847 = vst [vmem:[#allocation108_spill] sm:$0xff] %v9050_v33  ;;  %v9052_v57 = vpop.f32.mrf.mxu3  ;;  %v7659_v33 = vld [vmem:[%s14084_s13 + $0x618] sm:$0xff] }
 0x189   : > { %14848 = vst [vmem:[#allocation109_spill] sm:$0xff] %v9052_v57 }
 0x18b   : > { %4264 = vperm.xlu2 %8071, %v7756_v5  }
 0x18c   : > { %3024 = vperm.xlu1 %8070, %v7610_v25   ;;  %v7658_v25 = vld [vmem:[%s14084_s13 + $0x610] sm:$0xff] }
 0x18d   : > { %3019 = vperm.xlu0 %8069, %v7609_v34   ;;  %7419 = vmatmul.msk.bf16.gmra.mxu3 %vm661_vm1, %v8000_v10  ;;  %v9069_v57 = vpop.permute.xlu2 %1252  ;;  %v7757_v10 = vld [vmem:[%s14084_s13 + $0x818] sm:$0xff] }
 0x18e   : > { %v9065_v63 = vpop.permute.xlu1 %2094  ;;  %14851 = vst [vmem:[#allocation112_spill] sm:$0xff] %v9069_v57  ;;  %v7710_v57 = vld [vmem:[%s14084_s13 + $0x728] sm:$0xff] }
 0x18f   : > { %14849 = vst [vmem:[#allocation110_spill] sm:$0xff] %v9065_v63  ;;  %v9067_v45 = vpop.permute.xlu0 %2089  ;;  %v7611_v63 = vld [vmem:[%s14084_s13 + $0x520] sm:$0xff] }
 0x190   : > { %14850 = vst [vmem:[#allocation111_spill] sm:$0xff] %v9067_v45  ;;  %v9071_v19 = vpop.f32.mrf.mxu3 }
 0x193   : > { %3439 = vperm.xlu2 %8071, %v7659_v33   ;;  %v7709_v33 = vld [vmem:[%s14084_s13 + $0x720] sm:$0xff] }
 0x194   : > { %3434 = vperm.xlu1 %8070, %v7658_v25  }
 0x195   : > { %4269 = vperm.xlu0 %8069, %v7757_v10   ;;  %v9095_v12 = vpop.permute.xlu2 %2534 }
 0x196   : > { %v9082_v5 = vpop.permute.xlu1 %1237  ;;  %14854 = vst [vmem:[#allocation115_spill] sm:$0xff] %v9095_v12  ;;  %v7759_v12 = vld [vmem:[%s14084_s13 + $0x828] sm:$0xff] }
 0x197   : > { %14852 = vst [vmem:[#allocation113_spill] sm:$0xff] %v9082_v5  ;;  %v9084_v34 = vpop.permute.xlu0 %2519 }
 0x198   : > { %14853 = vst [vmem:[#allocation114_spill] sm:$0xff] %v9084_v34  ;;  %v9086_v45 = vpop.f32.mrf.mxu3  ;;  %v9108_v34 = vld [vmem:[%s14073_s2] ss:$0 sm:$0xff] }
 0x19b   : > { %3029 = vperm.xlu2 %8071, %v7611_v63   ;;  %v7612_v63 = vld [vmem:[%s14084_s13 + $0x528] sm:$0xff] }
 0x19c   : > { %3864 = vperm.xlu1 %8070, %v7710_v57   ;;  %v7758_v57 = vld [vmem:[%s14084_s13 + $0x820] sm:$0xff] }
 0x19d   : > { %3859 = vperm.xlu0 %8069, %v7709_v33   ;;  %7420 = vmatmul.msk.bf16.gmra.mxu3 %vm661_vm1, %v8001_v20  ;;  %v9123_v33 = vld [vmem:[%s14074_s3] ss:$0 sm:$0xff] }
 0x19e   : > { %v9101_v25 = vpop.permute.xlu1 %2104 }
 0x19f   : > { %14855 = vst [vmem:[#allocation116_spill] sm:$0xff] %v9101_v25  ;;  %v9103_v10 = vpop.permute.xlu0 %2099 }
 0x1a0   : > { %14856 = vst [vmem:[#allocation117_spill] sm:$0xff] %v9103_v10  ;;  %v877_v5 = vpop.f32.mrf.mxu3  ;;  %v9125_v10 = vpop.permute.xlu2 %1262 }
 0x1a1   : > { %v958_v20 = vmul.f32 %v9108_v34, %v877_v5  ;;  %14857 = vst [vmem:[#allocation118_spill] sm:$0xff] %v9125_v10 }
 0x1a3   : > { %4279 = vperm.xlu2 %8071, %v7759_v12   ;;  %v994_v25 = vadd.f32 %v9123_v33, %v958_v20  ;;  %v7661_v12 = vld [vmem:[%s14084_s13 + $0x628] sm:$0xff]  ;;  %v7660_v20 = vld [vmem:[%s14084_s13 + $0x620] sm:$0xff] }
 0x1a4   : > { %4274 = vperm.xlu1 %8070, %v7758_v57   ;;  %v8002_v57 = vld [vmem:[%s8348_s24 + $0x50] sm:$0xff] }
 0x1a5   : > { %3034 = vperm.xlu0 %8069, %v7612_v63   ;;  %v9140_v63 = vmax.f32 %v994_v25, 0.0  ;;  %v7614_v25 = vld [vmem:[%s14084_s13 + $0x538] sm:$0xff] }
 0x1a6   : > { %v9128_v24 = vpop.permute.xlu1 %1247 }
 0x1a7   : > { %14858 = vst [vmem:[#allocation119_spill] sm:$0xff] %v9128_v24  ;;  %v9130_v16 = vpop.permute.xlu0 %2529 }
 0x1a8   : > { %14859 = vst [vmem:[#allocation120_spill] sm:$0xff] %v9130_v16  ;;  %v879_v5 = vpop.f32.mrf.mxu3  ;;  %v9151_v24 = vpop.permute.xlu2 %2544 }
 0x1a9   : > { %v959_v14 = vmul.f32 %v9108_v34, %v879_v5  ;;  %14860 = vst [vmem:[#allocation121_spill] sm:$0xff] %v9140_v63  ;;  %v9146_v5 = vshrl.u32 %v1088_v26, 7 }
 0x1aa   : > { %14863 = vst [vmem:[#allocation124_spill] sm:$0xff] %v9151_v24  ;;  %v14868_v24 = vrot.slane %v9140_v63, 7 }
 0x1ab   : > { %v995_v16 = vadd.f32 %v9123_v33, %v959_v14  ;;  %3869 = vperm.xlu2 %8071, %v7711_v13   ;;  %14861 = vst [vmem:[#allocation122_spill] sm:$0xff] %v9146_v5  ;;  %v9159_v14 = vmul.f32 %v8512_v36, %v9140_v63  ;;  %vm1921_vm2 = vcmp.lt.s32.totalorder %v9146_v5, 7  ;;  %vm1090_vm3 = vcmp.lt.s32.totalorder %v9146_v5, 1  ;;  %v7613_v36 = vld [vmem:[%s14084_s13 + $0x530] sm:$0xff] }
 0x1ac   : > { %3449 = vperm.xlu1 %8070, %v7661_v12  }
 0x1ad   : > { %v9148_v10 = vmax.f32 %v995_v16, 0.0  ;;  %3444 = vperm.xlu0 %8069, %v7660_v20   ;;  %7421 = vmatmul.msk.bf16.gmra.mxu3 %vm661_vm1, %v8002_v57 }
 0x1ae   : > { %v9153_v1 = vpop.permute.xlu1 %2114 }
 0x1af   : > { %14862 = vst [vmem:[#allocation123_spill] sm:$0xff] %v9148_v10  ;;  %v9161_v13 = vpop.permute.xlu0 %2109  ;;  %v1892_v16 = vrot.slane %v9148_v10, 1  ;;  %v1059_v26 = vrot.slane %v9148_v10, 7  ;;  %v9167_v12 = vmul.f32 %v8529_v42, %v9148_v10  ;;  %v14866_v42 = vrot.slane %v9140_v63, 1 }
 0x1b0   : > { %14864 = vst [vmem:[#allocation125_spill] sm:$0xff] %v9153_v1  ;;  %v882_v20 = vpop.f32.mrf.mxu3  ;;  %v7712_v1 = vld [vmem:[%s14084_s13 + $0x738] sm:$0xff]  ;;  %v9206_v48 = vpop.permute.xlu2 %1272 }
 0x1b1   : > { %14865 = vst [vmem:[#allocation126_spill] sm:$0xff] %v9161_v13  ;;  %v960_v49 = vmul.f32 %v9108_v34, %v882_v20  ;;  %v9184_v57 = vsel %vm1921_vm2, %v14866_v42, %v1892_v16  ;;  %v9190_v13 = vsel %vm1090_vm3, %v14868_v24, %v1059_v26 }
 0x1b2   : > { %14867 = vst [vmem:[#allocation127_spill] sm:$0xff] %v9184_v57 }
 0x1b3   : > { %v996_v18 = vadd.f32 %v9123_v33, %v960_v49  ;;  %3044 = vperm.xlu2 %8071, %v7614_v25   ;;  %14872 = vst [vmem:[#allocation131_spill] sm:$0xff] %v9206_v48  ;;  %v8003_v49 = vld [vmem:[%s8348_s24 + $0x58] sm:$0xff] }
 0x1b4   : > { %3039 = vperm.xlu1 %8070, %v7613_v36   ;;  %v7662_v36 = vld [vmem:[%s14084_s13 + $0x630] sm:$0xff] }
 0x1b5   : > { %v9198_v42 = vmax.f32 %v996_v18, 0.0  ;;  %3874 = vperm.xlu0 %8069, %v7712_v1   ;;  %v7761_v1 = vld [vmem:[%s14084_s13 + $0x838] sm:$0xff] }
 0x1b6   : > { %v9200_v47 = vpop.permute.xlu1 %1257 }
 0x1b7   : > { %14869 = vst [vmem:[#allocation128_spill] sm:$0xff] %v9198_v42  ;;  %v9202_v55 = vpop.permute.xlu0 %2539  ;;  %v1893_v24 = vrot.slane %v9198_v42, 1  ;;  %v1060_v20 = vrot.slane %v9198_v42, 7 }
 0x1b8   : > { %14870 = vst [vmem:[#allocation129_spill] sm:$0xff] %v9200_v47  ;;  %v884_v4 = vpop.f32.mrf.mxu3 }
 0x1b9   : > { %14871 = vst [vmem:[#allocation130_spill] sm:$0xff] %v9202_v55  ;;  %v961_v50 = vmul.f32 %v9108_v34, %v884_v4  ;;  %v9218_v18 = vsel %vm1921_vm2, %v1892_v16, %v1893_v24  ;;  %v9222_v25 = vsel %vm1090_vm3, %v1059_v26, %v1060_v20  ;;  %v7760_v4 = vld [vmem:[%s14084_s13 + $0x830] sm:$0xff]  ;;  %v9235_v16 = vmul.f32 %v8585_v0, %v9198_v42  ;;  %v9269_v0 = vpop.permute.xlu2 %2554 }
 0x1ba   : > { %14873 = vst [vmem:[#allocation132_spill] sm:$0xff] %v9218_v18 }
 0x1bb   : > { %v997_v55 = vadd.f32 %v9123_v33, %v961_v50  ;;  %3454 = vperm.xlu2 %8071, %v7662_v36   ;;  %14878 = vst [vmem:[#allocation137_spill] sm:$0xff] %v9269_v0 }
 0x1bc   : > { %4289 = vperm.xlu1 %8070, %v7761_v1   ;;  %v7714_v1 = vld [vmem:[%s14084_s13 + $0x748] sm:$0xff] }
 0x1bd   : > { %v9228_v48 = vmax.f32 %v997_v55, 0.0  ;;  %4284 = vperm.xlu0 %8069, %v7760_v4   ;;  %7422 = vmatmul.msk.bf16.gmra.mxu3 %vm661_vm1, %v8003_v49  ;;  %v7713_v49 = vld [vmem:[%s14084_s13 + $0x740] sm:$0xff] }
 0x1be   : > { %v9231_v47 = vpop.permute.xlu1 %2124 }
 0x1bf   : > { %14874 = vst [vmem:[#allocation133_spill] sm:$0xff] %v9228_v48  ;;  %v9237_v26 = vpop.permute.xlu0 %2119  ;;  %v14174_v35 = vrot.slane %v9228_v48, 1  ;;  %v14176_v7 = vrot.slane %v9228_v48, 7  ;;  %v9243_v50 = vmul.f32 %v8581_v62, %v9228_v48  ;;  %v7616_v62 = vld [vmem:[%s14084_s13 + $0x548] sm:$0xff] }
 0x1c0   : > { %14875 = vst [vmem:[#allocation134_spill] sm:$0xff] %v9231_v47  ;;  %v9247_v36 = vpop.f32.mrf.mxu3 }
 0x1c1   : > { %14876 = vst [vmem:[#allocation135_spill] sm:$0xff] %v9237_v26  ;;  %v9259_v4 = vsel %vm1921_vm2, %v1893_v24, %v14174_v35  ;;  %v9265_v55 = vsel %vm1090_vm3, %v1060_v20, %v14176_v7  ;;  %v7663_v26 = vld [vmem:[%s14084_s13 + $0x638] sm:$0xff]  ;;  %v7762_v20 = vld [vmem:[%s14084_s13 + $0x840] sm:$0xff] }
 0x1c2   : > { %14877 = vst [vmem:[#allocation136_spill] sm:$0xff] %v9259_v4  ;;  %v8004_v7 = vld [vmem:[%s8348_s24 + $0x60] sm:$0xff] }
 0x1c3   : > { %3884 = vperm.xlu2 %8071, %v7714_v1   ;;  %v7615_v1 = vld [vmem:[%s14084_s13 + $0x540] sm:$0xff] }
 0x1c4   : > { %3879 = vperm.xlu1 %8070, %v7713_v49   ;;  %v9289_v49 = vpop.permute.xlu2 %1282  ;;  %v15209_v5 = vld [vmem:[#allocation137_spill] sm:$0xff] }
 0x1c5   : > { %3459 = vperm.xlu0 %8069, %v7663_v26   ;;  %14881 = vst [vmem:[#allocation140_spill] sm:$0xff] %v9289_v49 }
 0x1c6   : > { %v9274_v24 = vpop.permute.xlu1 %1267 }
 0x1c7   : > { %14879 = vst [vmem:[#allocation138_spill] sm:$0xff] %v9274_v24  ;;  %v9276_v35 = vpop.permute.xlu0 %2549 }
 0x1c8   : > { %14880 = vst [vmem:[#allocation139_spill] sm:$0xff] %v9276_v35  ;;  %v889_v47 = vpop.f32.mrf.mxu3 }
 0x1c9   : > { %v963_v26 = vmul.f32 %v9108_v34, %v889_v47  ;;  %v7665_v47 = vld [vmem:[%s14084_s13 + $0x648] sm:$0xff] }
 0x1cb   : > { %4294 = vperm.xlu2 %8071, %v7762_v20   ;;  %v999_v35 = vadd.f32 %v9123_v33, %v963_v26 }
 0x1cc   : > { %3054 = vperm.xlu1 %8070, %v7616_v62   ;;  %v7664_v62 = vld [vmem:[%s14084_s13 + $0x640] sm:$0xff]  ;;  %v9312_v26 = vpop.permute.xlu2 %3839 }
 0x1cd   : > { %3049 = vperm.xlu0 %8069, %v7615_v1   ;;  %7423 = vmatmul.msk.bf16.gmra.mxu3 %vm661_vm1, %v8004_v7  ;;  %v7763_v7 = vld [vmem:[%s14084_s13 + $0x848] sm:$0xff]  ;;  %v9307_v20 = vmax.f32 %v999_v35, 0.0  ;;  %14885 = vst [vmem:[#allocation144_spill] sm:$0xff] %v9312_v26 }
 0x1ce   : > { %v9292_v0 = vpop.permute.xlu1 %2134 }
 0x1cf   : > { %14882 = vst [vmem:[#allocation141_spill] sm:$0xff] %v9292_v0  ;;  %v9295_v24 = vpop.permute.xlu0 %2129  ;;  %v14191_v49 = vrot.slane %v9307_v20, 1  ;;  %v14194_v35 = vrot.slane %v9307_v20, 7 }
 0x1d0   : > { %14883 = vst [vmem:[#allocation142_spill] sm:$0xff] %v9295_v24  ;;  %v892_v32 = vpop.f32.mrf.mxu3 }
 0x1d1   : > { %v964_v9 = vmul.f32 %v9108_v34, %v892_v32 }
 0x1d3   : > { %v1000_v1 = vadd.f32 %v9123_v33, %v964_v9  ;;  %3469 = vperm.xlu2 %8071, %v7665_v47   ;;  %v7617_v47 = vld [vmem:[%s14084_s13 + $0x550] sm:$0xff] }
 0x1d4   : > { %3464 = vperm.xlu1 %8070, %v7664_v62   ;;  %v7716_v62 = vld [vmem:[%s14084_s13 + $0x758] sm:$0xff] }
 0x1d5   : > { %v9310_v32 = vmax.f32 %v1000_v1, 0.0  ;;  %4299 = vperm.xlu0 %8069, %v7763_v7   ;;  %v8005_v7 = vld [vmem:[%s8348_s24 + $0x68] sm:$0xff] }
 0x1d6   : > { %v9314_v24 = vpop.permute.xlu1 %1277 }
 0x1d7   : > { %14884 = vst [vmem:[#allocation143_spill] sm:$0xff] %v9310_v32  ;;  %v9316_v0 = vpop.permute.xlu0 %2559  ;;  %v14190_v27 = vrot.slane %v9310_v32, 1  ;;  %v14193_v21 = vrot.slane %v9310_v32, 7 }
 0x1d8   : > { %14886 = vst [vmem:[#allocation145_spill] sm:$0xff] %v9314_v24  ;;  %v9322_v9 = vpop.f32.mrf.mxu3  ;;  %v7715_v24 = vld [vmem:[%s14084_s13 + $0x750] sm:$0xff] }
 0x1d9   : > { %14887 = vst [vmem:[#allocation146_spill] sm:$0xff] %v9316_v0  ;;  %v9337_v1 = vsel %vm1921_vm2, %v14191_v49, %v14190_v27  ;;  %v9345_v0 = vsel %vm1090_vm3, %v14194_v35, %v14193_v21  ;;  %v9355_v49 = vpop.permute.xlu2 %3014  ;;  %v7765_v21 = vld [vmem:[%s14084_s13 + $0x858] sm:$0xff]  ;;  %v9374_v35 = vmul.f32 %v9312_v26, %v9140_v63  ;;  %v7619_v26 = vld [vmem:[%s14084_s13 + $0x560] sm:$0xff] }
 0x1da   : > { %14888 = vst [vmem:[#allocation147_spill] sm:$0xff] %v9337_v1 }
 0x1db   : > { %14889 = vst [vmem:[#allocation148_spill] sm:$0xff] %v9345_v0  ;;  %3059 = vperm.xlu2 %8071, %v7617_v47   ;;  %v7764_v47 = vld [vmem:[%s14084_s13 + $0x850] sm:$0xff] }
 0x1dc   : > { %3894 = vperm.xlu1 %8070, %v7716_v62   ;;  %14892 = vst [vmem:[#allocation151_spill] sm:$0xff] %v9355_v49 }
 0x1dd   : > { %3889 = vperm.xlu0 %8069, %v7715_v24   ;;  %7424 = vmatmul.msk.bf16.gmra.mxu3 %vm661_vm1, %v8005_v7  ;;  %v7618_v24 = vld [vmem:[%s14084_s13 + $0x558] sm:$0xff]  ;;  %14896 = vst [vmem:[#allocation155_spill] sm:$0xff] %v9374_v35 }
 0x1de   : > { %v9351_v46 = vpop.permute.xlu1 %2144 }
 0x1df   : > { %14890 = vst [vmem:[#allocation149_spill] sm:$0xff] %v9351_v46  ;;  %v9353_v27 = vpop.permute.xlu0 %2139 }
 0x1e0   : > { %14891 = vst [vmem:[#allocation150_spill] sm:$0xff] %v9353_v27  ;;  %v9357_v1 = vpop.f32.mrf.mxu3 }
 0x1e1   : > { %14893 = vst [vmem:[#allocation152_spill] sm:$0xff] %v9357_v1  ;;  %v9389_v49 = vpop.permute.xlu2 %3424 }
 0x1e2   : > { %14899 = vst [vmem:[#allocation158_spill] sm:$0xff] %v9389_v49  ;;  %v7620_v49 = vld [vmem:[%s14084_s13 + $0x568] sm:$0xff] }
 0x1e3   : > { %4309 = vperm.xlu2 %8071, %v7765_v21   ;;  %v7717_v21 = vld [vmem:[%s14084_s13 + $0x760] sm:$0xff] }
 0x1e4   : > { %4304 = vperm.xlu1 %8070, %v7764_v47   ;;  %v7667_v47 = vld [vmem:[%s14084_s13 + $0x658] sm:$0xff] }
 0x1e5   : > { %3064 = vperm.xlu0 %8069, %v7618_v24   ;;  %v8006_v24 = vld [vmem:[%s8348_s24 + $0x70] sm:$0xff] }
 0x1e6   : > { %v9368_v62 = vpop.permute.xlu1 %3009 }
 0x1e7   : > { %14894 = vst [vmem:[#allocation153_spill] sm:$0xff] %v9368_v62  ;;  %v9370_v7 = vpop.permute.xlu0 %3844 }
 0x1e8   : > { %14895 = vst [vmem:[#allocation154_spill] sm:$0xff] %v9370_v7  ;;  %v9378_v27 = vmul.f32 %v9370_v7, %v9148_v10  ;;  %v9380_v46 = vpop.f32.mrf.mxu3  ;;  %v7666_v7 = vld [vmem:[%s14084_s13 + $0x650] sm:$0xff] }
 0x1e9   : > { %14898 = vst [vmem:[#allocation157_spill] sm:$0xff] %v9380_v46 }
 0x1ea   : > { %14897 = vst [vmem:[#allocation156_spill] sm:$0xff] %v9378_v27  ;;  %v7720_v27 = vld [vmem:[%s14084_s13 + $0x778] sm:$0xff] }
 0x1eb   : > { %3899 = vperm.xlu2 %8071, %v7717_v21   ;;  %v7718_v21 = vld [vmem:[%s14084_s13 + $0x768] sm:$0xff] }
 0x1ec   : > { %3479 = vperm.xlu1 %8070, %v7667_v47  }
 0x1ed   : > { %3474 = vperm.xlu0 %8069, %v7666_v7   ;;  %7425 = vmatmul.msk.bf16.gmra.mxu3 %vm661_vm1, %v8006_v24  ;;  %v9410_v7 = vpop.permute.xlu2 %3854 }
 0x1ee   : > { %v9397_v10 = vpop.permute.xlu1 %4259  ;;  %14902 = vst [vmem:[#allocation161_spill] sm:$0xff] %v9410_v7  ;;  %v9416_v24 = vmul.f32 %v9410_v7, %v9228_v48  ;;  %v7766_v7 = vld [vmem:[%s14084_s13 + $0x860] sm:$0xff] }
 0x1ef   : > { %14900 = vst [vmem:[#allocation159_spill] sm:$0xff] %v9397_v10 }
 0x1f0   : > { %v9399_v62 = vpop.f32.mrf.mxu3  ;;  %14904 = vst [vmem:[#allocation163_spill] sm:$0xff] %v9416_v24  ;;  %v7769_v24 = vld [vmem:[%s14084_s13 + $0x878] sm:$0xff] }
 0x1f1   : > { %14901 = vst [vmem:[#allocation160_spill] sm:$0xff] %v9399_v62 }
 0x1f3   : > { %3074 = vperm.xlu2 %8071, %v7620_v49   ;;  %v7668_v49 = vld [vmem:[%s14084_s13 + $0x660] sm:$0xff] }
 0x1f4   : > { %3069 = vperm.xlu1 %8070, %v7619_v26   ;;  %v7767_v26 = vld [vmem:[%s14084_s13 + $0x868] sm:$0xff] }
 0x1f5   : > { %3904 = vperm.xlu0 %8069, %v7718_v21   ;;  %v8007_v21 = vld [vmem:[%s8348_s24 + $0x78] sm:$0xff] }
 0x1f6   : > { %v9412_v47 = vpop.permute.xlu1 %3849 }
 0x1f7   : > { %14903 = vst [vmem:[#allocation162_spill] sm:$0xff] %v9412_v47  ;;  %v9420_v10 = vmul.f32 %v9412_v47, %v9198_v42  ;;  %v7719_v42 = vld [vmem:[%s14084_s13 + $0x770] sm:$0xff] }
 0x1f8   : > { %v9422_v35 = vpop.f32.mrf.mxu3 }
 0x1f9   : > { %14905 = vst [vmem:[#allocation164_spill] sm:$0xff] %v9420_v10  ;;  %v7669_v10 = vld [vmem:[%s14084_s13 + $0x668] sm:$0xff] }
 0x1fa   : > { %14906 = vst [vmem:[#allocation165_spill] sm:$0xff] %v9422_v35 }
 0x1fb   : > { %3484 = vperm.xlu2 %8071, %v7668_v49   ;;  %v7768_v49 = vld [vmem:[%s14084_s13 + $0x870] sm:$0xff] }
 0x1fc   : > { %4319 = vperm.xlu1 %8070, %v7767_v26   ;;  %v7622_v26 = vld [vmem:[%s14084_s13 + $0x578] sm:$0xff] }
 0x1fd   : > { %4314 = vperm.xlu0 %8069, %v7766_v7   ;;  %7426 = vmatmul.msk.bf16.gmra.mxu3 %vm661_vm1, %v8007_v21  ;;  %v7621_v21 = vld [vmem:[%s14084_s13 + $0x570] sm:$0xff] }
 0x200   : > { %v9437_v47 = vpop.f32.mrf.mxu3 }
 0x201   : > { %14907 = vst [vmem:[#allocation166_spill] sm:$0xff] %v9437_v47 }
 0x203   : > { %3914 = vperm.xlu2 %8071, %v7720_v27  }
 0x204   : > { %3909 = vperm.xlu1 %8070, %v7719_v42   ;;  %v7670_v42 = vld [vmem:[%s14084_s13 + $0x670] sm:$0xff] }
 0x205   : > { %3489 = vperm.xlu0 %8069, %v7669_v10   ;;  %v7671_v10 = vld [vmem:[%s14084_s13 + $0x678] sm:$0xff] }
 0x208   : > { %v9448_v7 = vpop.f32.mrf.mxu3 }
 0x209   : > { %14908 = vst [vmem:[#allocation167_spill] sm:$0xff] %v9448_v7  ;;  %v7573_v7 = vld [vmem:[%s14075_s4 + $0xc] sm:$0x3] }
 0x20a   : > { %v2661_v47 = vsel %vm1656_vm4, %v7573_v7, 0 }
 0x20b   : > { %4324 = vperm.xlu2 %8071, %v7768_v49   ;;  %2670 = vmatpush.bf16.msra.mxu3 %v2661_v47  ;;  %v957_v47 = vmul.f32 %v9108_v34, %v9086_v45  ;;  %v7681_v45 = vld [vmem:[%s14084_s13 + $0x6c8] sm:$0xff] }
 0x20c   : > { %3084 = vperm.xlu1 %8070, %v7622_v26   ;;  %v7623_v26 = vld [vmem:[%s14084_s13 + $0x580] sm:$0xff] }
 0x20d   : > { %3079 = vperm.xlu0 %8069, %v7621_v21   ;;  %v7722_v21 = vld [vmem:[%s14084_s13 + $0x788] sm:$0xff] }
 0x210   : > { %v9459_v27 = vpop.f32.mrf.mxu3 }
 0x211   : > { %14909 = vst [vmem:[#allocation168_spill] sm:$0xff] %v9459_v27  ;;  %v7721_v27 = vld [vmem:[%s14084_s13 + $0x780] sm:$0xff] }
 0x213   : > { %3499 = vperm.xlu2 %8071, %v7671_v10  }
 0x214   : > { %3494 = vperm.xlu1 %8070, %v7670_v42   ;;  %v7770_v42 = vld [vmem:[%s14084_s13 + $0x880] sm:$0xff] }
 0x215   : > { %4329 = vperm.xlu0 %8069, %v7769_v24   ;;  %v7771_v24 = vld [vmem:[%s14084_s13 + $0x888] sm:$0xff] }
 0x218   : > { %v9470_v49 = vpop.f32.mrf.mxu3 }
 0x219   : > { %14910 = vst [vmem:[#allocation169_spill] sm:$0xff] %v9470_v49  ;;  %v7624_v49 = vld [vmem:[%s14084_s13 + $0x588] sm:$0xff] }
 0x21b   : > { %3089 = vperm.xlu2 %8071, %v7623_v26  }
 0x21c   : > { %3924 = vperm.xlu1 %8070, %v7722_v21   ;;  %v7673_v21 = vld [vmem:[%s14084_s13 + $0x688] sm:$0xff] }
 0x21d   : > { %3919 = vperm.xlu0 %8069, %v7721_v27   ;;  %v7723_v27 = vld [vmem:[%s14084_s13 + $0x790] sm:$0xff] }
 0x220   : > { %v9481_v10 = vpop.f32.mrf.mxu3 }
 0x221   : > { %14911 = vst [vmem:[#allocation170_spill] sm:$0xff] %v9481_v10  ;;  %v7672_v10 = vld [vmem:[%s14084_s13 + $0x680] sm:$0xff] }
 0x223   : > { %4339 = vperm.xlu2 %8071, %v7771_v24  }
 0x224   : > { %4334 = vperm.xlu1 %8070, %v7770_v42   ;;  %v7625_v42 = vld [vmem:[%s14084_s13 + $0x590] sm:$0xff] }
 0x225   : > { %3094 = vperm.xlu0 %8069, %v7624_v49   ;;  %v7626_v49 = vld [vmem:[%s14084_s13 + $0x598] sm:$0xff] }
 0x228   : > { %v9492_v26 = vpop.f32.mrf.mxu3 }
 0x229   : > { %14912 = vst [vmem:[#allocation171_spill] sm:$0xff] %v9492_v26  ;;  %v7724_v26 = vld [vmem:[%s14084_s13 + $0x798] sm:$0xff] }
 0x22b   : > { %3929 = vperm.xlu2 %8071, %v7723_v27  }
 0x22c   : > { %3509 = vperm.xlu1 %8070, %v7673_v21   ;;  %v7773_v21 = vld [vmem:[%s14084_s13 + $0x898] sm:$0xff] }
 0x22d   : > { %3504 = vperm.xlu0 %8069, %v7672_v10   ;;  %v7674_v10 = vld [vmem:[%s14084_s13 + $0x690] sm:$0xff] }
 0x230   : > { %v9503_v24 = vpop.f32.mrf.mxu3 }
 0x231   : > { %14913 = vst [vmem:[#allocation172_spill] sm:$0xff] %v9503_v24  ;;  %v7772_v24 = vld [vmem:[%s14084_s13 + $0x890] sm:$0xff] }
 0x233   : > { %3104 = vperm.xlu2 %8071, %v7626_v49  }
 0x234   : > { %3099 = vperm.xlu1 %8070, %v7625_v42   ;;  %v7725_v42 = vld [vmem:[%s14084_s13 + $0x7a0] sm:$0xff] }
 0x235   : > { %3934 = vperm.xlu0 %8069, %v7724_v26   ;;  %v7726_v26 = vld [vmem:[%s14084_s13 + $0x7a8] sm:$0xff] }
 0x238   : > { %v9514_v27 = vpop.f32.mrf.mxu3 }
 0x239   : > { %14914 = vst [vmem:[#allocation173_spill] sm:$0xff] %v9514_v27  ;;  %v7675_v27 = vld [vmem:[%s14084_s13 + $0x698] sm:$0xff] }
 0x23b   : > { %3514 = vperm.xlu2 %8071, %v7674_v10  }
 0x23c   : > { %4349 = vperm.xlu1 %8070, %v7773_v21   ;;  %v7628_v21 = vld [vmem:[%s14084_s13 + $0x5a8] sm:$0xff] }
 0x23d   : > { %4344 = vperm.xlu0 %8069, %v7772_v24   ;;  %v7774_v24 = vld [vmem:[%s14084_s13 + $0x8a0] sm:$0xff] }
 0x240   : > { %v9525_v49 = vpop.f32.mrf.mxu3 }
 0x241   : > { %14915 = vst [vmem:[#allocation174_spill] sm:$0xff] %v9525_v49  ;;  %v7627_v49 = vld [vmem:[%s14084_s13 + $0x5a0] sm:$0xff] }
 0x243   : > { %3944 = vperm.xlu2 %8071, %v7726_v26  }
 0x244   : > { %3939 = vperm.xlu1 %8070, %v7725_v42   ;;  %v7676_v42 = vld [vmem:[%s14084_s13 + $0x6a0] sm:$0xff] }
 0x245   : > { %3519 = vperm.xlu0 %8069, %v7675_v27   ;;  %v7677_v27 = vld [vmem:[%s14084_s13 + $0x6a8] sm:$0xff] }
 0x248   : > { %v9536_v10 = vpop.f32.mrf.mxu3 }
 0x249   : > { %14916 = vst [vmem:[#allocation175_spill] sm:$0xff] %v9536_v10  ;;  %v7775_v10 = vld [vmem:[%s14084_s13 + $0x8a8] sm:$0xff] }
 0x24b   : > { %4354 = vperm.xlu2 %8071, %v7774_v24  }
 0x24c   : > { %3114 = vperm.xlu1 %8070, %v7628_v21   ;;  %v7728_v21 = vld [vmem:[%s14084_s13 + $0x7b8] sm:$0xff] }
 0x24d   : > { %3109 = vperm.xlu0 %8069, %v7627_v49   ;;  %v7629_v49 = vld [vmem:[%s14084_s13 + $0x5b0] sm:$0xff] }
 0x250   : > { %v9547_v26 = vpop.f32.mrf.mxu3 }
 0x251   : > { %14917 = vst [vmem:[#allocation176_spill] sm:$0xff] %v9547_v26  ;;  %v7727_v26 = vld [vmem:[%s14084_s13 + $0x7b0] sm:$0xff] }
 0x253   : > { %3529 = vperm.xlu2 %8071, %v7677_v27  }
 0x254   : > { %3524 = vperm.xlu1 %8070, %v7676_v42   ;;  %v7776_v42 = vld [vmem:[%s14084_s13 + $0x8b0] sm:$0xff] }
 0x255   : > { %4359 = vperm.xlu0 %8069, %v7775_v10   ;;  %v7777_v10 = vld [vmem:[%s14084_s13 + $0x8b8] sm:$0xff] }
 0x258   : > { %v9558_v24 = vpop.f32.mrf.mxu3 }
 0x259   : > { %14918 = vst [vmem:[#allocation177_spill] sm:$0xff] %v9558_v24  ;;  %v7630_v24 = vld [vmem:[%s14084_s13 + $0x5b8] sm:$0xff] }
 0x25b   : > { %3119 = vperm.xlu2 %8071, %v7629_v49  }
 0x25c   : > { %3954 = vperm.xlu1 %8070, %v7728_v21   ;;  %v7679_v21 = vld [vmem:[%s14084_s13 + $0x6b8] sm:$0xff] }
 0x25d   : > { %3949 = vperm.xlu0 %8069, %v7727_v26   ;;  %v7729_v26 = vld [vmem:[%s14084_s13 + $0x7c0] sm:$0xff] }
 0x260   : > { %v9569_v27 = vpop.f32.mrf.mxu3 }
 0x261   : > { %14919 = vst [vmem:[#allocation178_spill] sm:$0xff] %v9569_v27  ;;  %v7678_v27 = vld [vmem:[%s14084_s13 + $0x6b0] sm:$0xff] }
 0x263   : > { %4369 = vperm.xlu2 %8071, %v7777_v10  }
 0x264   : > { %4364 = vperm.xlu1 %8070, %v7776_v42  }
 0x265   : > { %3124 = vperm.xlu0 %8069, %v7630_v24   ;;  %v7459_v24 = vld [vmem:[%s14075_s4 + $0x4] sm:$0x3] }
 0x266   : > { %v1658_v10 = vsel %vm1656_vm4, %v7459_v24, 0  ;;  %v7524_v24 = vld [vmem:[%s14075_s4 + $0x8] sm:$0x3] }
 0x267   : > { %1667 = vmatpush.bf16.msrb.mxu2 %v1658_v10 }
 0x268   : > { %v9580_v49 = vpop.f32.mrf.mxu3 }
 0x269   : > { %14920 = vst [vmem:[#allocation179_spill] sm:$0xff] %v9580_v49  ;;  %v7632_v49 = vld [vmem:[%s14084_s13 + $0x5c8] sm:$0xff] }
 0x26b   : > { %3959 = vperm.xlu2 %8071, %v7729_v26   ;;  %v7631_v26 = vld [vmem:[%s14084_s13 + $0x5c0] sm:$0xff] }
 0x26c   : > { %3539 = vperm.xlu1 %8070, %v7679_v21   ;;  %v1363_v21 = vld [vmem:[%s14075_s4] sm:$0x3] }
 0x26d   : > { %3534 = vperm.xlu0 %8069, %v7678_v27   ;;  %v7730_v27 = vld [vmem:[%s14084_s13 + $0x7c8] sm:$0xff]  ;;  %v1798_v10 = vsel %vm1656_vm4, %v1363_v21, 0  ;;  %v7680_v21 = vld [vmem:[%s14084_s13 + $0x6c0] sm:$0xff] }
 0x26e   : > { %1807 = vmatpush.bf16.msrb.mxu0 %v1798_v10  ;;  %8010 = vmatpush.bf16.msra.mxu2 %v1798_v10  ;;  %v7731_v10 = vld [vmem:[%s14084_s13 + $0x7d0] sm:$0xff] }
 0x270   : > { %v9595_v42 = vpop.f32.mrf.mxu3 }
 0x271   : > { %14921 = vst [vmem:[#allocation180_spill] sm:$0xff] %v9595_v42  ;;  %v2246_v42 = vsel %vm1656_vm4, %v7524_v24, 0  ;;  %v7779_v24 = vld [vmem:[%s14084_s13 + $0x8c8] sm:$0xff] }
 0x272   : > { %2255 = vmatpush.bf16.msrb.mxu1 %v2246_v42 }
 0x273   : > { %3134 = vperm.xlu2 %8071, %v7632_v49   ;;  %v7778_v49 = vld [vmem:[%s14084_s13 + $0x8c0] sm:$0xff] }
 0x274   : > { %3129 = vperm.xlu1 %8070, %v7631_v26  }
 0x275   : > { %3964 = vperm.xlu0 %8069, %v7730_v27   ;;  %v7732_v27 = vld [vmem:[%s14084_s13 + $0x7d8] sm:$0xff] }
 0x278   : > { %v944_v35 = vpop.f32.mrf.mxu3 }
 0x279   : > { %v985_v42 = vmul.f32 %v9108_v34, %v944_v35  ;;  %v993_v35 = vadd.f32 %v9123_v33, %v957_v47  ;;  %v7780_v47 = vld [vmem:[%s14084_s13 + $0x8d0] sm:$0xff] }
 0x27b   : > { %3544 = vperm.xlu2 %8071, %v7680_v21   ;;  %v956_v21 = vmul.f32 %v9108_v34, %v9071_v19  ;;  %v9648_v0 = vmax.f32 %v993_v35, 0.0 }
 0x27c   : > { %4379 = vperm.xlu1 %8070, %v7779_v24  }
 0x27d   : > { %4374 = vperm.xlu0 %8069, %v7778_v49   ;;  %v1021_v49 = vadd.f32 %v9123_v33, %v985_v42  ;;  %14923 = vst [vmem:[#allocation182_spill] sm:$0xff] %v9648_v0  ;;  %v7634_v42 = vld [vmem:[%s14084_s13 + $0x5d8] sm:$0xff] }
 0x27f   : > { %v9650_v32 = vmax.f32 %v1021_v49, 0.0 }
 0x280   : > { %v947_v7 = vpop.f32.mrf.mxu3 }
 0x281   : > { %v986_v26 = vmul.f32 %v9108_v34, %v947_v7  ;;  %v992_v7 = vadd.f32 %v9123_v33, %v956_v21  ;;  %14924 = vst [vmem:[#allocation183_spill] sm:$0xff] %v9650_v32  ;;  %v14218_v35 = vrot.slane %v9650_v32, 7  ;;  %v7682_v32 = vld [vmem:[%s14084_s13 + $0x6d0] sm:$0xff] }
 0x283   : > { %v1022_v24 = vadd.f32 %v9123_v33, %v986_v26  ;;  %3974 = vperm.xlu2 %8071, %v7732_v27   ;;  %v9659_v26 = vmax.f32 %v992_v7, 0.0  ;;  %v7633_v27 = vld [vmem:[%s14084_s13 + $0x5d0] sm:$0xff] }
 0x284   : > { %3969 = vperm.xlu1 %8070, %v7731_v10  }
 0x285   : > { %3549 = vperm.xlu0 %8069, %v7681_v45   ;;  %v9646_v62 = vmax.f32 %v1022_v24, 0.0  ;;  %14925 = vst [vmem:[#allocation184_spill] sm:$0xff] %v9659_v26  ;;  %v1057_v45 = vrot.slane %v9648_v0, 7  ;;  %v1056_v49 = vrot.slane %v9659_v26, 7  ;;  %v1889_v7 = vrot.slane %v9659_v26, 1 }
 0x287   : > { %14922 = vst [vmem:[#allocation181_spill] sm:$0xff] %v9646_v62  ;;  %v1086_v10 = vrot.slane %v9646_v62, 7 }
 0x288   : > { %v949_v19 = vpop.f32.mrf.mxu3 }
 0x289   : > { %v987_v46 = vmul.f32 %v9108_v34, %v949_v19  ;;  %v1557_v19 = vmul.f32 %v8555_v52, %v9646_v62 }
 0x28b   : > { %v1023_v21 = vadd.f32 %v9123_v33, %v987_v46  ;;  %4384 = vperm.xlu2 %8071, %v7780_v47   ;;  %v9681_v47 = vsel %vm1090_vm3, %v14218_v35, %v1086_v10 }
 0x28c   : > { %3144 = vperm.xlu1 %8070, %v7634_v42   ;;  %14927 = vst [vmem:[#allocation186_spill] sm:$0xff] %v9681_v47  ;;  %v9685_v42 = vsel %vm1090_vm3, %v1056_v49, %v1057_v45 }
 0x28d   : > { %v9667_v24 = vmax.f32 %v1023_v21, 0.0  ;;  %3139 = vperm.xlu0 %8069, %v7633_v27   ;;  %14928 = vst [vmem:[#allocation187_spill] sm:$0xff] %v9685_v42 }
 0x28f   : > { %14926 = vst [vmem:[#allocation185_spill] sm:$0xff] %v9667_v24  ;;  %v1558_v1 = vmul.f32 %v8570_v58, %v9667_v24  ;;  %v1087_v46 = vrot.slane %v9667_v24, 7  ;;  %v1920_v21 = vrot.slane %v9667_v24, 1  ;;  %v7683_v58 = vld [vmem:[%s14084_s13 + $0x6d8] sm:$0xff]  ;;  %v14931_v24 = vrot.slane %v9646_v62, 1 }
 0x291   : > { %v1589_v52 = vpack.c.bf16 %v1558_v1, %v1557_v19  ;;  %v9697_v35 = vsel %vm1090_vm3, %v1086_v10, %v1087_v46  ;;  %v9701_v6 = vsel %vm1090_vm3, %v1087_v46, %v1056_v49  ;;  %v7781_v1 = vld [vmem:[%s14084_s13 + $0x8d8] sm:$0xff]  ;;  %v1315_v19 = vmul.f32 %v8822_v53, %v9681_v47 }
 0x292   : > { %14929 = vst [vmem:[#allocation188_spill] sm:$0xff] %v9697_v35  ;;  %v1316_v27 = vmul.f32 %v8775_v43, %v9697_v35  ;;  %v9714_v10 = vsel %vm1921_vm2, %v14931_v24, %v1920_v21  ;;  %v9718_v49 = vsel %vm1921_vm2, %v1920_v21, %v1889_v7  ;;  %v2563_v46 = vmul.f32 %v8761_v22, %v9685_v42 }
 0x293   : > { %14930 = vst [vmem:[#allocation189_spill] sm:$0xff] %v9701_v6  ;;  %7460 = vmatmul.msk.bf16.vlgmr.msrb.gmra.mxu2 %vm1607_vm5, %v1589_v52  ;;  %v2147_v53 = vmul.f32 %v8757_v11, %v9714_v10  ;;  %v2148_v43 = vmul.f32 %v8709_v17, %v9718_v49  ;;  %v2562_v47 = vmul.f32 %v8693_v61, %v9701_v6  ;;  %v7635_v52 = vld [vmem:[%s14084_s13 + $0x5e0] sm:$0xff]  ;;  %v7734_v61 = vld [vmem:[%s14084_s13 + $0x7e8] sm:$0xff]  ;;  %v14949_v11 = vld [vmem:[#allocation152_spill] sm:$0xff] }
 0x294   : > { %14932 = vst [vmem:[#allocation190_spill] sm:$0xff] %v9714_v10  ;;  %3559 = vperm.xlu2 %8071, %v7683_v58   ;;  %3554 = vperm.xlu1 %8070, %v7682_v32   ;;  %v1347_v24 = vpack.c.bf16 %v1316_v27, %v1315_v19  ;;  %v7733_v58 = vld [vmem:[%s14084_s13 + $0x7e0] sm:$0xff]  ;;  %v14934_v32 = vrot.slane %v9140_v63, 1  ;;  %v14936_v27 = vrot.slane %v9140_v63, 7  ;;  %v1317_v19 = vmul.f32 %v8854_v23, %v9701_v6  ;;  %v7735_v23 = vld [vmem:[%s14084_s13 + $0x7f0] sm:$0xff] }
 0x295   : > { %14933 = vst [vmem:[#allocation191_spill] sm:$0xff] %v9718_v49  ;;  %4389 = vperm.xlu0 %8069, %v7781_v1   ;;  %v2179_v21 = vpack.c.bf16 %v2148_v43, %v2147_v53  ;;  %v2594_v35 = vpack.c.bf16 %v2563_v46, %v2562_v47  ;;  %v1890_v43 = vrot.slane %v9648_v0, 1  ;;  %v1560_v53 = vmul.f32 %v8566_v56, %v9648_v0  ;;  %v15005_v6 = vld [vmem:[#allocation83_spill] sm:$0xff] }
 0x296   : > { %7476 = vmatmul.msk.bf16.vlgmr.msrb.gmra.mxu0 %vm1607_vm5, %v1347_v24  ;;  %v1559_v47 = vmul.f32 %v8553_v51, %v9659_v26  ;;  %v9756_v1 = vsel %vm1090_vm3, %v1057_v45, %v14936_v27  ;;  %v2565_v46 = vmul.f32 %v8773_v41, %v9190_v13  ;;  %v7782_v45 = vld [vmem:[%s14084_s13 + $0x8e0] sm:$0xff]  ;;  %v14983_v41 = vld [vmem:[#allocation79_spill] sm:$0xff] }
 0x297   : > { %7525 = vmatmul.msk.bf16.vlgmr.msrb.gmra.mxu1 %vm1607_vm5, %v2179_v21  ;;  %7574 = vmatmul.msk.bf16.vlgmr.msra.gmra.mxu3 %vm1607_vm5, %v2594_v35  ;;  %v9748_v35 = vsel %vm1921_vm2, %v1890_v43, %v14934_v32  ;;  %v7783_v21 = vld [vmem:[%s14084_s13 + $0x8e8] sm:$0xff]  ;;  %v15051_v26 = vld [vmem:[#allocation97_spill] sm:$0xff] }
 0x298   : > { %14935 = vst [vmem:[#allocation192_spill] sm:$0xff] %v9748_v35  ;;  %v1590_v24 = vpack.c.bf16 %v1560_v53, %v1559_v47 }
 0x29c   : > { %3149 = vperm.xlu2 %8071, %v7635_v52   ;;  %3984 = vperm.xlu1 %8070, %v7734_v61   ;;  %v9760_v61 = vsel %vm1921_vm2, %v1889_v7, %v1890_v43  ;;  %v2150_v52 = vmul.f32 %v8792_v8, %v9748_v35  ;;  %v7636_v7 = vld [vmem:[%s14084_s13 + $0x5e8] sm:$0xff]  ;;  %v2564_v43 = vmul.f32 %v8777_v44, %v9756_v1 }
 0x29d   : > { %3979 = vperm.xlu0 %8069, %v7733_v58   ;;  %14937 = vst [vmem:[#allocation193_spill] sm:$0xff] %v9760_v61  ;;  %v1318_v58 = vmul.f32 %v8807_v29, %v9685_v42  ;;  %v2149_v53 = vmul.f32 %v8724_v31, %v9760_v61 }
 0x29e   : > { %v2595_v27 = vpack.c.bf16 %v2565_v46, %v2564_v43  ;;  %v962_v46 = vmul.f32 %v9108_v34, %v9247_v36  ;;  %v7736_v36 = vld [vmem:[%s14084_s13 + $0x7f8] sm:$0xff]  ;;  %v1319_v43 = vmul.f32 %v8886_v30, %v9756_v1 }
 0x29f   : > { %v1348_v32 = vpack.c.bf16 %v1318_v58, %v1317_v19  ;;  %v2180_v47 = vpack.c.bf16 %v2150_v52, %v2149_v53  ;;  %v7684_v19 = vld [vmem:[%s14084_s13 + $0x6e0] sm:$0xff]  ;;  %v7638_v52 = vld [vmem:[%s14084_s13 + $0x5f8] sm:$0xff]  ;;  %v2566_v53 = vmul.f32 %v8788_v3, %v9222_v25 }
 0x2a0   : > { %v998_v58 = vadd.f32 %v9123_v33, %v962_v46 }
 0x2a2   : > { %v9824_v46 = vmax.f32 %v998_v58, 0.0 }
 0x2a3   : > { %7461 = vmatmul.msk.bf16.gmra.mxu2 %vm1607_vm5, %v1590_v24  ;;  %v7685_v24 = vld [vmem:[%s14084_s13 + $0x6e8] sm:$0xff] }
 0x2a4   : > { %4399 = vperm.xlu2 %8071, %v7783_v21   ;;  %4394 = vperm.xlu1 %8070, %v7782_v45   ;;  %v1320_v21 = vmul.f32 %v8837_v38, %v9190_v13  ;;  %v2567_v45 = vmul.f32 %v8744_v59, %v9265_v55 }
 0x2a5   : > { %3154 = vperm.xlu0 %8069, %v7636_v7   ;;  %v7637_v7 = vld [vmem:[%s14084_s13 + $0x5f0] sm:$0xff] }
 0x2a6   : > { %7477 = vmatmul.msk.bf16.gmra.mxu0 %vm1607_vm5, %v1348_v32  ;;  %v14938_v32 = vpack.c.bf16 %v9167_v12, %v9159_v14  ;;  %v7686_v14 = vld [vmem:[%s14084_s13 + $0x6f0] sm:$0xff]  ;;  %v7785_v12 = vld [vmem:[%s14084_s13 + $0x8f8] sm:$0xff] }
 0x2a7   : > { %7526 = vmatmul.msk.bf16.gmra.mxu1 %vm1607_vm5, %v2180_v47  ;;  %7575 = vmatmul.msk.bf16.gmra.mxu3 %vm1607_vm5, %v2595_v27  ;;  %v2151_v47 = vmul.f32 %v8809_v37, %v9184_v57  ;;  %v1349_v27 = vpack.c.bf16 %v1320_v21, %v1319_v43  ;;  %v1895_v21 = vrot.slane %v9824_v46, 1  ;;  %v14982_v37 = vld [vmem:[#allocation77_spill] sm:$0xff] }
 0x2ac   : > { %3989 = vperm.xlu2 %8071, %v7735_v23   ;;  %3569 = vperm.xlu1 %8070, %v7685_v24   ;;  %v2152_v23 = vmul.f32 %v8805_v28, %v9218_v18 }
 0x2ad   : > { %3564 = vperm.xlu0 %8069, %v7684_v19   ;;  %v2596_v19 = vpack.c.bf16 %v2567_v45, %v2566_v53  ;;  %v7784_v45 = vld [vmem:[%s14084_s13 + $0x8f0] sm:$0xff]  ;;  %v14943_v53 = vrot.slane %v9228_v48, 7 }
 0x2ae   : > { %v2181_v24 = vpack.c.bf16 %v2152_v23, %v2151_v47  ;;  %v14939_v23 = vrot.slane %v9228_v48, 1 }
 0x2b0   : > { %v9846_v58 = vsel %vm1921_vm2, %v14939_v23, %v1895_v21 }
 0x2b1   : > { %14940 = vst [vmem:[#allocation194_spill] sm:$0xff] %v9846_v58 }
 0x2b3   : > { %7462 = vmatmul.msk.bf16.gmra.mxu2 %vm1607_vm5, %v14938_v32 }
 0x2b4   : > { %3164 = vperm.xlu2 %8071, %v7638_v52   ;;  %3159 = vperm.xlu1 %8070, %v7637_v7   ;;  %v1062_v52 = vrot.slane %v9824_v46, 7  ;;  %v965_v7 = vmul.f32 %v9108_v34, %v9322_v9  ;;  %v1322_v9 = vmul.f32 %v8869_v2, %v9265_v55  ;;  %v14962_v2 = vld [vmem:[#allocation148_spill] sm:$0xff] }
 0x2b5   : > { %3994 = vperm.xlu0 %8069, %v7736_v36   ;;  %v14941_v36 = vrot.slane %v9307_v20, 7 }
 0x2b6   : > { %7478 = vmatmul.msk.bf16.gmra.mxu0 %vm1607_vm5, %v1349_v27  ;;  %v9858_v32 = vsel %vm1090_vm3, %v14943_v53, %v1062_v52  ;;  %v2154_v27 = vmul.f32 %v8839_v39, %v9846_v58  ;;  %v14961_v39 = vld [vmem:[#allocation88_spill] sm:$0xff] }
 0x2b7   : > { %7527 = vmatmul.msk.bf16.gmra.mxu1 %vm1607_vm5, %v2181_v24  ;;  %7576 = vmatmul.msk.bf16.gmra.mxu3 %vm1607_vm5, %v2596_v19  ;;  %v9852_v43 = vsel %vm1090_vm3, %v1062_v52, %v14941_v36  ;;  %14944 = vst [vmem:[#allocation196_spill] sm:$0xff] %v9858_v32  ;;  %v1001_v24 = vadd.f32 %v9123_v33, %v965_v7  ;;  %v7687_v19 = vld [vmem:[%s14084_s13 + $0x6f8] sm:$0xff] }
 0x2b8   : > { %14942 = vst [vmem:[#allocation195_spill] sm:$0xff] %v9852_v43  ;;  %v2569_v47 = vmul.f32 %v8824_v54, %v9852_v43  ;;  %v2153_v52 = vmul.f32 %v8841_v40, %v9259_v4  ;;  %v14959_v54 = vld [vmem:[#allocation147_spill] sm:$0xff]  ;;  %v1323_v40 = vmul.f32 %v14961_v39, %v9858_v32  ;;  %v14977_v39 = vld [vmem:[#allocation22_spill] sm:$0xff] }
 0x2b9   : > { %v9880_v53 = vmax.f32 %v1001_v24, 0.0  ;;  %v14951_v24 = vld [vmem:[#allocation143_spill] sm:$0xff] }
 0x2ba   : > { %v2182_v7 = vpack.c.bf16 %v2154_v27, %v2153_v52  ;;  %v14950_v27 = vld [vmem:[#allocation157_spill] sm:$0xff]  ;;  %v1567_v3 = vmul.f32 %v14977_v39, %v14951_v24 }
 0x2bb   : > { %14946 = vst [vmem:[#allocation197_spill] sm:$0xff] %v9880_v53  ;;  %v1065_v17 = vrot.slane %v9880_v53, 7 }
 0x2bc   : > { %3574 = vperm.xlu2 %8071, %v7686_v14   ;;  %4409 = vperm.xlu1 %8070, %v7785_v12   ;;  %v1321_v14 = vmul.f32 %v8918_v60, %v9222_v25  ;;  %v2568_v12 = vmul.f32 %v8759_v15, %v9858_v32  ;;  %v14960_v15 = vld [vmem:[#allocation73_spill] sm:$0xff] }
 0x2bd   : > { %4404 = vperm.xlu0 %8069, %v7784_v45   ;;  %v14945_v45 = vpack.c.bf16 %v9243_v50, %v9235_v16  ;;  %v9886_v16 = vpop.permute.xlu0 %4254  ;;  %v14948_v50 = vld [vmem:[#allocation23_spill] sm:$0xff] }
 0x2be   : > { %v1350_v23 = vpack.c.bf16 %v1322_v9, %v1321_v14  ;;  %v2597_v36 = vpack.c.bf16 %v2569_v47, %v2568_v12  ;;  %14947 = vst [vmem:[#allocation198_spill] sm:$0xff] %v9886_v16  ;;  %v966_v9 = vmul.f32 %v9108_v34, %v14949_v11  ;;  %v967_v47 = vmul.f32 %v9108_v34, %v14950_v27  ;;  %v14954_v12 = vld [vmem:[#allocation11_spill] sm:$0xff]  ;;  %v14957_v11 = vld [vmem:[#allocation78_spill] sm:$0xff] }
 0x2bf   : > { %v1565_v52 = vmul.f32 %v14954_v12, %v9824_v46  ;;  %v14958_v27 = vld [vmem:[#allocation71_spill] sm:$0xff] }
 0x2c0   : > { %v1003_v12 = vadd.f32 %v9123_v33, %v967_v47 }
 0x2c3   : > { %7463 = vmatmul.msk.bf16.gmra.mxu2 %vm1607_vm5, %v14945_v45  ;;  %v1566_v45 = vmul.f32 %v14948_v50, %v9307_v20  ;;  %v1002_v50 = vadd.f32 %v9123_v33, %v966_v9  ;;  %v9927_v9 = vmax.f32 %v1003_v12, 0.0  ;;  %v14971_v12 = vld [vmem:[#allocation12_spill] sm:$0xff] }
 0x2c5   : > { %3579 = vperm.xlu0 %8069, %v7687_v19   ;;  %v14952_v19 = vrot.slane %v14951_v24, 7  ;;  %v1593_v22 = vpack.c.bf16 %v1566_v45, %v1565_v52  ;;  %v9923_v45 = vpop.permute.xlu0 %3429  ;;  %v9925_v60 = vmax.f32 %v1002_v50, 0.0  ;;  %14967 = vst [vmem:[#allocation201_spill] sm:$0xff] %v9927_v9  ;;  %v1067_v47 = vrot.slane %v9927_v9, 7  ;;  %v9940_v50 = vpop.permute.xlu2 %4264 }
 0x2c6   : > { %7479 = vmatmul.msk.bf16.gmra.mxu0 %vm1607_vm5, %v1350_v23  ;;  %v14955_v23 = vrot.slane %v9307_v20, 1  ;;  %14965 = vst [vmem:[#allocation199_spill] sm:$0xff] %v9923_v45 }
 0x2c7   : > { %7528 = vmatmul.msk.bf16.gmra.mxu1 %vm1607_vm5, %v2182_v7  ;;  %7577 = vmatmul.msk.bf16.gmra.mxu3 %vm1607_vm5, %v2597_v36  ;;  %v9898_v14 = vsel %vm1090_vm3, %v14952_v19, %v1065_v17  ;;  %v1324_v36 = vmul.f32 %v14957_v11, %v9852_v43  ;;  %v2156_v19 = vmul.f32 %v14960_v15, %v14959_v54  ;;  %v14964_v11 = vld [vmem:[#allocation74_spill] sm:$0xff] }
 0x2c8   : > { %14953 = vst [vmem:[#allocation152_spill] sm:$0xff] %v9898_v14  ;;  %v9906_v7 = vsel %vm1921_vm2, %v1895_v21, %v14955_v23  ;;  %v2571_v29 = vmul.f32 %v14958_v27, %v9898_v14  ;;  %v14963_v21 = vld [vmem:[#allocation58_spill] sm:$0xff] }
 0x2c9   : > { %14956 = vst [vmem:[#allocation157_spill] sm:$0xff] %v9906_v7  ;;  %v2570_v23 = vmul.f32 %v14963_v21, %v14962_v2  ;;  %v2155_v59 = vmul.f32 %v14964_v11, %v9906_v7  ;;  %v1351_v27 = vpack.c.bf16 %v1324_v36, %v1323_v40  ;;  %v9934_v21 = vpop.permute.xlu1 %3024  ;;  %v9936_v40 = vpop.f32.mrf.mxu2  ;;  %v1568_v36 = vmul.f32 %v14971_v12, %v9880_v53 }
 0x2ca   : > { %14966 = vst [vmem:[#allocation200_spill] sm:$0xff] %v9925_v60  ;;  %v14978_v12 = vrot.slane %v14951_v24, 1 }
 0x2cb   : > { %v2183_v52 = vpack.c.bf16 %v2156_v19, %v2155_v59  ;;  %v2598_v15 = vpack.c.bf16 %v2571_v29, %v2570_v23  ;;  %14968 = vst [vmem:[#allocation202_spill] sm:$0xff] %v9934_v21  ;;  %v1898_v59 = vrot.slane %v9880_v53, 1  ;;  %v1066_v29 = vrot.slane %v9925_v60, 7  ;;  %v14973_v19 = vld [vmem:[#allocation165_spill] sm:$0xff]  ;;  %v15050_v53 = vld [vmem:[#allocation95_spill] sm:$0xff] }
 0x2cc   : > { %14969 = vst [vmem:[#allocation203_spill] sm:$0xff] %v9936_v40  ;;  %v969_v23 = vmul.f32 %v9108_v34, %v14973_v19  ;;  %v14981_v19 = vld [vmem:[#allocation84_spill] sm:$0xff]  ;;  %v1594_v30 = vpack.c.bf16 %v1568_v36, %v1567_v3 }
 0x2cd   : > { %14970 = vst [vmem:[#allocation204_spill] sm:$0xff] %v9940_v50  ;;  %v9956_v11 = vpop.permute.xlu0 %3019  ;;  %v1326_v28 = vmul.f32 %v14981_v19, %v9898_v14  ;;  %v14986_v19 = vld [vmem:[#allocation80_spill] sm:$0xff]  ;;  %v15003_v50 = vld [vmem:[#allocation90_spill] sm:$0xff] }
 0x2ce   : > { %14976 = vst [vmem:[#allocation205_spill] sm:$0xff] %v9956_v11  ;;  %v1005_v8 = vadd.f32 %v9123_v33, %v969_v23  ;;  %v9994_v23 = vpop.permute.xlu2 %3439 }
 0x2cf   : > { %14991 = vst [vmem:[#allocation212_spill] sm:$0xff] %v9994_v23 }
 0x2d1   : > { %v9985_v3 = vpop.permute.xlu1 %3434  ;;  %v9987_v56 = vpop.f32.mrf.mxu2 }
 0x2d2   : > { %14987 = vst [vmem:[#allocation208_spill] sm:$0xff] %v9985_v3 }
 0x2d3   : > { %7464 = vmatmul.msk.bf16.gmra.mxu2 %vm1607_vm5, %v1593_v22  ;;  %v1899_v22 = vrot.slane %v9925_v60, 1  ;;  %14988 = vst [vmem:[#allocation209_spill] sm:$0xff] %v9987_v56 }
 0x2d5   : > { %v9954_v40 = vsel %vm1921_vm2, %v1898_v59, %v1899_v22 }
 0x2d6   : > { %7480 = vmatmul.msk.bf16.gmra.mxu0 %vm1607_vm5, %v1351_v27  ;;  %v14972_v27 = vld [vmem:[#allocation160_spill] sm:$0xff]  ;;  %14975 = vst [vmem:[#allocation165_spill] sm:$0xff] %v9954_v40  ;;  %v2158_v39 = vmul.f32 %v14983_v41, %v9954_v40  ;;  %v10039_v16 = vpop.permute.xlu2 %3029 }
 0x2d7   : > { %7529 = vmatmul.msk.bf16.gmra.mxu1 %vm1607_vm5, %v2183_v52  ;;  %7578 = vmatmul.msk.bf16.gmra.mxu3 %vm1607_vm5, %v2598_v15  ;;  %v968_v15 = vmul.f32 %v9108_v34, %v14972_v27  ;;  %v9950_v52 = vsel %vm1090_vm3, %v1066_v29, %v1067_v47  ;;  %v9964_v27 = vsel %vm1921_vm2, %v14978_v12, %v1898_v59  ;;  %v14984_v59 = vld [vmem:[#allocation94_spill] sm:$0xff] }
 0x2d8   : > { %14974 = vst [vmem:[#allocation160_spill] sm:$0xff] %v9950_v52  ;;  %v9968_v34 = vsel %vm1090_vm3, %v1065_v17, %v1066_v29  ;;  %v2573_v38 = vmul.f32 %v14982_v37, %v9950_v52  ;;  %v1325_v12 = vmul.f32 %v14984_v59, %v14962_v2  ;;  %v14985_v17 = vld [vmem:[#allocation63_spill] sm:$0xff]  ;;  %v2157_v31 = vmul.f32 %v14986_v19, %v9964_v27  ;;  %v14999_v19 = vld [vmem:[#allocation26_spill] sm:$0xff] }
 0x2d9   : > { %14979 = vst [vmem:[#allocation206_spill] sm:$0xff] %v9964_v27  ;;  %v1004_v44 = vadd.f32 %v9123_v33, %v968_v15  ;;  %v2572_v29 = vmul.f32 %v14985_v17, %v9968_v34  ;;  %v9991_v33 = vmax.f32 %v1005_v8, 0.0  ;;  %v14993_v8 = vld [vmem:[#allocation25_spill] sm:$0xff]  ;;  %v1569_v59 = vmul.f32 %v14999_v19, %v9925_v60  ;;  %v10027_v51 = vpop.f32.mrf.mxu2  ;;  %v15027_v2 = vld [vmem:[#allocation91_spill] sm:$0xff] }
 0x2da   : > { %14980 = vst [vmem:[#allocation207_spill] sm:$0xff] %v9968_v34  ;;  %v1352_v37 = vpack.c.bf16 %v1326_v28, %v1325_v12  ;;  %v2184_v36 = vpack.c.bf16 %v2158_v39, %v2157_v31  ;;  %v1570_v39 = vmul.f32 %v14993_v8, %v9927_v9  ;;  %v14994_v12 = vld [vmem:[#allocation166_spill] sm:$0xff]  ;;  %v10023_v8 = vpop.permute.xlu1 %3864  ;;  %v15006_v19 = vld [vmem:[#allocation85_spill] sm:$0xff] }
 0x2db   : > { %v2599_v41 = vpack.c.bf16 %v2573_v38, %v2572_v29  ;;  %v9989_v15 = vmax.f32 %v1004_v44, 0.0  ;;  %14990 = vst [vmem:[#allocation211_spill] sm:$0xff] %v9991_v33  ;;  %v1069_v31 = vrot.slane %v9991_v33, 7  ;;  %v1900_v38 = vrot.slane %v9927_v9, 1  ;;  %v14995_v29 = vld [vmem:[#allocation167_spill] sm:$0xff] }
 0x2dc   : > { %14998 = vst [vmem:[#allocation214_spill] sm:$0xff] %v10023_v8  ;;  %v1595_v49 = vpack.c.bf16 %v1570_v39, %v1569_v59  ;;  %v15010_v39 = vld [vmem:[#allocation86_spill] sm:$0xff] }
 0x2dd   : > { %14989 = vst [vmem:[#allocation210_spill] sm:$0xff] %v9989_v15  ;;  %v1901_v28 = vrot.slane %v9989_v15, 1  ;;  %v1068_v44 = vrot.slane %v9989_v15, 7 }
 0x2de   : > { %15000 = vst [vmem:[#allocation215_spill] sm:$0xff] %v10027_v51 }
 0x2df   : > { %v10017_v56 = vsel %vm1921_vm2, %v1900_v38, %v1901_v28  ;;  %v10021_v17 = vsel %vm1090_vm3, %v1068_v44, %v1069_v31  ;;  %15004 = vst [vmem:[#allocation218_spill] sm:$0xff] %v10039_v16 }
 0x2e0   : > { %14996 = vst [vmem:[#allocation166_spill] sm:$0xff] %v10017_v56  ;;  %v2575_v42 = vmul.f32 %v15005_v6, %v10021_v17  ;;  %v2160_v51 = vmul.f32 %v15006_v19, %v10017_v56  ;;  %v15009_v6 = vld [vmem:[#allocation69_spill] sm:$0xff] }
 0x2e1   : > { %14997 = vst [vmem:[#allocation167_spill] sm:$0xff] %v10021_v17 }
 0x2e3   : > { %7465 = vmatmul.msk.bf16.gmra.mxu2 %vm1607_vm5, %v1594_v30  ;;  %v9998_v30 = vpop.permute.xlu0 %4269 }
 0x2e4   : > { %14992 = vst [vmem:[#allocation213_spill] sm:$0xff] %v9998_v30  ;;  %v1328_v30 = vmul.f32 %v15003_v50, %v9950_v52 }
 0x2e6   : > { %7481 = vmatmul.msk.bf16.gmra.mxu0 %vm1607_vm5, %v1352_v37  ;;  %v10009_v37 = vld [vmem:[%s14073_s2] ss:$0 sm:$0xff] }
 0x2e7   : > { %7530 = vmatmul.msk.bf16.gmra.mxu1 %vm1607_vm5, %v2184_v36  ;;  %7579 = vmatmul.msk.bf16.gmra.mxu3 %vm1607_vm5, %v2599_v41  ;;  %v970_v41 = vmul.f32 %v10009_v37, %v14994_v12  ;;  %v971_v36 = vmul.f32 %v10009_v37, %v14995_v29  ;;  %v10031_v12 = vsel %vm1921_vm2, %v1899_v22, %v1900_v38  ;;  %v10048_v22 = vld [vmem:[%s14074_s3] ss:$0 sm:$0xff] }
 0x2e8   : > { %15001 = vst [vmem:[#allocation216_spill] sm:$0xff] %v10031_v12  ;;  %v10035_v29 = vsel %vm1090_vm3, %v1067_v47, %v1068_v44  ;;  %v15007_v44 = vld [vmem:[#allocation100_spill] sm:$0xff]  ;;  %v2159_v19 = vmul.f32 %v15010_v39, %v10031_v12 }
 0x2e9   : > { %15002 = vst [vmem:[#allocation217_spill] sm:$0xff] %v10035_v29  ;;  %v1006_v47 = vadd.f32 %v10048_v22, %v970_v41  ;;  %v1007_v38 = vadd.f32 %v10048_v22, %v971_v36  ;;  %v1327_v50 = vmul.f32 %v15007_v44, %v9968_v34  ;;  %v2574_v59 = vmul.f32 %v15009_v6, %v10035_v29  ;;  %v10068_v36 = vpop.permute.xlu1 %4274  ;;  %v10070_v6 = vpop.f32.mrf.mxu2  ;;  %v15022_v39 = vld [vmem:[#allocation16_spill] sm:$0xff] }
 0x2ea   : > { %v2185_v63 = vpack.c.bf16 %v2160_v51, %v2159_v19  ;;  %15013 = vst [vmem:[#allocation222_spill] sm:$0xff] %v10068_v36  ;;  %v10074_v51 = vpop.permute.xlu2 %4279 }
 0x2eb   : > { %v10054_v10 = vpop.permute.xlu0 %3859  ;;  %v1353_v48 = vpack.c.bf16 %v1328_v30, %v1327_v50  ;;  %v2600_v52 = vpack.c.bf16 %v2575_v42, %v2574_v59  ;;  %v10061_v9 = vmax.f32 %v1006_v47, 0.0  ;;  %v10063_v41 = vmax.f32 %v1007_v38, 0.0  ;;  %15014 = vst [vmem:[#allocation223_spill] sm:$0xff] %v10070_v6  ;;  %v15019_v38 = vld [vmem:[#allocation169_spill] sm:$0xff] }
 0x2ec   : > { %15008 = vst [vmem:[#allocation219_spill] sm:$0xff] %v10054_v10  ;;  %v1902_v42 = vrot.slane %v9991_v33, 1  ;;  %v973_v59 = vmul.f32 %v10009_v37, %v15019_v38  ;;  %v15025_v38 = vld [vmem:[#allocation96_spill] sm:$0xff] }
 0x2ed   : > { %15011 = vst [vmem:[#allocation220_spill] sm:$0xff] %v10061_v9  ;;  %v1071_v50 = vrot.slane %v10063_v41, 7  ;;  %v1070_v19 = vrot.slane %v10061_v9, 7  ;;  %v1330_v36 = vmul.f32 %v15025_v38, %v10021_v17 }
 0x2ee   : > { %15012 = vst [vmem:[#allocation221_spill] sm:$0xff] %v10063_v41 }
 0x2ef   : > { %15015 = vst [vmem:[#allocation224_spill] sm:$0xff] %v10074_v51  ;;  %v10092_v44 = vsel %vm1090_vm3, %v1070_v19, %v1071_v50  ;;  %v1571_v51 = vmul.f32 %v15022_v39, %v9989_v15  ;;  %v1009_v15 = vadd.f32 %v10048_v22, %v973_v59 }
 0x2f0   : > { %15021 = vst [vmem:[#allocation169_spill] sm:$0xff] %v10092_v44 }
 0x2f1   : > { %v10114_v14 = vpop.permute.xlu1 %3449 }
 0x2f2   : > { %15029 = vst [vmem:[#allocation228_spill] sm:$0xff] %v10114_v14 }
 0x2f3   : > { %7466 = vmatmul.msk.bf16.gmra.mxu2 %vm1607_vm5, %v1595_v49  ;;  %v1903_v49 = vrot.slane %v10061_v9, 1  ;;  %v10078_v30 = vpop.permute.xlu0 %3034 }
 0x2f4   : > { %15016 = vst [vmem:[#allocation225_spill] sm:$0xff] %v10078_v30 }
 0x2f5   : > { %v10088_v6 = vsel %vm1921_vm2, %v1902_v42, %v1903_v49 }
 0x2f6   : > { %7482 = vmatmul.msk.bf16.gmra.mxu0 %vm1607_vm5, %v1353_v48  ;;  %v15017_v48 = vld [vmem:[#allocation29_spill] sm:$0xff]  ;;  %v2162_v24 = vmul.f32 %v15027_v2, %v10088_v6  ;;  %v10123_v2 = vpop.permute.xlu2 %3869 }
 0x2f7   : > { %7531 = vmatmul.msk.bf16.gmra.mxu1 %vm1607_vm5, %v2185_v63  ;;  %7580 = vmatmul.msk.bf16.gmra.mxu3 %vm1607_vm5, %v2600_v52  ;;  %v1572_v63 = vmul.f32 %v15017_v48, %v9991_v33  ;;  %v15018_v52 = vld [vmem:[#allocation168_spill] sm:$0xff]  ;;  %v10098_v48 = vsel %vm1090_vm3, %v1069_v31, %v1070_v19  ;;  %v15026_v33 = vld [vmem:[#allocation89_spill] sm:$0xff]  ;;  %v15028_v31 = vld [vmem:[#allocation107_spill] sm:$0xff]  ;;  %15033 = vst [vmem:[#allocation230_spill] sm:$0xff] %v10123_v2 }
 0x2f8   : > { %v972_v47 = vmul.f32 %v10009_v37, %v15018_v52  ;;  %15020 = vst [vmem:[#allocation168_spill] sm:$0xff] %v10088_v6  ;;  %v10102_v52 = vsel %vm1921_vm2, %v1901_v28, %v1902_v42  ;;  %v2577_v34 = vmul.f32 %v15026_v33, %v10092_v44  ;;  %v1329_v19 = vmul.f32 %v15028_v31, %v10035_v29  ;;  %v15030_v28 = vld [vmem:[#allocation75_spill] sm:$0xff]  ;;  %v15031_v33 = vld [vmem:[#allocation92_spill] sm:$0xff] }
 0x2f9   : > { %15023 = vst [vmem:[#allocation226_spill] sm:$0xff] %v10098_v48  ;;  %v1596_v60 = vpack.c.bf16 %v1572_v63, %v1571_v51  ;;  %v2576_v42 = vmul.f32 %v15030_v28, %v10098_v48  ;;  %v2161_v51 = vmul.f32 %v15031_v33, %v10102_v52  ;;  %v10121_v63 = vpop.f32.mrf.mxu2  ;;  %v10127_v31 = vmax.f32 %v1009_v15, 0.0  ;;  %v15038_v15 = vld [vmem:[#allocation19_spill] sm:$0xff] }
 0x2fa   : > { %15024 = vst [vmem:[#allocation227_spill] sm:$0xff] %v10102_v52  ;;  %v1008_v39 = vadd.f32 %v10048_v22, %v972_v47  ;;  %v1354_v38 = vpack.c.bf16 %v1330_v36, %v1329_v19  ;;  %v1904_v19 = vrot.slane %v10063_v41, 1 }
 0x2fb   : > { %15032 = vst [vmem:[#allocation229_spill] sm:$0xff] %v10121_v63  ;;  %v2186_v47 = vpack.c.bf16 %v2162_v24, %v2161_v51  ;;  %v2601_v59 = vpack.c.bf16 %v2577_v34, %v2576_v42  ;;  %v10130_v29 = vpop.permute.xlu0 %3444  ;;  %v1073_v36 = vrot.slane %v10127_v31, 7  ;;  %v10138_v34 = vpop.permute.xlu1 %3039  ;;  %v15040_v42 = vld [vmem:[#allocation170_spill] sm:$0xff] }
 0x2fc   : > { %v10125_v17 = vmax.f32 %v1008_v39, 0.0  ;;  %15035 = vst [vmem:[#allocation232_spill] sm:$0xff] %v10127_v31  ;;  %v1574_v39 = vmul.f32 %v15038_v15, %v10063_v41  ;;  %v974_v51 = vmul.f32 %v10009_v37, %v15040_v42  ;;  %v15045_v15 = vld [vmem:[#allocation28_spill] sm:$0xff]  ;;  %v15047_v42 = vld [vmem:[#allocation102_spill] sm:$0xff] }
 0x2fd   : > { %15036 = vst [vmem:[#allocation233_spill] sm:$0xff] %v10130_v29  ;;  %v1573_v41 = vmul.f32 %v15045_v15, %v10061_v9 }
 0x2fe   : > { %15034 = vst [vmem:[#allocation231_spill] sm:$0xff] %v10125_v17  ;;  %v1072_v24 = vrot.slane %v10125_v17, 7  ;;  %v10156_v63 = vpop.permute.xlu2 %3044  ;;  %v1010_v9 = vadd.f32 %v10048_v22, %v974_v51 }
 0x2ff   : > { %15037 = vst [vmem:[#allocation234_spill] sm:$0xff] %v10138_v34  ;;  %v1597_v15 = vpack.c.bf16 %v1574_v39, %v1573_v41 }
 0x300   : > { %v10150_v28 = vsel %vm1090_vm3, %v1072_v24, %v1073_v36  ;;  %15044 = vst [vmem:[#allocation236_spill] sm:$0xff] %v10156_v63  ;;  %v10168_v2 = vsel %vm1090_vm3, %v1071_v50, %v1072_v24  ;;  %v15054_v24 = vld [vmem:[#allocation81_spill] sm:$0xff]  ;;  %v10185_v39 = vmax.f32 %v1010_v9, 0.0 }
 0x301   : > { %15042 = vst [vmem:[#allocation170_spill] sm:$0xff] %v10150_v28  ;;  %v2579_v0 = vmul.f32 %v15050_v53, %v10150_v28 }
 0x302   : > { %15048 = vst [vmem:[#allocation238_spill] sm:$0xff] %v10168_v2 }
 0x303   : > { %7467 = vmatmul.msk.bf16.gmra.mxu2 %vm1607_vm5, %v1596_v60  ;;  %v1905_v60 = vrot.slane %v10125_v17, 1  ;;  %v10170_v6 = vpop.permute.xlu0 %3874  ;;  %15055 = vst [vmem:[#allocation240_spill] sm:$0xff] %v10185_v39 }
 0x304   : > { %15049 = vst [vmem:[#allocation239_spill] sm:$0xff] %v10170_v6  ;;  %v2578_v6 = vmul.f32 %v15054_v24, %v10168_v2 }
 0x305   : > { %v10154_v33 = vsel %vm1921_vm2, %v1904_v19, %v1905_v60 }
 0x306   : > { %7483 = vmatmul.msk.bf16.gmra.mxu0 %vm1607_vm5, %v1354_v38  ;;  %v10142_v38 = vpop.f32.mrf.mxu2  ;;  %v2164_v52 = vmul.f32 %v15051_v26, %v10154_v33  ;;  %v2602_v41 = vpack.c.bf16 %v2579_v0, %v2578_v6 }
 0x307   : > { %7532 = vmatmul.msk.bf16.gmra.mxu1 %vm1607_vm5, %v2186_v47  ;;  %7581 = vmatmul.msk.bf16.gmra.mxu3 %vm1607_vm5, %v2601_v59  ;;  %15039 = vst [vmem:[#allocation235_spill] sm:$0xff] %v10142_v38  ;;  %v15041_v47 = vld [vmem:[#allocation171_spill] sm:$0xff]  ;;  %v10162_v38 = vsel %vm1921_vm2, %v1903_v49, %v1904_v19  ;;  %v15052_v19 = vld [vmem:[#allocation113_spill] sm:$0xff] }
 0x308   : > { %v975_v59 = vmul.f32 %v10009_v37, %v15041_v47  ;;  %15043 = vst [vmem:[#allocation171_spill] sm:$0xff] %v10154_v33  ;;  %v1332_v47 = vmul.f32 %v15047_v42, %v10092_v44  ;;  %v1331_v42 = vmul.f32 %v15052_v19, %v10098_v48  ;;  %v15053_v44 = vld [vmem:[#allocation98_spill] sm:$0xff]  ;;  %v10190_v19 = vpop.permute.xlu1 %4289 }
 0x309   : > { %15046 = vst [vmem:[#allocation237_spill] sm:$0xff] %v10162_v38  ;;  %v2163_v50 = vmul.f32 %v15053_v44, %v10162_v38 }
 0x30a   : > { %v1011_v49 = vadd.f32 %v10048_v22, %v975_v59  ;;  %v1355_v14 = vpack.c.bf16 %v1332_v47, %v1331_v42  ;;  %15057 = vst [vmem:[#allocation242_spill] sm:$0xff] %v10190_v19  ;;  %v1906_v47 = vrot.slane %v10127_v31, 1 }
 0x30b   : > { %v2187_v26 = vpack.c.bf16 %v2164_v52, %v2163_v50  ;;  %v14304_v52 = vrot.slane %v10185_v39, 1  ;;  %v10198_v9 = vpop.permute.xlu0 %4284 }
 0x30c   : > { %v10187_v51 = vmax.f32 %v1011_v49, 0.0  ;;  %15059 = vst [vmem:[#allocation244_spill] sm:$0xff] %v10198_v9  ;;  %v15061_v49 = vld [vmem:[#allocation31_spill] sm:$0xff]  ;;  %v15066_v9 = vld [vmem:[#allocation32_spill] sm:$0xff] }
 0x30d   : > { %v1576_v50 = vmul.f32 %v15061_v49, %v10127_v31 }
 0x30e   : > { %15056 = vst [vmem:[#allocation241_spill] sm:$0xff] %v10187_v51  ;;  %v14306_v0 = vrot.slane %v10187_v51, 7 }
 0x310   : > { %v10234_v48 = vpop.permute.xlu1 %3879 }
 0x311   : > { %15070 = vst [vmem:[#allocation248_spill] sm:$0xff] %v10234_v48 }
 0x313   : > { %7468 = vmatmul.msk.bf16.gmra.mxu2 %vm1607_vm5, %v1597_v15  ;;  %v1809_v53 = vpop.f32.mrf.mxu0  ;;  %v10194_v15 = vpop.permute.xlu2 %3454 }
 0x314   : > { %v2257_v12 = vpop.f32.mrf.mxu1  ;;  %15058 = vst [vmem:[#allocation243_spill] sm:$0xff] %v10194_v15 }
 0x316   : > { %v1669_v59 = vpop.f32.mrf.mxu2  ;;  %7484 = vmatmul.msk.bf16.gmra.mxu0 %vm1607_vm5, %v1355_v14 }
 0x317   : > { %v1810_v44 = vadd.f32 %v1809_v53, %v1669_v59  ;;  %7533 = vmatmul.msk.bf16.gmra.mxu1 %vm1607_vm5, %v2187_v26  ;;  %7582 = vmatmul.msk.bf16.gmra.mxu3 %vm1607_vm5, %v2602_v41  ;;  %v1074_v53 = vrot.slane %v10185_v39, 7  ;;  %v15062_v41 = vld [vmem:[#allocation172_spill] sm:$0xff] }
 0x319   : > { %v2337_v24 = vadd.f32 %v2257_v12, %v1810_v44  ;;  %v976_v12 = vmul.f32 %v10009_v37, %v15062_v41  ;;  %v15063_v44 = vld [vmem:[#allocation173_spill] sm:$0xff]  ;;  %v1575_v41 = vmul.f32 %v15066_v9, %v10125_v17 }
 0x31a   : > { %v2672_v6 = vpop.f32.mrf.mxu3  ;;  %v977_v59 = vmul.f32 %v10009_v37, %v15063_v44  ;;  %v10226_v44 = vsel %vm1921_vm2, %v1905_v60, %v1906_v47 }
 0x31b   : > { %v10200_v42 = vadd.f32 %v2672_v6, %v2337_v24  ;;  %v1811_v14 = vpop.f32.mrf.mxu0  ;;  %v10214_v24 = vsel %vm1921_vm2, %v1906_v47, %v14304_v52  ;;  %v10220_v6 = vsel %vm1090_vm3, %v1074_v53, %v14306_v0  ;;  %15067 = vst [vmem:[#allocation246_spill] sm:$0xff] %v10226_v44  ;;  %v10232_v52 = vsel %vm1090_vm3, %v1073_v36, %v1074_v53  ;;  %v15071_v0 = vld [vmem:[#allocation103_spill] sm:$0xff]  ;;  %v10244_v36 = vpop.permute.xlu2 %3884  ;;  %v15075_v53 = vld [vmem:[#allocation104_spill] sm:$0xff] }
 0x31c   : > { %v2259_v26 = vpop.f32.mrf.mxu1  ;;  %15064 = vst [vmem:[#allocation172_spill] sm:$0xff] %v10214_v24  ;;  %v2166_v33 = vmul.f32 %v15071_v0, %v10214_v24  ;;  %v1598_v17 = vpack.c.bf16 %v1576_v50, %v1575_v41  ;;  %v1012_v60 = vadd.f32 %v10048_v22, %v976_v12  ;;  %v1013_v47 = vadd.f32 %v10048_v22, %v977_v59  ;;  %v15076_v0 = vld [vmem:[#allocation87_spill] sm:$0xff]  ;;  %v10253_v12 = vpop.permute.xlu0 %3459 }
 0x31d   : > { %15060 = vst [vmem:[#allocation245_spill] sm:$0xff] %v10200_v42  ;;  %v15068_v42 = vld [vmem:[#allocation112_spill] sm:$0xff]  ;;  %v2165_v48 = vmul.f32 %v15075_v53, %v10226_v44  ;;  %v2580_v24 = vmul.f32 %v15076_v0, %v10232_v52 }
 0x31e   : > { %15065 = vst [vmem:[#allocation173_spill] sm:$0xff] %v10220_v6  ;;  %v1671_v19 = vpop.f32.mrf.mxu2  ;;  %v1334_v31 = vmul.f32 %v15068_v42, %v10150_v28  ;;  %v15073_v42 = vld [vmem:[#allocation119_spill] sm:$0xff] }
 0x31f   : > { %v1812_v49 = vadd.f32 %v1811_v14, %v1671_v19  ;;  %15069 = vst [vmem:[#allocation247_spill] sm:$0xff] %v10232_v52  ;;  %v15072_v19 = vld [vmem:[#allocation101_spill] sm:$0xff]  ;;  %v1333_v28 = vmul.f32 %v15073_v42, %v10168_v2  ;;  %v2188_v59 = vpack.c.bf16 %v2166_v33, %v2165_v48  ;;  %v10255_v42 = vmax.f32 %v1012_v60, 0.0  ;;  %v10264_v33 = vpop.permute.xlu1 %3054 }
 0x320   : > { %v2581_v14 = vmul.f32 %v15072_v19, %v10220_v6  ;;  %15074 = vst [vmem:[#allocation249_spill] sm:$0xff] %v10244_v36  ;;  %v10257_v19 = vmax.f32 %v1013_v47, 0.0  ;;  %v15084_v47 = vld [vmem:[#allocation35_spill] sm:$0xff] }
 0x321   : > { %v2338_v9 = vadd.f32 %v2259_v26, %v1812_v49  ;;  %v1356_v50 = vpack.c.bf16 %v1334_v31, %v1333_v28  ;;  %15078 = vst [vmem:[#allocation251_spill] sm:$0xff] %v10253_v12 }
 0x322   : > { %v2674_v38 = vpop.f32.mrf.mxu3  ;;  %v2603_v41 = vpack.c.bf16 %v2581_v14, %v2580_v24  ;;  %15079 = vst [vmem:[#allocation252_spill] sm:$0xff] %v10255_v42  ;;  %v14321_v31 = vrot.slane %v10257_v19, 7  ;;  %v1908_v24 = vrot.slane %v10187_v51, 1  ;;  %v1076_v14 = vrot.slane %v10255_v42, 7 }
 0x323   : > { %v10250_v15 = vadd.f32 %v2674_v38, %v2338_v9  ;;  %7469 = vmatmul.msk.bf16.gmra.mxu2 %vm1607_vm5, %v1598_v17  ;;  %v1814_v26 = vpop.f32.mrf.mxu0  ;;  %15080 = vst [vmem:[#allocation253_spill] sm:$0xff] %v10257_v19  ;;  %v14320_v38 = vrot.slane %v10255_v42, 1  ;;  %v10270_v60 = vpop.permute.xlu2 %4294 }
 0x324   : > { %v2262_v49 = vpop.f32.mrf.mxu1  ;;  %15081 = vst [vmem:[#allocation254_spill] sm:$0xff] %v10264_v33 }
 0x325   : > { %15077 = vst [vmem:[#allocation250_spill] sm:$0xff] %v10250_v15 }
 0x326   : > { %v1674_v2 = vpop.f32.mrf.mxu2  ;;  %7485 = vmatmul.msk.bf16.gmra.mxu0 %vm1607_vm5, %v1356_v50  ;;  %15083 = vst [vmem:[#allocation256_spill] sm:$0xff] %v10270_v60  ;;  %v15086_v50 = vld [vmem:[#allocation175_spill] sm:$0xff] }
 0x327   : > { %v1815_v53 = vadd.f32 %v1814_v26, %v1674_v2  ;;  %7534 = vmatmul.msk.bf16.gmra.mxu1 %vm1607_vm5, %v2188_v59  ;;  %7583 = vmatmul.msk.bf16.gmra.mxu3 %vm1607_vm5, %v2603_v41  ;;  %v15085_v26 = vld [vmem:[#allocation174_spill] sm:$0xff]  ;;  %v979_v59 = vmul.f32 %v10009_v37, %v15086_v50  ;;  %v10282_v41 = vsel %vm1921_vm2, %v1908_v24, %v14320_v38  ;;  %v15091_v50 = vrot.slane %v10187_v51, 7 }
 0x328   : > { %15087 = vst [vmem:[#allocation174_spill] sm:$0xff] %v10282_v41  ;;  %v15093_v38 = vrot.slane %v10185_v39, 1 }
 0x329   : > { %v2339_v17 = vadd.f32 %v2262_v49, %v1815_v53  ;;  %v1578_v53 = vmul.f32 %v15084_v47, %v10187_v51  ;;  %v978_v49 = vmul.f32 %v10009_v37, %v15085_v26  ;;  %v10290_v47 = vpop.permute.xlu0 %3049  ;;  %v15090_v26 = vld [vmem:[#allocation21_spill] sm:$0xff] }
 0x32a   : > { %v2677_v28 = vpop.f32.mrf.mxu3  ;;  %15089 = vst [vmem:[#allocation257_spill] sm:$0xff] %v10290_v47  ;;  %v1577_v60 = vmul.f32 %v15090_v26, %v10185_v39  ;;  %v10304_v15 = vsel %vm1921_vm2, %v15093_v38, %v1908_v24  ;;  %v15097_v26 = vld [vmem:[#allocation108_spill] sm:$0xff]  ;;  %v15098_v39 = vld [vmem:[#allocation129_spill] sm:$0xff] }
 0x32b   : > { %v10266_v48 = vadd.f32 %v2677_v28, %v2339_v17  ;;  %v1816_v9 = vpop.f32.mrf.mxu0  ;;  %v10288_v17 = vsel %vm1090_vm3, %v1076_v14, %v14321_v31  ;;  %15094 = vst [vmem:[#allocation259_spill] sm:$0xff] %v10304_v15  ;;  %v15095_v31 = vld [vmem:[#allocation118_spill] sm:$0xff]  ;;  %v1335_v43 = vmul.f32 %v15098_v39, %v10232_v52  ;;  %v15099_v24 = vld [vmem:[#allocation93_spill] sm:$0xff] }
 0x32c   : > { %v2264_v2 = vpop.f32.mrf.mxu1  ;;  %15088 = vst [vmem:[#allocation175_spill] sm:$0xff] %v10288_v17  ;;  %v1336_v44 = vmul.f32 %v15095_v31, %v10220_v6  ;;  %v2583_v36 = vmul.f32 %v15097_v26, %v10288_v17  ;;  %v1599_v12 = vpack.c.bf16 %v1578_v53, %v1577_v60  ;;  %v15100_v31 = vld [vmem:[#allocation111_spill] sm:$0xff]  ;;  %v10323_v53 = vpop.permute.xlu1 %3464 }
 0x32d   : > { %15082 = vst [vmem:[#allocation255_spill] sm:$0xff] %v10266_v48  ;;  %v10298_v48 = vsel %vm1090_vm3, %v15091_v50, %v1076_v14  ;;  %v1014_v14 = vadd.f32 %v10048_v22, %v978_v49  ;;  %v1015_v50 = vadd.f32 %v10048_v22, %v979_v59  ;;  %v2167_v6 = vmul.f32 %v15100_v31, %v10304_v15 }
 0x32e   : > { %v1676_v28 = vpop.f32.mrf.mxu2  ;;  %15092 = vst [vmem:[#allocation258_spill] sm:$0xff] %v10298_v48  ;;  %v2582_v29 = vmul.f32 %v15099_v24, %v10298_v48  ;;  %v1357_v60 = vpack.c.bf16 %v1336_v44, %v1335_v43  ;;  %v10330_v24 = vpop.permute.xlu2 %3469 }
 0x32f   : > { %v1817_v0 = vadd.f32 %v1816_v9, %v1676_v28  ;;  %v15096_v9 = vld [vmem:[#allocation110_spill] sm:$0xff]  ;;  %15102 = vst [vmem:[#allocation261_spill] sm:$0xff] %v10323_v53  ;;  %v10325_v26 = vmax.f32 %v1014_v14, 0.0  ;;  %v10327_v39 = vmax.f32 %v1015_v50, 0.0  ;;  %v1910_v14 = vrot.slane %v10257_v19, 1 }
 0x330   : > { %v2168_v28 = vmul.f32 %v15096_v9, %v10282_v41  ;;  %v2604_v59 = vpack.c.bf16 %v2583_v36, %v2582_v29  ;;  %15105 = vst [vmem:[#allocation264_spill] sm:$0xff] %v10330_v24  ;;  %v15118_v41 = vrot.slane %v10257_v19, 7 }
 0x331   : > { %v2340_v51 = vadd.f32 %v2264_v2, %v1817_v0  ;;  %15103 = vst [vmem:[#allocation262_spill] sm:$0xff] %v10325_v26  ;;  %v14335_v29 = vrot.slane %v10327_v39, 7  ;;  %v1078_v50 = vrot.slane %v10325_v26, 7 }
 0x332   : > { %v2679_v38 = vpop.f32.mrf.mxu3  ;;  %v2189_v49 = vpack.c.bf16 %v2168_v28, %v2167_v6  ;;  %15104 = vst [vmem:[#allocation263_spill] sm:$0xff] %v10327_v39  ;;  %v14338_v6 = vrot.slane %v10325_v26, 1 }
 0x333   : > { %v10320_v9 = vadd.f32 %v2679_v38, %v2340_v51  ;;  %7470 = vmatmul.msk.bf16.gmra.mxu2 %vm1607_vm5, %v1599_v12  ;;  %v1819_v0 = vpop.f32.mrf.mxu0  ;;  %v10334_v12 = vpop.permute.xlu0 %4299  ;;  %v15108_v38 = vld [vmem:[#allocation24_spill] sm:$0xff] }
 0x334   : > { %v2267_v2 = vpop.f32.mrf.mxu1  ;;  %15106 = vst [vmem:[#allocation265_spill] sm:$0xff] %v10334_v12 }
 0x335   : > { %15101 = vst [vmem:[#allocation260_spill] sm:$0xff] %v10320_v9 }
 0x336   : > { %v1679_v52 = vpop.f32.mrf.mxu2  ;;  %7486 = vmatmul.msk.bf16.gmra.mxu0 %vm1607_vm5, %v1357_v60  ;;  %v15109_v60 = vld [vmem:[#allocation176_spill] sm:$0xff]  ;;  %v10378_v15 = vpop.permute.xlu2 %3059 }
 0x337   : > { %v1820_v51 = vadd.f32 %v1819_v0, %v1679_v52  ;;  %7535 = vmatmul.msk.bf16.gmra.mxu1 %vm1607_vm5, %v2189_v49  ;;  %7584 = vmatmul.msk.bf16.gmra.mxu3 %vm1607_vm5, %v2604_v59  ;;  %v1580_v0 = vmul.f32 %v15108_v38, %v10257_v19  ;;  %v980_v49 = vmul.f32 %v10009_v37, %v15109_v60  ;;  %v10360_v38 = vpop.permute.xlu1 %3894  ;;  %v15114_v60 = vld [vmem:[#allocation33_spill] sm:$0xff] }
 0x338   : > { %15113 = vst [vmem:[#allocation267_spill] sm:$0xff] %v10360_v38  ;;  %v1579_v12 = vmul.f32 %v15114_v60, %v10255_v42  ;;  %v15122_v60 = vld [vmem:[#allocation116_spill] sm:$0xff] }
 0x339   : > { %v2341_v43 = vadd.f32 %v2267_v2, %v1820_v51  ;;  %v15110_v2 = vld [vmem:[#allocation177_spill] sm:$0xff]  ;;  %v10352_v51 = vsel %vm1090_vm3, %v1078_v50, %v14335_v29  ;;  %v15117_v29 = vld [vmem:[#allocation131_spill] sm:$0xff]  ;;  %15120 = vst [vmem:[#allocation270_spill] sm:$0xff] %v10378_v15 }
 0x33a   : > { %v2682_v44 = vpop.f32.mrf.mxu3  ;;  %v981_v59 = vmul.f32 %v10009_v37, %v15110_v2  ;;  %15111 = vst [vmem:[#allocation176_spill] sm:$0xff] %v10352_v51  ;;  %v15115_v2 = vrot.slane %v10255_v42, 1  ;;  %v1338_v9 = vmul.f32 %v15117_v29, %v10288_v17  ;;  %v15123_v17 = vld [vmem:[#allocation138_spill] sm:$0xff] }
 0x33b   : > { %v10338_v36 = vadd.f32 %v2682_v44, %v2341_v43  ;;  %v1821_v28 = vpop.f32.mrf.mxu0  ;;  %v10358_v43 = vsel %vm1921_vm2, %v1910_v14, %v14338_v6  ;;  %v10376_v6 = vsel %vm1090_vm3, %v15118_v41, %v1078_v50  ;;  %v1337_v19 = vmul.f32 %v15123_v17, %v10298_v48  ;;  %v10388_v41 = vpop.permute.xlu0 %3889  ;;  %v15125_v50 = vld [vmem:[#allocation117_spill] sm:$0xff] }
 0x33c   : > { %v2269_v52 = vpop.f32.mrf.mxu1  ;;  %15112 = vst [vmem:[#allocation177_spill] sm:$0xff] %v10358_v43  ;;  %v2170_v42 = vmul.f32 %v15122_v60, %v10358_v43  ;;  %v1017_v29 = vadd.f32 %v10048_v22, %v981_v59 }
 0x33d   : > { %15107 = vst [vmem:[#allocation266_spill] sm:$0xff] %v10338_v36  ;;  %v10368_v36 = vsel %vm1921_vm2, %v15115_v2, %v1910_v14  ;;  %v1600_v14 = vpack.c.bf16 %v1580_v0, %v1579_v12  ;;  %v1016_v2 = vadd.f32 %v10048_v22, %v980_v49  ;;  %v7639_v12 = vld [vmem:[%s14075_s4 + $0x14] sm:$0x3]  ;;  %v1358_v0 = vpack.c.bf16 %v1338_v9, %v1337_v19 }
 0x33e   : > { %v1681_v44 = vpop.f32.mrf.mxu2  ;;  %15116 = vst [vmem:[#allocation268_spill] sm:$0xff] %v10368_v36  ;;  %v2169_v53 = vmul.f32 %v15125_v50, %v10368_v36  ;;  %v3266_v49 = vsel %vm1656_vm4, %v7639_v12, 0  ;;  %v10403_v50 = vmax.f32 %v1017_v29, 0.0 }
 0x33f   : > { %v1822_v31 = vadd.f32 %v1821_v28, %v1681_v44  ;;  %15119 = vst [vmem:[#allocation269_spill] sm:$0xff] %v10376_v6  ;;  %v15121_v28 = vld [vmem:[#allocation114_spill] sm:$0xff]  ;;  %3275 = vmatpush.bf16.msra.mxu0 %v3266_v49  ;;  %v10401_v60 = vmax.f32 %v1016_v2, 0.0  ;;  %v1912_v2 = vrot.slane %v10327_v39, 1 }
 0x340   : > { %v2585_v44 = vmul.f32 %v15121_v28, %v10352_v51  ;;  %15124 = vst [vmem:[#allocation271_spill] sm:$0xff] %v10388_v41  ;;  %v15126_v28 = vld [vmem:[#allocation99_spill] sm:$0xff]  ;;  %v2190_v59 = vpack.c.bf16 %v2170_v42, %v2169_v53  ;;  %v10412_v53 = vpop.permute.xlu2 %4309  ;;  %v15135_v49 = vld [vmem:[#allocation178_spill] sm:$0xff] }
 0x341   : > { %v2342_v38 = vadd.f32 %v2269_v52, %v1822_v31  ;;  %v2584_v15 = vmul.f32 %v15126_v28, %v10376_v6  ;;  %15128 = vst [vmem:[#allocation273_spill] sm:$0xff] %v10401_v60  ;;  %v14353_v9 = vrot.slane %v10401_v60, 1 }
 0x342   : > { %v2684_v24 = vpop.f32.mrf.mxu3  ;;  %15129 = vst [vmem:[#allocation274_spill] sm:$0xff] %v10403_v50 }
 0x343   : > { %v10394_v32 = vadd.f32 %v2684_v24, %v2342_v38  ;;  %7471 = vmatmul.msk.bf16.gmra.mxu2 %vm1607_vm5, %v1600_v14  ;;  %v1824_v31 = vpop.f32.mrf.mxu0  ;;  %v2605_v17 = vpack.c.bf16 %v2585_v44, %v2584_v15  ;;  %v10408_v14 = vpop.permute.xlu1 %4304  ;;  %v14354_v15 = vrot.slane %v10403_v50, 7  ;;  %15131 = vst [vmem:[#allocation276_spill] sm:$0xff] %v10412_v53  ;;  %v15138_v53 = vld [vmem:[#allocation38_spill] sm:$0xff] }
 0x344   : > { %v2272_v52 = vpop.f32.mrf.mxu1  ;;  %15130 = vst [vmem:[#allocation275_spill] sm:$0xff] %v10408_v14  ;;  %v15139_v14 = vrot.slane %v10325_v26, 1 }
 0x345   : > { %15127 = vst [vmem:[#allocation272_spill] sm:$0xff] %v10394_v32  ;;  %v15142_v32 = vrot.slane %v10327_v39, 7 }
 0x346   : > { %v1684_v24 = vpop.f32.mrf.mxu2  ;;  %7487 = vmatmul.msk.bf16.gmra.mxu0 %vm1607_vm5, %v1358_v0  ;;  %v10418_v0 = vpop.permute.xlu0 %3064 }
 0x347   : > { %v1825_v38 = vadd.f32 %v1824_v31, %v1684_v24  ;;  %7536 = vmatmul.msk.bf16.gmra.mxu1 %vm1607_vm5, %v2190_v59  ;;  %7585 = vmatmul.msk.bf16.gmra.mxu3 %vm1607_vm5, %v2605_v17  ;;  %v1080_v31 = vrot.slane %v10401_v60, 7  ;;  %15133 = vst [vmem:[#allocation278_spill] sm:$0xff] %v10418_v0  ;;  %v15134_v17 = vld [vmem:[#allocation36_spill] sm:$0xff]  ;;  %v982_v59 = vmul.f32 %v10009_v37, %v15135_v49  ;;  %v15136_v24 = vld [vmem:[#allocation179_spill] sm:$0xff] }
 0x348   : > { %v1581_v49 = vmul.f32 %v15138_v53, %v10325_v26  ;;  %v15144_v53 = vld [vmem:[#allocation120_spill] sm:$0xff] }
 0x349   : > { %v2343_v19 = vadd.f32 %v2272_v52, %v1825_v38  ;;  %v1582_v52 = vmul.f32 %v15134_v17, %v10327_v39  ;;  %v983_v38 = vmul.f32 %v10009_v37, %v15136_v24  ;;  %v10444_v24 = vsel %vm1921_vm2, %v15139_v14, %v1912_v2 }
 0x34a   : > { %v2687_v42 = vpop.f32.mrf.mxu3  ;;  %15140 = vst [vmem:[#allocation179_spill] sm:$0xff] %v10444_v24  ;;  %v1018_v14 = vadd.f32 %v10048_v22, %v982_v59  ;;  %v10471_v59 = vpop.permute.xlu2 %3899 }
 0x34b   : > { %v10414_v29 = vadd.f32 %v2687_v42, %v2343_v19  ;;  %v1826_v44 = vpop.f32.mrf.mxu0  ;;  %v10430_v19 = vsel %vm1921_vm2, %v1912_v2, %v14353_v9  ;;  %v10436_v42 = vsel %vm1090_vm3, %v1080_v31, %v14354_v15  ;;  %v15141_v9 = vld [vmem:[#allocation140_spill] sm:$0xff]  ;;  %v10452_v15 = vsel %vm1090_vm3, %v15142_v32, %v1080_v31  ;;  %v10462_v36 = vpop.permute.xlu1 %3479  ;;  %v15147_v32 = vld [vmem:[#allocation126_spill] sm:$0xff]  ;;  %15150 = vst [vmem:[#allocation281_spill] sm:$0xff] %v10471_v59  ;;  %v15170_v59 = vld [vmem:[#allocation151_spill] sm:$0xff] }
 0x34c   : > { %v2274_v12 = vpop.f32.mrf.mxu1  ;;  %15137 = vst [vmem:[#allocation178_spill] sm:$0xff] %v10430_v19  ;;  %v2587_v48 = vmul.f32 %v15144_v53, %v10436_v42  ;;  %v1601_v43 = vpack.c.bf16 %v1582_v52, %v1581_v49  ;;  %v1019_v2 = vadd.f32 %v10048_v22, %v983_v38  ;;  %v2171_v31 = vmul.f32 %v15147_v32, %v10444_v24 }
 0x34d   : > { %15132 = vst [vmem:[#allocation277_spill] sm:$0xff] %v10414_v29  ;;  %v1340_v29 = vmul.f32 %v15141_v9, %v10352_v51  ;;  %v15145_v9 = vld [vmem:[#allocation145_spill] sm:$0xff] }
 0x34e   : > { %v1686_v28 = vpop.f32.mrf.mxu2  ;;  %v1339_v51 = vmul.f32 %v15145_v9, %v10376_v6  ;;  %15146 = vst [vmem:[#allocation279_spill] sm:$0xff] %v10462_v36  ;;  %v10473_v9 = vmax.f32 %v1018_v14, 0.0  ;;  %v10475_v53 = vmax.f32 %v1019_v2, 0.0  ;;  %v10478_v32 = vpop.permute.xlu0 %3474  ;;  %v15171_v36 = vld [vmem:[#allocation115_spill] sm:$0xff] }
 0x34f   : > { %v1827_v17 = vadd.f32 %v1826_v44, %v1686_v28  ;;  %v15143_v28 = vld [vmem:[#allocation125_spill] sm:$0xff]  ;;  %15153 = vst [vmem:[#allocation284_spill] sm:$0xff] %v10478_v32 }
 0x350   : > { %v2172_v44 = vmul.f32 %v15143_v28, %v10430_v19  ;;  %v15148_v28 = vld [vmem:[#allocation106_spill] sm:$0xff]  ;;  %v1359_v52 = vpack.c.bf16 %v1340_v29, %v1339_v51  ;;  %15151 = vst [vmem:[#allocation282_spill] sm:$0xff] %v10473_v9  ;;  %v14369_v51 = vrot.slane %v10473_v9, 1  ;;  %v1082_v14 = vrot.slane %v10473_v9, 7 }
 0x351   : > { %v2344_v26 = vadd.f32 %v2274_v12, %v1827_v17  ;;  %v2586_v19 = vmul.f32 %v15148_v28, %v10452_v15  ;;  %15152 = vst [vmem:[#allocation283_spill] sm:$0xff] %v10475_v53 }
 0x352   : > { %v2689_v39 = vpop.f32.mrf.mxu3  ;;  %v2191_v38 = vpack.c.bf16 %v2172_v44, %v2171_v31  ;;  %v1914_v44 = vrot.slane %v10403_v50, 1 }
 0x353   : > { %v10468_v41 = vadd.f32 %v2689_v39, %v2344_v26  ;;  %7472 = vmatmul.msk.bf16.gmra.mxu2 %vm1607_vm5, %v1601_v43  ;;  %v1829_v12 = vpop.f32.mrf.mxu0  ;;  %v2606_v49 = vpack.c.bf16 %v2587_v48, %v2586_v19  ;;  %v14370_v43 = vrot.slane %v10475_v53, 7  ;;  %v10488_v31 = vpop.permute.xlu1 %3069 }
 0x354   : > { %v2277_v17 = vpop.f32.mrf.mxu1  ;;  %15155 = vst [vmem:[#allocation286_spill] sm:$0xff] %v10488_v31 }
 0x355   : > { %15149 = vst [vmem:[#allocation280_spill] sm:$0xff] %v10468_v41  ;;  %v15165_v41 = vrot.slane %v10401_v60, 1 }
 0x356   : > { %v1689_v6 = vpop.f32.mrf.mxu2  ;;  %7488 = vmatmul.msk.bf16.gmra.mxu0 %vm1607_vm5, %v1359_v52  ;;  %v15157_v52 = vld [vmem:[#allocation180_spill] sm:$0xff]  ;;  %v10524_v24 = vpop.permute.xlu0 %3904 }
 0x357   : > { %v1830_v39 = vadd.f32 %v1829_v12, %v1689_v6  ;;  %7537 = vmatmul.msk.bf16.gmra.mxu1 %vm1607_vm5, %v2191_v38  ;;  %7586 = vmatmul.msk.bf16.gmra.mxu3 %vm1607_vm5, %v2606_v49  ;;  %v15156_v6 = vld [vmem:[#allocation41_spill] sm:$0xff]  ;;  %v10498_v38 = vsel %vm1921_vm2, %v1914_v44, %v14369_v51  ;;  %v10504_v49 = vsel %vm1090_vm3, %v1082_v14, %v14370_v43 }
 0x358   : > { %v1584_v12 = vmul.f32 %v15156_v6, %v10403_v50  ;;  %15158 = vst [vmem:[#allocation180_spill] sm:$0xff] %v10498_v38  ;;  %v15161_v6 = vld [vmem:[#allocation27_spill] sm:$0xff]  ;;  %v10522_v43 = vsel %vm1921_vm2, %v15165_v41, %v1914_v44 }
 0x359   : > { %v2345_v26 = vadd.f32 %v2277_v17, %v1830_v39  ;;  %v984_v17 = vmul.f32 %v10009_v37, %v15157_v52  ;;  %15159 = vst [vmem:[#allocation287_spill] sm:$0xff] %v10504_v49  ;;  %v1583_v28 = vmul.f32 %v15161_v6, %v10401_v60  ;;  %v15162_v37 = vld [vmem:[#allocation153_spill] sm:$0xff]  ;;  %v15169_v6 = vld [vmem:[#allocation130_spill] sm:$0xff]  ;;  %v15172_v44 = vld [vmem:[#allocation135_spill] sm:$0xff] }
 0x35a   : > { %v2692_v48 = vpop.f32.mrf.mxu3  ;;  %v3167_v52 = vmul.f32 %v15162_v37, %v9760_v61  ;;  %15166 = vst [vmem:[#allocation290_spill] sm:$0xff] %v10522_v43  ;;  %v2589_v37 = vmul.f32 %v15169_v6, %v10504_v49 }
 0x35b   : > { %v10484_v29 = vadd.f32 %v2692_v48, %v2345_v26  ;;  %v1831_v19 = vpop.f32.mrf.mxu0  ;;  %v10506_v26 = vpop.permute.xlu2 %3074  ;;  %15167 = vst [vmem:[#allocation291_spill] sm:$0xff] %v10524_v24  ;;  %v2173_v24 = vmul.f32 %v15172_v44, %v10522_v43  ;;  %v3169_v44 = vmul.f32 %v9956_v11, %v9184_v57 }
 0x35c   : > { %v2279_v2 = vpop.f32.mrf.mxu1  ;;  %15160 = vst [vmem:[#allocation288_spill] sm:$0xff] %v10506_v26 }
 0x35d   : > { %15154 = vst [vmem:[#allocation285_spill] sm:$0xff] %v10484_v29  ;;  %v15163_v29 = vrot.slane %v10403_v50, 7  ;;  %v1602_v50 = vpack.c.bf16 %v1584_v12, %v1583_v28 }
 0x35e   : > { %v1691_v39 = vpop.f32.mrf.mxu2 }
 0x35f   : > { %v1832_v48 = vadd.f32 %v1831_v19, %v1691_v39  ;;  %v10516_v51 = vsel %vm1090_vm3, %v15163_v29, %v1082_v14  ;;  %v15168_v19 = vld [vmem:[#allocation134_spill] sm:$0xff]  ;;  %v3168_v29 = vmul.f32 %v15170_v59, %v9748_v35  ;;  %v1020_v14 = vadd.f32 %v10048_v22, %v984_v17  ;;  %v10543_v22 = vpop.permute.xlu1 %4319 }
 0x360   : > { %15164 = vst [vmem:[#allocation289_spill] sm:$0xff] %v10516_v51  ;;  %v2174_v39 = vmul.f32 %v15168_v19, %v10498_v38  ;;  %v2588_v41 = vmul.f32 %v15171_v36, %v10516_v51  ;;  %v15184_v35 = vrot.slane %v10473_v9, 1 }
 0x361   : > { %v2346_v61 = vadd.f32 %v2279_v2, %v1832_v48  ;;  %v3199_v6 = vpack.c.bf16 %v3168_v29, %v3167_v52  ;;  %v10540_v48 = vmax.f32 %v1020_v14, 0.0  ;;  %15175 = vst [vmem:[#allocation294_spill] sm:$0xff] %v10543_v22  ;;  %v15185_v22 = vrot.slane %v10475_v53, 7 }
 0x362   : > { %v2694_v60 = vpop.f32.mrf.mxu3  ;;  %v2192_v28 = vpack.c.bf16 %v2174_v39, %v2173_v24  ;;  %v2607_v12 = vpack.c.bf16 %v2589_v37, %v2588_v41  ;;  %v10550_v24 = vpop.permute.xlu0 %4314  ;;  %v15180_v41 = vld [vmem:[#allocation183_spill] sm:$0xff] }
 0x363   : > { %v10537_v32 = vadd.f32 %v2694_v60, %v2346_v61  ;;  %7473 = vmatmul.msk.bf16.gmra.mxu2 %vm1607_vm5, %v1602_v50  ;;  %v1834_v19 = vpop.f32.mrf.mxu0  ;;  %15174 = vst [vmem:[#allocation293_spill] sm:$0xff] %v10540_v48  ;;  %v10547_v61 = vpop.permute.xlu2 %3484  ;;  %v1917_v50 = vrot.slane %v10540_v48, 1  ;;  %v1084_v29 = vrot.slane %v10540_v48, 7 }
 0x364   : > { %v2282_v2 = vpop.f32.mrf.mxu1  ;;  %15176 = vst [vmem:[#allocation295_spill] sm:$0xff] %v10547_v61 }
 0x365   : > { %15173 = vst [vmem:[#allocation292_spill] sm:$0xff] %v10537_v32 }
 0x366   : > { %v1694_v59 = vpop.f32.mrf.mxu2  ;;  %7640 = vmatmul.msk.bf16.vlgmr.msra.gmra.mxu0 %vm1607_vm5, %v3199_v6  ;;  %15177 = vst [vmem:[#allocation296_spill] sm:$0xff] %v10550_v24  ;;  %v1916_v6 = vrot.slane %v10475_v53, 1  ;;  %v15189_v24 = vld [vmem:[#allocation141_spill] sm:$0xff] }
 0x367   : > { %v1835_v17 = vadd.f32 %v1834_v19, %v1694_v59  ;;  %7538 = vmatmul.msk.bf16.gmra.mxu1 %vm1607_vm5, %v2192_v28  ;;  %7587 = vmatmul.msk.bf16.gmra.mxu3 %vm1607_vm5, %v2607_v12  ;;  %v15179_v19 = vld [vmem:[#allocation30_spill] sm:$0xff]  ;;  %v15181_v28 = vrot.slane %v15180_v41, 7 }
 0x368   : > { %v1586_v14 = vmul.f32 %v15179_v19, %v10475_v53  ;;  %v10566_v12 = vsel %vm1921_vm2, %v1916_v6, %v1917_v50  ;;  %v3170_v19 = vmul.f32 %v9934_v21, %v9218_v18 }
 0x369   : > { %v2347_v60 = vadd.f32 %v2282_v2, %v1835_v17  ;;  %v10562_v2 = vsel %vm1090_vm3, %v1084_v29, %v15181_v28  ;;  %v10578_v28 = vsel %vm1921_vm2, %v15184_v35, %v1916_v6  ;;  %v2176_v21 = vmul.f32 %v15189_v24, %v10566_v12  ;;  %v15191_v35 = vld [vmem:[#allocation142_spill] sm:$0xff] }
 0x36a   : > { %v2697_v52 = vpop.f32.mrf.mxu3  ;;  %15182 = vst [vmem:[#allocation298_spill] sm:$0xff] %v10562_v2  ;;  %v2175_v6 = vmul.f32 %v15191_v35, %v10578_v28 }
 0x36b   : > { %v10552_v37 = vadd.f32 %v2697_v52, %v2347_v60  ;;  %v1836_v39 = vpop.f32.mrf.mxu0  ;;  %v15183_v52 = vld [vmem:[#allocation39_spill] sm:$0xff]  ;;  %v10592_v32 = vpop.permute.xlu2 %3914 }
 0x36c   : > { %v2284_v59 = vpop.f32.mrf.mxu1  ;;  %v1585_v36 = vmul.f32 %v15183_v52, %v10473_v9  ;;  %v15188_v52 = vld [vmem:[#allocation139_spill] sm:$0xff]  ;;  %15190 = vst [vmem:[#allocation301_spill] sm:$0xff] %v10592_v32  ;;  %v15192_v9 = vld [vmem:[#allocation124_spill] sm:$0xff] }
 0x36d   : > { %15178 = vst [vmem:[#allocation297_spill] sm:$0xff] %v10552_v37  ;;  %v2591_v11 = vmul.f32 %v15188_v52, %v10562_v2  ;;  %v3200_v52 = vpack.c.bf16 %v3170_v19, %v3169_v44 }
 0x36e   : > { %v1696_v17 = vpop.f32.mrf.mxu2  ;;  %v1603_v57 = vpack.c.bf16 %v1586_v14, %v1585_v36  ;;  %v7688_v36 = vld [vmem:[%s14075_s4 + $0x18] sm:$0x3]  ;;  %v10607_v14 = vpop.permute.xlu0 %3489 }
 0x36f   : > { %v1837_v60 = vadd.f32 %v1836_v39, %v1696_v17  ;;  %v10584_v39 = vsel %vm1090_vm3, %v15185_v22, %v1084_v29  ;;  %v10586_v17 = vpop.permute.xlu1 %3909  ;;  %15194 = vst [vmem:[#allocation303_spill] sm:$0xff] %v10607_v14 }
 0x370   : > { %15186 = vst [vmem:[#allocation299_spill] sm:$0xff] %v10584_v39  ;;  %v2590_v22 = vmul.f32 %v15192_v9, %v10584_v39 }
 0x371   : > { %15187 = vst [vmem:[#allocation300_spill] sm:$0xff] %v10586_v17  ;;  %v2348_v18 = vadd.f32 %v2284_v59, %v1837_v60  ;;  %v7737_v59 = vld [vmem:[%s14075_s4 + $0x1c] sm:$0x3]  ;;  %v2193_v60 = vpack.c.bf16 %v2176_v21, %v2175_v6  ;;  %v1918_v6 = vrot.slane %v15180_v41, 1 }
 0x372   : > { %v2699_v37 = vpop.f32.mrf.mxu3  ;;  %v2608_v24 = vpack.c.bf16 %v2591_v11, %v2590_v22 }
 0x373   : > { %v10598_v29 = vadd.f32 %v2699_v37, %v2348_v18  ;;  %7474 = vmatmul.msk.bf16.gmra.mxu2 %vm1607_vm5, %v1603_v57  ;;  %v1839_v53 = vpop.f32.mrf.mxu0  ;;  %v3681_v18 = vsel %vm1656_vm4, %v7688_v36, 0  ;;  %v4096_v37 = vsel %vm1656_vm4, %v7737_v59, 0  ;;  %v10619_v36 = vpop.permute.xlu2 %4324  ;;  %v15199_v59 = vrot.slane %v9646_v62, 1 }
 0x374   : > { %v2287_v38 = vpop.f32.mrf.mxu1  ;;  %3690 = vmatpush.bf16.msra.mxu1 %v3681_v18  ;;  %4105 = vmatpush.bf16.msrb.mxu3 %v4096_v37  ;;  %15197 = vst [vmem:[#allocation306_spill] sm:$0xff] %v10619_v36  ;;  %v15201_v18 = vld [vmem:[#allocation44_spill] sm:$0xff] }
 0x375   : > { %15193 = vst [vmem:[#allocation302_spill] sm:$0xff] %v10598_v29  ;;  %v1587_v37 = vmul.f32 %v15201_v18, %v10540_v48  ;;  %v15205_v29 = vld [vmem:[#allocation146_spill] sm:$0xff] }
 0x376   : > { %v1699_v57 = vpop.f32.mrf.mxu2  ;;  %7641 = vmatmul.msk.bf16.gmra.mxu0 %vm1607_vm5, %v3200_v52  ;;  %v15198_v52 = vld [vmem:[#allocation42_spill] sm:$0xff] }
 0x377   : > { %v1840_v44 = vadd.f32 %v1839_v53, %v1699_v57  ;;  %7539 = vmatmul.msk.bf16.gmra.mxu1 %vm1607_vm5, %v2193_v60  ;;  %7588 = vmatmul.msk.bf16.gmra.mxu3 %vm1607_vm5, %v2608_v24  ;;  %v10614_v35 = vpop.permute.xlu1 %3084  ;;  %v1588_v53 = vmul.f32 %v15198_v52, %v15180_v41  ;;  %v10627_v24 = vsel %vm1921_vm2, %v1918_v6, %v15199_v59  ;;  %v10629_v60 = vpop.permute.xlu0 %3079  ;;  %v15206_v18 = vld [vmem:[#allocation150_spill] sm:$0xff] }
 0x378   : > { %15195 = vst [vmem:[#allocation304_spill] sm:$0xff] %v10614_v35  ;;  %v3172_v57 = vmul.f32 %v10078_v30, %v9846_v58 }
 0x379   : > { %v2349_v19 = vadd.f32 %v2287_v38, %v1840_v44  ;;  %15200 = vst [vmem:[#allocation307_spill] sm:$0xff] %v10629_v60  ;;  %v10637_v44 = vsel %vm1921_vm2, %v1917_v50, %v1918_v6  ;;  %v1604_v59 = vpack.c.bf16 %v1588_v53, %v1587_v37  ;;  %v15208_v6 = vld [vmem:[#allocation186_spill] sm:$0xff] }
 0x37a   : > { %v2702_v9 = vpop.f32.mrf.mxu3  ;;  %15202 = vst [vmem:[#allocation308_spill] sm:$0xff] %v10637_v44  ;;  %v2177_v41 = vmul.f32 %v15206_v18, %v10637_v44 }
 0x37b   : > { %v10616_v21 = vadd.f32 %v2702_v9, %v2349_v19  ;;  %v1841_v11 = vpop.f32.mrf.mxu0  ;;  %v15203_v19 = vld [vmem:[#allocation149_spill] sm:$0xff] }
 0x37c   : > { %v2289_v22 = vpop.f32.mrf.mxu1  ;;  %v2178_v52 = vmul.f32 %v15203_v19, %v10627_v24  ;;  %v2592_v19 = vmul.f32 %v15209_v5, %v15208_v6  ;;  %v15303_v6 = vld [vmem:[#allocation246_spill] sm:$0xff] }
 0x37d   : > { %15196 = vst [vmem:[#allocation305_spill] sm:$0xff] %v10616_v21  ;;  %v15204_v21 = vld [vmem:[#allocation188_spill] sm:$0xff] }
 0x37e   : > { %v1701_v38 = vpop.f32.mrf.mxu2  ;;  %v2593_v62 = vmul.f32 %v15205_v29, %v15204_v21  ;;  %v2194_v37 = vpack.c.bf16 %v2178_v52, %v2177_v41 }
 0x37f   : > { %v1842_v9 = vadd.f32 %v1841_v11, %v1701_v38  ;;  %v3171_v11 = vmul.f32 %v10039_v16, %v9259_v4  ;;  %v10655_v16 = vpop.permute.xlu2 %3499 }
 0x380   : > { %v2609_v29 = vpack.c.bf16 %v2593_v62, %v2592_v19  ;;  %15211 = vst [vmem:[#allocation311_spill] sm:$0xff] %v10655_v16  ;;  %v15214_v62 = vld [vmem:[#allocation47_spill] sm:$0xff] }
 0x381   : > { %v2350_v36 = vadd.f32 %v2289_v22, %v1842_v9  ;;  %v3201_v22 = vpack.c.bf16 %v3172_v57, %v3171_v11  ;;  %v10652_v9 = vpop.permute.xlu1 %3494  ;;  %v1342_v41 = vmul.f32 %v15214_v62, %v10436_v42 }
 0x382   : > { %v2704_v38 = vpop.f32.mrf.mxu3  ;;  %15210 = vst [vmem:[#allocation310_spill] sm:$0xff] %v10652_v9 }
 0x383   : > { %v10647_v30 = vadd.f32 %v2704_v38, %v2350_v36  ;;  %7475 = vmatmul.msk.bf16.gmra.mxu2 %vm1607_vm5, %v1604_v59  ;;  %v1844_v50 = vpop.f32.mrf.mxu0  ;;  %v10659_v36 = vpop.permute.xlu0 %4329 }
 0x384   : > { %v2292_v53 = vpop.f32.mrf.mxu1  ;;  %15212 = vst [vmem:[#allocation312_spill] sm:$0xff] %v10659_v36  ;;  %v15218_v36 = vld [vmem:[#allocation158_spill] sm:$0xff] }
 0x385   : > { %15207 = vst [vmem:[#allocation309_spill] sm:$0xff] %v10647_v30  ;;  %v3582_v4 = vmul.f32 %v15218_v36, %v9756_v1  ;;  %v15282_v30 = vld [vmem:[#allocation160_spill] sm:$0xff] }
 0x386   : > { %v1704_v58 = vpop.f32.mrf.mxu2  ;;  %7642 = vmatmul.msk.bf16.gmra.mxu0 %vm1607_vm5, %v3201_v22 }
 0x387   : > { %v1845_v18 = vadd.f32 %v1844_v50, %v1704_v58  ;;  %7540 = vmatmul.msk.bf16.gmra.mxu1 %vm1607_vm5, %v2194_v37  ;;  %7589 = vmatmul.msk.bf16.gmra.mxu3 %vm1607_vm5, %v2609_v29  ;;  %v15216_v58 = vld [vmem:[#allocation34_spill] sm:$0xff]  ;;  %v3173_v29 = vmul.f32 %v10138_v34, %v9906_v7 }
 0x388   : > { %v1341_v50 = vmul.f32 %v15216_v58, %v10452_v15 }
 0x389   : > { %v2351_v59 = vadd.f32 %v2292_v53, %v1845_v18  ;;  %v10665_v19 = vpop.permute.xlu1 %3924  ;;  %v3583_v18 = vmul.f32 %v9923_v45, %v9190_v13  ;;  %v10673_v53 = vpop.permute.xlu2 %3089 }
 0x38a   : > { %v2707_v38 = vpop.f32.mrf.mxu3  ;;  %15215 = vst [vmem:[#allocation314_spill] sm:$0xff] %v10665_v19  ;;  %v1360_v37 = vpack.c.bf16 %v1342_v41, %v1341_v50  ;;  %v15221_v41 = vld [vmem:[#allocation156_spill] sm:$0xff]  ;;  %v15222_v50 = vld [vmem:[#allocation155_spill] sm:$0xff] }
 0x38b   : > { %v10661_v57 = vadd.f32 %v2707_v38, %v2351_v59  ;;  %v1846_v11 = vpop.f32.mrf.mxu0  ;;  %15217 = vst [vmem:[#allocation315_spill] sm:$0xff] %v10673_v53  ;;  %v3174_v38 = vmul.f32 %v10156_v63, %v14959_v54  ;;  %v3614_v34 = vpack.c.bf16 %v3583_v18, %v3582_v4 }
 0x38c   : > { %v2294_v5 = vpop.f32.mrf.mxu1 }
 0x38d   : > { %15213 = vst [vmem:[#allocation313_spill] sm:$0xff] %v10661_v57  ;;  %v10679_v57 = vpop.permute.xlu0 %3919  ;;  %v3202_v58 = vpack.c.bf16 %v3174_v38, %v3173_v29  ;;  %v15229_v38 = vld [vmem:[#allocation45_spill] sm:$0xff] }
 0x38e   : > { %v1706_v52 = vpop.f32.mrf.mxu2  ;;  %15219 = vst [vmem:[#allocation316_spill] sm:$0xff] %v10679_v57 }
 0x38f   : > { %v1847_v22 = vadd.f32 %v1846_v11, %v1706_v52 }
 0x391   : > { %v2352_v59 = vadd.f32 %v2294_v5, %v1847_v22  ;;  %v15223_v22 = vpack.c.bf16 %v15221_v41, %v15222_v50  ;;  %v10690_v1 = vpop.permute.xlu1 %4334  ;;  %v10692_v63 = vpop.permute.xlu2 %4339  ;;  %v3176_v50 = vmul.f32 %v10264_v33, %v9954_v40 }
 0x392   : > { %v2709_v62 = vpop.f32.mrf.mxu3  ;;  %15224 = vst [vmem:[#allocation156_spill] sm:$0xff] %v10690_v1 }
 0x393   : > { %v10681_v11 = vadd.f32 %v2709_v62, %v2352_v59  ;;  %v1849_v52 = vpop.f32.mrf.mxu0  ;;  %7489 = vmatmul.msk.bf16.vlgmr.msra.gmra.mxu2 %vm1607_vm5, %v1360_v37  ;;  %15225 = vst [vmem:[#allocation155_spill] sm:$0xff] %v10692_v63 }
 0x394   : > { %v2297_v13 = vpop.f32.mrf.mxu1 }
 0x395   : > { %15220 = vst [vmem:[#allocation317_spill] sm:$0xff] %v10681_v11  ;;  %v10696_v37 = vpop.permute.xlu0 %3094 }
 0x396   : > { %v1709_v45 = vpop.f32.mrf.mxu2  ;;  %7643 = vmatmul.msk.bf16.gmra.mxu0 %vm1607_vm5, %v3202_v58  ;;  %15227 = vst [vmem:[#allocation319_spill] sm:$0xff] %v10696_v37 }
 0x397   : > { %v1850_v5 = vadd.f32 %v1849_v52, %v1709_v45  ;;  %7689 = vmatmul.msk.bf16.vlgmr.msra.gmra.mxu1 %vm1607_vm5, %v3614_v34  ;;  %7738 = vmatmul.msk.bf16.vlgmr.msrb.gmra.mxu3 %vm1607_vm5, %v15223_v22  ;;  %v15228_v45 = vld [vmem:[#allocation37_spill] sm:$0xff]  ;;  %v1343_v52 = vmul.f32 %v15229_v38, %v10516_v51 }
 0x398   : > { %v1344_v34 = vmul.f32 %v15228_v45, %v10504_v49  ;;  %v15330_v49 = vld [vmem:[#allocation232_spill] sm:$0xff] }
 0x399   : > { %v2353_v62 = vadd.f32 %v2297_v13, %v1850_v5  ;;  %v7590_v13 = vld [vmem:[%s14075_s4 + $0x10] sm:$0x3]  ;;  %v3175_v5 = vmul.f32 %v10290_v47, %v9964_v27  ;;  %v10719_v1 = vpop.permute.xlu2 %3929  ;;  %v4012_v44 = vmul.f32 %v10592_v32, %v15330_v49 }
 0x39a   : > { %v2712_v59 = vpop.f32.mrf.mxu3  ;;  %v2851_v22 = vsel %vm1656_vm4, %v7590_v13, 0  ;;  %v1361_v45 = vpack.c.bf16 %v1344_v34, %v1343_v52  ;;  %15232 = vst [vmem:[#allocation322_spill] sm:$0xff] %v10719_v1  ;;  %v15235_v52 = vld [vmem:[#allocation164_spill] sm:$0xff] }
 0x39b   : > { %v10694_v29 = vadd.f32 %v2712_v59, %v2353_v62  ;;  %v1851_v4 = vpop.f32.mrf.mxu0  ;;  %v3584_v62 = vmul.f32 %v9985_v3, %v9222_v25  ;;  %2860 = vmatpush.bf16.msrb.mxu2 %v2851_v22  ;;  %v3203_v33 = vpack.c.bf16 %v3176_v50, %v3175_v5 }
 0x39c   : > { %v2299_v18 = vpop.f32.mrf.mxu1 }
 0x39d   : > { %15226 = vst [vmem:[#allocation318_spill] sm:$0xff] %v10694_v29 }
 0x39e   : > { %v1711_v58 = vpop.f32.mrf.mxu2 }
 0x39f   : > { %v1852_v41 = vadd.f32 %v1851_v4, %v1711_v58  ;;  %v3585_v4 = vmul.f32 %v9994_v23, %v9265_v55  ;;  %v10714_v58 = vpop.permute.xlu1 %3509  ;;  %v15234_v55 = vld [vmem:[#allocation163_spill] sm:$0xff]  ;;  %v15245_v23 = vld [vmem:[#allocation228_spill] sm:$0xff] }
 0x3a0   : > { %15230 = vst [vmem:[#allocation320_spill] sm:$0xff] %v10714_v58 }
 0x3a1   : > { %v2354_v59 = vadd.f32 %v2299_v18, %v1852_v41  ;;  %v3615_v13 = vpack.c.bf16 %v3585_v4, %v3584_v62  ;;  %v10722_v18 = vpop.permute.xlu0 %3504 }
 0x3a2   : > { %v2714_v38 = vpop.f32.mrf.mxu3  ;;  %15233 = vst [vmem:[#allocation323_spill] sm:$0xff] %v10722_v18 }
 0x3a3   : > { %v10716_v36 = vadd.f32 %v2714_v38, %v2354_v59  ;;  %v1854_v47 = vpop.f32.mrf.mxu0  ;;  %7490 = vmatmul.msk.bf16.gmra.mxu2 %vm1607_vm5, %v1361_v45  ;;  %v15236_v38 = vpack.c.bf16 %v15234_v55, %v15235_v52  ;;  %v3178_v52 = vmul.f32 %v10418_v0, %v10017_v56 }
 0x3a4   : > { %v2302_v63 = vpop.f32.mrf.mxu1 }
 0x3a5   : > { %15231 = vst [vmem:[#allocation321_spill] sm:$0xff] %v10716_v36 }
 0x3a6   : > { %v1714_v25 = vpop.f32.mrf.mxu2  ;;  %7644 = vmatmul.msk.bf16.gmra.mxu0 %vm1607_vm5, %v3203_v33  ;;  %v15239_v33 = vld [vmem:[#allocation48_spill] sm:$0xff] }
 0x3a7   : > { %v1855_v34 = vadd.f32 %v1854_v47, %v1714_v25  ;;  %7690 = vmatmul.msk.bf16.gmra.mxu1 %vm1607_vm5, %v3615_v13  ;;  %7739 = vmatmul.msk.bf16.gmra.mxu3 %vm1607_vm5, %v15236_v38  ;;  %v10731_v62 = vpop.permute.xlu1 %3099  ;;  %v1346_v59 = vmul.f32 %v15239_v33, %v10562_v2  ;;  %v10735_v47 = vpop.permute.xlu2 %3104  ;;  %v15241_v13 = vld [vmem:[#allocation50_spill] sm:$0xff]  ;;  %v15242_v38 = vld [vmem:[#allocation196_spill] sm:$0xff]  ;;  %v15244_v33 = vld [vmem:[#allocation195_spill] sm:$0xff] }
 0x3a8   : > { %15238 = vst [vmem:[#allocation164_spill] sm:$0xff] %v10731_v62  ;;  %v1345_v25 = vmul.f32 %v15241_v13, %v10584_v39  ;;  %v3587_v3 = vmul.f32 %v15245_v23, %v15244_v33 }
 0x3a9   : > { %v2355_v41 = vadd.f32 %v2302_v63, %v1855_v34  ;;  %15240 = vst [vmem:[#allocation324_spill] sm:$0xff] %v10735_v47  ;;  %v4001_v63 = vmul.f32 %v10054_v10, %v9824_v46  ;;  %v4002_v34 = vmul.f32 %v10023_v8, %v9307_v20  ;;  %v10749_v40 = vpop.permute.xlu0 %3934 }
 0x3aa   : > { %v2717_v45 = vpop.f32.mrf.mxu3  ;;  %15246 = vst [vmem:[#allocation196_spill] sm:$0xff] %v10749_v40  ;;  %v1362_v13 = vpack.c.bf16 %v1346_v59, %v1345_v25 }
 0x3ab   : > { %v10729_v5 = vadd.f32 %v2717_v45, %v2355_v41  ;;  %v1856_v50 = vpop.f32.mrf.mxu0  ;;  %v15243_v41 = vld [vmem:[#allocation233_spill] sm:$0xff] }
 0x3ac   : > { %v2304_v22 = vpop.f32.mrf.mxu1  ;;  %v3586_v45 = vmul.f32 %v15243_v41, %v15242_v38 }
 0x3ad   : > { %15237 = vst [vmem:[#allocation163_spill] sm:$0xff] %v10729_v5  ;;  %v4031_v5 = vpack.c.bf16 %v4002_v34, %v4001_v63 }
 0x3ae   : > { %v1716_v4 = vpop.f32.mrf.mxu2  ;;  %v3616_v38 = vpack.c.bf16 %v3587_v3, %v3586_v45  ;;  %v15257_v45 = vld [vmem:[#allocation197_spill] sm:$0xff] }
 0x3af   : > { %v1857_v55 = vadd.f32 %v1856_v50, %v1716_v4  ;;  %v15247_v50 = vld [vmem:[#allocation216_spill] sm:$0xff]  ;;  %v15248_v4 = vld [vmem:[#allocation270_spill] sm:$0xff]  ;;  %v10757_v33 = vpop.permute.xlu1 %4349  ;;  %v10761_v59 = vpop.permute.xlu2 %3514 }
 0x3b0   : > { %v3177_v54 = vmul.f32 %v15248_v4, %v15247_v50  ;;  %15250 = vst [vmem:[#allocation325_spill] sm:$0xff] %v10757_v33  ;;  %v15259_v4 = vld [vmem:[#allocation152_spill] sm:$0xff] }
 0x3b1   : > { %v2356_v27 = vadd.f32 %v2304_v22, %v1857_v55  ;;  %15251 = vst [vmem:[#allocation326_spill] sm:$0xff] %v10761_v59  ;;  %v10763_v25 = vpop.permute.xlu0 %4344 }
 0x3b2   : > { %v2719_v10 = vpop.f32.mrf.mxu3  ;;  %v3204_v0 = vpack.c.bf16 %v3178_v52, %v3177_v54  ;;  %15252 = vst [vmem:[#allocation327_spill] sm:$0xff] %v10763_v25  ;;  %v15256_v52 = vld [vmem:[#allocation182_spill] sm:$0xff] }
 0x3b3   : > { %v10753_v7 = vadd.f32 %v2719_v10, %v2356_v27  ;;  %v1859_v8 = vpop.f32.mrf.mxu0  ;;  %7491 = vmatmul.msk.bf16.gmra.mxu2 %vm1607_vm5, %v1362_v13 }
 0x3b4   : > { %v2307_v56 = vpop.f32.mrf.mxu1 }
 0x3b5   : > { %15249 = vst [vmem:[#allocation195_spill] sm:$0xff] %v10753_v7 }
 0x3b6   : > { %v1719_v41 = vpop.f32.mrf.mxu2  ;;  %7645 = vmatmul.msk.bf16.gmra.mxu0 %vm1607_vm5, %v3204_v0  ;;  %v15254_v0 = vld [vmem:[#allocation227_spill] sm:$0xff] }
 0x3b7   : > { %v1860_v22 = vadd.f32 %v1859_v8, %v1719_v41  ;;  %7691 = vmatmul.msk.bf16.gmra.mxu1 %vm1607_vm5, %v3616_v38  ;;  %7740 = vmatmul.msk.bf16.gmra.mxu3 %vm1607_vm5, %v4031_v5  ;;  %v3179_v34 = vmul.f32 %v10488_v31, %v15254_v0  ;;  %v15255_v8 = vld [vmem:[#allocation184_spill] sm:$0xff]  ;;  %v15258_v5 = vld [vmem:[#allocation239_spill] sm:$0xff]  ;;  %v10775_v23 = vpop.permute.xlu1 %3939  ;;  %v10783_v7 = vpop.permute.xlu2 %3944 }
 0x3b8   : > { %v2784_v41 = vpack.c.bf16 %v15256_v52, %v15255_v8  ;;  %v4004_v38 = vmul.f32 %v15258_v5, %v15257_v45  ;;  %15261 = vst [vmem:[#allocation197_spill] sm:$0xff] %v10775_v23  ;;  %v15265_v31 = vld [vmem:[#allocation148_spill] sm:$0xff]  ;;  %v15266_v0 = vld [vmem:[#allocation243_spill] sm:$0xff] }
 0x3b9   : > { %v2357_v10 = vadd.f32 %v2307_v56, %v1860_v22  ;;  %v15260_v56 = vld [vmem:[#allocation251_spill] sm:$0xff]  ;;  %15267 = vst [vmem:[#allocation152_spill] sm:$0xff] %v10783_v7  ;;  %v10788_v29 = vpop.permute.xlu0 %3519  ;;  %v15283_v8 = vld [vmem:[#allocation264_spill] sm:$0xff] }
 0x3ba   : > { %v2722_v27 = vpop.f32.mrf.mxu3  ;;  %v3589_v22 = vmul.f32 %v15260_v56, %v15259_v4  ;;  %15269 = vst [vmem:[#allocation148_spill] sm:$0xff] %v10788_v29 }
 0x3bb   : > { %v10765_v54 = vadd.f32 %v2722_v27, %v2357_v10  ;;  %v1861_v13 = vpop.f32.mrf.mxu0  ;;  %v15262_v27 = vld [vmem:[#allocation168_spill] sm:$0xff] }
 0x3bc   : > { %v2309_v3 = vpop.f32.mrf.mxu1  ;;  %v3180_v33 = vmul.f32 %v10506_v26, %v15262_v27 }
 0x3bd   : > { %15253 = vst [vmem:[#allocation328_spill] sm:$0xff] %v10765_v54  ;;  %v3588_v54 = vmul.f32 %v15266_v0, %v15265_v31 }
 0x3be   : > { %v1721_v55 = vpop.f32.mrf.mxu2  ;;  %v3205_v4 = vpack.c.bf16 %v3180_v33, %v3179_v34 }
 0x3bf   : > { %v1862_v63 = vadd.f32 %v1861_v13, %v1721_v55  ;;  %v15263_v13 = vld [vmem:[#allocation143_spill] sm:$0xff]  ;;  %v15264_v55 = vld [vmem:[#allocation230_spill] sm:$0xff] }
 0x3c0   : > { %v4003_v50 = vmul.f32 %v15264_v55, %v15263_v13  ;;  %v2788_v51 = vpack.c.bf16 %v15257_v45, %v15263_v13 }
 0x3c1   : > { %v2358_v10 = vadd.f32 %v2309_v3, %v1862_v63  ;;  %v3617_v63 = vpack.c.bf16 %v3589_v22, %v3588_v54  ;;  %v15274_v22 = vld [vmem:[#allocation237_spill] sm:$0xff] }
 0x3c2   : > { %v2724_v25 = vpop.f32.mrf.mxu3  ;;  %v4032_v3 = vpack.c.bf16 %v4004_v38, %v4003_v50  ;;  %v10797_v50 = vpop.permute.xlu2 %4354 }
 0x3c3   : > { %v10785_v36 = vadd.f32 %v2724_v25, %v2358_v10  ;;  %v1864_v5 = vpop.f32.mrf.mxu0  ;;  %7591 = vmatmul.msk.bf16.vlgmr.msrb.gmra.mxu2 %vm1607_vm5, %v2784_v41  ;;  %v10793_v10 = vpop.permute.xlu1 %3114  ;;  %15272 = vst [vmem:[#allocation331_spill] sm:$0xff] %v10797_v50  ;;  %v15281_v50 = vld [vmem:[#allocation249_spill] sm:$0xff] }
 0x3c4   : > { %v2312_v56 = vpop.f32.mrf.mxu1  ;;  %15270 = vst [vmem:[#allocation329_spill] sm:$0xff] %v10793_v10  ;;  %v10799_v41 = vpop.permute.xlu0 %3109 }
 0x3c5   : > { %15268 = vst [vmem:[#allocation143_spill] sm:$0xff] %v10785_v36  ;;  %v15280_v36 = vld [vmem:[#allocation201_spill] sm:$0xff] }
 0x3c6   : > { %v1724_v26 = vpop.f32.mrf.mxu2  ;;  %7646 = vmatmul.msk.bf16.gmra.mxu0 %vm1607_vm5, %v3205_v4  ;;  %15273 = vst [vmem:[#allocation332_spill] sm:$0xff] %v10799_v41  ;;  %v4006_v11 = vmul.f32 %v15281_v50, %v15280_v36  ;;  %v15298_v50 = vld [vmem:[#allocation217_spill] sm:$0xff] }
 0x3c7   : > { %v1865_v55 = vadd.f32 %v1864_v5, %v1724_v26  ;;  %7692 = vmatmul.msk.bf16.gmra.mxu1 %vm1607_vm5, %v3617_v63  ;;  %7741 = vmatmul.msk.bf16.gmra.mxu3 %vm1607_vm5, %v4032_v3  ;;  %v3181_v26 = vmul.f32 %v10629_v60, %v15274_v22  ;;  %v15275_v5 = vld [vmem:[#allocation171_spill] sm:$0xff]  ;;  %v15286_v22 = vld [vmem:[#allocation121_spill] sm:$0xff] }
 0x3c8   : > { %v3182_v4 = vmul.f32 %v10614_v35, %v15275_v5  ;;  %v15278_v63 = vld [vmem:[#allocation207_spill] sm:$0xff] }
 0x3c9   : > { %v2359_v31 = vadd.f32 %v2312_v56, %v1865_v55  ;;  %v15276_v56 = vld [vmem:[#allocation200_spill] sm:$0xff]  ;;  %v15285_v60 = vld [vmem:[#allocation123_spill] sm:$0xff] }
 0x3ca   : > { %v2727_v25 = vpop.f32.mrf.mxu3  ;;  %v15277_v55 = vld [vmem:[#allocation248_spill] sm:$0xff]  ;;  %v15287_v52 = vpack.c.bf16 %v15285_v60, %v15286_v22  ;;  %v3206_v35 = vpack.c.bf16 %v3182_v4, %v3181_v26 }
 0x3cb   : > { %v10795_v0 = vadd.f32 %v2727_v25, %v2359_v31  ;;  %v1866_v33 = vpop.f32.mrf.mxu0  ;;  %v4005_v3 = vmul.f32 %v15277_v55, %v15276_v56  ;;  %v15279_v31 = vld [vmem:[#allocation261_spill] sm:$0xff] }
 0x3cc   : > { %v2314_v34 = vpop.f32.mrf.mxu1  ;;  %v3590_v25 = vmul.f32 %v15279_v31, %v15278_v63  ;;  %v10822_v31 = vpop.permute.xlu2 %3529 }
 0x3cd   : > { %15271 = vst [vmem:[#allocation330_spill] sm:$0xff] %v10795_v0  ;;  %v4033_v21 = vpack.c.bf16 %v4006_v11, %v4005_v3  ;;  %v10826_v60 = vpop.permute.xlu0 %4359 }
 0x3ce   : > { %v1726_v54 = vpop.f32.mrf.mxu2  ;;  %15289 = vst [vmem:[#allocation201_spill] sm:$0xff] %v10822_v31 }
 0x3cf   : > { %v1867_v38 = vadd.f32 %v1866_v33, %v1726_v54  ;;  %v3591_v33 = vmul.f32 %v15283_v8, %v15282_v30  ;;  %15290 = vst [vmem:[#allocation160_spill] sm:$0xff] %v10826_v60 }
 0x3d1   : > { %v2360_v27 = vadd.f32 %v2314_v34, %v1867_v38  ;;  %v3618_v63 = vpack.c.bf16 %v3591_v33, %v3590_v25  ;;  %v10819_v34 = vpop.permute.xlu1 %3524  ;;  %v15294_v25 = vld [vmem:[#allocation267_spill] sm:$0xff] }
 0x3d2   : > { %v2729_v0 = vpop.f32.mrf.mxu3  ;;  %15288 = vst [vmem:[#allocation207_spill] sm:$0xff] %v10819_v34 }
 0x3d3   : > { %v10813_v54 = vadd.f32 %v2729_v0, %v2360_v27  ;;  %7592 = vmatmul.msk.bf16.gmra.mxu2 %vm1607_vm5, %v15287_v52  ;;  %v1869_v55 = vpop.f32.mrf.mxu0 }
 0x3d4   : > { %v2317_v5 = vpop.f32.mrf.mxu1 }
 0x3d5   : > { %15284 = vst [vmem:[#allocation200_spill] sm:$0xff] %v10813_v54 }
 0x3d6   : > { %v1729_v38 = vpop.f32.mrf.mxu2  ;;  %7647 = vmatmul.msk.bf16.gmra.mxu0 %vm1607_vm5, %v3206_v35  ;;  %v15293_v35 = vld [vmem:[#allocation211_spill] sm:$0xff] }
 0x3d7   : > { %v1870_v30 = vadd.f32 %v1869_v55, %v1729_v38  ;;  %7693 = vmatmul.msk.bf16.gmra.mxu1 %vm1607_vm5, %v3618_v63  ;;  %7742 = vmatmul.msk.bf16.gmra.mxu3 %vm1607_vm5, %v4033_v21  ;;  %v4008_v33 = vmul.f32 %v15294_v25, %v15293_v35  ;;  %v15295_v55 = vld [vmem:[#allocation172_spill] sm:$0xff]  ;;  %v15296_v38 = vld [vmem:[#allocation210_spill] sm:$0xff]  ;;  %v15297_v21 = vld [vmem:[#allocation271_spill] sm:$0xff]  ;;  %v10846_v25 = vpop.permute.xlu0 %3949 }
 0x3d8   : > { %v3184_v63 = vmul.f32 %v10696_v37, %v15295_v55  ;;  %v4007_v8 = vmul.f32 %v15297_v21, %v15296_v38  ;;  %15304 = vst [vmem:[#allocation210_spill] sm:$0xff] %v10846_v25  ;;  %v15306_v37 = vld [vmem:[#allocation133_spill] sm:$0xff]  ;;  %v15307_v55 = vld [vmem:[#allocation128_spill] sm:$0xff] }
 0x3d9   : > { %v2361_v0 = vadd.f32 %v2317_v5, %v1870_v30  ;;  %v10830_v4 = vpop.permute.xlu1 %3954  ;;  %v15299_v5 = vld [vmem:[#allocation284_spill] sm:$0xff]  ;;  %v15308_v21 = vpack.c.bf16 %v15306_v37, %v15307_v55 }
 0x3da   : > { %v2732_v52 = vpop.f32.mrf.mxu3  ;;  %15292 = vst [vmem:[#allocation121_spill] sm:$0xff] %v10830_v4  ;;  %v3592_v30 = vmul.f32 %v15299_v5, %v15298_v50 }
 0x3db   : > { %v10828_v27 = vadd.f32 %v2732_v52, %v2361_v0  ;;  %v1871_v22 = vpop.f32.mrf.mxu0  ;;  %v15300_v0 = vld [vmem:[#allocation167_spill] sm:$0xff] }
 0x3dc   : > { %v2319_v11 = vpop.f32.mrf.mxu1  ;;  %v15301_v52 = vld [vmem:[#allocation279_spill] sm:$0xff] }
 0x3dd   : > { %15291 = vst [vmem:[#allocation123_spill] sm:$0xff] %v10828_v27  ;;  %v3593_v60 = vmul.f32 %v15301_v52, %v15300_v0  ;;  %v10842_v27 = vpop.permute.xlu2 %3119  ;;  %v4034_v0 = vpack.c.bf16 %v4008_v33, %v4007_v8 }
 0x3de   : > { %v1731_v26 = vpop.f32.mrf.mxu2  ;;  %15302 = vst [vmem:[#allocation211_spill] sm:$0xff] %v10842_v27 }
 0x3df   : > { %v1872_v3 = vadd.f32 %v1871_v22, %v1731_v26  ;;  %v3183_v22 = vmul.f32 %v10673_v53, %v15303_v6  ;;  %v3619_v52 = vpack.c.bf16 %v3593_v60, %v3592_v30  ;;  %v10869_v55 = vpop.permute.xlu0 %3124  ;;  %v15312_v60 = vld [vmem:[#allocation259_spill] sm:$0xff] }
 0x3e0   : > { %15311 = vst [vmem:[#allocation128_spill] sm:$0xff] %v10869_v55  ;;  %v3185_v33 = vmul.f32 %v10731_v62, %v15312_v60 }
 0x3e1   : > { %v2362_v54 = vadd.f32 %v2319_v11, %v1872_v3  ;;  %v3207_v50 = vpack.c.bf16 %v3184_v63, %v3183_v22  ;;  %v15313_v63 = vld [vmem:[#allocation221_spill] sm:$0xff] }
 0x3e2   : > { %v2734_v26 = vpop.f32.mrf.mxu3 }
 0x3e3   : > { %v10848_v2 = vadd.f32 %v2734_v26, %v2362_v54  ;;  %7593 = vmatmul.msk.bf16.gmra.mxu2 %vm1607_vm5, %v15308_v21  ;;  %v10861_v54 = vpop.permute.xlu1 %4364  ;;  %v15314_v21 = vld [vmem:[#allocation291_spill] sm:$0xff]  ;;  %v2787_v26 = vpack.c.bf16 %v9307_v20, %v9824_v46 }
 0x3e4   : > { %v10854_v5 = vpop.f32.mrf.mxu1  ;;  %15309 = vst [vmem:[#allocation167_spill] sm:$0xff] %v10861_v54  ;;  %v4010_v30 = vmul.f32 %v15314_v21, %v15313_v63  ;;  %v15318_v54 = vld [vmem:[#allocation281_spill] sm:$0xff] }
 0x3e5   : > { %15305 = vst [vmem:[#allocation217_spill] sm:$0xff] %v10848_v2  ;;  %v10865_v37 = vpop.permute.xlu2 %4369  ;;  %v15319_v2 = vld [vmem:[#allocation226_spill] sm:$0xff] }
 0x3e6   : > { %v10856_v39 = vpop.f32.mrf.mxu2  ;;  %7648 = vmatmul.msk.bf16.gmra.mxu0 %vm1607_vm5, %v3207_v50  ;;  %15310 = vst [vmem:[#allocation133_spill] sm:$0xff] %v10865_v37  ;;  %v15316_v50 = vld [vmem:[#allocation174_spill] sm:$0xff]  ;;  %v15317_v37 = vld [vmem:[#allocation220_spill] sm:$0xff]  ;;  %v3594_v62 = vmul.f32 %v10547_v61, %v15319_v2  ;;  %v15327_v61 = vld [vmem:[#allocation231_spill] sm:$0xff] }
 0x3e7   : > { %7694 = vmatmul.msk.bf16.gmra.mxu1 %vm1607_vm5, %v3619_v52  ;;  %7743 = vmatmul.msk.bf16.gmra.mxu3 %vm1607_vm5, %v4034_v0  ;;  %v15315_v52 = vld [vmem:[#allocation169_spill] sm:$0xff]  ;;  %v3186_v0 = vmul.f32 %v10735_v47, %v15316_v50  ;;  %v4009_v6 = vmul.f32 %v15318_v54, %v15317_v37  ;;  %v10899_v50 = vpop.permute.xlu0 %3534 }
 0x3e8   : > { %v3595_v22 = vmul.f32 %v10607_v14, %v15315_v52  ;;  %15322 = vst [vmem:[#allocation220_spill] sm:$0xff] %v10899_v50 }
 0x3e9   : > { %v3208_v21 = vpack.c.bf16 %v3186_v0, %v3185_v33  ;;  %v4035_v14 = vpack.c.bf16 %v4010_v30, %v4009_v6  ;;  %v15325_v30 = vld [vmem:[#allocation268_spill] sm:$0xff] }
 0x3ea   : > { %v10863_v11 = vpop.f32.mrf.mxu3  ;;  %v3620_v20 = vpack.c.bf16 %v3595_v22, %v3594_v62  ;;  %v3187_v22 = vmul.f32 %v10799_v41, %v15325_v30  ;;  %v15331_v41 = vld [vmem:[#allocation170_spill] sm:$0xff] }
 0x3eb   : > { %v10889_v60 = vpop.permute.xlu1 %3539  ;;  %v3597_v30 = vmul.f32 %v10655_v16, %v15331_v41 }
 0x3ec   : > { %v10867_v3 = vpop.f32.mrf.mxu1  ;;  %15320 = vst [vmem:[#allocation221_spill] sm:$0xff] %v10889_v60 }
 0x3ed   : > { %v10894_v46 = vpop.permute.xlu2 %3959 }
 0x3ee   : > { %v10871_v8 = vpop.f32.mrf.mxu2  ;;  %15321 = vst [vmem:[#allocation169_spill] sm:$0xff] %v10894_v46 }
 0x3ef   : > { %v10921_v48 = vpop.permute.xlu0 %3964 }
 0x3f0   : > { %15329 = vst [vmem:[#allocation231_spill] sm:$0xff] %v10921_v48 }
 0x3f2   : > { %v10883_v53 = vpop.f32.mrf.mxu3 }
 0x3f3   : > { %7594 = vmatmul.msk.bf16.gmra.mxu2 %vm1607_vm5, %v2787_v26  ;;  %v10907_v33 = vpop.permute.xlu1 %3129 }
 0x3f4   : > { %v10892_v52 = vpop.f32.mrf.mxu1  ;;  %15323 = vst [vmem:[#allocation226_spill] sm:$0xff] %v10907_v33 }
 0x3f5   : > { %v10911_v62 = vpop.permute.xlu2 %3134 }
 0x3f6   : > { %v10896_v47 = vpop.f32.mrf.mxu2  ;;  %7649 = vmatmul.msk.bf16.gmra.mxu0 %vm1607_vm5, %v3208_v21  ;;  %15324 = vst [vmem:[#allocation333_spill] sm:$0xff] %v10911_v62  ;;  %v15326_v21 = vld [vmem:[#allocation177_spill] sm:$0xff] }
 0x3f7   : > { %7695 = vmatmul.msk.bf16.gmra.mxu1 %vm1607_vm5, %v3620_v20  ;;  %7744 = vmatmul.msk.bf16.gmra.mxu3 %vm1607_vm5, %v4035_v14  ;;  %v3188_v0 = vmul.f32 %v10793_v10, %v15326_v21  ;;  %v4011_v20 = vmul.f32 %v10586_v17, %v15327_v61  ;;  %v15328_v14 = vld [vmem:[#allocation238_spill] sm:$0xff] }
 0x3f8   : > { %v3596_v54 = vmul.f32 %v10652_v9, %v15328_v14  ;;  %v15338_v9 = vld [vmem:[#allocation247_spill] sm:$0xff] }
 0x3f9   : > { %v3209_v10 = vpack.c.bf16 %v3188_v0, %v3187_v22  ;;  %v4036_v17 = vpack.c.bf16 %v4012_v44, %v4011_v20  ;;  %v15336_v0 = vld [vmem:[#allocation240_spill] sm:$0xff]  ;;  %v15337_v20 = vld [vmem:[#allocation241_spill] sm:$0xff]  ;;  %v3598_v32 = vmul.f32 %v10722_v18, %v15338_v9 }
 0x3fa   : > { %v10903_v2 = vpop.f32.mrf.mxu3  ;;  %v3621_v21 = vpack.c.bf16 %v3597_v30, %v3596_v54  ;;  %v10949_v54 = vpop.f32.mrf.mxu0  ;;  %v15335_v30 = vld [vmem:[#allocation178_spill] sm:$0xff]  ;;  %v4014_v16 = vmul.f32 %v10665_v19, %v15337_v20 }
 0x3fb   : > { %v10937_v45 = vpop.permute.xlu1 %4379  ;;  %v3190_v22 = vmul.f32 %v10869_v55, %v15335_v30  ;;  %v15341_v55 = vld [vmem:[#allocation179_spill] sm:$0xff] }
 0x3fc   : > { %v10905_v26 = vpop.f32.mrf.mxu1  ;;  %15332 = vst [vmem:[#allocation238_spill] sm:$0xff] %v10937_v45  ;;  %v15339_v45 = vld [vmem:[#allocation173_spill] sm:$0xff]  ;;  %v3189_v30 = vmul.f32 %v10842_v27, %v15341_v55 }
 0x3fd   : > { %v10941_v13 = vpop.permute.xlu2 %3544 }
 0x3fe   : > { %v10909_v6 = vpop.f32.mrf.mxu2  ;;  %15333 = vst [vmem:[#allocation232_spill] sm:$0xff] %v10941_v13 }
 0x402   : > { %v10925_v46 = vpop.f32.mrf.mxu3  ;;  %v10980_v27 = vpop.f32.mrf.mxu0 }
 0x403   : > { %7595 = vmatmul.msk.bf16.gmra.mxu2 %vm1607_vm5, %v2788_v51  ;;  %v10945_v51 = vpop.permute.xlu0 %4374  ;;  %v10965_v13 = vpop.permute.xlu1 %3969 }
 0x404   : > { %v10932_v60 = vpop.f32.mrf.mxu1  ;;  %15334 = vst [vmem:[#allocation170_spill] sm:$0xff] %v10945_v51  ;;  %v3599_v51 = vmul.f32 %v10714_v58, %v15339_v45  ;;  %v15349_v58 = vld [vmem:[#allocation180_spill] sm:$0xff] }
 0x405   : > { %15340 = vst [vmem:[#allocation240_spill] sm:$0xff] %v10965_v13  ;;  %v10969_v48 = vpop.permute.xlu2 %3974  ;;  %v3192_v18 = vmul.f32 %v10911_v62, %v15349_v58 }
 0x406   : > { %v10934_v14 = vpop.f32.mrf.mxu2  ;;  %7650 = vmatmul.msk.bf16.gmra.mxu0 %vm1607_vm5, %v3209_v10  ;;  %15342 = vst [vmem:[#allocation247_spill] sm:$0xff] %v10969_v48  ;;  %v3622_v19 = vpack.c.bf16 %v3599_v51, %v3598_v32 }
 0x407   : > { %7696 = vmatmul.msk.bf16.gmra.mxu1 %vm1607_vm5, %v3621_v21  ;;  %7745 = vmatmul.msk.bf16.gmra.mxu3 %vm1607_vm5, %v4036_v17  ;;  %v2789_v21 = vpack.c.bf16 %v15280_v36, %v15276_v56  ;;  %v4013_v17 = vmul.f32 %v10679_v57, %v15336_v0  ;;  %v3210_v36 = vpack.c.bf16 %v3190_v22, %v3189_v30 }
 0x409   : > { %v4037_v57 = vpack.c.bf16 %v4014_v16, %v4013_v17 }
 0x40a   : > { %v10943_v41 = vpop.f32.mrf.mxu3 }
 0x40b   : > { %v10974_v20 = vpop.permute.xlu0 %3549  ;;  %v10985_v22 = vpop.permute.xlu1 %3144 }
 0x40c   : > { %v10953_v10 = vpop.f32.mrf.mxu1  ;;  %15343 = vst [vmem:[#allocation173_spill] sm:$0xff] %v10974_v20 }
 0x40d   : > { %15344 = vst [vmem:[#allocation179_spill] sm:$0xff] %v10985_v22  ;;  %v10990_v32 = vpop.permute.xlu2 %4384 }
 0x40e   : > { %v10947_v44 = vpop.f32.mrf.mxu2  ;;  %15345 = vst [vmem:[#allocation334_spill] sm:$0xff] %v10990_v32  ;;  %v15350_v32 = vld [vmem:[#allocation252_spill] sm:$0xff] }
 0x412   : > { %v10972_v56 = vpop.f32.mrf.mxu3 }
 0x413   : > { %7596 = vmatmul.msk.bf16.gmra.mxu2 %vm1607_vm5, %v2789_v21  ;;  %v10994_v17 = vpop.permute.xlu0 %3139 }
 0x414   : > { %v10983_v30 = vpop.f32.mrf.mxu1  ;;  %15346 = vst [vmem:[#allocation335_spill] sm:$0xff] %v10994_v17 }
 0x416   : > { %v1874_v9 = vpop.f32.mrf.mxu2  ;;  %7651 = vmatmul.msk.bf16.gmra.mxu0 %vm1607_vm5, %v3210_v36 }
 0x417   : > { %v1875_v45 = vadd.f32 %v1874_v9, %v10856_v39  ;;  %7697 = vmatmul.msk.bf16.gmra.mxu1 %vm1607_vm5, %v3622_v19  ;;  %7746 = vmatmul.msk.bf16.gmra.mxu3 %vm1607_vm5, %v4037_v57  ;;  %v3191_v19 = vmul.f32 %v10907_v33, %v10522_v43  ;;  %v15348_v9 = vld [vmem:[#allocation175_spill] sm:$0xff]  ;;  %v11012_v43 = vpop.f32.mrf.mxu0 }
 0x419   : > { %v2363_v21 = vadd.f32 %v10854_v5, %v1875_v45  ;;  %v15347_v5 = vld [vmem:[#allocation253_spill] sm:$0xff]  ;;  %v3601_v45 = vmul.f32 %v10788_v29, %v15348_v9  ;;  %v11020_v29 = vpop.permute.xlu1 %3554 }
 0x41a   : > { %v10992_v51 = vpop.f32.mrf.mxu3  ;;  %v4016_v36 = vmul.f32 %v10749_v40, %v15347_v5  ;;  %15352 = vst [vmem:[#allocation253_spill] sm:$0xff] %v11020_v29 }
 0x41b   : > { %v10988_v16 = vadd.f32 %v10863_v11, %v2363_v21  ;;  %v2790_v21 = vpack.c.bf16 %v15293_v35, %v15296_v38 }
 0x41e   : > { %v1876_v39 = vpop.f32.mrf.mxu2 }
 0x41f   : > { %v1877_v57 = vadd.f32 %v1876_v39, %v10871_v8  ;;  %v4015_v8 = vmul.f32 %v10719_v1, %v15350_v32  ;;  %v15351_v39 = vld [vmem:[#allocation258_spill] sm:$0xff]  ;;  %v11023_v1 = vpop.permute.xlu2 %3559 }
 0x420   : > { %v3600_v33 = vmul.f32 %v10761_v59, %v15351_v39  ;;  %15353 = vst [vmem:[#allocation175_spill] sm:$0xff] %v11023_v1  ;;  %v15360_v59 = vld [vmem:[#allocation176_spill] sm:$0xff] }
 0x421   : > { %v2364_v11 = vadd.f32 %v10867_v3, %v1877_v57  ;;  %v3211_v3 = vpack.c.bf16 %v3192_v18, %v3191_v19  ;;  %v11018_v57 = vpop.f32.mrf.mxu1  ;;  %v4038_v35 = vpack.c.bf16 %v4016_v36, %v4015_v8  ;;  %v11030_v18 = vpop.permute.xlu0 %4389  ;;  %v3194_v8 = vmul.f32 %v10985_v22, %v10566_v12 }
 0x422   : > { %v3623_v38 = vpack.c.bf16 %v3601_v45, %v3600_v33  ;;  %15354 = vst [vmem:[#allocation180_spill] sm:$0xff] %v11030_v18  ;;  %v11036_v36 = vpop.f32.mrf.mxu0  ;;  %v3603_v22 = vmul.f32 %v10822_v31, %v15360_v59 }
 0x423   : > { %7597 = vmatmul.msk.bf16.gmra.mxu2 %vm1607_vm5, %v2790_v21  ;;  %v11016_v9 = vadd.f32 %v10883_v53, %v2364_v11  ;;  %v11028_v53 = vpop.f32.mrf.mxu3  ;;  %v11040_v21 = vpop.permute.xlu1 %3984 }
 0x424   : > { %15355 = vst [vmem:[#allocation252_spill] sm:$0xff] %v11040_v21 }
 0x426   : > { %v1879_v62 = vpop.f32.mrf.mxu2  ;;  %7652 = vmatmul.msk.bf16.gmra.mxu0 %vm1607_vm5, %v3211_v3  ;;  %v15356_v3 = vld [vmem:[#allocation262_spill] sm:$0xff] }
 0x427   : > { %v1880_v39 = vadd.f32 %v1879_v62, %v10896_v47  ;;  %7698 = vmatmul.msk.bf16.gmra.mxu1 %vm1607_vm5, %v3623_v38  ;;  %7747 = vmatmul.msk.bf16.gmra.mxu3 %vm1607_vm5, %v4038_v35  ;;  %v3193_v62 = vmul.f32 %v10994_v17, %v10578_v28  ;;  %v11051_v38 = vpop.permute.xlu2 %3149 }
 0x428   : > { %15358 = vst [vmem:[#allocation258_spill] sm:$0xff] %v11051_v38 }
 0x429   : > { %v2365_v19 = vadd.f32 %v10892_v52, %v1880_v39  ;;  %v11038_v45 = vpop.f32.mrf.mxu1  ;;  %v4017_v52 = vmul.f32 %v10775_v23, %v15356_v3  ;;  %v11062_v40 = vpop.permute.xlu0 %3979 }
 0x42a   : > { %15361 = vst [vmem:[#allocation262_spill] sm:$0xff] %v11062_v40 }
 0x42b   : > { %v11034_v33 = vadd.f32 %v10903_v2, %v2365_v19  ;;  %v15357_v2 = vld [vmem:[#allocation269_spill] sm:$0xff]  ;;  %v2791_v19 = vpack.c.bf16 %v15313_v63, %v15317_v37  ;;  %v11069_v37 = vpop.f32.mrf.mxu0 }
 0x42c   : > { %v3602_v35 = vmul.f32 %v10819_v34, %v15357_v2  ;;  %v3212_v34 = vpack.c.bf16 %v3194_v8, %v3193_v62  ;;  %v15365_v8 = vld [vmem:[#allocation274_spill] sm:$0xff] }
 0x42e   : > { %v1881_v11 = vpop.f32.mrf.mxu2 }
 0x42f   : > { %v1882_v47 = vadd.f32 %v1881_v11, %v10909_v6  ;;  %v11056_v6 = vpop.f32.mrf.mxu3  ;;  %v15359_v11 = vld [vmem:[#allocation263_spill] sm:$0xff]  ;;  %v11079_v62 = vpop.permute.xlu2 %4399 }
 0x430   : > { %v4018_v17 = vmul.f32 %v10783_v7, %v15359_v11  ;;  %15363 = vst [vmem:[#allocation263_spill] sm:$0xff] %v11079_v62  ;;  %v15380_v7 = vld [vmem:[#allocation191_spill] sm:$0xff] }
 0x431   : > { %v2366_v39 = vadd.f32 %v10905_v26, %v1882_v47  ;;  %v3624_v47 = vpack.c.bf16 %v3603_v22, %v3602_v35  ;;  %v11074_v59 = vpop.f32.mrf.mxu1 }
 0x432   : > { %v4039_v26 = vpack.c.bf16 %v4018_v17, %v4017_v52  ;;  %v11086_v17 = vpop.permute.xlu0 %3154  ;;  %v4020_v52 = vmul.f32 %v10830_v4, %v15365_v8 }
 0x433   : > { %7598 = vmatmul.msk.bf16.gmra.mxu2 %vm1607_vm5, %v2791_v19  ;;  %v11066_v2 = vadd.f32 %v10925_v46, %v2366_v39  ;;  %v11076_v19 = vpop.permute.xlu1 %4394  ;;  %15364 = vst [vmem:[#allocation176_spill] sm:$0xff] %v11086_v17  ;;  %v3196_v35 = vmul.f32 %v11086_v17, %v10627_v24  ;;  %v15366_v39 = vld [vmem:[#allocation273_spill] sm:$0xff] }
 0x434   : > { %15362 = vst [vmem:[#allocation269_spill] sm:$0xff] %v11076_v19 }
 0x436   : > { %v1884_v23 = vpop.f32.mrf.mxu2  ;;  %7653 = vmatmul.msk.bf16.gmra.mxu0 %vm1607_vm5, %v3212_v34 }
 0x437   : > { %v1885_v63 = vadd.f32 %v1884_v23, %v10934_v14  ;;  %7699 = vmatmul.msk.bf16.gmra.mxu1 %vm1607_vm5, %v3624_v47  ;;  %7748 = vmatmul.msk.bf16.gmra.mxu3 %vm1607_vm5, %v4039_v26  ;;  %v11084_v34 = vpop.f32.mrf.mxu3  ;;  %v3604_v26 = vmul.f32 %v10899_v50, %v10452_v15  ;;  %v15367_v47 = vld [vmem:[#allocation221_spill] sm:$0xff] }
 0x439   : > { %v2367_v46 = vadd.f32 %v10932_v60, %v1885_v63  ;;  %v2792_v60 = vpack.c.bf16 %v15330_v49, %v15327_v61  ;;  %v3605_v63 = vmul.f32 %v15367_v47, %v10436_v42  ;;  %v11106_v17 = vpop.f32.mrf.mxu1  ;;  %v11114_v42 = vpop.permute.xlu2 %3989 }
 0x43a   : > { %15370 = vst [vmem:[#allocation273_spill] sm:$0xff] %v11114_v42 }
 0x43b   : > { %v11082_v22 = vadd.f32 %v10943_v41, %v2367_v46  ;;  %v4019_v41 = vmul.f32 %v10846_v25, %v15366_v39  ;;  %v11101_v46 = vpop.f32.mrf.mxu0  ;;  %v11108_v31 = vpop.permute.xlu1 %3569  ;;  %v3625_v50 = vpack.c.bf16 %v3605_v63, %v3604_v26 }
 0x43c   : > { %15369 = vst [vmem:[#allocation274_spill] sm:$0xff] %v11108_v31 }
 0x43d   : > { %v4040_v61 = vpack.c.bf16 %v4020_v52, %v4019_v41 }
 0x43e   : > { %v1886_v23 = vpop.f32.mrf.mxu2 }
 0x43f   : > { %v1887_v14 = vadd.f32 %v1886_v23, %v10947_v44  ;;  %v15368_v23 = vld [vmem:[#allocation308_spill] sm:$0xff]  ;;  %v11116_v47 = vpop.f32.mrf.mxu3 }
 0x440   : > { %v3195_v4 = vmul.f32 %v11051_v38, %v15368_v23 }
 0x441   : > { %v2368_v44 = vadd.f32 %v10953_v10, %v1887_v14  ;;  %v15371_v14 = vld [vmem:[#allocation245_spill] sm:$0xff]  ;;  %v11126_v52 = vpop.f32.mrf.mxu1  ;;  %v11133_v63 = vpop.permute.xlu2 %3164 }
 0x442   : > { %v3213_v15 = vpack.c.bf16 %v3196_v35, %v3195_v4  ;;  %15373 = vst [vmem:[#allocation336_spill] sm:$0xff] %v11133_v63  ;;  %v3198_v62 = vmul.f32 %v11133_v63, %v15380_v7  ;;  %v15385_v63 = vld [vmem:[#allocation255_spill] sm:$0xff] }
 0x443   : > { %7599 = vmatmul.msk.bf16.gmra.mxu2 %vm1607_vm5, %v2792_v60  ;;  %v11112_v49 = vadd.f32 %v10972_v56, %v2368_v44  ;;  %v11123_v56 = vpop.f32.mrf.mxu0  ;;  %v11128_v35 = vpop.permute.xlu1 %3159  ;;  %v15374_v44 = vld [vmem:[#allocation250_spill] sm:$0xff] }
 0x444   : > { %15372 = vst [vmem:[#allocation245_spill] sm:$0xff] %v11128_v35 }
 0x446   : > { %v2862_v10 = vpop.f32.mrf.mxu2  ;;  %7654 = vmatmul.msk.bf16.gmra.mxu0 %vm1607_vm5, %v3213_v15  ;;  %v15375_v15 = vld [vmem:[#allocation190_spill] sm:$0xff] }
 0x447   : > { %v2942_v38 = vadd.f32 %v2862_v10, %v15371_v14  ;;  %7700 = vmatmul.msk.bf16.gmra.mxu1 %vm1607_vm5, %v3625_v50  ;;  %7749 = vmatmul.msk.bf16.gmra.mxu3 %vm1607_vm5, %v4040_v61  ;;  %v3197_v61 = vmul.f32 %v11128_v35, %v15375_v15  ;;  %v15377_v10 = vld [vmem:[#allocation231_spill] sm:$0xff]  ;;  %v15383_v35 = vld [vmem:[#allocation289_spill] sm:$0xff]  ;;  %v15384_v15 = vld [vmem:[#allocation232_spill] sm:$0xff] }
 0x448   : > { %v15378_v14 = vld [vmem:[#allocation287_spill] sm:$0xff]  ;;  %v3606_v23 = vmul.f32 %v15384_v15, %v15383_v35  ;;  %v15387_v35 = vld [vmem:[#allocation260_spill] sm:$0xff] }
 0x449   : > { %v3357_v60 = vadd.f32 %v10949_v54, %v2942_v38  ;;  %v11138_v54 = vpop.f32.mrf.mxu3  ;;  %v15376_v38 = vld [vmem:[#allocation283_spill] sm:$0xff]  ;;  %v3214_v18 = vpack.c.bf16 %v3198_v62, %v3197_v61 }
 0x44a   : > { %v15427_v15 = vld [vmem:[#allocation127_spill] sm:$0xff] }
 0x44b   : > { %v3772_v4 = vadd.f32 %v10983_v30, %v3357_v60  ;;  %v4022_v30 = vmul.f32 %v15377_v10, %v15376_v38  ;;  %v3607_v60 = vmul.f32 %v10974_v20, %v15378_v14 }
 0x44d   : > { %v11131_v41 = vadd.f32 %v10992_v51, %v3772_v4  ;;  %v15379_v51 = vld [vmem:[#allocation241_spill] sm:$0xff]  ;;  %v3626_v20 = vpack.c.bf16 %v3607_v60, %v3606_v23  ;;  %v11169_v23 = vpop.permute.xlu0 %3564  ;;  %v15390_v60 = vld [vmem:[#allocation183_spill] sm:$0xff] }
 0x44e   : > { %v2864_v26 = vpop.f32.mrf.mxu2  ;;  %v2793_v4 = vpack.c.bf16 %v15379_v51, %v15336_v0  ;;  %15386 = vst [vmem:[#allocation250_spill] sm:$0xff] %v11169_v23 }
 0x44f   : > { %v2943_v50 = vadd.f32 %v2864_v26, %v15374_v44  ;;  %v15381_v26 = vld [vmem:[#allocation282_spill] sm:$0xff]  ;;  %v15382_v44 = vld [vmem:[#allocation169_spill] sm:$0xff] }
 0x450   : > { %v4021_v19 = vmul.f32 %v15382_v44, %v15381_v26 }
 0x451   : > { %v3358_v25 = vadd.f32 %v10980_v27, %v2943_v50  ;;  %v11155_v27 = vpop.f32.mrf.mxu0  ;;  %v3707_v50 = vpop.f32.mrf.mxu1 }
 0x452   : > { %v4041_v14 = vpack.c.bf16 %v4022_v30, %v4021_v19 }
 0x453   : > { %7600 = vmatmul.msk.bf16.gmra.mxu2 %vm1607_vm5, %v2793_v4  ;;  %v3773_v10 = vadd.f32 %v11018_v57, %v3358_v25  ;;  %v4122_v57 = vpop.f32.mrf.mxu3  ;;  %v15391_v4 = vld [vmem:[#allocation298_spill] sm:$0xff] }
 0x455   : > { %v11158_v0 = vadd.f32 %v11028_v53, %v3773_v10  ;;  %v15388_v10 = vld [vmem:[#allocation293_spill] sm:$0xff] }
 0x456   : > { %v2867_v51 = vpop.f32.mrf.mxu2  ;;  %7655 = vmatmul.msk.bf16.gmra.mxu0 %vm1607_vm5, %v3214_v18 }
 0x457   : > { %v2944_v44 = vadd.f32 %v2867_v51, %v15385_v63  ;;  %7701 = vmatmul.msk.bf16.gmra.mxu1 %vm1607_vm5, %v3626_v20  ;;  %7750 = vmatmul.msk.bf16.gmra.mxu3 %vm1607_vm5, %v4041_v14  ;;  %v4023_v63 = vmul.f32 %v10965_v13, %v15388_v10  ;;  %v15389_v20 = vld [vmem:[#allocation299_spill] sm:$0xff] }
 0x458   : > { %v3608_v30 = vmul.f32 %v11020_v29, %v15389_v20 }
 0x459   : > { %v3359_v25 = vadd.f32 %v11012_v43, %v2944_v44  ;;  %v3709_v18 = vpop.f32.mrf.mxu1  ;;  %v3609_v44 = vmul.f32 %v11023_v1, %v15391_v4  ;;  %v15395_v4 = vld [vmem:[#allocation185_spill] sm:$0xff] }
 0x45b   : > { %v3774_v19 = vadd.f32 %v11038_v45, %v3359_v25  ;;  %v2794_v45 = vpack.c.bf16 %v15347_v5, %v15350_v32  ;;  %v4124_v51 = vpop.f32.mrf.mxu3  ;;  %v11191_v32 = vpop.f32.mrf.mxu0 }
 0x45c   : > { %v11193_v5 = vpop.permute.xlu0 %3994 }
 0x45d   : > { %v11167_v62 = vadd.f32 %v11056_v6, %v3774_v19  ;;  %v4024_v6 = vmul.f32 %v10969_v48, %v15390_v60  ;;  %v3627_v19 = vpack.c.bf16 %v3609_v44, %v3608_v30  ;;  %15393 = vst [vmem:[#allocation283_spill] sm:$0xff] %v11193_v5  ;;  %v4026_v44 = vmul.f32 %v11040_v21, %v15395_v4  ;;  %v15401_v21 = vld [vmem:[#allocation277_spill] sm:$0xff] }
 0x45e   : > { %v2869_v53 = vpop.f32.mrf.mxu2 }
 0x45f   : > { %v2945_v61 = vadd.f32 %v2869_v53, %v15387_v35  ;;  %v4042_v25 = vpack.c.bf16 %v4024_v6, %v4023_v63  ;;  %v15392_v35 = vld [vmem:[#allocation266_spill] sm:$0xff] }
 0x461   : > { %v3360_v43 = vadd.f32 %v11036_v36, %v2945_v61 }
 0x463   : > { %7601 = vmatmul.msk.bf16.gmra.mxu2 %vm1607_vm5, %v2794_v45  ;;  %v3775_v14 = vadd.f32 %v11074_v59, %v3360_v43  ;;  %v11196_v59 = vpop.f32.mrf.mxu1  ;;  %v11202_v30 = vpop.f32.mrf.mxu3  ;;  %v15394_v45 = vld [vmem:[#allocation272_spill] sm:$0xff] }
 0x465   : > { %v11186_v53 = vadd.f32 %v11084_v34, %v3775_v14  ;;  %v2795_v14 = vpack.c.bf16 %v15359_v11, %v15356_v3 }
 0x466   : > { %v2872_v36 = vpop.f32.mrf.mxu2 }
 0x467   : > { %v2946_v61 = vadd.f32 %v2872_v36, %v15392_v35  ;;  %7702 = vmatmul.msk.bf16.gmra.mxu1 %vm1607_vm5, %v3627_v19  ;;  %7751 = vmatmul.msk.bf16.gmra.mxu3 %vm1607_vm5, %v4042_v25  ;;  %v15396_v25 = vld [vmem:[#allocation181_spill] sm:$0xff]  ;;  %v15397_v19 = vld [vmem:[#allocation186_spill] sm:$0xff]  ;;  %v15398_v36 = vld [vmem:[#allocation188_spill] sm:$0xff] }
 0x469   : > { %v3361_v20 = vadd.f32 %v11069_v37, %v2946_v61  ;;  %v4025_v37 = vmul.f32 %v11062_v40, %v15396_v25  ;;  %v11216_v61 = vpop.f32.mrf.mxu0 }
 0x46a   : > { %15399 = vst [vmem:[#allocation287_spill] sm:$0xff] %v11216_v61 }
 0x46b   : > { %v3776_v63 = vadd.f32 %v11106_v17, %v3361_v20  ;;  %v3610_v17 = vmul.f32 %v11169_v23, %v15397_v19  ;;  %v11218_v20 = vpop.permute.xlu0 %4404  ;;  %v11222_v3 = vpop.f32.mrf.mxu1  ;;  %v4043_v11 = vpack.c.bf16 %v4026_v44, %v4025_v37 }
 0x46c   : > { %15400 = vst [vmem:[#allocation241_spill] sm:$0xff] %v11222_v3 }
 0x46d   : > { %v11200_v34 = vadd.f32 %v11116_v47, %v3776_v63  ;;  %v3611_v47 = vmul.f32 %v11108_v31, %v15398_v36 }
 0x46e   : > { %v2874_v43 = vpop.f32.mrf.mxu2 }
 0x46f   : > { %v2947_v6 = vadd.f32 %v2874_v43, %v15394_v45  ;;  %v3628_v43 = vpack.c.bf16 %v3611_v47, %v3610_v17  ;;  %v15406_v17 = vld [vmem:[#allocation280_spill] sm:$0xff]  ;;  %v11242_v47 = vpop.permute.xlu2 %3574 }
 0x470   : > { %15407 = vst [vmem:[#allocation260_spill] sm:$0xff] %v11242_v47 }
 0x471   : > { %v3362_v35 = vadd.f32 %v11101_v46, %v2947_v6  ;;  %v11230_v46 = vpop.f32.mrf.mxu3 }
 0x472   : > { %15402 = vst [vmem:[#allocation191_spill] sm:$0xff] %v11230_v46 }
 0x473   : > { %7602 = vmatmul.msk.bf16.gmra.mxu2 %vm1607_vm5, %v2795_v14  ;;  %v3777_v63 = vadd.f32 %v11126_v52, %v3362_v35  ;;  %v11233_v52 = vpop.f32.mrf.mxu0  ;;  %v11235_v35 = vpop.permute.xlu0 %3579 }
 0x474   : > { %15403 = vst [vmem:[#allocation282_spill] sm:$0xff] %v11233_v52 }
 0x475   : > { %v11225_v45 = vadd.f32 %v11138_v54, %v3777_v63  ;;  %15404 = vst [vmem:[#allocation289_spill] sm:$0xff] %v11235_v35  ;;  %v11239_v54 = vpop.f32.mrf.mxu1  ;;  %v15408_v63 = vld [vmem:[#allocation182_spill] sm:$0xff] }
 0x476   : > { %v2877_v19 = vpop.f32.mrf.mxu2  ;;  %15405 = vst [vmem:[#allocation255_spill] sm:$0xff] %v11239_v54 }
 0x477   : > { %v2948_v36 = vadd.f32 %v2877_v19, %v15401_v21  ;;  %7703 = vmatmul.msk.bf16.gmra.mxu1 %vm1607_vm5, %v3628_v43  ;;  %7752 = vmatmul.msk.bf16.gmra.mxu3 %vm1607_vm5, %v4043_v11  ;;  %v4028_v11 = vmul.f32 %v11193_v5, %v15408_v63  ;;  %v15409_v43 = vld [vmem:[#allocation187_spill] sm:$0xff]  ;;  %v2796_v19 = vpack.c.bf16 %v15365_v8, %v15366_v39  ;;  %v7786_v63 = vld [vmem:[%s14075_s4 + $0x20] sm:$0x3]  ;;  %v15428_v5 = vld [vmem:[#allocation198_spill] sm:$0xff] }
 0x479   : > { %v3363_v6 = vadd.f32 %v11123_v56, %v2948_v36  ;;  %v3613_v56 = vmul.f32 %v11235_v35, %v15409_v43  ;;  %v15411_v36 = vld [vmem:[#allocation184_spill] sm:$0xff] }
 0x47b   : > { %v3778_v14 = vadd.f32 %v3707_v50, %v3363_v6  ;;  %v4027_v6 = vmul.f32 %v11114_v42, %v15411_v36  ;;  %v11264_v39 = vpop.f32.mrf.mxu0  ;;  %v15413_v36 = vld [vmem:[#allocation285_spill] sm:$0xff]  ;;  %v4412_v42 = vmul.f32 %v15428_v5, %v15427_v15 }
 0x47d   : > { %v11237_v44 = vadd.f32 %v4122_v57, %v3778_v14  ;;  %v11251_v57 = vpop.f32.mrf.mxu3  ;;  %v15412_v14 = vld [vmem:[#allocation189_spill] sm:$0xff]  ;;  %v4044_v43 = vpack.c.bf16 %v4028_v11, %v4027_v6  ;;  %v2797_v6 = vpack.c.bf16 %v15376_v38, %v15381_v26  ;;  %v2798_v38 = vpack.c.bf16 %v15390_v60, %v15388_v10 }
 0x47e   : > { %v2879_v37 = vpop.f32.mrf.mxu2  ;;  %15410 = vst [vmem:[#allocation293_spill] sm:$0xff] %v11251_v57  ;;  %v2799_v10 = vpack.c.bf16 %v15395_v4, %v15396_v25  ;;  %v15432_v4 = vld [vmem:[#allocation317_spill] sm:$0xff] }
 0x47f   : > { %v2949_v21 = vadd.f32 %v2879_v37, %v15406_v17  ;;  %v3612_v37 = vmul.f32 %v11242_v47, %v15412_v14 }
 0x481   : > { %v3364_v50 = vadd.f32 %v11155_v27, %v2949_v21  ;;  %v3629_v27 = vpack.c.bf16 %v3613_v56, %v3612_v37  ;;  %v4511_v21 = vsel %vm1656_vm4, %v7786_v63, 0  ;;  %v15416_v56 = vld [vmem:[#allocation292_spill] sm:$0xff] }
 0x482   : > { %4520 = vmatpush.bf16.msra.mxu2 %v4511_v21 }
 0x483   : > { %7603 = vmatmul.msk.bf16.gmra.mxu2 %vm1607_vm5, %v2796_v19  ;;  %v3779_v17 = vadd.f32 %v3709_v18, %v3364_v50  ;;  %v11271_v18 = vpop.f32.mrf.mxu1 }
 0x484   : > { %15414 = vst [vmem:[#allocation299_spill] sm:$0xff] %v11271_v18 }
 0x485   : > { %v11262_v8 = vadd.f32 %v4124_v51, %v3779_v17  ;;  %v11273_v50 = vpop.f32.mrf.mxu3  ;;  %v11278_v51 = vpop.f32.mrf.mxu0  ;;  %v15420_v17 = vld [vmem:[#allocation297_spill] sm:$0xff] }
 0x486   : > { %v2882_v31 = vpop.f32.mrf.mxu2  ;;  %15415 = vst [vmem:[#allocation183_spill] sm:$0xff] %v11273_v50 }
 0x487   : > { %v11267_v23 = vadd.f32 %v2882_v31, %v15413_v36  ;;  %7704 = vmatmul.msk.bf16.gmra.mxu1 %vm1607_vm5, %v3629_v27  ;;  %7753 = vmatmul.msk.bf16.gmra.mxu3 %vm1607_vm5, %v4044_v43  ;;  %v15421_v36 = vld [vmem:[#allocation302_spill] sm:$0xff] }
 0x48b   : > { %v11282_v14 = vpop.f32.mrf.mxu1 }
 0x48c   : > { %15418 = vst [vmem:[#allocation266_spill] sm:$0xff] %v11282_v14 }
 0x48d   : > { %v11285_v31 = vpop.f32.mrf.mxu3  ;;  %v11290_v43 = vpop.f32.mrf.mxu0 }
 0x48e   : > { %v2884_v11 = vpop.f32.mrf.mxu2  ;;  %15419 = vst [vmem:[#allocation272_spill] sm:$0xff] %v11285_v31  ;;  %v15433_v31 = vld [vmem:[#allocation318_spill] sm:$0xff] }
 0x48f   : > { %v11276_v19 = vadd.f32 %v2884_v11, %v15416_v56 }
 0x491   : > { %15417 = vst [vmem:[#allocation298_spill] sm:$0xff] %v11276_v19 }
 0x493   : > { %7604 = vmatmul.msk.bf16.gmra.mxu2 %vm1607_vm5, %v2797_v6  ;;  %v11292_v27 = vpop.f32.mrf.mxu1 }
 0x495   : > { %v11297_v56 = vpop.f32.mrf.mxu3  ;;  %v11302_v26 = vpop.f32.mrf.mxu0 }
 0x496   : > { %v2887_v37 = vpop.f32.mrf.mxu2  ;;  %15422 = vst [vmem:[#allocation185_spill] sm:$0xff] %v11297_v56 }
 0x497   : > { %v11288_v63 = vadd.f32 %v2887_v37, %v15420_v17  ;;  %v15423_v17 = vld [vmem:[#allocation305_spill] sm:$0xff] }
 0x49b   : > { %v11304_v6 = vpop.f32.mrf.mxu1 }
 0x49d   : > { %v11309_v35 = vpop.f32.mrf.mxu3  ;;  %v11311_v40 = vpop.f32.mrf.mxu0 }
 0x49e   : > { %v2889_v21 = vpop.f32.mrf.mxu2  ;;  %15424 = vst [vmem:[#allocation181_spill] sm:$0xff] %v11309_v35 }
 0x49f   : > { %v11295_v11 = vadd.f32 %v2889_v21, %v15421_v36  ;;  %v15425_v36 = vld [vmem:[#allocation309_spill] sm:$0xff] }
 0x4a3   : > { %7605 = vmatmul.msk.bf16.gmra.mxu2 %vm1607_vm5, %v2798_v38  ;;  %v11316_v29 = vpop.f32.mrf.mxu1 }
 0x4a5   : > { %v11321_v60 = vpop.f32.mrf.mxu3  ;;  %v3317_v13 = vpop.f32.mrf.mxu0 }
 0x4a6   : > { %v2892_v37 = vpop.f32.mrf.mxu2 }
 0x4a7   : > { %v11307_v47 = vadd.f32 %v2892_v37, %v15423_v17  ;;  %v15426_v37 = vld [vmem:[#allocation313_spill] sm:$0xff] }
 0x4ab   : > { %v3732_v48 = vpop.f32.mrf.mxu1 }
 0x4ad   : > { %v11330_v57 = vpop.f32.mrf.mxu3  ;;  %v3319_v3 = vpop.f32.mrf.mxu0 }
 0x4ae   : > { %v2894_v21 = vpop.f32.mrf.mxu2  ;;  %15431 = vst [vmem:[#allocation186_spill] sm:$0xff] %v11330_v57 }
 0x4af   : > { %v11314_v1 = vadd.f32 %v2894_v21, %v15425_v36  ;;  %v15429_v21 = vld [vmem:[#allocation132_spill] sm:$0xff]  ;;  %v15430_v36 = vld [vmem:[#allocation159_spill] sm:$0xff] }
 0x4b0   : > { %v4413_v46 = vmul.f32 %v15430_v36, %v15429_v21  ;;  %v15435_v21 = vld [vmem:[#allocation194_spill] sm:$0xff]  ;;  %v15436_v36 = vld [vmem:[#allocation213_spill] sm:$0xff] }
 0x4b1   : > { %v4415_v57 = vmul.f32 %v15436_v36, %v15435_v21 }
 0x4b3   : > { %7606 = vmatmul.msk.bf16.gmra.mxu2 %vm1607_vm5, %v2799_v10  ;;  %v4444_v10 = vpack.c.bf16 %v4413_v46, %v4412_v42  ;;  %v15439_v46 = vld [vmem:[#allocation321_spill] sm:$0xff] }
 0x4b5   : > { %v4149_v56 = vpop.f32.mrf.mxu3  ;;  %v3322_v5 = vpop.f32.mrf.mxu0 }
 0x4b6   : > { %v2897_v38 = vpop.f32.mrf.mxu2 }
 0x4b7   : > { %v11324_v17 = vadd.f32 %v2897_v38, %v15426_v37  ;;  %v3734_v38 = vpop.f32.mrf.mxu1 }
 0x4bd   : > { %v11344_v52 = vpop.f32.mrf.mxu3 }
 0x4be   : > { %v2899_v50 = vpop.f32.mrf.mxu2  ;;  %15440 = vst [vmem:[#allocation277_spill] sm:$0xff] %v11344_v52 }
 0x4bf   : > { %v11333_v25 = vadd.f32 %v2899_v50, %v15432_v4  ;;  %v3737_v61 = vpop.f32.mrf.mxu1  ;;  %v15437_v50 = vld [vmem:[#allocation136_spill] sm:$0xff] }
 0x4c0   : > { %v15438_v4 = vld [vmem:[#allocation204_spill] sm:$0xff] }
 0x4c1   : > { %v4414_v42 = vmul.f32 %v15438_v4, %v15437_v50  ;;  %v15443_v4 = vld [vmem:[#allocation157_spill] sm:$0xff] }
 0x4c3   : > { %7787 = vmatmul.msk.bf16.vlgmr.msra.gmra.mxu2 %vm1607_vm5, %v4444_v10  ;;  %v4445_v10 = vpack.c.bf16 %v4415_v57, %v4414_v42  ;;  %v15446_v42 = vld [vmem:[#allocation224_spill] sm:$0xff] }
 0x4c5   : > { %v4154_v50 = vpop.f32.mrf.mxu3 }
 0x4c6   : > { %v2902_v37 = vpop.f32.mrf.mxu2 }
 0x4c7   : > { %v2958_v54 = vadd.f32 %v2902_v37, %v15433_v31  ;;  %v15442_v31 = vld [vmem:[#allocation163_spill] sm:$0xff]  ;;  %v3739_v21 = vpop.f32.mrf.mxu1 }
 0x4c9   : > { %v3373_v18 = vadd.f32 %v3317_v13, %v2958_v54  ;;  %v3324_v54 = vpop.f32.mrf.mxu0 }
 0x4cb   : > { %v11337_v15 = vadd.f32 %v3732_v48, %v3373_v18 }
 0x4cd   : > { %15434 = vst [vmem:[#allocation188_spill] sm:$0xff] %v11337_v15 }
 0x4ce   : > { %v2904_v19 = vpop.f32.mrf.mxu2 }
 0x4cf   : > { %v2959_v35 = vadd.f32 %v2904_v19, %v15439_v46  ;;  %v15444_v19 = vld [vmem:[#allocation222_spill] sm:$0xff] }
 0x4d0   : > { %v4416_v57 = vmul.f32 %v15444_v19, %v15443_v4 }
 0x4d1   : > { %v3374_v14 = vadd.f32 %v3319_v3, %v2959_v35  ;;  %v15445_v35 = vld [vmem:[#allocation147_spill] sm:$0xff] }
 0x4d2   : > { %v4417_v46 = vmul.f32 %v15446_v42, %v15445_v35 }
 0x4d3   : > { %7788 = vmatmul.msk.bf16.gmra.mxu2 %vm1607_vm5, %v4445_v10  ;;  %v3789_v13 = vadd.f32 %v3734_v38, %v3374_v14  ;;  %v15447_v10 = vld [vmem:[#allocation195_spill] sm:$0xff] }
 0x4d4   : > { %v4446_v38 = vpack.c.bf16 %v4417_v46, %v4416_v57  ;;  %v15453_v46 = vld [vmem:[#allocation242_spill] sm:$0xff] }
 0x4d5   : > { %v11347_v48 = vadd.f32 %v4149_v56, %v3789_v13  ;;  %v3327_v56 = vpop.f32.mrf.mxu0 }
 0x4d6   : > { %v2907_v18 = vpop.f32.mrf.mxu2 }
 0x4d7   : > { %15441 = vst [vmem:[#allocation280_spill] sm:$0xff] %v11347_v48  ;;  %v2960_v37 = vadd.f32 %v2907_v18, %v15442_v31  ;;  %v3742_v48 = vpop.f32.mrf.mxu1  ;;  %v15449_v31 = vld [vmem:[#allocation328_spill] sm:$0xff] }
 0x4d9   : > { %v3375_v36 = vadd.f32 %v3322_v5, %v2960_v37 }
 0x4db   : > { %v11350_v15 = vadd.f32 %v3737_v61, %v3375_v36  ;;  %v11360_v61 = vpop.f32.mrf.mxu3 }
 0x4dd   : > { %v3329_v19 = vpop.f32.mrf.mxu0 }
 0x4de   : > { %v2909_v3 = vpop.f32.mrf.mxu2 }
 0x4df   : > { %v2961_v14 = vadd.f32 %v2909_v3, %v15447_v10  ;;  %v3744_v35 = vpop.f32.mrf.mxu1  ;;  %v15450_v3 = vld [vmem:[#allocation206_spill] sm:$0xff]  ;;  %v15451_v10 = vld [vmem:[#allocation244_spill] sm:$0xff] }
 0x4e0   : > { %v4418_v57 = vmul.f32 %v15451_v10, %v15450_v3 }
 0x4e1   : > { %v3376_v13 = vadd.f32 %v3324_v54, %v2961_v14  ;;  %v15452_v54 = vld [vmem:[#allocation165_spill] sm:$0xff] }
 0x4e2   : > { %v4419_v14 = vmul.f32 %v15453_v46, %v15452_v54  ;;  %v15459_v46 = vld [vmem:[#allocation166_spill] sm:$0xff] }
 0x4e3   : > { %7789 = vmatmul.msk.bf16.gmra.mxu2 %vm1607_vm5, %v4446_v38  ;;  %v3791_v18 = vadd.f32 %v3739_v21, %v3376_v13  ;;  %v15454_v21 = vld [vmem:[#allocation143_spill] sm:$0xff]  ;;  %v4159_v13 = vpop.f32.mrf.mxu3 }
 0x4e5   : > { %v11358_v5 = vadd.f32 %v4154_v50, %v3791_v18  ;;  %v4447_v18 = vpack.c.bf16 %v4419_v14, %v4418_v57  ;;  %v15461_v14 = vld [vmem:[#allocation216_spill] sm:$0xff] }
 0x4e6   : > { %v2912_v36 = vpop.f32.mrf.mxu2 }
 0x4e7   : > { %15448 = vst [vmem:[#allocation182_spill] sm:$0xff] %v11358_v5  ;;  %v2962_v4 = vadd.f32 %v2912_v36, %v15449_v31 }
 0x4e9   : > { %v3377_v37 = vadd.f32 %v3327_v56, %v2962_v4  ;;  %v3332_v56 = vpop.f32.mrf.mxu0 }
 0x4eb   : > { %v11363_v52 = vadd.f32 %v3742_v48, %v3377_v37  ;;  %v3747_v48 = vpop.f32.mrf.mxu1  ;;  %v15456_v37 = vld [vmem:[#allocation330_spill] sm:$0xff]  ;;  %v11374_v10 = vpop.f32.mrf.mxu3 }
 0x4ec   : > { %15457 = vst [vmem:[#allocation184_spill] sm:$0xff] %v11374_v10 }
 0x4ee   : > { %v2914_v38 = vpop.f32.mrf.mxu2 }
 0x4ef   : > { %v2963_v50 = vadd.f32 %v2914_v38, %v15454_v21  ;;  %v15460_v38 = vld [vmem:[#allocation265_spill] sm:$0xff] }
 0x4f0   : > { %v4421_v21 = vmul.f32 %v15460_v38, %v15459_v46 }
 0x4f1   : > { %v3378_v42 = vadd.f32 %v3329_v19, %v2963_v50  ;;  %v3334_v57 = vpop.f32.mrf.mxu0  ;;  %v15462_v50 = vld [vmem:[#allocation256_spill] sm:$0xff] }
 0x4f3   : > { %7790 = vmatmul.msk.bf16.gmra.mxu2 %vm1607_vm5, %v4447_v18  ;;  %v3793_v36 = vadd.f32 %v3744_v35, %v3378_v42  ;;  %v4420_v42 = vmul.f32 %v15462_v50, %v15461_v14  ;;  %v15463_v35 = vld [vmem:[#allocation200_spill] sm:$0xff]  ;;  %v3749_v18 = vpop.f32.mrf.mxu1  ;;  %v15465_v14 = vld [vmem:[#allocation227_spill] sm:$0xff] }
 0x4f4   : > { %v15466_v50 = vld [vmem:[#allocation275_spill] sm:$0xff] }
 0x4f5   : > { %v11371_v31 = vadd.f32 %v4159_v13, %v3793_v36  ;;  %v4448_v36 = vpack.c.bf16 %v4421_v21, %v4420_v42  ;;  %v15467_v21 = vld [vmem:[#allocation168_spill] sm:$0xff] }
 0x4f6   : > { %v2917_v4 = vpop.f32.mrf.mxu2 }
 0x4f7   : > { %15455 = vst [vmem:[#allocation187_spill] sm:$0xff] %v11371_v31  ;;  %v2964_v5 = vadd.f32 %v2917_v4, %v15456_v37  ;;  %v15464_v37 = vld [vmem:[#allocation123_spill] sm:$0xff] }
 0x4f9   : > { %v3379_v3 = vadd.f32 %v3332_v56, %v2964_v5  ;;  %v4164_v56 = vpop.f32.mrf.mxu3  ;;  %v3337_v46 = vpop.f32.mrf.mxu0 }
 0x4fb   : > { %v11376_v54 = vadd.f32 %v3747_v48, %v3379_v3  ;;  %v3752_v10 = vpop.f32.mrf.mxu1 }
 0x4fd   : > { %15458 = vst [vmem:[#allocation189_spill] sm:$0xff] %v11376_v54 }
 0x4fe   : > { %v2919_v19 = vpop.f32.mrf.mxu2 }
 0x4ff   : > { %v2965_v13 = vadd.f32 %v2919_v19, %v15463_v35  ;;  %v4422_v19 = vmul.f32 %v15466_v50, %v15465_v14 }
 0x501   : > { %v3380_v31 = vadd.f32 %v3334_v57, %v2965_v13  ;;  %v15468_v57 = vld [vmem:[#allocation276_spill] sm:$0xff]  ;;  %v15469_v13 = vld [vmem:[#allocation217_spill] sm:$0xff] }
 0x502   : > { %v4423_v42 = vmul.f32 %v15468_v57, %v15467_v21 }
 0x503   : > { %7791 = vmatmul.msk.bf16.gmra.mxu2 %vm1607_vm5, %v4448_v36  ;;  %v3795_v5 = vadd.f32 %v3749_v18, %v3380_v31 }
 0x504   : > { %v4449_v18 = vpack.c.bf16 %v4423_v42, %v4422_v19  ;;  %v15474_v42 = vld [vmem:[#allocation172_spill] sm:$0xff] }
 0x505   : > { %v11384_v4 = vadd.f32 %v4164_v56, %v3795_v5  ;;  %v15470_v56 = vld [vmem:[#allocation237_spill] sm:$0xff] }
 0x506   : > { %v2922_v48 = vpop.f32.mrf.mxu2 }
 0x507   : > { %v2966_v3 = vadd.f32 %v2922_v48, %v15464_v37  ;;  %v15472_v48 = vld [vmem:[#allocation171_spill] sm:$0xff]  ;;  %v15473_v37 = vld [vmem:[#allocation294_spill] sm:$0xff] }
 0x509   : > { %v3381_v38 = vadd.f32 %v3337_v46, %v2966_v3  ;;  %v4425_v3 = vmul.f32 %v15473_v37, %v15472_v48 }
 0x50b   : > { %v11387_v54 = vadd.f32 %v3752_v10, %v3381_v38  ;;  %v15471_v10 = vld [vmem:[#allocation296_spill] sm:$0xff] }
 0x50c   : > { %v4424_v38 = vmul.f32 %v15471_v10, %v15470_v56  ;;  %v15477_v56 = vld [vmem:[#allocation306_spill] sm:$0xff] }
 0x50e   : > { %v2924_v35 = vpop.f32.mrf.mxu2  ;;  %v4450_v21 = vpack.c.bf16 %v4425_v3, %v4424_v38  ;;  %v15478_v3 = vld [vmem:[#allocation259_spill] sm:$0xff] }
 0x50f   : > { %v11394_v31 = vadd.f32 %v2924_v35, %v15469_v13 }
 0x513   : > { %7792 = vmatmul.msk.bf16.gmra.mxu2 %vm1607_vm5, %v4449_v18 }
 0x516   : > { %v2927_v36 = vpop.f32.mrf.mxu2 }
 0x517   : > { %v11398_v5 = vadd.f32 %v2927_v36, %v10988_v16  ;;  %v15475_v16 = vld [vmem:[#allocation312_spill] sm:$0xff]  ;;  %v15476_v36 = vld [vmem:[#allocation246_spill] sm:$0xff] }
 0x518   : > { %v4427_v13 = vmul.f32 %v15475_v16, %v15474_v42  ;;  %v4426_v10 = vmul.f32 %v15477_v56, %v15476_v36  ;;  %v15481_v42 = vld [vmem:[#allocation155_spill] sm:$0xff] }
 0x51a   : > { %v4451_v37 = vpack.c.bf16 %v4427_v13, %v4426_v10 }
 0x51e   : > { %v2929_v46 = vpop.f32.mrf.mxu2 }
 0x51f   : > { %v11405_v14 = vadd.f32 %v2929_v46, %v11016_v9 }
 0x523   : > { %7793 = vmatmul.msk.bf16.gmra.mxu2 %vm1607_vm5, %v4450_v21 }
 0x526   : > { %v2932_v19 = vpop.f32.mrf.mxu2 }
 0x527   : > { %v11409_v35 = vadd.f32 %v2932_v19, %v11034_v33  ;;  %v15479_v33 = vld [vmem:[#allocation156_spill] sm:$0xff]  ;;  %v15480_v19 = vld [vmem:[#allocation174_spill] sm:$0xff] }
 0x528   : > { %v4428_v46 = vmul.f32 %v15479_v33, %v15478_v3  ;;  %v4429_v16 = vmul.f32 %v15481_v42, %v15480_v19 }
 0x52a   : > { %v4452_v36 = vpack.c.bf16 %v4429_v16, %v4428_v46  ;;  %v15486_v46 = vld [vmem:[#allocation178_spill] sm:$0xff] }
 0x52e   : > { %v2934_v18 = vpop.f32.mrf.mxu2 }
 0x52f   : > { %v11416_v48 = vadd.f32 %v2934_v18, %v11066_v2  ;;  %v15484_v18 = vld [vmem:[#allocation177_spill] sm:$0xff] }
 0x533   : > { %7794 = vmatmul.msk.bf16.gmra.mxu2 %vm1607_vm5, %v4451_v37  ;;  %v15482_v37 = vld [vmem:[#allocation268_spill] sm:$0xff] }
 0x536   : > { %v2937_v9 = vpop.f32.mrf.mxu2 }
 0x537   : > { %v11420_v38 = vadd.f32 %v2937_v9, %v11082_v22  ;;  %v15483_v22 = vld [vmem:[#allocation327_spill] sm:$0xff]  ;;  %v15485_v9 = vld [vmem:[#allocation325_spill] sm:$0xff] }
 0x538   : > { %v4430_v13 = vmul.f32 %v15483_v22, %v15482_v37  ;;  %v4431_v3 = vmul.f32 %v15485_v9, %v15484_v18 }
 0x53a   : > { %v4453_v19 = vpack.c.bf16 %v4431_v3, %v4430_v13  ;;  %v15489_v13 = vld [vmem:[#allocation290_spill] sm:$0xff] }
 0x53e   : > { %v2939_v21 = vpop.f32.mrf.mxu2 }
 0x53f   : > { %v11427_v57 = vadd.f32 %v2939_v21, %v11112_v49 }
 0x543   : > { %7795 = vmatmul.msk.bf16.gmra.mxu2 %vm1607_vm5, %v4452_v36 }
 0x546   : > { %v4522_v2 = vpop.f32.mrf.mxu2 }
 0x547   : > { %v11431_v10 = vadd.f32 %v4522_v2, %v11131_v41  ;;  %v15487_v41 = vld [vmem:[#allocation160_spill] sm:$0xff]  ;;  %v15488_v2 = vld [vmem:[#allocation331_spill] sm:$0xff] }
 0x548   : > { %v4433_v21 = vmul.f32 %v15487_v41, %v15486_v46  ;;  %v4432_v37 = vmul.f32 %v15488_v2, %v15341_v55 }
 0x54a   : > { %v4454_v9 = vpack.c.bf16 %v4433_v21, %v4432_v37 }
 0x54e   : > { %v4524_v33 = vpop.f32.mrf.mxu2 }
 0x54f   : > { %v11438_v56 = vadd.f32 %v4524_v33, %v11158_v0 }
 0x553   : > { %7796 = vmatmul.msk.bf16.gmra.mxu2 %vm1607_vm5, %v4453_v19 }
 0x556   : > { %v4527_v49 = vpop.f32.mrf.mxu2 }
 0x557   : > { %v11442_v16 = vadd.f32 %v4527_v49, %v11167_v62  ;;  %v15490_v62 = vld [vmem:[#allocation167_spill] sm:$0xff]  ;;  %v15491_v49 = vld [vmem:[#allocation133_spill] sm:$0xff] }
 0x558   : > { %v4434_v3 = vmul.f32 %v15490_v62, %v15489_v13  ;;  %v4435_v46 = vmul.f32 %v15491_v49, %v15349_v58 }
 0x55a   : > { %v4455_v55 = vpack.c.bf16 %v4435_v46, %v4434_v3 }
 0x55e   : > { %v4529_v36 = vpop.f32.mrf.mxu2 }
 0x55f   : > { %v11449_v18 = vadd.f32 %v4529_v36, %v11186_v53  ;;  %v15493_v36 = vld [vmem:[#allocation238_spill] sm:$0xff] }
 0x560   : > { %v4437_v37 = vmul.f32 %v15493_v36, %v10566_v12 }
 0x563   : > { %7797 = vmatmul.msk.bf16.gmra.mxu2 %vm1607_vm5, %v4454_v9 }
 0x566   : > { %v4532_v0 = vpop.f32.mrf.mxu2 }
 0x567   : > { %v11453_v33 = vadd.f32 %v4532_v0, %v11200_v34  ;;  %v15492_v34 = vld [vmem:[#allocation170_spill] sm:$0xff]  ;;  %v3365_v0 = vadd.f32 %v11191_v32, %v11267_v23 }
 0x568   : > { %v4436_v21 = vmul.f32 %v15492_v34, %v10578_v28  ;;  %v15494_v28 = vld [vmem:[#allocation180_spill] sm:$0xff]  ;;  %v15496_v23 = vld [vmem:[#allocation334_spill] sm:$0xff] }
 0x569   : > { %v3780_v3 = vadd.f32 %v11196_v59, %v3365_v0  ;;  %v4439_v12 = vmul.f32 %v15494_v28, %v10627_v24  ;;  %v15498_v59 = vld [vmem:[#allocation269_spill] sm:$0xff]  ;;  %v11490_v24 = vpop.permute.xlu1 %4409 }
 0x56a   : > { %v4456_v13 = vpack.c.bf16 %v4437_v37, %v4436_v21  ;;  %v15497_v21 = vld [vmem:[#allocation190_spill] sm:$0xff] }
 0x56b   : > { %v4440_v37 = vmul.f32 %v15498_v59, %v15497_v21  ;;  %v3372_v21 = vadd.f32 %v11311_v40, %v11333_v25  ;;  %v15508_v59 = vld [vmem:[#allocation185_spill] sm:$0xff] }
 0x56e   : > { %v4534_v19 = vpop.f32.mrf.mxu2 }
 0x56f   : > { %v11460_v41 = vadd.f32 %v4534_v19, %v11225_v45 }
 0x573   : > { %7798 = vmatmul.msk.bf16.gmra.mxu2 %vm1607_vm5, %v4455_v55 }
 0x576   : > { %v4537_v53 = vpop.f32.mrf.mxu2 }
 0x577   : > { %v11464_v9 = vadd.f32 %v4537_v53, %v11237_v44  ;;  %v4195_v44 = vadd.f32 %v11202_v30, %v3780_v3  ;;  %v15495_v53 = vld [vmem:[#allocation308_spill] sm:$0xff]  ;;  %v15499_v30 = vld [vmem:[#allocation263_spill] sm:$0xff] }
 0x578   : > { %v4438_v32 = vmul.f32 %v15496_v23, %v15495_v53 }
 0x57a   : > { %v4457_v36 = vpack.c.bf16 %v4439_v12, %v4438_v32  ;;  %v15501_v12 = vld [vmem:[#allocation192_spill] sm:$0xff] }
 0x57e   : > { %v4539_v58 = vpop.f32.mrf.mxu2 }
 0x57f   : > { %v11473_v45 = vadd.f32 %v4539_v58, %v11262_v8  ;;  %v4441_v58 = vmul.f32 %v15499_v30, %v15380_v7  ;;  %v15505_v30 = vld [vmem:[#allocation298_spill] sm:$0xff] }
 0x583   : > { %7799 = vmatmul.msk.bf16.gmra.mxu2 %vm1607_vm5, %v4456_v13  ;;  %v4458_v13 = vpack.c.bf16 %v4441_v58, %v4440_v37  ;;  %v3371_v37 = vadd.f32 %v11302_v26, %v11324_v17  ;;  %v3370_v58 = vadd.f32 %v11290_v43, %v11314_v1  ;;  %v15502_v26 = vld [vmem:[#allocation282_spill] sm:$0xff]  ;;  %v15504_v43 = vld [vmem:[#allocation181_spill] sm:$0xff] }
 0x584   : > { %v3367_v17 = vadd.f32 %v15502_v26, %v11288_v63 }
 0x586   : > { %v4542_v19 = vpop.f32.mrf.mxu2 }
 0x587   : > { %v11478_v46 = vadd.f32 %v4542_v19, %v4195_v44  ;;  %v15500_v44 = vld [vmem:[#allocation193_spill] sm:$0xff] }
 0x588   : > { %v4442_v19 = vmul.f32 %v11218_v20, %v15500_v44  ;;  %v3369_v44 = vadd.f32 %v11278_v51, %v11307_v47  ;;  %v15506_v47 = vld [vmem:[#allocation287_spill] sm:$0xff] }
 0x589   : > { %v3366_v51 = vadd.f32 %v15506_v47, %v15505_v30  ;;  %v15513_v30 = vld [vmem:[#allocation188_spill] sm:$0xff] }
 0x58e   : > { %v4544_v55 = vpop.f32.mrf.mxu2 }
 0x593   : > { %7800 = vmatmul.msk.bf16.gmra.mxu2 %vm1607_vm5, %v4457_v36  ;;  %v4443_v36 = vmul.f32 %v11490_v24, %v15501_v12  ;;  %v3786_v12 = vadd.f32 %v11304_v6, %v3371_v37  ;;  %v15507_v6 = vld [vmem:[#allocation299_spill] sm:$0xff] }
 0x595   : > { %v4459_v32 = vpack.c.bf16 %v4443_v36, %v4442_v19  ;;  %v3368_v19 = vadd.f32 %v11264_v39, %v11295_v11  ;;  %v3785_v36 = vadd.f32 %v11292_v27, %v3370_v58  ;;  %v15509_v27 = vld [vmem:[#allocation255_spill] sm:$0xff]  ;;  %v15510_v58 = vld [vmem:[#allocation272_spill] sm:$0xff] }
 0x596   : > { %v4547_v8 = vpop.f32.mrf.mxu2 }
 0x597   : > { %v3783_v37 = vadd.f32 %v15507_v6, %v3368_v19  ;;  %v4200_v39 = vadd.f32 %v15508_v59, %v3785_v36  ;;  %v15514_v19 = vld [vmem:[#allocation186_spill] sm:$0xff]  ;;  %v15515_v36 = vld [vmem:[#allocation293_spill] sm:$0xff] }
 0x598   : > { %v4203_v59 = vadd.f32 %v15514_v19, %v15513_v30 }
 0x59e   : > { %v4549_v0 = vpop.f32.mrf.mxu2 }
 0x5a3   : > { %7801 = vmatmul.msk.bf16.gmra.mxu2 %vm1607_vm5, %v4458_v13  ;;  %v3787_v13 = vadd.f32 %v11316_v29, %v3372_v21  ;;  %v4201_v29 = vadd.f32 %v15504_v43, %v3786_v12 }
 0x5a5   : > { %v4202_v40 = vadd.f32 %v11321_v60, %v3787_v13  ;;  %v3782_v60 = vadd.f32 %v15509_v27, %v3367_v17  ;;  %v3754_v27 = vpop.f32.mrf.mxu1 }
 0x5a6   : > { %v4552_v3 = vpop.f32.mrf.mxu2 }
 0x5ae   : > { %v4554_v53 = vpop.f32.mrf.mxu2 }
 0x5af   : > { %v4615_v63 = vadd.f32 %v4554_v53, %v4200_v39  ;;  %v15516_v53 = vld [vmem:[#allocation191_spill] sm:$0xff]  ;;  %v3339_v39 = vpop.f32.mrf.mxu0 }
 0x5b3   : > { %7802 = vmatmul.msk.bf16.gmra.mxu2 %vm1607_vm5, %v4459_v32  ;;  %v15503_v32 = vld [vmem:[#allocation266_spill] sm:$0xff] }
 0x5b4   : > { %v3784_v1 = vadd.f32 %v15503_v32, %v3369_v44  ;;  %v15511_v44 = vld [vmem:[#allocation241_spill] sm:$0xff]  ;;  %v4197_v32 = vadd.f32 %v15515_v36, %v3782_v60 }
 0x5b5   : > { %v3781_v12 = vadd.f32 %v15511_v44, %v3366_v51  ;;  %v15519_v51 = vld [vmem:[#allocation184_spill] sm:$0xff]  ;;  %v8093_v36 = vld [vmem:[%s14085_s14 + $0x60] sm:$0xff] }
 0x5b6   : > { %v4557_v7 = vpop.f32.mrf.mxu2  ;;  %v4199_v13 = vadd.f32 %v15510_v58, %v3784_v1 }
 0x5b7   : > { %v4616_v11 = vadd.f32 %v4557_v7, %v4201_v29  ;;  %v4196_v1 = vadd.f32 %v15516_v53, %v3781_v12  ;;  %v4612_v29 = vadd.f32 %v4547_v8, %v4197_v32  ;;  %v3757_v12 = vpop.f32.mrf.mxu1 }
 0x5b8   : > { %v4614_v26 = vadd.f32 %v4552_v3, %v4199_v13  ;;  %v8091_v13 = vld [vmem:[%s14085_s14 + $0x40] sm:$0xff] }
 0x5be   : > { %v4559_v25 = vpop.f32.mrf.mxu2 }
 0x5bf   : > { %v4617_v21 = vadd.f32 %v4559_v25, %v4202_v40  ;;  %v15512_v40 = vld [vmem:[#allocation183_spill] sm:$0xff] }
 0x5c0   : > { %v4198_v25 = vadd.f32 %v15512_v40, %v3783_v37  ;;  %v4167_v37 = vpop.f32.mrf.mxu3 }
 0x5c1   : > { %4634 = vmatpush.msrb.mxu0 %v4617_v21  ;;  %8011 = vmatpush.msra.mxu3 %v4617_v21  ;;  %v4611_v21 = vadd.f32 %v4544_v55, %v4196_v1  ;;  %v15517_v55 = vld [vmem:[#allocation277_spill] sm:$0xff]  ;;  %v4211_v44 = vadd.f32 %v4167_v37, %v11387_v54 }
 0x5c2   : > { %v4613_v43 = vadd.f32 %v4549_v0, %v4198_v25  ;;  %v4205_v8 = vadd.f32 %v15517_v55, %v11350_v15 }
 0x5c3   : > { %4635 = vmatpush.msrb.mxu0 %v4616_v11  ;;  %8012 = vmatpush.msra.mxu3 %v4616_v11  ;;  %v8090_v11 = vld [vmem:[%s14085_s14 + $0x30] sm:$0xff] }
 0x5c5   : > { %4636 = vmatpush.msrb.mxu0 %v4615_v63  ;;  %8013 = vmatpush.msra.mxu3 %v4615_v63  ;;  %v3342_v63 = vpop.f32.mrf.mxu0 }
 0x5c6   : > { %v4562_v7 = vpop.f32.mrf.mxu2  ;;  %v3383_v23 = vadd.f32 %v3342_v63, %v11398_v5 }
 0x5c7   : > { %v11526_v17 = vadd.f32 %v4562_v7, %v4203_v59  ;;  %4637 = vmatpush.msrb.mxu0 %v4614_v26  ;;  %8014 = vmatpush.msra.mxu3 %v4614_v26  ;;  %v8092_v26 = vld [vmem:[%s14085_s14 + $0x50] sm:$0xff]  ;;  %v3759_v7 = vpop.f32.mrf.mxu1 }
 0x5c8   : > { %v11582_v58 = vpop.f32.mrf.mxu3 }
 0x5c9   : > { %4638 = vmatpush.msrb.mxu0 %v4613_v43  ;;  %8015 = vmatpush.msra.mxu3 %v4613_v43 }
 0x5cb   : > { %4639 = vmatpush.msrb.mxu0 %v4612_v29  ;;  %8016 = vmatpush.msra.mxu3 %v4612_v29 }
 0x5cd   : > { %4640 = vmatpush.msrb.mxu0 %v4611_v21  ;;  %8017 = vmatpush.msra.mxu3 %v4611_v21  ;;  %v3344_v19 = vpop.f32.mrf.mxu0 }
 0x5ce   : > { %v11529_v3 = vpop.f32.mrf.mxu2 }
 0x5cf   : > { %4641 = vmatpush.msrb.mxu0 %v11478_v46  ;;  %8018 = vmatpush.msra.mxu3 %v11478_v46  ;;  %v15518_v46 = vld [vmem:[#allocation189_spill] sm:$0xff]  ;;  %v3762_v53 = vpop.f32.mrf.mxu1 }
 0x5d0   : > { %v4209_v6 = vadd.f32 %v15519_v51, %v15518_v46  ;;  %v4172_v30 = vpop.f32.mrf.mxu3 }
 0x5d1   : > { %4642 = vmatpush.msrb.mxu0 %v11473_v45  ;;  %8019 = vmatpush.msra.mxu3 %v11473_v45  ;;  %v8089_v45 = vld [vmem:[%s14085_s14 + $0x20] sm:$0xff] }
 0x5d3   : > { %4643 = vmatpush.msrb.mxu0 %v11464_v9  ;;  %8020 = vmatpush.msra.mxu3 %v11464_v9 }
 0x5d5   : > { %4644 = vmatpush.msrb.mxu0 %v11460_v41  ;;  %8021 = vmatpush.msra.mxu3 %v11460_v41  ;;  %v8086_v41 = vld [vmem:[%s14085_s14] sm:$0xff]  ;;  %v3347_v54 = vpop.f32.mrf.mxu0 }
 0x5d6   : > { %v4567_v0 = vpop.f32.mrf.mxu2 }
 0x5d7   : > { %v11541_v47 = vadd.f32 %v4567_v0, %v4205_v8  ;;  %4645 = vmatpush.msrb.mxu0 %v11453_v33  ;;  %8022 = vmatpush.msra.mxu3 %v11453_v33  ;;  %v3764_v55 = vpop.f32.mrf.mxu1 }
 0x5d8   : > { %v4174_v32 = vpop.f32.mrf.mxu3 }
 0x5d9   : > { %4646 = vmatpush.msrb.mxu0 %v11449_v18  ;;  %8023 = vmatpush.msra.mxu3 %v11449_v18  ;;  %v8087_v18 = vld [vmem:[%s14085_s14 + $0x70] sm:$0xff] }
 0x5db   : > { %4647 = vmatpush.msrb.mxu0 %v11442_v16  ;;  %8024 = vmatpush.msra.mxu3 %v11442_v16  ;;  %v4207_v16 = vadd.f32 %v11360_v61, %v11363_v52 }
 0x5dd   : > { %4648 = vmatpush.msrb.mxu0 %v11438_v56  ;;  %8025 = vmatpush.msra.mxu3 %v11438_v56  ;;  %v3349_v21 = vpop.f32.mrf.mxu0 }
 0x5de   : > { %v11551_v15 = vpop.f32.mrf.mxu2  ;;  %v3386_v37 = vadd.f32 %v3349_v21, %v11416_v48  ;;  %v3798_v21 = vadd.f32 %v3757_v12, %v3383_v23  ;;  %v8101_v12 = vld [vmem:[%s14085_s14 + $0x78] sm:$0xff] }
 0x5df   : > { %4649 = vmatpush.msrb.mxu0 %v11431_v10  ;;  %8026 = vmatpush.msra.mxu3 %v11431_v10  ;;  %v8088_v10 = vld [vmem:[%s14085_s14 + $0x10] sm:$0xff] }
 0x5e0   : > { %4650 = vmatmul.f32.vlgmr.msrb.gmra.mxu0 %v8086_v41  ;;  %4671 = vmatmul.f32.vlgmr.msra.gmra.mxu3 %v8087_v18  ;;  %v4177_v1 = vpop.f32.mrf.mxu3  ;;  %v3767_v18 = vpop.f32.mrf.mxu1 }
 0x5e5   : > { %v3352_v41 = vpop.f32.mrf.mxu0 }
 0x5e6   : > { %v4572_v56 = vpop.f32.mrf.mxu2  ;;  %v3387_v51 = vadd.f32 %v3352_v41, %v11420_v38  ;;  %v3382_v38 = vadd.f32 %v3339_v39, %v11394_v31  ;;  %v15521_v39 = vld [vmem:[#allocation182_spill] sm:$0xff] }
 0x5e7   : > { %v11563_v33 = vadd.f32 %v4572_v56, %v4207_v16 }
 0x5e8   : > { %4653 = vmatmul.f32.gmra.mxu0 %v8088_v10  ;;  %v4179_v0 = vpop.f32.mrf.mxu3 }
 0x5ed   : > { %v3354_v10 = vpop.f32.mrf.mxu0 }
 0x5ee   : > { %v11568_v9 = vpop.f32.mrf.mxu2 }
 0x5f0   : > { %4656 = vmatmul.f32.gmra.mxu0 %v8089_v45  ;;  %v4182_v56 = vpop.f32.mrf.mxu3  ;;  %v3388_v45 = vadd.f32 %v3354_v10, %v11427_v57 }
 0x5f6   : > { %v4577_v52 = vpop.f32.mrf.mxu2 }
 0x5f7   : > { %v11575_v61 = vadd.f32 %v4577_v52, %v4209_v6  ;;  %v3769_v6 = vpop.f32.mrf.mxu1 }
 0x5f8   : > { %4659 = vmatmul.f32.gmra.mxu0 %v8090_v11  ;;  %v3803_v52 = vadd.f32 %v3769_v6, %v3388_v45  ;;  %v3385_v11 = vadd.f32 %v3347_v54, %v11409_v35 }
 0x5fa   : > { %v3800_v34 = vadd.f32 %v3762_v53, %v3385_v11 }
 0x5fc   : > { %v4215_v35 = vadd.f32 %v4177_v1, %v3800_v34 }
 0x5fe   : > { %v11580_v60 = vpop.f32.mrf.mxu2 }
 0x5ff   : > { %v4625_v23 = vadd.f32 %v11580_v60, %v11384_v4  ;;  %v8094_v4 = vld [vmem:[%s14085_s14 + $0x8] sm:$0xff] }
 0x600   : > { %4662 = vmatmul.f32.gmra.mxu0 %v8091_v13  ;;  %v3802_v13 = vadd.f32 %v3767_v18, %v3387_v51  ;;  %v3797_v18 = vadd.f32 %v3754_v27, %v3382_v38  ;;  %v4621_v27 = vadd.f32 %v11551_v15, %v15521_v39  ;;  %v8095_v15 = vld [vmem:[%s14085_s14 + $0x18] sm:$0xff]  ;;  %v8100_v60 = vld [vmem:[%s14085_s14 + $0x68] sm:$0xff] }
 0x601   : > { %v8107_v38 = vld [vmem:[%s8348_s24 + $0x28] sm:$0xff] }
 0x602   : > { %v4217_v57 = vadd.f32 %v4182_v56, %v3802_v13  ;;  %v4212_v5 = vadd.f32 %v11582_v58, %v3797_v18  ;;  %v15522_v58 = vld [vmem:[#allocation280_spill] sm:$0xff] }
 0x603   : > { %v4619_v63 = vadd.f32 %v11529_v3, %v15522_v58  ;;  %v8096_v3 = vld [vmem:[%s14085_s14 + $0x28] sm:$0xff] }
 0x606   : > { %v4582_v40 = vpop.f32.mrf.mxu2 }
 0x607   : > { %v11588_v25 = vadd.f32 %v4582_v40, %v4211_v44  ;;  %v4184_v44 = vpop.f32.mrf.mxu3  ;;  %v3384_v40 = vadd.f32 %v3344_v19, %v11405_v14 }
 0x608   : > { %4665 = vmatmul.f32.gmra.mxu0 %v8092_v26  ;;  %v3801_v26 = vadd.f32 %v3764_v55, %v3386_v37  ;;  %v4213_v55 = vadd.f32 %v4172_v30, %v3798_v21  ;;  %v8103_v30 = vld [vmem:[%s8348_s24 + $0x8] sm:$0xff] }
 0x609   : > { %v3799_v41 = vadd.f32 %v3759_v7, %v3384_v40  ;;  %v4752_v7 = vld [vmem:[%s14078_s7] sm:$0x3] }
 0x60a   : > { %v4216_v49 = vadd.f32 %v4179_v0, %v3801_v26  ;;  %v8076_v0 = vld [vmem:[%s14076_s5] ss:$0 sm:$0xff] }
 0x60b   : > { %v4214_v14 = vadd.f32 %v4174_v32, %v3799_v41  ;;  %v4766_v32 = vsel %vm1656_vm4, %v4752_v7, 0 }
 0x60c   : > { %4775 = vmatpush.bf16.msra.mxu0 %v4766_v32  ;;  %v11677_v32 = vld [vmem:[%s14073_s2 + $0x1] ss:$0 sm:$0xff] }
 0x60e   : > { %v4584_v59 = vpop.f32.mrf.mxu2 }
 0x60f   : > { %v4627_v31 = vadd.f32 %v4584_v59, %v4212_v5  ;;  %v8104_v59 = vld [vmem:[%s8348_s24 + $0x10] sm:$0xff] }
 0x610   : > { %4668 = vmatmul.f32.gmra.mxu0 %v8093_v36  ;;  %v4218_v36 = vadd.f32 %v4184_v44, %v3803_v52 }
 0x616   : > { %v4587_v43 = vpop.f32.mrf.mxu2 }
 0x61e   : > { %v4589_v29 = vpop.f32.mrf.mxu2 }
 0x61f   : > { %v4629_v45 = vadd.f32 %v4589_v29, %v4214_v14 }
 0x626   : > { %v4592_v8 = vpop.f32.mrf.mxu2 }
 0x627   : > { %v4630_v19 = vadd.f32 %v4592_v8, %v4215_v35 }
 0x62e   : > { %v4594_v16 = vpop.f32.mrf.mxu2 }
 0x62f   : > { %v4631_v54 = vadd.f32 %v4594_v16, %v4216_v49  ;;  %v15520_v49 = vld [vmem:[#allocation187_spill] sm:$0xff]  ;;  %v8106_v16 = vld [vmem:[%s8348_s24 + $0x20] sm:$0xff] }
 0x630   : > { %v4623_v34 = vadd.f32 %v11568_v9, %v15520_v49  ;;  %v8098_v9 = vld [vmem:[%s14085_s14 + $0x48] sm:$0xff] }
 0x636   : > { %v4597_v46 = vpop.f32.mrf.mxu2 }
 0x637   : > { %v4632_v48 = vadd.f32 %v4597_v46, %v4217_v57  ;;  %v8077_v46 = vld [vmem:[%s14077_s6] ss:$0 sm:$0xff] }
 0x63e   : > { %v4599_v28 = vpop.f32.mrf.mxu2 }
 0x63f   : > { %v4633_v10 = vadd.f32 %v4599_v28, %v4218_v36  ;;  %v4628_v28 = vadd.f32 %v4587_v43, %v4213_v55  ;;  %v8105_v43 = vld [vmem:[%s8348_s24 + $0x18] sm:$0xff] }
 0x641   : > { %4675 = vmatpush.msrb.mxu1 %v4633_v10 }
 0x643   : > { %4676 = vmatpush.msrb.mxu1 %v4632_v48 }
 0x645   : > { %4677 = vmatpush.msrb.mxu1 %v4631_v54 }
 0x647   : > { %4678 = vmatpush.msrb.mxu1 %v4630_v19 }
 0x649   : > { %4679 = vmatpush.msrb.mxu1 %v4629_v45 }
 0x64b   : > { %4680 = vmatpush.msrb.mxu1 %v4628_v28 }
 0x64d   : > { %4681 = vmatpush.msrb.mxu1 %v4627_v31  ;;  %v8108_v31 = vld [vmem:[%s8348_s24 + $0x30] sm:$0xff] }
 0x64f   : > { %4682 = vmatpush.msrb.mxu1 %v11588_v25  ;;  %v8102_v25 = vld [vmem:[%s8348_s24] sm:$0xff] }
 0x651   : > { %4683 = vmatpush.msrb.mxu1 %v4625_v23 }
 0x653   : > { %4684 = vmatpush.msrb.mxu1 %v11575_v61  ;;  %v8099_v61 = vld [vmem:[%s14085_s14 + $0x58] sm:$0xff] }
 0x655   : > { %4685 = vmatpush.msrb.mxu1 %v4623_v34 }
 0x657   : > { %4686 = vmatpush.msrb.mxu1 %v11563_v33 }
 0x659   : > { %4687 = vmatpush.msrb.mxu1 %v4621_v27 }
 0x65b   : > { %4688 = vmatpush.msrb.mxu1 %v11541_v47  ;;  %v7807_v47 = vld [vmem:[%s14786_s1 + $0x4] sm:$0xf] }
 0x65c   : > { %v4820_v33 = vsel %vm674_vm0, %v7807_v47, 0 }
 0x65d   : > { %4689 = vmatpush.msrb.mxu1 %v4619_v63  ;;  %v4651_v53 = vpop.f32.mrf.mxu0 }
 0x65f   : > { %4690 = vmatpush.msrb.mxu1 %v11526_v17  ;;  %v8097_v17 = vld [vmem:[%s14085_s14 + $0x38] sm:$0xff] }
 0x660   : > { %4691 = vmatmul.f32.vlgmr.msrb.gmra.mxu1 %v8094_v4 }
 0x661   : > { %4829 = vmatpush.bf16.msra.mxu1 %v4820_v33 }
 0x665   : > { %v4654_v1 = vpop.f32.mrf.mxu0 }
 0x668   : > { %4694 = vmatmul.f32.gmra.mxu1 %v8095_v15 }
 0x66d   : > { %v4657_v6 = vpop.f32.mrf.mxu0 }
 0x670   : > { %4697 = vmatmul.f32.gmra.mxu1 %v8096_v3 }
 0x675   : > { %v4660_v57 = vpop.f32.mrf.mxu0 }
 0x678   : > { %4700 = vmatmul.f32.gmra.mxu1 %v8097_v17 }
 0x67d   : > { %v4663_v18 = vpop.f32.mrf.mxu0 }
 0x680   : > { %4703 = vmatmul.f32.gmra.mxu1 %v8098_v9  ;;  %v8109_v9 = vld [vmem:[%s8348_s24 + $0x38] sm:$0xff] }
 0x685   : > { %v4666_v23 = vpop.f32.mrf.mxu0 }
 0x688   : > { %4706 = vmatmul.f32.gmra.mxu1 %v8099_v61  ;;  %v4672_v61 = vpop.f32.mrf.mxu3 }
 0x68d   : > { %v4669_v3 = vpop.f32.mrf.mxu0 }
 0x690   : > { %4709 = vmatmul.f32.gmra.mxu1 %v8100_v60 }
 0x698   : > { %4712 = vmatmul.f32.gmra.mxu1 %v8101_v12 }
 0x6a0   : > { %7808 = vmatmul.msk.bf16.vlgmr.msra.gmra.mxu1 %vm661_vm1, %v8102_v25 }
 0x6b0   : > { %7809 = vmatmul.msk.bf16.gmra.mxu1 %vm661_vm1, %v8103_v30 }
 0x6c0   : > { %7810 = vmatmul.msk.bf16.gmra.mxu1 %vm661_vm1, %v8104_v59 }
 0x6d0   : > { %7811 = vmatmul.msk.bf16.gmra.mxu1 %vm661_vm1, %v8105_v43 }
 0x6dd   : > { %v4692_v29 = vpop.f32.mrf.mxu1 }
 0x6de   : > { %v4693_v8 = vadd.f32 %v4692_v29, %v4651_v53 }
 0x6e0   : > { %7812 = vmatmul.msk.bf16.gmra.mxu1 %vm661_vm1, %v8106_v16  ;;  %v4720_v56 = vmul.f32 %v8076_v0, %v4693_v8  ;;  %v11683_v16 = vld [vmem:[%s14074_s3 + $0x1] ss:$0 sm:$0xff] }
 0x6e2   : > { %v4732_v52 = vadd.f32 %v8077_v46, %v4720_v56 }
 0x6e4   : > { %v4740_v44 = vmax.f32 %v4732_v52, 0.0 }
 0x6e5   : > { %v4695_v51 = vpop.f32.mrf.mxu1 }
 0x6e6   : > { %v4696_v37 = vadd.f32 %v4695_v51, %v4654_v1 }
 0x6e8   : > { %v4721_v11 = vmul.f32 %v8076_v0, %v4696_v37 }
 0x6ea   : > { %v4733_v13 = vadd.f32 %v8077_v46, %v4721_v11 }
 0x6ec   : > { %v4741_v40 = vmax.f32 %v4733_v13, 0.0 }
 0x6ed   : > { %v4698_v26 = vpop.f32.mrf.mxu1 }
 0x6ee   : > { %v4748_v36 = vpack.c.bf16 %v4741_v40, %v4740_v44  ;;  %v4699_v10 = vadd.f32 %v4698_v26, %v4657_v6  ;;  %v15524_v44 = vld [vmem:[#allocation13_spill] sm:$0xff] }
 0x6f0   : > { %7803 = vmatmul.msk.bf16.vlgmr.msra.gmra.mxu0 %vm1607_vm5, %v4748_v36  ;;  %7813 = vmatmul.msk.bf16.gmra.mxu1 %vm661_vm1, %v8107_v38  ;;  %v4722_v41 = vmul.f32 %v8076_v0, %v4699_v10  ;;  %v15572_v36 = vld [vmem:[#allocation82_spill] sm:$0xff] }
 0x6f2   : > { %v4734_v35 = vadd.f32 %v8077_v46, %v4722_v41 }
 0x6f4   : > { %v4742_v19 = vmax.f32 %v4734_v35, 0.0  ;;  %v15528_v35 = vld [vmem:[#allocation283_spill] sm:$0xff] }
 0x6f5   : > { %v4701_v48 = vpop.f32.mrf.mxu1 }
 0x6f6   : > { %v4702_v21 = vadd.f32 %v4701_v48, %v4660_v57  ;;  %v15525_v57 = vld [vmem:[#allocation15_spill] sm:$0xff]  ;;  %v15526_v48 = vld [vmem:[#allocation273_spill] sm:$0xff] }
 0x6f8   : > { %v4723_v54 = vmul.f32 %v8076_v0, %v4702_v21 }
 0x6fa   : > { %v4735_v14 = vadd.f32 %v8077_v46, %v4723_v54 }
 0x6fc   : > { %v4743_v55 = vmax.f32 %v4735_v14, 0.0 }
 0x6fd   : > { %v4704_v45 = vpop.f32.mrf.mxu1 }
 0x6fe   : > { %v4749_v5 = vpack.c.bf16 %v4743_v55, %v4742_v19  ;;  %v4705_v28 = vadd.f32 %v4704_v45, %v4663_v18  ;;  %v15576_v55 = vld [vmem:[#allocation72_spill] sm:$0xff] }
 0x700   : > { %7804 = vmatmul.msk.bf16.gmra.mxu0 %vm1607_vm5, %v4749_v5  ;;  %7814 = vmatmul.msk.bf16.gmra.mxu1 %vm661_vm1, %v8108_v31  ;;  %v4724_v49 = vmul.f32 %v8076_v0, %v4705_v28  ;;  %v8111_v28 = vld [vmem:[%s8348_s24 + $0x48] sm:$0xff]  ;;  %v15562_v31 = vld [vmem:[#allocation205_spill] sm:$0xff] }
 0x702   : > { %v4736_v27 = vadd.f32 %v8077_v46, %v4724_v49 }
 0x704   : > { %v4744_v4 = vmax.f32 %v4736_v27, 0.0 }
 0x705   : > { %v4707_v34 = vpop.f32.mrf.mxu1 }
 0x706   : > { %v4708_v39 = vadd.f32 %v4707_v34, %v4666_v23 }
 0x708   : > { %v4725_v58 = vmul.f32 %v8076_v0, %v4708_v39 }
 0x70a   : > { %v4737_v63 = vadd.f32 %v8077_v46, %v4725_v58 }
 0x70c   : > { %v4745_v15 = vmax.f32 %v4737_v63, 0.0 }
 0x70d   : > { %v4710_v17 = vpop.f32.mrf.mxu1 }
 0x70e   : > { %v4750_v47 = vpack.c.bf16 %v4745_v15, %v4744_v4  ;;  %v4711_v33 = vadd.f32 %v4710_v17, %v4669_v3  ;;  %v15532_v4 = vld [vmem:[#allocation46_spill] sm:$0xff]  ;;  %v15533_v3 = vld [vmem:[#allocation59_spill] sm:$0xff] }
 0x710   : > { %7805 = vmatmul.msk.bf16.gmra.mxu0 %vm1607_vm5, %v4750_v47  ;;  %7815 = vmatmul.msk.bf16.gmra.mxu1 %vm661_vm1, %v8109_v9  ;;  %v4726_v60 = vmul.f32 %v8076_v0, %v4711_v33  ;;  %v15534_v47 = vld [vmem:[#allocation153_spill] sm:$0xff]  ;;  %v15536_v9 = vld [vmem:[#allocation151_spill] sm:$0xff] }
 0x712   : > { %v4738_v30 = vadd.f32 %v8077_v46, %v4726_v60 }
 0x714   : > { %v4746_v43 = vmax.f32 %v4738_v30, 0.0 }
 0x715   : > { %v4713_v12 = vpop.f32.mrf.mxu1 }
 0x716   : > { %v4714_v25 = vadd.f32 %v4713_v12, %v4672_v61 }
 0x718   : > { %v4727_v59 = vmul.f32 %v8076_v0, %v4714_v25  ;;  %v8110_v0 = vld [vmem:[%s8348_s24 + $0x40] sm:$0xff] }
 0x71a   : > { %v4739_v7 = vadd.f32 %v8077_v46, %v4727_v59  ;;  %v15571_v59 = vld [vmem:[#allocation57_spill] sm:$0xff] }
 0x71c   : > { %v4747_v53 = vmax.f32 %v4739_v7, 0.0 }
 0x71d   : > { %v4831_v1 = vpop.f32.mrf.mxu1 }
 0x71e   : > { %v4751_v29 = vpack.c.bf16 %v4747_v53, %v4746_v43  ;;  %v4916_v8 = vmul.f32 %v11677_v32, %v4831_v1  ;;  %v15541_v53 = vld [vmem:[#allocation9_spill] sm:$0xff] }
 0x720   : > { %7806 = vmatmul.msk.bf16.gmra.mxu0 %vm1607_vm5, %v4751_v29  ;;  %7816 = vmatmul.msk.bf16.gmra.mxu1 %vm661_vm1, %v8110_v0  ;;  %v4953_v56 = vadd.f32 %v11683_v16, %v4916_v8  ;;  %v15544_v8 = vld [vmem:[#allocation10_spill] sm:$0xff] }
 0x722   : > { %v11690_v6 = vmax.f32 %v4953_v56, 0.0 }
 0x724   : > { %v14503_v11 = vrot.slane %v11690_v6, 7  ;;  %v14502_v13 = vrot.slane %v11690_v6, 1  ;;  %v11699_v40 = vmul.f32 %v11690_v6, %v15524_v44  ;;  %v11711_v21 = vmul.f32 %v11690_v6, %v15526_v48  ;;  %v15547_v44 = vld [vmem:[#allocation56_spill] sm:$0xff] }
 0x725   : > { %v4833_v46 = vpop.f32.mrf.mxu1 }
 0x726   : > { %v4917_v51 = vmul.f32 %v11677_v32, %v4833_v46  ;;  %15527 = vst [vmem:[#allocation292_spill] sm:$0xff] %v11711_v21  ;;  %v15545_v46 = vld [vmem:[#allocation144_spill] sm:$0xff] }
 0x728   : > { %v4954_v37 = vadd.f32 %v11683_v16, %v4917_v51 }
 0x72a   : > { %v11693_v52 = vmax.f32 %v4954_v37, 0.0 }
 0x72c   : > { %15523 = vst [vmem:[#allocation285_spill] sm:$0xff] %v11693_v52  ;;  %v5018_v26 = vrot.slane %v11693_v52, 7  ;;  %v11706_v10 = vmul.f32 %v11693_v52, %v15525_v57  ;;  %v5462_v38 = vrot.slane %v11693_v52, 1  ;;  %v11715_v54 = vmul.f32 %v11693_v52, %v15528_v35  ;;  %v15548_v57 = vld [vmem:[#allocation158_spill] sm:$0xff] }
 0x72d   : > { %v4836_v41 = vpop.f32.mrf.mxu1 }
 0x72e   : > { %15529 = vst [vmem:[#allocation297_spill] sm:$0xff] %v11715_v54  ;;  %v11721_v14 = vsel %vm1090_vm3, %v14503_v11, %v5018_v26  ;;  %v4918_v19 = vmul.f32 %v11677_v32, %v4836_v41  ;;  %v5523_v45 = vsel %vm1921_vm2, %v14502_v13, %v5462_v38  ;;  %v15577_v13 = vld [vmem:[#allocation208_spill] sm:$0xff] }
 0x72f   : > { %v11745_v15 = vmul.f32 %v5523_v45, %v15532_v4  ;;  %v11751_v33 = vmul.f32 %v5523_v45, %v15534_v47  ;;  %v11758_v12 = vmul.f32 %v5523_v45, %v11218_v20  ;;  %v15542_v20 = vld [vmem:[#allocation154_spill] sm:$0xff]  ;;  %v15588_v54 = vld [vmem:[#allocation204_spill] sm:$0xff] }
 0x730   : > { %v4955_v5 = vadd.f32 %v11683_v16, %v4918_v19  ;;  %7817 = vmatmul.msk.bf16.gmra.mxu1 %vm661_vm1, %v8111_v28 }
 0x731   : > { %15535 = vst [vmem:[#allocation305_spill] sm:$0xff] %v11751_v33  ;;  %v15627_v33 = vld [vmem:[#allocation71_spill] sm:$0xff] }
 0x732   : > { %v11735_v23 = vmax.f32 %v4955_v5, 0.0  ;;  %15538 = vst [vmem:[#allocation313_spill] sm:$0xff] %v11758_v12  ;;  %v15550_v5 = vld [vmem:[#allocation54_spill] sm:$0xff]  ;;  %v8113_v12 = vld [vmem:[%s8348_s24 + $0x58] sm:$0xff] }
 0x734   : > { %15531 = vst [vmem:[#allocation302_spill] sm:$0xff] %v11735_v23  ;;  %v5019_v49 = vrot.slane %v11735_v23, 7  ;;  %v5463_v34 = vrot.slane %v11735_v23, 1  ;;  %v11773_v1 = vmul.f32 %v11735_v23, %v15541_v53  ;;  %v11787_v51 = vmul.f32 %v11735_v23, %v15545_v46  ;;  %v15569_v53 = vld [vmem:[#allocation161_spill] sm:$0xff]  ;;  %v15615_v23 = vld [vmem:[#allocation222_spill] sm:$0xff] }
 0x735   : > { %v4838_v39 = vpop.f32.mrf.mxu1 }
 0x736   : > { %v4919_v27 = vmul.f32 %v11677_v32, %v4838_v39  ;;  %v5522_v58 = vsel %vm1921_vm2, %v5462_v38, %v5463_v34  ;;  %v5078_v63 = vsel %vm1090_vm3, %v5018_v26, %v5019_v49  ;;  %15546 = vst [vmem:[#allocation318_spill] sm:$0xff] %v11787_v51  ;;  %v15551_v39 = vld [vmem:[#allocation199_spill] sm:$0xff] }
 0x737   : > { %v11748_v17 = vmul.f32 %v5522_v58, %v15533_v3  ;;  %v11754_v61 = vmul.f32 %v5522_v58, %v15536_v9  ;;  %v11761_v25 = vmul.f32 %v5522_v58, %v11490_v24  ;;  %v11790_v26 = vmul.f32 %v5078_v63, %v15547_v44  ;;  %v15553_v58 = vld [vmem:[#allocation76_spill] sm:$0xff]  ;;  %v15554_v3 = vld [vmem:[#allocation66_spill] sm:$0xff]  ;;  %v8112_v9 = vld [vmem:[%s8348_s24 + $0x50] sm:$0xff] }
 0x738   : > { %v4956_v60 = vadd.f32 %v11683_v16, %v4919_v27  ;;  %v11793_v38 = vmul.f32 %v5078_v63, %v15548_v57  ;;  %v11811_v4 = vmul.f32 %v5078_v63, %v15553_v58 }
 0x739   : > { %15537 = vst [vmem:[#allocation309_spill] sm:$0xff] %v11754_v61  ;;  %v15628_v61 = vld [vmem:[#allocation84_spill] sm:$0xff] }
 0x73a   : > { %15539 = vst [vmem:[#allocation127_spill] sm:$0xff] %v11761_v25  ;;  %v11767_v7 = vmax.f32 %v4956_v60, 0.0  ;;  %v15583_v25 = vld [vmem:[#allocation67_spill] sm:$0xff] }
 0x73b   : > { %15549 = vst [vmem:[#allocation194_spill] sm:$0xff] %v11793_v38 }
 0x73c   : > { %15540 = vst [vmem:[#allocation132_spill] sm:$0xff] %v11767_v7  ;;  %v11777_v29 = vmul.f32 %v11767_v7, %v15542_v20  ;;  %v5020_v24 = vrot.slane %v11767_v7, 7  ;;  %v11782_v0 = vmul.f32 %v11767_v7, %v15544_v8  ;;  %v5464_v56 = vrot.slane %v11767_v7, 1 }
 0x73d   : > { %v4841_v37 = vpop.f32.mrf.mxu1 }
 0x73e   : > { %15543 = vst [vmem:[#allocation317_spill] sm:$0xff] %v11777_v29  ;;  %v4920_v48 = vmul.f32 %v11677_v32, %v4841_v37  ;;  %v5077_v35 = vsel %vm1090_vm3, %v5019_v49, %v5020_v24  ;;  %v5521_v45 = vsel %vm1921_vm2, %v5463_v34, %v5464_v56  ;;  %v15623_v29 = vld [vmem:[#allocation230_spill] sm:$0xff] }
 0x73f   : > { %v11805_v28 = vmul.f32 %v5077_v35, %v15550_v5  ;;  %v11808_v27 = vmul.f32 %v5077_v35, %v15551_v39  ;;  %v11814_v47 = vmul.f32 %v5077_v35, %v15554_v3  ;;  %v15556_v35 = vld [vmem:[#allocation62_spill] sm:$0xff]  ;;  %v15557_v39 = vld [vmem:[#allocation60_spill] sm:$0xff]  ;;  %v11850_v41 = vmul.f32 %v5521_v45, %v15562_v31 }
 0x740   : > { %v4957_v49 = vadd.f32 %v11683_v16, %v4920_v48  ;;  %7818 = vmatmul.msk.bf16.gmra.mxu1 %vm661_vm1, %v8112_v9  ;;  %v11837_v5 = vmul.f32 %v5521_v45, %v15556_v35  ;;  %v15558_v3 = vld [vmem:[#allocation198_spill] sm:$0xff]  ;;  %v15560_v9 = vld [vmem:[#allocation159_spill] sm:$0xff] }
 0x741   : > { %15552 = vst [vmem:[#allocation136_spill] sm:$0xff] %v11808_v27 }
 0x742   : > { %v11827_v20 = vmax.f32 %v4957_v49, 0.0  ;;  %v11843_v49 = vmul.f32 %v5521_v45, %v15558_v3  ;;  %15563 = vst [vmem:[#allocation147_spill] sm:$0xff] %v11850_v41  ;;  %v15568_v45 = vld [vmem:[#allocation18_spill] sm:$0xff]  ;;  %v15603_v41 = vld [vmem:[#allocation233_spill] sm:$0xff] }
 0x744   : > { %15555 = vst [vmem:[#allocation321_spill] sm:$0xff] %v11827_v20  ;;  %v5021_v8 = vrot.slane %v11827_v20, 7  ;;  %v5465_v46 = vrot.slane %v11827_v20, 1 }
 0x745   : > { %v4843_v37 = vpop.f32.mrf.mxu1  ;;  %15559 = vst [vmem:[#allocation163_spill] sm:$0xff] %v11843_v49 }
 0x746   : > { %v4921_v44 = vmul.f32 %v11677_v32, %v4843_v37  ;;  %v5520_v57 = vsel %vm1921_vm2, %v5464_v56, %v5465_v46  ;;  %v5076_v48 = vsel %vm1090_vm3, %v5020_v24, %v5021_v8  ;;  %v15564_v56 = vld [vmem:[#allocation202_spill] sm:$0xff] }
 0x747   : > { %v11840_v58 = vmul.f32 %v5520_v57, %v15557_v39  ;;  %v11846_v43 = vmul.f32 %v5520_v57, %v15560_v9  ;;  %v11853_v34 = vmul.f32 %v5520_v57, %v15564_v56  ;;  %v15567_v9 = vld [vmem:[#allocation20_spill] sm:$0xff]  ;;  %v11878_v3 = vmul.f32 %v5076_v48, %v15571_v59  ;;  %v15573_v24 = vld [vmem:[#allocation162_spill] sm:$0xff] }
 0x748   : > { %v4958_v37 = vadd.f32 %v11683_v16, %v4921_v44  ;;  %v11865_v44 = vmul.f32 %v11827_v20, %v15567_v9  ;;  %v11881_v9 = vmul.f32 %v5076_v48, %v15572_v36  ;;  %v11885_v63 = vmul.f32 %v11827_v20, %v15573_v24  ;;  %v15575_v36 = vld [vmem:[#allocation49_spill] sm:$0xff] }
 0x749   : > { %15561 = vst [vmem:[#allocation157_spill] sm:$0xff] %v11846_v43  ;;  %v11903_v11 = vmul.f32 %v5076_v48, %v15577_v13  ;;  %v15586_v43 = vld [vmem:[#allocation225_spill] sm:$0xff] }
 0x74a   : > { %15565 = vst [vmem:[#allocation195_spill] sm:$0xff] %v11853_v34  ;;  %v11859_v39 = vmax.f32 %v4958_v37, 0.0 }
 0x74b   : > { %15574 = vst [vmem:[#allocation165_spill] sm:$0xff] %v11885_v63 }
 0x74c   : > { %15566 = vst [vmem:[#allocation328_spill] sm:$0xff] %v11859_v39  ;;  %v5022_v31 = vrot.slane %v11859_v39, 7  ;;  %v11870_v57 = vmul.f32 %v11859_v39, %v15568_v45  ;;  %v5466_v56 = vrot.slane %v11859_v39, 1  ;;  %v11875_v37 = vmul.f32 %v11859_v39, %v15569_v53  ;;  %v15579_v45 = vld [vmem:[#allocation212_spill] sm:$0xff] }
 0x74d   : > { %v4846_v35 = vpop.f32.mrf.mxu1  ;;  %15578 = vst [vmem:[#allocation143_spill] sm:$0xff] %v11903_v11 }
 0x74e   : > { %15570 = vst [vmem:[#allocation206_spill] sm:$0xff] %v11875_v37  ;;  %v4922_v19 = vmul.f32 %v11677_v32, %v4846_v35  ;;  %v5075_v53 = vsel %vm1090_vm3, %v5021_v8, %v5022_v31  ;;  %v5519_v59 = vsel %vm1921_vm2, %v5465_v46, %v5466_v56 }
 0x74f   : > { %v11897_v30 = vmul.f32 %v5075_v53, %v15575_v36  ;;  %v11900_v24 = vmul.f32 %v5075_v53, %v15576_v55  ;;  %v11906_v35 = vmul.f32 %v5075_v53, %v15579_v45  ;;  %v15582_v36 = vld [vmem:[#allocation68_spill] sm:$0xff]  ;;  %v11942_v20 = vmul.f32 %v5519_v59, %v15588_v54 }
 0x750   : > { %v4959_v8 = vadd.f32 %v11683_v16, %v4922_v19  ;;  %7819 = vmatmul.msk.bf16.gmra.mxu1 %vm661_vm1, %v8113_v12  ;;  %v11929_v55 = vmul.f32 %v5519_v59, %v15582_v36 }
 0x751   : > { %15580 = vst [vmem:[#allocation330_spill] sm:$0xff] %v11906_v35  ;;  %v15602_v35 = vld [vmem:[#allocation78_spill] sm:$0xff] }
 0x752   : > { %v11919_v48 = vmax.f32 %v4959_v8, 0.0  ;;  %v15584_v8 = vld [vmem:[#allocation218_spill] sm:$0xff]  ;;  %15589 = vst [vmem:[#allocation123_spill] sm:$0xff] %v11942_v20  ;;  %v15598_v20 = vld [vmem:[#allocation88_spill] sm:$0xff] }
 0x753   : > { %v11935_v49 = vmul.f32 %v5519_v59, %v15584_v8  ;;  %v15593_v8 = vld [vmem:[#allocation11_spill] sm:$0xff] }
 0x754   : > { %15581 = vst [vmem:[#allocation166_spill] sm:$0xff] %v11919_v48  ;;  %v5023_v45 = vrot.slane %v11919_v48, 7  ;;  %v5467_v19 = vrot.slane %v11919_v48, 1  ;;  %v15594_v59 = vld [vmem:[#allocation23_spill] sm:$0xff] }
 0x755   : > { %v4848_v53 = vpop.f32.mrf.mxu1  ;;  %15585 = vst [vmem:[#allocation216_spill] sm:$0xff] %v11935_v49  ;;  %v15597_v49 = vld [vmem:[#allocation52_spill] sm:$0xff] }
 0x756   : > { %v4923_v12 = vmul.f32 %v11677_v32, %v4848_v53  ;;  %v5518_v46 = vsel %vm1921_vm2, %v5466_v56, %v5467_v19  ;;  %v5074_v60 = vsel %vm1090_vm3, %v5022_v31, %v5023_v45  ;;  %v15590_v56 = vld [vmem:[#allocation213_spill] sm:$0xff]  ;;  %v15595_v31 = vld [vmem:[#allocation214_spill] sm:$0xff] }
 0x757   : > { %v11932_v13 = vmul.f32 %v5518_v46, %v15583_v25  ;;  %v11938_v21 = vmul.f32 %v5518_v46, %v15586_v43  ;;  %v11945_v39 = vmul.f32 %v5518_v46, %v15590_v56  ;;  %v11970_v43 = vmul.f32 %v5074_v60, %v15597_v49 }
 0x758   : > { %v4960_v53 = vadd.f32 %v11683_v16, %v4923_v12  ;;  %v11957_v12 = vmul.f32 %v11919_v48, %v15593_v8  ;;  %v11973_v8 = vmul.f32 %v5074_v60, %v15598_v20  ;;  %v15601_v20 = vld [vmem:[#allocation65_spill] sm:$0xff]  ;;  %v11995_v34 = vmul.f32 %v5074_v60, %v15603_v41 }
 0x759   : > { %15587 = vst [vmem:[#allocation200_spill] sm:$0xff] %v11938_v21 }
 0x75a   : > { %15591 = vst [vmem:[#allocation227_spill] sm:$0xff] %v11945_v39  ;;  %v11951_v36 = vmax.f32 %v4960_v53, 0.0  ;;  %v15599_v39 = vld [vmem:[#allocation219_spill] sm:$0xff] }
 0x75b   : > { %v11977_v21 = vmul.f32 %v11919_v48, %v15599_v39  ;;  %15604 = vst [vmem:[#allocation237_spill] sm:$0xff] %v11995_v34  ;;  %v8114_v48 = vld [vmem:[%s8348_s24 + $0x60] sm:$0xff]  ;;  %v15613_v34 = vld [vmem:[#allocation236_spill] sm:$0xff] }
 0x75c   : > { %15592 = vst [vmem:[#allocation275_spill] sm:$0xff] %v11951_v36  ;;  %v5024_v54 = vrot.slane %v11951_v36, 7  ;;  %v11962_v46 = vmul.f32 %v11951_v36, %v15594_v59  ;;  %v5468_v56 = vrot.slane %v11951_v36, 1  ;;  %v11967_v53 = vmul.f32 %v11951_v36, %v15595_v31  ;;  %v15605_v59 = vld [vmem:[#allocation228_spill] sm:$0xff] }
 0x75d   : > { %v4851_v25 = vpop.f32.mrf.mxu1  ;;  %15600 = vst [vmem:[#allocation217_spill] sm:$0xff] %v11977_v21  ;;  %v15611_v21 = vld [vmem:[#allocation234_spill] sm:$0xff] }
 0x75e   : > { %15596 = vst [vmem:[#allocation168_spill] sm:$0xff] %v11967_v53  ;;  %v4924_v63 = vmul.f32 %v11677_v32, %v4851_v25  ;;  %v5073_v31 = vsel %vm1090_vm3, %v5023_v45, %v5024_v54  ;;  %v5517_v49 = vsel %vm1921_vm2, %v5467_v19, %v5468_v56 }
 0x75f   : > { %v11989_v11 = vmul.f32 %v5073_v31, %v15601_v20  ;;  %v11992_v39 = vmul.f32 %v5073_v31, %v15602_v35  ;;  %v11998_v25 = vmul.f32 %v5073_v31, %v15605_v59  ;;  %v15610_v20 = vld [vmem:[#allocation73_spill] sm:$0xff]  ;;  %v12032_v53 = vmul.f32 %v5517_v49, %v15611_v21 }
 0x760   : > { %v4961_v45 = vadd.f32 %v11683_v16, %v4924_v63  ;;  %7820 = vmatmul.msk.bf16.gmra.mxu1 %vm661_vm1, %v8114_v48  ;;  %v12018_v48 = vld [vmem:[%s14082_s11] ss:$0 sm:$0xff]  ;;  %v12039_v7 = vmul.f32 %v5517_v49, %v15615_v23 }
 0x761   : > { %15606 = vst [vmem:[#allocation171_spill] sm:$0xff] %v11998_v25  ;;  %v12060_v23 = vld [vmem:[%s14079_s8] ss:$0 sm:$0xff] }
 0x762   : > { %v12011_v60 = vmax.f32 %v4961_v45, 0.0  ;;  %v15608_v45 = vld [vmem:[#allocation74_spill] sm:$0xff]  ;;  %15612 = vst [vmem:[#allocation259_spill] sm:$0xff] %v12032_v53 }
 0x763   : > { %v12026_v37 = vmul.f32 %v5517_v49, %v15608_v45  ;;  %15616 = vst [vmem:[#allocation155_spill] sm:$0xff] %v12039_v7  ;;  %v15622_v53 = vld [vmem:[#allocation58_spill] sm:$0xff]  ;;  %v15632_v49 = vld [vmem:[#allocation251_spill] sm:$0xff] }
 0x764   : > { %15607 = vst [vmem:[#allocation172_spill] sm:$0xff] %v12011_v60  ;;  %v5025_v59 = vrot.slane %v12011_v60, 7  ;;  %v5469_v63 = vrot.slane %v12011_v60, 1  ;;  %v12075_v38 = vmul.f32 %v12011_v60, %v15623_v29  ;;  %v15630_v29 = vld [vmem:[#allocation243_spill] sm:$0xff] }
 0x765   : > { %v4853_v31 = vpop.f32.mrf.mxu1  ;;  %15609 = vst [vmem:[#allocation246_spill] sm:$0xff] %v12026_v37 }
 0x766   : > { %v4925_v19 = vmul.f32 %v11677_v32, %v4853_v31  ;;  %v5516_v35 = vsel %vm1921_vm2, %v5468_v56, %v5469_v63  ;;  %v5072_v41 = vsel %vm1090_vm3, %v5024_v54, %v5025_v59  ;;  %v15617_v56 = vld [vmem:[#allocation224_spill] sm:$0xff]  ;;  %v15619_v54 = vld [vmem:[#allocation203_spill] sm:$0xff]  ;;  %15624 = vst [vmem:[#allocation177_spill] sm:$0xff] %v12075_v38 }
 0x767   : > { %v12029_v36 = vmul.f32 %v5516_v35, %v15610_v20  ;;  %v12035_v25 = vmul.f32 %v5516_v35, %v15613_v34  ;;  %v12042_v51 = vmul.f32 %v5516_v35, %v15617_v56  ;;  %v711_v45 = vmul.f32 %v12018_v48, %v15619_v54  ;;  %v12049_v20 = vld [vmem:[%s14083_s12] ss:$0 sm:$0xff]  ;;  %v15620_v56 = vld [vmem:[#allocation239_spill] sm:$0xff] }
 0x768   : > { %v4962_v31 = vadd.f32 %v11683_v16, %v4925_v19  ;;  %v12093_v37 = vmul.f32 %v5072_v41, %v15630_v29 }
 0x769   : > { %15614 = vst [vmem:[#allocation174_spill] sm:$0xff] %v12035_v25  ;;  %v723_v21 = vadd.f32 %v12049_v20, %v711_v45  ;;  %v12071_v25 = vmul.f32 %v5072_v41, %v15622_v53 }
 0x76a   : > { %15618 = vst [vmem:[#allocation268_spill] sm:$0xff] %v12042_v51  ;;  %v12055_v19 = vmax.f32 %v4962_v31, 0.0  ;;  %v15625_v51 = vld [vmem:[#allocation94_spill] sm:$0xff] }
 0x76b   : > { %v12084_v27 = vmul.f32 %v5072_v41, %v15625_v51  ;;  %15631 = vst [vmem:[#allocation290_spill] sm:$0xff] %v12093_v37 }
 0x76c   : > { %v5026_v35 = vrot.slane %v12055_v19, 7  ;;  %v12067_v54 = vmul.f32 %v12055_v19, %v15620_v56  ;;  %v5470_v51 = vrot.slane %v12055_v19, 1 }
 0x76d   : > { %v4777_v34 = vpop.f32.mrf.mxu0  ;;  %v4856_v31 = vpop.f32.mrf.mxu1  ;;  %15626 = vst [vmem:[#allocation178_spill] sm:$0xff] %v12084_v27 }
 0x76e   : > { %15621 = vst [vmem:[#allocation327_spill] sm:$0xff] %v12067_v54  ;;  %v4801_v7 = vmul.f32 %v12060_v23, %v4777_v34  ;;  %v4926_v56 = vmul.f32 %v11677_v32, %v4856_v31  ;;  %v5071_v45 = vsel %vm1090_vm3, %v5025_v59, %v5026_v35  ;;  %v8115_v59 = vld [vmem:[%s8348_s24 + $0x68] sm:$0xff] }
 0x76f   : > { %v12087_v53 = vmul.f32 %v5071_v45, %v15627_v33  ;;  %v12090_v52 = vmul.f32 %v5071_v45, %v15628_v61  ;;  %v12096_v60 = vmul.f32 %v5071_v45, %v15632_v49  ;;  %v15637_v61 = vld [vmem:[#allocation80_spill] sm:$0xff]  ;;  %v15643_v54 = vld [vmem:[#allocation254_spill] sm:$0xff] }
 0x770   : > { %v12098_v34 = vadd.f32 %v4801_v7, %v723_v21  ;;  %v4963_v31 = vadd.f32 %v11683_v16, %v4926_v56  ;;  %7821 = vmatmul.msk.bf16.gmra.mxu1 %vm661_vm1, %v8115_v59  ;;  %v5515_v56 = vsel %vm1921_vm2, %v5469_v63, %v5470_v51 }
 0x771   : > { %15629 = vst [vmem:[#allocation331_spill] sm:$0xff] %v12090_v52  ;;  %v12123_v41 = vmul.f32 %v5515_v56, %v15637_v61  ;;  %v15649_v61 = vld [vmem:[#allocation215_spill] sm:$0xff] }
 0x772   : > { %15633 = vst [vmem:[#allocation167_spill] sm:$0xff] %v12096_v60  ;;  %v12112_v21 = vmax.f32 %v4963_v31, 0.0  ;;  %v15641_v31 = vld [vmem:[#allocation257_spill] sm:$0xff] }
 0x773   : > { %15634 = vst [vmem:[#allocation308_spill] sm:$0xff] %v12098_v34  ;;  %v15639_v34 = vld [vmem:[#allocation79_spill] sm:$0xff]  ;;  %v12129_v38 = vmul.f32 %v5515_v56, %v15641_v31 }
 0x774   : > { %15635 = vst [vmem:[#allocation190_spill] sm:$0xff] %v12112_v21  ;;  %v5471_v49 = vrot.slane %v12112_v21, 1  ;;  %v5027_v63 = vrot.slane %v12112_v21, 7 }
 0x775   : > { %v12117_v45 = vpop.f32.mrf.mxu0  ;;  %v4858_v29 = vpop.f32.mrf.mxu1  ;;  %15638 = vst [vmem:[#allocation192_spill] sm:$0xff] %v12123_v41 }
 0x776   : > { %15636 = vst [vmem:[#allocation193_spill] sm:$0xff] %v12117_v45  ;;  %v4927_v59 = vmul.f32 %v11677_v32, %v4858_v29  ;;  %v5514_v33 = vsel %vm1921_vm2, %v5470_v51, %v5471_v49  ;;  %v15645_v29 = vld [vmem:[#allocation244_spill] sm:$0xff]  ;;  %v15647_v51 = vld [vmem:[#allocation242_spill] sm:$0xff] }
 0x777   : > { %v12126_v7 = vmul.f32 %v5514_v33, %v15639_v34  ;;  %15642 = vst [vmem:[#allocation266_spill] sm:$0xff] %v12129_v38  ;;  %v12132_v37 = vmul.f32 %v5514_v33, %v15643_v54  ;;  %v12137_v60 = vmul.f32 %v5515_v56, %v15645_v29  ;;  %v12140_v27 = vmul.f32 %v5514_v33, %v15647_v51  ;;  %v15652_v29 = vld [vmem:[#allocation249_spill] sm:$0xff] }
 0x778   : > { %v4964_v45 = vadd.f32 %v11683_v16, %v4927_v59  ;;  %v713_v34 = vmul.f32 %v12018_v48, %v15649_v61  ;;  %v12155_v33 = vsel %vm1090_vm3, %v5026_v35, %v5027_v63  ;;  %v15655_v35 = vld [vmem:[#allocation248_spill] sm:$0xff] }
 0x779   : > { %15640 = vst [vmem:[#allocation282_spill] sm:$0xff] %v12126_v7  ;;  %v12172_v38 = vmul.f32 %v12112_v21, %v15655_v35 }
 0x77a   : > { %15644 = vst [vmem:[#allocation181_spill] sm:$0xff] %v12132_v37  ;;  %v12148_v52 = vmax.f32 %v4964_v45, 0.0  ;;  %v725_v61 = vadd.f32 %v12049_v20, %v713_v34  ;;  %v15659_v37 = vld [vmem:[#allocation264_spill] sm:$0xff] }
 0x77b   : > { %15646 = vst [vmem:[#allocation298_spill] sm:$0xff] %v12137_v60 }
 0x77c   : > { %15648 = vst [vmem:[#allocation287_spill] sm:$0xff] %v12140_v27  ;;  %v5028_v56 = vrot.slane %v12148_v52, 7  ;;  %v12159_v51 = vmul.f32 %v12148_v52, %v15652_v29  ;;  %v15657_v29 = vld [vmem:[#allocation261_spill] sm:$0xff] }
 0x77d   : > { %15650 = vst [vmem:[#allocation299_spill] sm:$0xff] %v12148_v52  ;;  %v4782_v31 = vpop.f32.mrf.mxu0  ;;  %v4861_v54 = vpop.f32.mrf.mxu1  ;;  %v12176_v34 = vmul.f32 %v12155_v33, %v15657_v29 }
 0x77e   : > { %15651 = vst [vmem:[#allocation185_spill] sm:$0xff] %v12155_v33  ;;  %v4803_v59 = vmul.f32 %v12060_v23, %v4782_v31  ;;  %v4928_v60 = vmul.f32 %v11677_v32, %v4861_v54  ;;  %v12168_v27 = vsel %vm1090_vm3, %v5027_v63, %v5028_v56  ;;  %v8116_v54 = vld [vmem:[%s8348_s24 + $0x70] sm:$0xff]  ;;  %v5472_v63 = vrot.slane %v12148_v52, 1  ;;  %v15664_v52 = vld [vmem:[#allocation86_spill] sm:$0xff] }
 0x77f   : > { %15653 = vst [vmem:[#allocation255_spill] sm:$0xff] %v12159_v51  ;;  %v12180_v41 = vmul.f32 %v12168_v27, %v15659_v37 }
 0x780   : > { %15654 = vst [vmem:[#allocation272_spill] sm:$0xff] %v12168_v27  ;;  %v12182_v45 = vadd.f32 %v4803_v59, %v725_v61  ;;  %v4965_v31 = vadd.f32 %v11683_v16, %v4928_v60  ;;  %7822 = vmatmul.msk.bf16.gmra.mxu1 %vm661_vm1, %v8116_v54  ;;  %v5513_v59 = vsel %vm1921_vm2, %v5471_v49, %v5472_v63 }
 0x781   : > { %15656 = vst [vmem:[#allocation241_spill] sm:$0xff] %v12172_v38  ;;  %v12203_v35 = vmul.f32 %v5513_v59, %v15664_v52  ;;  %v15666_v38 = vld [vmem:[#allocation85_spill] sm:$0xff] }
 0x782   : > { %15658 = vst [vmem:[#allocation183_spill] sm:$0xff] %v12176_v34  ;;  %v12192_v21 = vmax.f32 %v4965_v31, 0.0  ;;  %v15668_v31 = vld [vmem:[#allocation270_spill] sm:$0xff]  ;;  %v15676_v52 = vld [vmem:[#allocation229_spill] sm:$0xff] }
 0x783   : > { %15660 = vst [vmem:[#allocation188_spill] sm:$0xff] %v12180_v41  ;;  %v12209_v51 = vmul.f32 %v5513_v59, %v15668_v31  ;;  %v15670_v34 = vld [vmem:[#allocation278_spill] sm:$0xff] }
 0x784   : > { %15661 = vst [vmem:[#allocation186_spill] sm:$0xff] %v12182_v45  ;;  %v5473_v37 = vrot.slane %v12192_v21, 1  ;;  %v5029_v49 = vrot.slane %v12192_v21, 7 }
 0x785   : > { %15662 = vst [vmem:[#allocation293_spill] sm:$0xff] %v12192_v21  ;;  %v12197_v61 = vpop.f32.mrf.mxu0  ;;  %v4863_v60 = vpop.f32.mrf.mxu1 }
 0x786   : > { %15663 = vst [vmem:[#allocation191_spill] sm:$0xff] %v12197_v61  ;;  %v4929_v54 = vmul.f32 %v11677_v32, %v4863_v60  ;;  %v5512_v45 = vsel %vm1921_vm2, %v5472_v63, %v5473_v37  ;;  %v15672_v60 = vld [vmem:[#allocation256_spill] sm:$0xff]  ;;  %v15674_v63 = vld [vmem:[#allocation265_spill] sm:$0xff] }
 0x787   : > { %15665 = vst [vmem:[#allocation277_spill] sm:$0xff] %v12203_v35  ;;  %v12206_v29 = vmul.f32 %v5512_v45, %v15666_v38  ;;  %v12212_v41 = vmul.f32 %v5512_v45, %v15670_v34  ;;  %v12217_v7 = vmul.f32 %v5513_v59, %v15672_v60  ;;  %v12220_v33 = vmul.f32 %v5512_v45, %v15674_v63  ;;  %v15679_v60 = vld [vmem:[#allocation267_spill] sm:$0xff] }
 0x788   : > { %15669 = vst [vmem:[#allocation184_spill] sm:$0xff] %v12209_v51  ;;  %v4966_v61 = vadd.f32 %v11683_v16, %v4929_v54  ;;  %v715_v38 = vmul.f32 %v12018_v48, %v15676_v52  ;;  %v12235_v45 = vsel %vm1090_vm3, %v5028_v56, %v5029_v49  ;;  %v15681_v56 = vld [vmem:[#allocation271_spill] sm:$0xff] }
 0x789   : > { %15667 = vst [vmem:[#allocation189_spill] sm:$0xff] %v12206_v29  ;;  %v12252_v51 = vmul.f32 %v12192_v21, %v15681_v56 }
 0x78a   : > { %15671 = vst [vmem:[#allocation187_spill] sm:$0xff] %v12212_v41  ;;  %v12228_v27 = vmax.f32 %v4966_v61, 0.0  ;;  %v727_v52 = vadd.f32 %v12049_v20, %v715_v38  ;;  %v15685_v41 = vld [vmem:[#allocation279_spill] sm:$0xff] }
 0x78b   : > { %15673 = vst [vmem:[#allocation182_spill] sm:$0xff] %v12217_v7 }
 0x78c   : > { %15675 = vst [vmem:[#allocation280_spill] sm:$0xff] %v12220_v33  ;;  %v5030_v59 = vrot.slane %v12228_v27, 7  ;;  %v12239_v63 = vmul.f32 %v12228_v27, %v15679_v60  ;;  %v15683_v60 = vld [vmem:[#allocation284_spill] sm:$0xff] }
 0x78d   : > { %15677 = vst [vmem:[#allocation13_spill] sm:$0xff] %v12228_v27  ;;  %v4787_v31 = vpop.f32.mrf.mxu0  ;;  %v4866_v34 = vpop.f32.mrf.mxu1  ;;  %v12256_v38 = vmul.f32 %v12235_v45, %v15683_v60 }
 0x78e   : > { %15678 = vst [vmem:[#allocation15_spill] sm:$0xff] %v12235_v45  ;;  %v4805_v54 = vmul.f32 %v12060_v23, %v4787_v31  ;;  %v4930_v7 = vmul.f32 %v11677_v32, %v4866_v34  ;;  %v12248_v33 = vsel %vm1090_vm3, %v5029_v49, %v5030_v59  ;;  %v8117_v34 = vld [vmem:[%s8348_s24 + $0x78] sm:$0xff]  ;;  %v5474_v49 = vrot.slane %v12228_v27, 1  ;;  %s7273_s24 = sshll.u32 %s7270_s20, 4  ;;  %s7274_s24 = int_to_ptr.hbm [resolvable:$true] %s7273_s24 }
 0x78f   : > { %15680 = vst [vmem:[#allocation273_spill] sm:$0xff] %v12239_v63  ;;  %v12260_v35 = vmul.f32 %v12248_v33, %v15685_v41  ;;  %v15690_v27 = vld [vmem:[#allocation92_spill] sm:$0xff]  ;;  %s8153_s25 = sshra.s32 %s7274_s24, 4  ;;  %s8154_s25 = int_to_ptr.hbm [resolvable:$true] %s8153_s25 }
 0x790   : > { %15682 = vst [vmem:[#allocation283_spill] sm:$0xff] %v12252_v51  ;;  %v12262_v61 = vadd.f32 %v4805_v54, %v727_v52  ;;  %v4967_v31 = vadd.f32 %v11683_v16, %v4930_v7  ;;  %7823 = vmatmul.msk.bf16.gmra.mxu1 %vm661_vm1, %v8117_v34  ;;  %v5511_v54 = vsel %vm1921_vm2, %v5473_v37, %v5474_v49  ;;  %v15692_v51 = vld [vmem:[#allocation91_spill] sm:$0xff]  ;;  %s8155_s26 = scalar_lea.hbm %s8154_s25, 64  ;;  %p8160_p0 = scmp.lt.s32.totalorder %s8154_s25, %s14086_s15 }
 0x791   : > { %15684 = vst [vmem:[#allocation122_spill] sm:$0xff] %v12256_v38  ;;  %v12283_v56 = vmul.f32 %v5511_v54, %v15690_v27  ;;  %v15696_v38 = vld [vmem:[#allocation288_spill] sm:$0xff]  ;;  %v15701_v27 = vld [vmem:[#allocation105_spill] sm:$0xff]  ;;  %p8156_p11 = scmp.ne.s32.totalorder %s8154_s25, %s8155_s26  ;;  %p8161_p1 = scmp.lt.s32.totalorder %s8159_s17, %s8155_s26 }
 0x792   : > { %15686 = vst [vmem:[#allocation46_spill] sm:$0xff] %v12260_v35  ;;  %v12272_v21 = vmax.f32 %v4967_v31, 0.0  ;;  %v15694_v31 = vld [vmem:[#allocation286_spill] sm:$0xff] }
 0x793   : > { %15687 = vst [vmem:[#allocation59_spill] sm:$0xff] %v12262_v61  ;;  %v12289_v63 = vmul.f32 %v5511_v54, %v15694_v31  ;;  %p8157_p12 = pnand %p8156_p11, %p8324_p5  ;;  %p8162_p2 = por %p8161_p1, %p8160_p0 }
 0x794   : > { %15688 = vst [vmem:[#allocation153_spill] sm:$0xff] %v12272_v21  ;;  %v5475_v41 = vrot.slane %v12272_v21, 1  ;;  %v5031_v37 = vrot.slane %v12272_v21, 7 }
 0x795   : > { %v12277_v52 = vpop.f32.mrf.mxu0  ;;  %v4868_v7 = vpop.f32.mrf.mxu1  ;;  %15691 = vst [vmem:[#allocation9_spill] sm:$0xff] %v12283_v56  ;;  %p8158_p13 = pneg %p8157_p12 }
 0x796   : > { %15689 = vst [vmem:[#allocation151_spill] sm:$0xff] %v12277_v52  ;;  %v4931_v34 = vmul.f32 %v11677_v32, %v4868_v7  ;;  %v5510_v61 = vsel %vm1921_vm2, %v5474_v49, %v5475_v41  ;;  %v12297_v7 = vmul.f32 %v5511_v54, %v15466_v50  ;;  %v15699_v49 = vld [vmem:[#allocation276_spill] sm:$0xff]  ;;  %v15704_v54 = vld [vmem:[#allocation291_spill] sm:$0xff] }
 0x797   : > { %v12286_v60 = vmul.f32 %v5510_v61, %v15692_v51  ;;  %15695 = vst [vmem:[#allocation10_spill] sm:$0xff] %v12289_v63  ;;  %v12292_v35 = vmul.f32 %v5510_v61, %v15696_v38  ;;  %v12300_v29 = vmul.f32 %v5510_v61, %v15699_v49  ;;  %v717_v51 = vmul.f32 %v12018_v48, %v15701_v27  ;;  %p8163_p3 = pnand %p8162_p2, %p8158_p13 }
 0x798   : > { %v4968_v52 = vadd.f32 %v11683_v16, %v4931_v34  ;;  %15698 = vst [vmem:[#allocation56_spill] sm:$0xff] %v12297_v7  ;;  %v12315_v61 = vsel %vm1090_vm3, %v5030_v59, %v5031_v37  ;;  %v15707_v59 = vld [vmem:[#allocation281_spill] sm:$0xff] }
 0x799   : > { %15693 = vst [vmem:[#allocation154_spill] sm:$0xff] %v12286_v60  ;;  %v729_v49 = vadd.f32 %v12049_v20, %v717_v51  ;;  %v15711_v51 = vld [vmem:[#allocation303_spill] sm:$0xff]  ;;  %v15918_v60 = vld [vmem:[#allocation70_spill] sm:$0xff] }
 0x79a   : > { %15697 = vst [vmem:[#allocation144_spill] sm:$0xff] %v12292_v35  ;;  %v12308_v45 = vmax.f32 %v4968_v52, 0.0 }
 0x79b   : > { %15700 = vst [vmem:[#allocation158_spill] sm:$0xff] %v12300_v29  ;;  %v12332_v29 = vmul.f32 %v12272_v21, %v15707_v59 }
 0x79c   : > { %15702 = vst [vmem:[#allocation54_spill] sm:$0xff] %v12308_v45  ;;  %v5032_v50 = vrot.slane %v12308_v45, 7  ;;  %v12319_v48 = vmul.f32 %v12308_v45, %v15704_v54  ;;  %v15709_v54 = vld [vmem:[#allocation295_spill] sm:$0xff] }
 0x79d   : > { %15703 = vst [vmem:[#allocation199_spill] sm:$0xff] %v12315_v61  ;;  %v4792_v27 = vpop.f32.mrf.mxu0  ;;  %v4871_v31 = vpop.f32.mrf.mxu1  ;;  %v12336_v20 = vmul.f32 %v12315_v61, %v15709_v54 }
 0x79e   : > { %15705 = vst [vmem:[#allocation76_spill] sm:$0xff] %v12319_v48  ;;  %v4807_v38 = vmul.f32 %v12060_v23, %v4792_v27  ;;  %v4932_v34 = vmul.f32 %v11677_v32, %v4871_v31  ;;  %v12328_v7 = vsel %vm1090_vm3, %v5031_v37, %v5032_v50  ;;  %v5476_v31 = vrot.slane %v12308_v45, 1  ;;  %v15717_v37 = vld [vmem:[#allocation97_spill] sm:$0xff]  ;;  %v15719_v27 = vld [vmem:[#allocation307_spill] sm:$0xff]  ;;  %v15721_v48 = vld [vmem:[#allocation304_spill] sm:$0xff] }
 0x79f   : > { %15706 = vst [vmem:[#allocation66_spill] sm:$0xff] %v12328_v7  ;;  %v12340_v63 = vmul.f32 %v12328_v7, %v15711_v51 }
 0x7a0   : > { %15708 = vst [vmem:[#allocation62_spill] sm:$0xff] %v12332_v29  ;;  %v12342_v52 = vadd.f32 %v4807_v38, %v729_v49  ;;  %v4969_v23 = vadd.f32 %v11683_v16, %v4932_v34  ;;  %v5509_v51 = vsel %vm1921_vm2, %v5475_v41, %v5476_v31  ;;  %v15715_v49 = vld [vmem:[#allocation98_spill] sm:$0xff] }
 0x7a1   : > { %15710 = vst [vmem:[#allocation60_spill] sm:$0xff] %v12336_v20 }
 0x7a2   : > { %15712 = vst [vmem:[#allocation198_spill] sm:$0xff] %v12340_v63  ;;  %v12350_v59 = vmax.f32 %v4969_v23, 0.0  ;;  %v12365_v23 = vmul.f32 %v5509_v51, %v15719_v27 }
 0x7a3   : > { %15713 = vst [vmem:[#allocation159_spill] sm:$0xff] %v12342_v52  ;;  %v12359_v52 = vmul.f32 %v5509_v51, %v15715_v49 }
 0x7a4   : > { %15714 = vst [vmem:[#allocation205_spill] sm:$0xff] %v12350_v59  ;;  %v5477_v54 = vrot.slane %v12350_v59, 1  ;;  %v5033_v41 = vrot.slane %v12350_v59, 7 }
 0x7a5   : > { %v4873_v35 = vpop.f32.mrf.mxu1  ;;  %15716 = vst [vmem:[#allocation202_spill] sm:$0xff] %v12359_v52 }
 0x7a6   : > { %v4933_v38 = vmul.f32 %v11677_v32, %v4873_v35  ;;  %v5508_v34 = vsel %vm1921_vm2, %v5476_v31, %v5477_v54  ;;  %15720 = vst [vmem:[#allocation18_spill] sm:$0xff] %v12365_v23  ;;  %v15723_v35 = vld [vmem:[#allocation296_spill] sm:$0xff]  ;;  %v15725_v31 = vld [vmem:[#allocation294_spill] sm:$0xff]  ;;  %v15743_v23 = vld [vmem:[#allocation315_spill] sm:$0xff] }
 0x7a7   : > { %v12362_v29 = vmul.f32 %v5508_v34, %v15717_v37  ;;  %v12368_v20 = vmul.f32 %v5508_v34, %v15721_v48  ;;  %v12373_v21 = vmul.f32 %v5509_v51, %v15723_v35  ;;  %v12376_v45 = vmul.f32 %v5508_v34, %v15725_v31  ;;  %v15732_v48 = vld [vmem:[#allocation300_spill] sm:$0xff] }
 0x7a8   : > { %v4970_v63 = vadd.f32 %v11683_v16, %v4933_v38  ;;  %v12389_v51 = vsel %vm1090_vm3, %v5032_v50, %v5033_v41  ;;  %v15729_v38 = vld [vmem:[#allocation301_spill] sm:$0xff]  ;;  %v12404_v37 = vmul.f32 %v12350_v59, %v15732_v48  ;;  %v15734_v50 = vld [vmem:[#allocation310_spill] sm:$0xff] }
 0x7a9   : > { %15718 = vst [vmem:[#allocation20_spill] sm:$0xff] %v12362_v29 }
 0x7aa   : > { %15722 = vst [vmem:[#allocation161_spill] sm:$0xff] %v12368_v20  ;;  %v12382_v49 = vmax.f32 %v4970_v63, 0.0 }
 0x7ab   : > { %15724 = vst [vmem:[#allocation57_spill] sm:$0xff] %v12373_v21  ;;  %v12408_v21 = vmul.f32 %v12389_v51, %v15734_v50 }
 0x7ac   : > { %15726 = vst [vmem:[#allocation82_spill] sm:$0xff] %v12376_v45  ;;  %v5034_v56 = vrot.slane %v12382_v49, 7  ;;  %v12393_v34 = vmul.f32 %v12382_v49, %v15729_v38  ;;  %v15736_v38 = vld [vmem:[#allocation311_spill] sm:$0xff] }
 0x7ad   : > { %15727 = vst [vmem:[#allocation162_spill] sm:$0xff] %v12382_v49  ;;  %v4876_v35 = vpop.f32.mrf.mxu1 }
 0x7ae   : > { %15728 = vst [vmem:[#allocation49_spill] sm:$0xff] %v12389_v51  ;;  %v4934_v63 = vmul.f32 %v11677_v32, %v4876_v35  ;;  %v12400_v27 = vsel %vm1090_vm3, %v5033_v41, %v5034_v56  ;;  %v5478_v35 = vrot.slane %v12382_v49, 1  ;;  %v15739_v49 = vld [vmem:[#allocation104_spill] sm:$0xff]  ;;  %v15741_v41 = vld [vmem:[#allocation103_spill] sm:$0xff] }
 0x7af   : > { %15730 = vst [vmem:[#allocation72_spill] sm:$0xff] %v12393_v34  ;;  %v12412_v45 = vmul.f32 %v12400_v27, %v15736_v38  ;;  %v15745_v34 = vld [vmem:[#allocation319_spill] sm:$0xff] }
 0x7b0   : > { %15731 = vst [vmem:[#allocation208_spill] sm:$0xff] %v12400_v27  ;;  %v4971_v31 = vadd.f32 %v11683_v16, %v4934_v63  ;;  %v5507_v50 = vsel %vm1921_vm2, %v5477_v54, %v5478_v35 }
 0x7b1   : > { %15733 = vst [vmem:[#allocation212_spill] sm:$0xff] %v12404_v37  ;;  %v12429_v52 = vmul.f32 %v5507_v50, %v15739_v49 }
 0x7b2   : > { %15735 = vst [vmem:[#allocation68_spill] sm:$0xff] %v12408_v21  ;;  %v12420_v48 = vmax.f32 %v4971_v31, 0.0  ;;  %v12435_v31 = vmul.f32 %v5507_v50, %v15743_v23 }
 0x7b3   : > { %15737 = vst [vmem:[#allocation67_spill] sm:$0xff] %v12412_v45 }
 0x7b4   : > { %15738 = vst [vmem:[#allocation218_spill] sm:$0xff] %v12420_v48  ;;  %v5479_v20 = vrot.slane %v12420_v48, 1  ;;  %v5035_v54 = vrot.slane %v12420_v48, 7 }
 0x7b5   : > { %v4878_v59 = vpop.f32.mrf.mxu1  ;;  %15740 = vst [vmem:[#allocation225_spill] sm:$0xff] %v12429_v52 }
 0x7b6   : > { %v4935_v38 = vmul.f32 %v11677_v32, %v4878_v59  ;;  %v5506_v63 = vsel %vm1921_vm2, %v5478_v35, %v5479_v20  ;;  %15744 = vst [vmem:[#allocation213_spill] sm:$0xff] %v12435_v31  ;;  %v15747_v59 = vld [vmem:[#allocation306_spill] sm:$0xff]  ;;  %v15749_v35 = vld [vmem:[#allocation312_spill] sm:$0xff] }
 0x7b7   : > { %v12432_v37 = vmul.f32 %v5506_v63, %v15741_v41  ;;  %v12438_v21 = vmul.f32 %v5506_v63, %v15745_v34  ;;  %v12443_v29 = vmul.f32 %v5507_v50, %v15747_v59  ;;  %v12446_v51 = vmul.f32 %v5506_v63, %v15749_v35  ;;  %v15756_v34 = vld [vmem:[#allocation316_spill] sm:$0xff] }
 0x7b8   : > { %v4972_v45 = vadd.f32 %v11683_v16, %v4935_v38  ;;  %v12459_v50 = vsel %vm1090_vm3, %v5034_v56, %v5035_v54  ;;  %v15753_v38 = vld [vmem:[#allocation314_spill] sm:$0xff]  ;;  %v12474_v49 = vmul.f32 %v12420_v48, %v15756_v34  ;;  %v15758_v56 = vld [vmem:[#allocation323_spill] sm:$0xff]  ;;  %v15767_v31 = vld [vmem:[#allocation164_spill] sm:$0xff] }
 0x7b9   : > { %15742 = vst [vmem:[#allocation204_spill] sm:$0xff] %v12432_v37 }
 0x7ba   : > { %15746 = vst [vmem:[#allocation11_spill] sm:$0xff] %v12438_v21  ;;  %v12452_v41 = vmax.f32 %v4972_v45, 0.0 }
 0x7bb   : > { %15748 = vst [vmem:[#allocation23_spill] sm:$0xff] %v12443_v29  ;;  %v12478_v29 = vmul.f32 %v12459_v50, %v15758_v56 }
 0x7bc   : > { %15750 = vst [vmem:[#allocation214_spill] sm:$0xff] %v12446_v51  ;;  %v5036_v27 = vrot.slane %v12452_v41, 7  ;;  %v12463_v63 = vmul.f32 %v12452_v41, %v15753_v38  ;;  %v15760_v38 = vld [vmem:[#allocation320_spill] sm:$0xff] }
 0x7bd   : > { %15751 = vst [vmem:[#allocation52_spill] sm:$0xff] %v12452_v41  ;;  %v4881_v59 = vpop.f32.mrf.mxu1 }
 0x7be   : > { %15752 = vst [vmem:[#allocation88_spill] sm:$0xff] %v12459_v50  ;;  %v4936_v45 = vmul.f32 %v11677_v32, %v4881_v59  ;;  %v12470_v23 = vsel %vm1090_vm3, %v5035_v54, %v5036_v27  ;;  %v5480_v59 = vrot.slane %v12452_v41, 1  ;;  %v15763_v41 = vld [vmem:[#allocation111_spill] sm:$0xff]  ;;  %v15765_v54 = vld [vmem:[#allocation110_spill] sm:$0xff] }
 0x7bf   : > { %15754 = vst [vmem:[#allocation219_spill] sm:$0xff] %v12463_v63  ;;  %v12482_v51 = vmul.f32 %v12470_v23, %v15760_v38  ;;  %v15769_v63 = vld [vmem:[#allocation324_spill] sm:$0xff] }
 0x7c0   : > { %15755 = vst [vmem:[#allocation65_spill] sm:$0xff] %v12470_v23  ;;  %v4973_v35 = vadd.f32 %v11683_v16, %v4936_v45  ;;  %v5505_v56 = vsel %vm1921_vm2, %v5479_v20, %v5480_v59 }
 0x7c1   : > { %15757 = vst [vmem:[#allocation78_spill] sm:$0xff] %v12474_v49  ;;  %v12499_v52 = vmul.f32 %v5505_v56, %v15763_v41 }
 0x7c2   : > { %15759 = vst [vmem:[#allocation233_spill] sm:$0xff] %v12478_v29  ;;  %v12490_v34 = vmax.f32 %v4973_v35, 0.0  ;;  %v12505_v35 = vmul.f32 %v5505_v56, %v15767_v31 }
 0x7c3   : > { %15761 = vst [vmem:[#allocation228_spill] sm:$0xff] %v12482_v51 }
 0x7c4   : > { %15762 = vst [vmem:[#allocation74_spill] sm:$0xff] %v12490_v34  ;;  %v5481_v21 = vrot.slane %v12490_v34, 1  ;;  %v5037_v20 = vrot.slane %v12490_v34, 7 }
 0x7c5   : > { %v4883_v48 = vpop.f32.mrf.mxu1  ;;  %15764 = vst [vmem:[#allocation73_spill] sm:$0xff] %v12499_v52 }
 0x7c6   : > { %v4937_v38 = vmul.f32 %v11677_v32, %v4883_v48  ;;  %v5504_v45 = vsel %vm1921_vm2, %v5480_v59, %v5481_v21  ;;  %15768 = vst [vmem:[#allocation236_spill] sm:$0xff] %v12505_v35  ;;  %v15771_v48 = vld [vmem:[#allocation156_spill] sm:$0xff] }
 0x7c7   : > { %v12502_v49 = vmul.f32 %v5504_v45, %v15765_v54  ;;  %v12508_v29 = vmul.f32 %v5504_v45, %v15769_v63  ;;  %v12513_v37 = vmul.f32 %v5505_v56, %v15771_v48  ;;  %v12516_v59 = vmul.f32 %v5504_v45, %v15481_v42  ;;  %v15779_v63 = vld [vmem:[#allocation322_spill] sm:$0xff]  ;;  %v15790_v35 = vld [vmem:[#allocation332_spill] sm:$0xff] }
 0x7c8   : > { %v4974_v51 = vadd.f32 %v11683_v16, %v4937_v38  ;;  %v12529_v56 = vsel %vm1090_vm3, %v5036_v27, %v5037_v20  ;;  %v15776_v38 = vld [vmem:[#allocation196_spill] sm:$0xff]  ;;  %v12544_v41 = vmul.f32 %v12490_v34, %v15779_v63  ;;  %v15781_v27 = vld [vmem:[#allocation326_spill] sm:$0xff] }
 0x7c9   : > { %15766 = vst [vmem:[#allocation234_spill] sm:$0xff] %v12502_v49 }
 0x7ca   : > { %15770 = vst [vmem:[#allocation222_spill] sm:$0xff] %v12508_v29  ;;  %v12522_v54 = vmax.f32 %v4974_v51, 0.0 }
 0x7cb   : > { %15772 = vst [vmem:[#allocation224_spill] sm:$0xff] %v12513_v37  ;;  %v12548_v37 = vmul.f32 %v12529_v56, %v15781_v27 }
 0x7cc   : > { %15773 = vst [vmem:[#allocation203_spill] sm:$0xff] %v12516_v59  ;;  %v5038_v50 = vrot.slane %v12522_v54, 7  ;;  %v12533_v42 = vmul.f32 %v12522_v54, %v15776_v38  ;;  %v15783_v38 = vld [vmem:[#allocation148_spill] sm:$0xff] }
 0x7cd   : > { %15774 = vst [vmem:[#allocation239_spill] sm:$0xff] %v12522_v54  ;;  %v4886_v45 = vpop.f32.mrf.mxu1 }
 0x7ce   : > { %15775 = vst [vmem:[#allocation58_spill] sm:$0xff] %v12529_v56  ;;  %v4938_v51 = vmul.f32 %v11677_v32, %v4886_v45  ;;  %v12540_v31 = vsel %vm1090_vm3, %v5037_v20, %v5038_v50  ;;  %v5482_v45 = vrot.slane %v12522_v54, 1  ;;  %v15786_v54 = vld [vmem:[#allocation117_spill] sm:$0xff]  ;;  %v15788_v20 = vld [vmem:[#allocation116_spill] sm:$0xff] }
 0x7cf   : > { %15777 = vst [vmem:[#allocation230_spill] sm:$0xff] %v12533_v42  ;;  %v12552_v59 = vmul.f32 %v12540_v31, %v15783_v38  ;;  %v15792_v42 = vld [vmem:[#allocation329_spill] sm:$0xff] }
 0x7d0   : > { %15778 = vst [vmem:[#allocation94_spill] sm:$0xff] %v12540_v31  ;;  %v4975_v48 = vadd.f32 %v11683_v16, %v4938_v51  ;;  %v5503_v27 = vsel %vm1921_vm2, %v5481_v21, %v5482_v45 }
 0x7d1   : > { %15780 = vst [vmem:[#allocation71_spill] sm:$0xff] %v12544_v41  ;;  %v12569_v52 = vmul.f32 %v5503_v27, %v15786_v54 }
 0x7d2   : > { %15782 = vst [vmem:[#allocation84_spill] sm:$0xff] %v12548_v37  ;;  %v12560_v63 = vmax.f32 %v4975_v48, 0.0  ;;  %v12575_v48 = vmul.f32 %v5503_v27, %v15790_v35 }
 0x7d3   : > { %15784 = vst [vmem:[#allocation243_spill] sm:$0xff] %v12552_v59 }
 0x7d4   : > { %15785 = vst [vmem:[#allocation251_spill] sm:$0xff] %v12560_v63  ;;  %v5483_v29 = vrot.slane %v12560_v63, 1  ;;  %v5039_v21 = vrot.slane %v12560_v63, 7 }
 0x7d5   : > { %v4888_v34 = vpop.f32.mrf.mxu1  ;;  %15787 = vst [vmem:[#allocation80_spill] sm:$0xff] %v12569_v52 }
 0x7d6   : > { %v4939_v38 = vmul.f32 %v11677_v32, %v4888_v34  ;;  %v5502_v51 = vsel %vm1921_vm2, %v5482_v45, %v5483_v29  ;;  %15791 = vst [vmem:[#allocation257_spill] sm:$0xff] %v12575_v48  ;;  %v12583_v34 = vmul.f32 %v5503_v27, %v15483_v22  ;;  %v15795_v45 = vld [vmem:[#allocation325_spill] sm:$0xff]  ;;  %v12599_v22 = vsel %vm1090_vm3, %v5038_v50, %v5039_v21  ;;  %v15799_v27 = vld [vmem:[#allocation152_spill] sm:$0xff]  ;;  %v15804_v50 = vld [vmem:[#allocation207_spill] sm:$0xff] }
 0x7d7   : > { %v12572_v41 = vmul.f32 %v5502_v51, %v15788_v20  ;;  %v12578_v37 = vmul.f32 %v5502_v51, %v15792_v42  ;;  %v12586_v49 = vmul.f32 %v5502_v51, %v15795_v45  ;;  %15798 = vst [vmem:[#allocation249_spill] sm:$0xff] %v12599_v22  ;;  %v15802_v42 = vld [vmem:[#allocation197_spill] sm:$0xff]  ;;  %v15813_v48 = vld [vmem:[#allocation211_spill] sm:$0xff] }
 0x7d8   : > { %v4976_v59 = vadd.f32 %v11683_v16, %v4939_v38  ;;  %15794 = vst [vmem:[#allocation244_spill] sm:$0xff] %v12583_v34  ;;  %v12614_v54 = vmul.f32 %v12560_v63, %v15802_v42  ;;  %v12618_v34 = vmul.f32 %v12599_v22, %v15804_v50 }
 0x7d9   : > { %15789 = vst [vmem:[#allocation79_spill] sm:$0xff] %v12572_v41 }
 0x7da   : > { %15793 = vst [vmem:[#allocation254_spill] sm:$0xff] %v12578_v37  ;;  %v12592_v20 = vmax.f32 %v4976_v59, 0.0 }
 0x7db   : > { %15796 = vst [vmem:[#allocation242_spill] sm:$0xff] %v12586_v49 }
 0x7dc   : > { %15797 = vst [vmem:[#allocation215_spill] sm:$0xff] %v12592_v20  ;;  %v5040_v56 = vrot.slane %v12592_v20, 7  ;;  %v12603_v38 = vmul.f32 %v12592_v20, %v15799_v27  ;;  %v15806_v27 = vld [vmem:[#allocation201_spill] sm:$0xff] }
 0x7dd   : > { %v4891_v51 = vpop.f32.mrf.mxu1  ;;  %15803 = vst [vmem:[#allocation264_spill] sm:$0xff] %v12614_v54 }
 0x7de   : > { %15800 = vst [vmem:[#allocation248_spill] sm:$0xff] %v12603_v38  ;;  %v4940_v59 = vmul.f32 %v11677_v32, %v4891_v51  ;;  %v12610_v35 = vsel %vm1090_vm3, %v5039_v21, %v5040_v56  ;;  %v5484_v51 = vrot.slane %v12592_v20, 1  ;;  %v15809_v20 = vld [vmem:[#allocation126_spill] sm:$0xff]  ;;  %v15811_v21 = vld [vmem:[#allocation125_spill] sm:$0xff]  ;;  %v15815_v38 = vld [vmem:[#allocation128_spill] sm:$0xff] }
 0x7df   : > { %15801 = vst [vmem:[#allocation261_spill] sm:$0xff] %v12610_v35  ;;  %v12622_v49 = vmul.f32 %v12610_v35, %v15806_v27  ;;  %v15882_v35 = vld [vmem:[#allocation48_spill] sm:$0xff] }
 0x7e0   : > { %15805 = vst [vmem:[#allocation86_spill] sm:$0xff] %v12618_v34  ;;  %v4977_v45 = vadd.f32 %v11683_v16, %v4940_v59  ;;  %v5501_v50 = vsel %vm1921_vm2, %v5483_v29, %v5484_v51 }
 0x7e1   : > { %15807 = vst [vmem:[#allocation85_spill] sm:$0xff] %v12622_v49  ;;  %v12639_v52 = vmul.f32 %v5501_v50, %v15809_v20 }
 0x7e2   : > { %v12630_v42 = vmax.f32 %v4977_v45, 0.0  ;;  %v12645_v45 = vmul.f32 %v5501_v50, %v15813_v48 }
 0x7e3   : > { %15810 = vst [vmem:[#allocation278_spill] sm:$0xff] %v12639_v52 }
 0x7e4   : > { %15808 = vst [vmem:[#allocation270_spill] sm:$0xff] %v12630_v42  ;;  %v5485_v37 = vrot.slane %v12630_v42, 1  ;;  %v5041_v29 = vrot.slane %v12630_v42, 7 }
 0x7e5   : > { %v4893_v63 = vpop.f32.mrf.mxu1  ;;  %15814 = vst [vmem:[#allocation265_spill] sm:$0xff] %v12645_v45  ;;  %v15836_v45 = vld [vmem:[#allocation226_spill] sm:$0xff] }
 0x7e6   : > { %v4941_v27 = vmul.f32 %v11677_v32, %v4893_v63  ;;  %v5500_v59 = vsel %vm1921_vm2, %v5484_v51, %v5485_v37  ;;  %v12653_v63 = vmul.f32 %v5501_v50, %v15488_v2  ;;  %v15818_v51 = vld [vmem:[#allocation160_spill] sm:$0xff]  ;;  %v12669_v2 = vsel %vm1090_vm3, %v5040_v56, %v5041_v29  ;;  %v15822_v50 = vld [vmem:[#allocation121_spill] sm:$0xff] }
 0x7e7   : > { %v12642_v54 = vmul.f32 %v5500_v59, %v15811_v21  ;;  %v12648_v34 = vmul.f32 %v5500_v59, %v15815_v38  ;;  %v12656_v41 = vmul.f32 %v5500_v59, %v15818_v51  ;;  %15821 = vst [vmem:[#allocation279_spill] sm:$0xff] %v12669_v2  ;;  %v15825_v38 = vld [vmem:[#allocation210_spill] sm:$0xff]  ;;  %v15827_v56 = vld [vmem:[#allocation220_spill] sm:$0xff] }
 0x7e8   : > { %v4978_v49 = vadd.f32 %v11683_v16, %v4941_v27  ;;  %15817 = vst [vmem:[#allocation267_spill] sm:$0xff] %v12653_v63  ;;  %v12684_v20 = vmul.f32 %v12630_v42, %v15825_v38  ;;  %v12688_v63 = vmul.f32 %v12669_v2, %v15827_v56  ;;  %v15868_v2 = vld [vmem:[#allocation44_spill] sm:$0xff] }
 0x7e9   : > { %15812 = vst [vmem:[#allocation256_spill] sm:$0xff] %v12642_v54 }
 0x7ea   : > { %15816 = vst [vmem:[#allocation229_spill] sm:$0xff] %v12648_v34  ;;  %v12662_v21 = vmax.f32 %v4978_v49, 0.0 }
 0x7eb   : > { %15819 = vst [vmem:[#allocation271_spill] sm:$0xff] %v12656_v41 }
 0x7ec   : > { %15820 = vst [vmem:[#allocation284_spill] sm:$0xff] %v12662_v21  ;;  %v5042_v22 = vrot.slane %v12662_v21, 7  ;;  %v12673_v27 = vmul.f32 %v12662_v21, %v15822_v50  ;;  %v15829_v50 = vld [vmem:[#allocation221_spill] sm:$0xff] }
 0x7ed   : > { %v4896_v59 = vpop.f32.mrf.mxu1  ;;  %15826 = vst [vmem:[#allocation286_spill] sm:$0xff] %v12684_v20 }
 0x7ee   : > { %15823 = vst [vmem:[#allocation92_spill] sm:$0xff] %v12673_v27  ;;  %v4942_v49 = vmul.f32 %v11677_v32, %v4896_v59  ;;  %v12680_v48 = vsel %vm1090_vm3, %v5041_v29, %v5042_v22  ;;  %v5486_v59 = vrot.slane %v12662_v21, 1  ;;  %v15832_v21 = vld [vmem:[#allocation135_spill] sm:$0xff]  ;;  %v15834_v29 = vld [vmem:[#allocation134_spill] sm:$0xff]  ;;  %v15838_v27 = vld [vmem:[#allocation333_spill] sm:$0xff] }
 0x7ef   : > { %15824 = vst [vmem:[#allocation91_spill] sm:$0xff] %v12680_v48  ;;  %v12692_v41 = vmul.f32 %v12680_v48, %v15829_v50  ;;  %v15880_v48 = vld [vmem:[#allocation139_spill] sm:$0xff] }
 0x7f0   : > { %15828 = vst [vmem:[#allocation288_spill] sm:$0xff] %v12688_v63  ;;  %v4979_v51 = vadd.f32 %v11683_v16, %v4942_v49  ;;  %v5499_v56 = vsel %vm1921_vm2, %v5485_v37, %v5486_v59 }
 0x7f1   : > { %15830 = vst [vmem:[#allocation276_spill] sm:$0xff] %v12692_v41  ;;  %v12709_v52 = vmul.f32 %v5499_v56, %v15832_v21  ;;  %v12722_v41 = vmul.f32 %v5499_v56, %v15490_v62  ;;  %v15844_v62 = vld [vmem:[#allocation231_spill] sm:$0xff] }
 0x7f2   : > { %v12700_v38 = vmax.f32 %v4979_v51, 0.0  ;;  %v12715_v51 = vmul.f32 %v5499_v56, %v15836_v45 }
 0x7f3   : > { %15833 = vst [vmem:[#allocation291_spill] sm:$0xff] %v12709_v52  ;;  %v8119_v52 = vld [vmem:[%s14074_s3 + $0x1] ss:$0 sm:$0xff] }
 0x7f4   : > { %15831 = vst [vmem:[#allocation105_spill] sm:$0xff] %v12700_v38  ;;  %v5487_v34 = vrot.slane %v12700_v38, 1  ;;  %v5043_v45 = vrot.slane %v12700_v38, 7 }
 0x7f5   : > { %v4898_v42 = vpop.f32.mrf.mxu1  ;;  %15837 = vst [vmem:[#allocation295_spill] sm:$0xff] %v12715_v51 }
 0x7f6   : > { %v4943_v50 = vmul.f32 %v11677_v32, %v4898_v42  ;;  %v5498_v49 = vsel %vm1921_vm2, %v5486_v59, %v5487_v34  ;;  %15840 = vst [vmem:[#allocation98_spill] sm:$0xff] %v12722_v41  ;;  %v15841_v42 = vld [vmem:[#allocation133_spill] sm:$0xff] }
 0x7f7   : > { %v12712_v20 = vmul.f32 %v5498_v49, %v15834_v29  ;;  %v12718_v63 = vmul.f32 %v5498_v49, %v15838_v27  ;;  %v12725_v54 = vmul.f32 %v5498_v49, %v15841_v42  ;;  %v12753_v27 = vsel %vm1090_vm3, %v5042_v22, %v5043_v45  ;;  %v7826_v22 = vld [vmem:[%s14075_s4 + $0x2] sm:$0x3] }
 0x7f8   : > { %v4980_v37 = vadd.f32 %v11683_v16, %v4943_v50  ;;  %15847 = vst [vmem:[#allocation294_spill] sm:$0xff] %v12753_v27 }
 0x7f9   : > { %15835 = vst [vmem:[#allocation281_spill] sm:$0xff] %v12712_v20  ;;  %v15863_v20 = vld [vmem:[#allocation170_spill] sm:$0xff] }
 0x7fa   : > { %15839 = vst [vmem:[#allocation303_spill] sm:$0xff] %v12718_v63  ;;  %v12732_v29 = vmax.f32 %v4980_v37, 0.0  ;;  %v7827_v37 = vld [vmem:[%s14075_s4 + $0x6] sm:$0x3] }
 0x7fb   : > { %15842 = vst [vmem:[#allocation97_spill] sm:$0xff] %v12725_v54  ;;  %v5230_v42 = vsel %vm1656_vm4, %v7827_v37, 0  ;;  %v15850_v54 = vld [vmem:[#allocation173_spill] sm:$0xff]  ;;  %v5370_v37 = vsel %vm1656_vm4, %v7826_v22, 0 }
 0x7fc   : > { %15843 = vst [vmem:[#allocation307_spill] sm:$0xff] %v12732_v29  ;;  %v5044_v50 = vrot.slane %v12732_v29, 7  ;;  %v12739_v56 = vmul.f32 %v12732_v29, %v15844_v62  ;;  %v15848_v62 = vld [vmem:[#allocation169_spill] sm:$0xff]  ;;  %5239 = vmatpush.bf16.msrb.mxu0 %v5230_v42  ;;  %5379 = vmatpush.bf16.msrb.mxu3 %v5370_v37  ;;  %v15855_v37 = vld [vmem:[#allocation142_spill] sm:$0xff] }
 0x7fd   : > { %v4901_v49 = vpop.f32.mrf.mxu1  ;;  %v12757_v41 = vmul.f32 %v12700_v38, %v15848_v62  ;;  %v8118_v22 = vld [vmem:[%s14073_s2 + $0x1] ss:$0 sm:$0xff] }
 0x7fe   : > { %15845 = vst [vmem:[#allocation304_spill] sm:$0xff] %v12739_v56  ;;  %v4944_v21 = vmul.f32 %v11677_v32, %v4901_v49  ;;  %v12749_v59 = vsel %vm1090_vm3, %v5043_v45, %v5044_v50  ;;  %v5488_v49 = vrot.slane %v12732_v29, 1  ;;  %v7860_v45 = vld [vmem:[%s14075_s4 + $0xa] sm:$0x3] }
 0x7ff   : > { %15846 = vst [vmem:[#allocation296_spill] sm:$0xff] %v12749_v59  ;;  %v12764_v51 = vmul.f32 %v12749_v59, %v15850_v54  ;;  %v5624_v62 = vsel %vm1656_vm4, %v7860_v45, 0 }
 0x800   : > { %15849 = vst [vmem:[#allocation301_spill] sm:$0xff] %v12757_v41  ;;  %v4981_v32 = vadd.f32 %v11683_v16, %v4944_v21  ;;  %v7877_v16 = vld [vmem:[%s14075_s4 + $0xe] sm:$0x3]  ;;  %v15852_v21 = vld [vmem:[#allocation232_spill] sm:$0xff]  ;;  %5633 = vmatpush.bf16.msrb.mxu2 %v5624_v62  ;;  %v15857_v41 = vld [vmem:[#allocation141_spill] sm:$0xff] }
 0x801   : > { %15851 = vst [vmem:[#allocation300_spill] sm:$0xff] %v12764_v51  ;;  %v12779_v42 = vmul.f32 %v12753_v27, %v15852_v21  ;;  %v5846_v63 = vsel %vm1656_vm4, %v7877_v16, 0  ;;  %v5497_v21 = vsel %vm1921_vm2, %v5487_v34, %v5488_v49  ;;  %v15861_v34 = vld [vmem:[#allocation179_spill] sm:$0xff] }
 0x802   : > { %v12781_v54 = vmax.f32 %v4981_v32, 0.0  ;;  %5855 = vmatpush.bf16.msrb.mxu1 %v5846_v63  ;;  %v12798_v62 = vmul.f32 %v5497_v21, %v15855_v37  ;;  %v15859_v63 = vld [vmem:[#allocation335_spill] sm:$0xff]  ;;  %v12813_v27 = vmul.f32 %v5497_v21, %v15863_v20 }
 0x803   : > { %15853 = vst [vmem:[#allocation310_spill] sm:$0xff] %v12779_v42  ;;  %v12804_v51 = vmul.f32 %v5497_v21, %v15859_v63 }
 0x804   : > { %15854 = vst [vmem:[#allocation311_spill] sm:$0xff] %v12781_v54  ;;  %v5489_v56 = vrot.slane %v12781_v54, 1  ;;  %v5045_v32 = vrot.slane %v12781_v54, 7  ;;  %v12830_v20 = vmul.f32 %v12781_v54, %v15868_v2  ;;  %v15878_v2 = vld [vmem:[#allocation240_spill] sm:$0xff] }
 0x805   : > { %v4903_v38 = vpop.f32.mrf.mxu1  ;;  %15856 = vst [vmem:[#allocation104_spill] sm:$0xff] %v12798_v62 }
 0x806   : > { %v4945_v45 = vmul.f32 %v8118_v22, %v4903_v38  ;;  %v5496_v16 = vsel %vm1921_vm2, %v5488_v49, %v5489_v56  ;;  %15860 = vst [vmem:[#allocation315_spill] sm:$0xff] %v12804_v51  ;;  %v15865_v49 = vld [vmem:[#allocation238_spill] sm:$0xff]  ;;  %v15874_v51 = vld [vmem:[#allocation124_spill] sm:$0xff] }
 0x807   : > { %v12801_v42 = vmul.f32 %v5496_v16, %v15857_v41  ;;  %v12807_v29 = vmul.f32 %v5496_v16, %v15861_v34  ;;  %15864 = vst [vmem:[#allocation306_spill] sm:$0xff] %v12813_v27  ;;  %v12816_v37 = vmul.f32 %v5496_v16, %v15865_v49  ;;  %v5052_v34 = vsel %vm1090_vm3, %v5044_v50, %v5045_v32  ;;  %v15870_v16 = vld [vmem:[#allocation42_spill] sm:$0xff] }
 0x808   : > { %v4982_v38 = vadd.f32 %v8119_v52, %v4945_v45  ;;  %15869 = vst [vmem:[#allocation316_spill] sm:$0xff] %v12830_v20  ;;  %v15876_v45 = vld [vmem:[#allocation50_spill] sm:$0xff]  ;;  %v15914_v20 = vld [vmem:[#allocation55_spill] sm:$0xff] }
 0x809   : > { %15858 = vst [vmem:[#allocation103_spill] sm:$0xff] %v12801_v42  ;;  %v12846_v27 = vmul.f32 %v5052_v34, %v15876_v45 }
 0x80a   : > { %15862 = vst [vmem:[#allocation319_spill] sm:$0xff] %v12807_v29  ;;  %v12822_v59 = vmax.f32 %v4982_v38, 0.0  ;;  %v15872_v38 = vld [vmem:[#allocation247_spill] sm:$0xff]  ;;  %v12843_v29 = vmul.f32 %v5052_v34, %v15874_v51 }
 0x80b   : > { %15866 = vst [vmem:[#allocation312_spill] sm:$0xff] %v12816_v37  ;;  %v12850_v37 = vmul.f32 %v12781_v54, %v15878_v2  ;;  %v15884_v2 = vld [vmem:[#allocation253_spill] sm:$0xff] }
 0x80c   : > { %15867 = vst [vmem:[#allocation314_spill] sm:$0xff] %v12822_v59  ;;  %v5046_v21 = vrot.slane %v12822_v59, 7  ;;  %v12835_v49 = vmul.f32 %v12822_v59, %v15870_v16  ;;  %v5490_v63 = vrot.slane %v12822_v59, 1  ;;  %v12840_v41 = vmul.f32 %v12822_v59, %v15872_v38  ;;  %v15886_v16 = vld [vmem:[#allocation175_spill] sm:$0xff]  ;;  %v15891_v38 = vld [vmem:[#allocation149_spill] sm:$0xff] }
 0x80d   : > { %v4906_v50 = vpop.f32.mrf.mxu1  ;;  %15875 = vst [vmem:[#allocation111_spill] sm:$0xff] %v12843_v29  ;;  %v12867_v23 = vmul.f32 %v5052_v34, %v15884_v2  ;;  %v15917_v29 = vld [vmem:[#allocation40_spill] sm:$0xff] }
 0x80e   : > { %15871 = vst [vmem:[#allocation323_spill] sm:$0xff] %v12835_v49  ;;  %v4946_v62 = vmul.f32 %v8118_v22, %v4906_v50  ;;  %v5051_v42 = vsel %vm1090_vm3, %v5045_v32, %v5046_v21  ;;  %v5495_v51 = vsel %vm1921_vm2, %v5489_v56, %v5490_v63  ;;  %v15889_v32 = vld [vmem:[#allocation150_spill] sm:$0xff] }
 0x80f   : > { %15873 = vst [vmem:[#allocation320_spill] sm:$0xff] %v12840_v41  ;;  %v12861_v45 = vmul.f32 %v5051_v42, %v15880_v48  ;;  %v12864_v31 = vmul.f32 %v5051_v42, %v15882_v35  ;;  %v12870_v50 = vmul.f32 %v5051_v42, %v15886_v16  ;;  %v12887_v59 = vmul.f32 %v5495_v51, %v15889_v32  ;;  %v15893_v48 = vld [vmem:[#allocation258_spill] sm:$0xff] }
 0x810   : > { %15877 = vst [vmem:[#allocation110_spill] sm:$0xff] %v12846_v27  ;;  %v4983_v54 = vadd.f32 %v8119_v52, %v4946_v62  ;;  %v12893_v41 = vmul.f32 %v5495_v51, %v15893_v48 }
 0x811   : > { %15879 = vst [vmem:[#allocation164_spill] sm:$0xff] %v12850_v37 }
 0x812   : > { %15881 = vst [vmem:[#allocation324_spill] sm:$0xff] %v12861_v45  ;;  %v12880_v56 = vmax.f32 %v4983_v54, 0.0  ;;  %v15895_v54 = vld [vmem:[#allocation176_spill] sm:$0xff] }
 0x813   : > { %15883 = vst [vmem:[#allocation156_spill] sm:$0xff] %v12864_v31 }
 0x814   : > { %15885 = vst [vmem:[#allocation196_spill] sm:$0xff] %v12867_v23  ;;  %v5491_v34 = vrot.slane %v12880_v56, 1  ;;  %v5047_v42 = vrot.slane %v12880_v56, 7 }
 0x815   : > { %15887 = vst [vmem:[#allocation322_spill] sm:$0xff] %v12870_v50  ;;  %v4908_v16 = vpop.f32.mrf.mxu1  ;;  %v15897_v50 = vld [vmem:[#allocation334_spill] sm:$0xff] }
 0x816   : > { %15888 = vst [vmem:[#allocation326_spill] sm:$0xff] %v12880_v56  ;;  %v4947_v62 = vmul.f32 %v8118_v22, %v4908_v16  ;;  %v5494_v2 = vsel %vm1921_vm2, %v5490_v63, %v5491_v34  ;;  %v12899_v27 = vmul.f32 %v5495_v51, %v15897_v50  ;;  %v15899_v22 = vld [vmem:[#allocation180_spill] sm:$0xff]  ;;  %v5050_v63 = vsel %vm1090_vm3, %v5046_v21, %v5047_v42  ;;  %v15903_v50 = vld [vmem:[#allocation14_spill] sm:$0xff] }
 0x817   : > { %15890 = vst [vmem:[#allocation148_spill] sm:$0xff] %v12887_v59  ;;  %v12890_v37 = vmul.f32 %v5494_v2, %v15891_v38  ;;  %v12896_v35 = vmul.f32 %v5494_v2, %v15895_v54  ;;  %v12902_v16 = vmul.f32 %v5494_v2, %v15899_v22  ;;  %v15902_v54 = vld [vmem:[#allocation53_spill] sm:$0xff]  ;;  %v15905_v22 = vld [vmem:[#allocation262_spill] sm:$0xff] }
 0x818   : > { %15894 = vst [vmem:[#allocation116_spill] sm:$0xff] %v12893_v41  ;;  %v4984_v23 = vadd.f32 %v8119_v52, %v4947_v62  ;;  %v5748_v52 = vmul.f32 %v11721_v14, %v15902_v54  ;;  %v5131_v62 = vmul.f32 %v12880_v56, %v15903_v50  ;;  %v15904_v2 = vld [vmem:[#allocation61_spill] sm:$0xff]  ;;  %v12922_v38 = vmul.f32 %v12880_v56, %v15905_v22  ;;  %v15911_v22 = vld [vmem:[#allocation252_spill] sm:$0xff] }
 0x819   : > { %15892 = vst [vmem:[#allocation117_spill] sm:$0xff] %v12890_v37  ;;  %v5084_v21 = vmul.f32 %v11721_v14, %v15904_v2  ;;  %v15906_v59 = vld [vmem:[#allocation289_spill] sm:$0xff]  ;;  %v15910_v2 = vld [vmem:[#allocation250_spill] sm:$0xff] }
 0x81a   : > { %15896 = vst [vmem:[#allocation332_spill] sm:$0xff] %v12896_v35  ;;  %v12910_v48 = vmax.f32 %v4984_v23, 0.0  ;;  %v12926_v23 = vmul.f32 %v11721_v14, %v15906_v59  ;;  %v15907_v54 = vld [vmem:[#allocation17_spill] sm:$0xff]  ;;  %v12937_v37 = vmul.f32 %v5050_v63, %v15910_v2  ;;  %v15915_v14 = vld [vmem:[#allocation51_spill] sm:$0xff] }
 0x81b   : > { %15898 = vst [vmem:[#allocation329_spill] sm:$0xff] %v12899_v27  ;;  %v15908_v27 = vld [vmem:[#allocation64_spill] sm:$0xff] }
 0x81c   : > { %15900 = vst [vmem:[#allocation325_spill] sm:$0xff] %v12902_v16  ;;  %v5048_v32 = vrot.slane %v12910_v48, 7  ;;  %v5132_v41 = vmul.f32 %v12910_v48, %v15907_v54  ;;  %v5492_v51 = vrot.slane %v12910_v48, 1  ;;  %v5081_v50 = vmul.f32 %v5050_v63, %v15908_v27  ;;  %v15909_v16 = vld [vmem:[#allocation137_spill] sm:$0xff] }
 0x81d   : > { %15901 = vst [vmem:[#allocation152_spill] sm:$0xff] %v12910_v48  ;;  %v12934_v35 = vmul.f32 %v5050_v63, %v15909_v16  ;;  %v12941_v31 = vmul.f32 %v12910_v48, %v15911_v22  ;;  %v15912_v54 = vrot.slane %v11690_v6, 7  ;;  %v15913_v63 = vrot.slane %v11690_v6, 1  ;;  %v15916_v48 = vld [vmem:[#allocation43_spill] sm:$0xff] }
 0x81e   : > { %v5049_v59 = vsel %vm1090_vm3, %v5047_v42, %v5048_v32  ;;  %v5493_v16 = vsel %vm1921_vm2, %v5491_v34, %v5492_v51  ;;  %v5163_v22 = vpack.c.bf16 %v5132_v41, %v5131_v62  ;;  %v15920_v34 = vld [vmem:[#allocation274_spill] sm:$0xff] }
 0x81f   : > { %v5080_v27 = vsel %vm1090_vm3, %v5048_v32, %v15912_v54  ;;  %v5524_v2 = vsel %vm1921_vm2, %v5492_v51, %v15913_v63  ;;  %v5082_v49 = vmul.f32 %v5049_v59, %v15914_v20  ;;  %v5525_v56 = vmul.f32 %v5493_v16, %v15915_v14  ;;  %v15919_v32 = vld [vmem:[#allocation146_spill] sm:$0xff]  ;;  %v15921_v51 = vld [vmem:[#allocation245_spill] sm:$0xff] }
 0x820   : > { %v5526_v42 = vmul.f32 %v5524_v2, %v15916_v48  ;;  %v5747_v45 = vmul.f32 %v5080_v27, %v15917_v29  ;;  %v5083_v61 = vmul.f32 %v5080_v27, %v15918_v60  ;;  %v12963_v54 = vmul.f32 %v5049_v59, %v15919_v32  ;;  %7828 = vmatmul.msk.bf16.vlgmr.msrb.gmra.mxu0 %vm1607_vm5, %v5163_v22  ;;  %v15924_v63 = vld [vmem:[#allocation269_spill] sm:$0xff] }
 0x821   : > { %v12966_v7 = vmul.f32 %v5049_v59, %v15920_v34  ;;  %v5113_v18 = vpack.c.bf16 %v5082_v49, %v5081_v50  ;;  %v12972_v62 = vmul.f32 %v5493_v16, %v15921_v51  ;;  %v15922_v49 = vld [vmem:[#allocation336_spill] sm:$0xff]  ;;  %v12987_v22 = vmul.f32 %v5493_v16, %v15924_v63  ;;  %v15958_v51 = vld [vmem:[#allocation299_spill] sm:$0xff]  ;;  %v15961_v63 = vld [vmem:[#allocation90_spill] sm:$0xff] }
 0x822   : > { %v5557_v41 = vpack.c.bf16 %v5526_v42, %v5525_v56  ;;  %v5779_v48 = vpack.c.bf16 %v5748_v52, %v5747_v45  ;;  %v5114_v29 = vpack.c.bf16 %v5084_v21, %v5083_v61  ;;  %v12981_v56 = vmul.f32 %v5524_v2, %v15922_v49  ;;  %v15923_v50 = vld [vmem:[#allocation260_spill] sm:$0xff]  ;;  %v15926_v61 = vld [vmem:[#allocation263_spill] sm:$0xff]  ;;  %v15960_v49 = vld [vmem:[#allocation190_spill] sm:$0xff] }
 0x823   : > { %7844 = vmatmul.msk.bf16.vlgmr.msrb.gmra.mxu3 %vm1607_vm5, %v5113_v18  ;;  %v12984_v59 = vmul.f32 %v5080_v27, %v15923_v50  ;;  %15925 = vst [vmem:[#allocation197_spill] sm:$0xff] %v12987_v22  ;;  %v12991_v45 = vmul.f32 %v5524_v2, %v15926_v61  ;;  %v15928_v27 = vpack.c.bf16 %v11706_v10, %v11699_v40  ;;  %v15955_v34 = vld [vmem:[#allocation192_spill] sm:$0xff]  ;;  %v16059_v22 = vld [vmem:[#allocation291_spill] sm:$0xff] }
 0x824   : > { %7861 = vmatmul.msk.bf16.vlgmr.msrb.gmra.mxu2 %vm1607_vm5, %v5557_v41  ;;  %7878 = vmatmul.msk.bf16.vlgmr.msrb.gmra.mxu1 %vm1607_vm5, %v5779_v48  ;;  %v15929_v16 = vpack.c.bf16 %v11748_v17, %v11745_v15  ;;  %v15930_v2 = vpack.c.bf16 %v11805_v28, %v11790_v26  ;;  %v15931_v32 = vpack.c.bf16 %v11782_v0, %v11773_v1  ;;  %v15957_v41 = vld [vmem:[#allocation25_spill] sm:$0xff] }
 0x825   : > { %15927 = vst [vmem:[#allocation207_spill] sm:$0xff] %v12991_v45  ;;  %v15932_v40 = vpack.c.bf16 %v11814_v47, %v11811_v4  ;;  %v15933_v10 = vpack.c.bf16 %v11840_v58, %v11837_v5  ;;  %v15934_v15 = vpack.c.bf16 %v11897_v30, %v11878_v3  ;;  %v15935_v17 = vpack.c.bf16 %v11870_v57, %v11865_v44  ;;  %v15941_v4 = vld [vmem:[#allocation246_spill] sm:$0xff]  ;;  %v15944_v5 = vld [vmem:[#allocation12_spill] sm:$0xff]  ;;  %v16073_v45 = vld [vmem:[#allocation323_spill] sm:$0xff] }
 0x826   : > { %v15936_v1 = vpack.c.bf16 %v11900_v24, %v11881_v9  ;;  %v15937_v0 = vpack.c.bf16 %v11932_v13, %v11929_v55  ;;  %v15938_v30 = vpack.c.bf16 %v11989_v11, %v11970_v43  ;;  %v15939_v26 = vpack.c.bf16 %v11962_v46, %v11957_v12  ;;  %v15945_v3 = vld [vmem:[#allocation22_spill] sm:$0xff]  ;;  %v15946_v44 = vld [vmem:[#allocation172_spill] sm:$0xff]  ;;  %v15947_v9 = vld [vmem:[#allocation77_spill] sm:$0xff] }
 0x827   : > { %v15940_v28 = vpack.c.bf16 %v11992_v39, %v11973_v8  ;;  %v15942_v47 = vpack.c.bf16 %v12029_v36, %v15941_v4  ;;  %v15943_v11 = vpack.c.bf16 %v12087_v53, %v12071_v25  ;;  %v5142_v58 = vmul.f32 %v12055_v19, %v15944_v5  ;;  %v15948_v24 = vld [vmem:[#allocation272_spill] sm:$0xff]  ;;  %v15949_v43 = vld [vmem:[#allocation63_spill] sm:$0xff]  ;;  %v15950_v12 = vld [vmem:[#allocation185_spill] sm:$0xff] }
 0x828   : > { %v5141_v57 = vmul.f32 %v15946_v44, %v15945_v3  ;;  %v5758_v55 = vmul.f32 %v15948_v24, %v15947_v9  ;;  %v5757_v36 = vmul.f32 %v15950_v12, %v15949_v43  ;;  %v15951_v8 = vld [vmem:[#allocation331_spill] sm:$0xff]  ;;  %v15952_v39 = vld [vmem:[#allocation178_spill] sm:$0xff]  ;;  %v5144_v48 = vmul.f32 %v15958_v51, %v15957_v41  ;;  %v15969_v4 = vld [vmem:[#allocation29_spill] sm:$0xff] }
 0x829   : > { %v15953_v25 = vpack.c.bf16 %v15951_v8, %v15952_v39  ;;  %v15954_v53 = vld [vmem:[#allocation282_spill] sm:$0xff]  ;;  %v5094_v61 = vmul.f32 %v15948_v24, %v15961_v63  ;;  %v15971_v5 = vld [vmem:[#allocation16_spill] sm:$0xff]  ;;  %v15974_v24 = vld [vmem:[#allocation89_spill] sm:$0xff] }
 0x82a   : > { %v5168_v13 = vpack.c.bf16 %v5142_v58, %v5141_v57  ;;  %v5784_v46 = vpack.c.bf16 %v5758_v55, %v5757_v36  ;;  %v15956_v18 = vpack.c.bf16 %v15954_v53, %v15955_v34  ;;  %v15972_v58 = vld [vmem:[#allocation293_spill] sm:$0xff]  ;;  %v15973_v57 = vld [vmem:[#allocation96_spill] sm:$0xff]  ;;  %v15975_v55 = vld [vmem:[#allocation66_spill] sm:$0xff] }
 0x82b   : > { %v5145_v3 = vmul.f32 %v15972_v58, %v15971_v5  ;;  %v5096_v9 = vmul.f32 %v12248_v33, %v15973_v57  ;;  %v15978_v8 = vld [vmem:[#allocation199_spill] sm:$0xff]  ;;  %v15979_v34 = vld [vmem:[#allocation154_spill] sm:$0xff]  ;;  %v15985_v63 = vld [vmem:[#allocation28_spill] sm:$0xff] }
 0x82c   : > { %v15994_v57 = vld [vmem:[#allocation202_spill] sm:$0xff] }
 0x830   : > { %7829 = vmatmul.msk.bf16.gmra.mxu0 %vm1607_vm5, %v15928_v27  ;;  %v15962_v27 = vld [vmem:[#allocation83_spill] sm:$0xff] }
 0x833   : > { %7845 = vmatmul.msk.bf16.gmra.mxu3 %vm1607_vm5, %v5114_v29  ;;  %v15959_v29 = vld [vmem:[#allocation26_spill] sm:$0xff] }
 0x834   : > { %7862 = vmatmul.msk.bf16.gmra.mxu2 %vm1607_vm5, %v15929_v16  ;;  %7879 = vmatmul.msk.bf16.gmra.mxu1 %vm1607_vm5, %v15930_v2  ;;  %v5143_v50 = vmul.f32 %v15960_v49, %v15959_v29  ;;  %v5760_v16 = vmul.f32 %v12248_v33, %v15962_v27  ;;  %v13116_v33 = vpop.f32.mrf.mxu0  ;;  %v15984_v29 = vld [vmem:[#allocation54_spill] sm:$0xff] }
 0x835   : > { %15982 = vst [vmem:[#allocation201_spill] sm:$0xff] %v13116_v33 }
 0x836   : > { %v5169_v2 = vpack.c.bf16 %v5144_v48, %v5143_v50  ;;  %v15983_v48 = vld [vmem:[#allocation19_spill] sm:$0xff] }
 0x837   : > { %v5148_v50 = vmul.f32 %v15984_v29, %v15983_v48 }
 0x840   : > { %7830 = vmatmul.msk.bf16.gmra.mxu0 %vm1607_vm5, %v15931_v32  ;;  %v15963_v32 = vld [vmem:[#allocation100_spill] sm:$0xff] }
 0x843   : > { %7846 = vmatmul.msk.bf16.gmra.mxu3 %vm1607_vm5, %v15932_v40  ;;  %v5093_v40 = vmul.f32 %v15950_v12, %v15963_v32  ;;  %v15976_v12 = vld [vmem:[#allocation107_spill] sm:$0xff] }
 0x844   : > { %7863 = vmatmul.msk.bf16.gmra.mxu2 %vm1607_vm5, %v15933_v10  ;;  %7880 = vmatmul.msk.bf16.gmra.mxu1 %vm1607_vm5, %v15934_v15  ;;  %v15964_v10 = vld [vmem:[#allocation69_spill] sm:$0xff]  ;;  %v15965_v15 = vld [vmem:[#allocation15_spill] sm:$0xff] }
 0x845   : > { %v5095_v36 = vmul.f32 %v15965_v15, %v15976_v12 }
 0x850   : > { %7831 = vmatmul.msk.bf16.gmra.mxu0 %vm1607_vm5, %v15935_v17  ;;  %v5759_v17 = vmul.f32 %v15965_v15, %v15964_v10  ;;  %v15989_v10 = vld [vmem:[#allocation208_spill] sm:$0xff] }
 0x853   : > { %7847 = vmatmul.msk.bf16.gmra.mxu3 %vm1607_vm5, %v15936_v1  ;;  %v5119_v1 = vpack.c.bf16 %v5094_v61, %v5093_v40  ;;  %v15986_v61 = vld [vmem:[#allocation153_spill] sm:$0xff]  ;;  %v15988_v40 = vld [vmem:[#allocation95_spill] sm:$0xff] }
 0x854   : > { %7864 = vmatmul.msk.bf16.gmra.mxu2 %vm1607_vm5, %v15937_v0  ;;  %7881 = vmatmul.msk.bf16.gmra.mxu1 %vm1607_vm5, %v15938_v30  ;;  %v5785_v0 = vpack.c.bf16 %v5760_v16, %v5759_v17  ;;  %v15966_v30 = vld [vmem:[#allocation189_spill] sm:$0xff]  ;;  %v5147_v27 = vmul.f32 %v15986_v61, %v15985_v63  ;;  %v15987_v16 = vld [vmem:[#allocation102_spill] sm:$0xff]  ;;  %v5764_v15 = vmul.f32 %v15989_v10, %v15988_v40 }
 0x856   : > { %v5171_v17 = vpack.c.bf16 %v5148_v50, %v5147_v27  ;;  %v16001_v27 = vld [vmem:[#allocation101_spill] sm:$0xff] }
 0x860   : > { %7832 = vmatmul.msk.bf16.gmra.mxu0 %vm1607_vm5, %v15939_v26  ;;  %v15967_v26 = vld [vmem:[#allocation277_spill] sm:$0xff] }
 0x863   : > { %7848 = vmatmul.msk.bf16.gmra.mxu3 %vm1607_vm5, %v15940_v28  ;;  %v15968_v28 = vpack.c.bf16 %v15966_v30, %v15967_v26  ;;  %v15991_v30 = vld [vmem:[#allocation81_spill] sm:$0xff] }
 0x864   : > { %7865 = vmatmul.msk.bf16.gmra.mxu2 %vm1607_vm5, %v15942_v47  ;;  %7882 = vmatmul.msk.bf16.gmra.mxu1 %vm1607_vm5, %v15943_v11  ;;  %v15970_v47 = vld [vmem:[#allocation13_spill] sm:$0xff] }
 0x865   : > { %v5146_v11 = vmul.f32 %v15970_v47, %v15969_v4  ;;  %v15992_v26 = vld [vmem:[#allocation49_spill] sm:$0xff] }
 0x867   : > { %v5170_v43 = vpack.c.bf16 %v5146_v11, %v5145_v3  ;;  %v15993_v3 = vld [vmem:[#allocation20_spill] sm:$0xff] }
 0x870   : > { %7833 = vmatmul.msk.bf16.gmra.mxu0 %vm1607_vm5, %v5168_v13  ;;  %v5762_v13 = vmul.f32 %v15975_v55, %v15974_v24 }
 0x873   : > { %7849 = vmatmul.msk.bf16.gmra.mxu3 %vm1607_vm5, %v15953_v25  ;;  %v5120_v25 = vpack.c.bf16 %v5096_v9, %v5095_v36  ;;  %v15995_v9 = vpack.c.bf16 %v15993_v3, %v15994_v57  ;;  %v16006_v3 = vld [vmem:[#allocation204_spill] sm:$0xff]  ;;  %v16007_v57 = vld [vmem:[#allocation225_spill] sm:$0xff] }
 0x874   : > { %7866 = vmatmul.msk.bf16.gmra.mxu2 %vm1607_vm5, %v15956_v18  ;;  %7883 = vmatmul.msk.bf16.gmra.mxu1 %vm1607_vm5, %v5784_v46  ;;  %v15977_v46 = vld [vmem:[#allocation75_spill] sm:$0xff]  ;;  %v15980_v18 = vld [vmem:[#allocation9_spill] sm:$0xff] }
 0x875   : > { %v5761_v39 = vmul.f32 %v15978_v8, %v15977_v46  ;;  %v15981_v41 = vpack.c.bf16 %v15979_v34, %v15980_v18  ;;  %v15996_v46 = vld [vmem:[#allocation31_spill] sm:$0xff]  ;;  %v15999_v34 = vld [vmem:[#allocation205_spill] sm:$0xff] }
 0x877   : > { %v5786_v53 = vpack.c.bf16 %v5762_v13, %v5761_v39 }
 0x880   : > { %7834 = vmatmul.msk.bf16.gmra.mxu0 %vm1607_vm5, %v5169_v2  ;;  %v5098_v2 = vmul.f32 %v15975_v55, %v15987_v16  ;;  %v16002_v16 = vld [vmem:[#allocation65_spill] sm:$0xff] }
 0x883   : > { %7850 = vmatmul.msk.bf16.gmra.mxu3 %vm1607_vm5, %v5119_v1  ;;  %v15990_v1 = vld [vmem:[#allocation113_spill] sm:$0xff] }
 0x884   : > { %7867 = vmatmul.msk.bf16.gmra.mxu2 %vm1607_vm5, %v15968_v28  ;;  %7884 = vmatmul.msk.bf16.gmra.mxu1 %vm1607_vm5, %v5785_v0  ;;  %v5097_v0 = vmul.f32 %v15978_v8, %v15990_v1  ;;  %v5763_v28 = vmul.f32 %v15992_v26, %v15991_v30  ;;  %v15997_v8 = vld [vmem:[#allocation162_spill] sm:$0xff]  ;;  %v16005_v30 = vld [vmem:[#allocation88_spill] sm:$0xff] }
 0x885   : > { %v5150_v39 = vmul.f32 %v15997_v8, %v15996_v46 }
 0x886   : > { %v5121_v11 = vpack.c.bf16 %v5098_v2, %v5097_v0  ;;  %v5787_v5 = vpack.c.bf16 %v5764_v15, %v5763_v28  ;;  %v5766_v2 = vmul.f32 %v16002_v16, %v16001_v27  ;;  %v16004_v0 = vld [vmem:[#allocation87_spill] sm:$0xff] }
 0x887   : > { %v5765_v28 = vmul.f32 %v16005_v30, %v16004_v0 }
 0x890   : > { %7835 = vmatmul.msk.bf16.gmra.mxu0 %vm1607_vm5, %v5170_v43 }
 0x893   : > { %7851 = vmatmul.msk.bf16.gmra.mxu3 %vm1607_vm5, %v5120_v25 }
 0x894   : > { %7868 = vmatmul.msk.bf16.gmra.mxu2 %vm1607_vm5, %v15981_v41  ;;  %7885 = vmatmul.msk.bf16.gmra.mxu1 %vm1607_vm5, %v5786_v53  ;;  %v15998_v53 = vld [vmem:[#allocation32_spill] sm:$0xff] }
 0x895   : > { %v5149_v18 = vmul.f32 %v15999_v34, %v15998_v53  ;;  %v16000_v41 = vld [vmem:[#allocation112_spill] sm:$0xff] }
 0x896   : > { %v5100_v48 = vmul.f32 %v15989_v10, %v16000_v41  ;;  %v5788_v10 = vpack.c.bf16 %v5766_v2, %v5765_v28  ;;  %v16010_v53 = vld [vmem:[#allocation52_spill] sm:$0xff]  ;;  %v16013_v2 = vld [vmem:[#allocation118_spill] sm:$0xff] }
 0x897   : > { %v5172_v15 = vpack.c.bf16 %v5150_v39, %v5149_v18  ;;  %v16009_v39 = vld [vmem:[#allocation35_spill] sm:$0xff] }
 0x898   : > { %v5152_v18 = vmul.f32 %v16010_v53, %v16009_v39 }
 0x89d   : > { %v5241_v32 = vpop.f32.mrf.mxu0 }
 0x8a0   : > { %7836 = vmatmul.msk.bf16.gmra.mxu0 %vm1607_vm5, %v5171_v17  ;;  %v16003_v17 = vld [vmem:[#allocation119_spill] sm:$0xff] }
 0x8a1   : > { %v5857_v4 = vpop.f32.mrf.mxu1  ;;  %v5099_v1 = vmul.f32 %v15992_v26, %v16003_v17  ;;  %v16015_v17 = vld [vmem:[#allocation94_spill] sm:$0xff] }
 0x8a3   : > { %7852 = vmatmul.msk.bf16.gmra.mxu3 %vm1607_vm5, %v5121_v11 }
 0x8a4   : > { %7869 = vmatmul.msk.bf16.gmra.mxu2 %vm1607_vm5, %v15995_v9  ;;  %7886 = vmatmul.msk.bf16.gmra.mxu1 %vm1607_vm5, %v5787_v5  ;;  %v5122_v5 = vpack.c.bf16 %v5100_v48, %v5099_v1  ;;  %v16008_v9 = vpack.c.bf16 %v16006_v3, %v16007_v57  ;;  %v16011_v48 = vld [vmem:[#allocation21_spill] sm:$0xff] }
 0x8a5   : > { %v5243_v24 = vpop.f32.mrf.mxu0 }
 0x8a6   : > { %v5381_v55 = vpop.f32.mrf.mxu3 }
 0x8a7   : > { %v5382_v13 = vadd.f32 %v5381_v55, %v5241_v32  ;;  %v5635_v43 = vpop.f32.mrf.mxu2 }
 0x8a9   : > { %v5715_v12 = vadd.f32 %v5635_v43, %v5382_v13  ;;  %v5859_v36 = vpop.f32.mrf.mxu1 }
 0x8ab   : > { %v13139_v25 = vadd.f32 %v5857_v4, %v5715_v12 }
 0x8ad   : > { %v5246_v50 = vpop.f32.mrf.mxu0 }
 0x8ae   : > { %v5383_v63 = vpop.f32.mrf.mxu3 }
 0x8af   : > { %v5384_v32 = vadd.f32 %v5383_v63, %v5243_v24  ;;  %v5637_v40 = vpop.f32.mrf.mxu2  ;;  %v16012_v63 = vld [vmem:[#allocation218_spill] sm:$0xff] }
 0x8b0   : > { %7837 = vmatmul.msk.bf16.gmra.mxu0 %vm1607_vm5, %v5172_v15  ;;  %v5151_v27 = vmul.f32 %v16012_v63, %v16011_v48  ;;  %v16014_v15 = vld [vmem:[#allocation108_spill] sm:$0xff] }
 0x8b1   : > { %v5716_v4 = vadd.f32 %v5637_v40, %v5384_v32  ;;  %v5862_v11 = vpop.f32.mrf.mxu1  ;;  %v5768_v1 = vmul.f32 %v16015_v17, %v16014_v15 }
 0x8b2   : > { %v5173_v28 = vpack.c.bf16 %v5152_v18, %v5151_v27 }
 0x8b3   : > { %7853 = vmatmul.msk.bf16.gmra.mxu3 %vm1607_vm5, %v5122_v5  ;;  %v13157_v24 = vadd.f32 %v5859_v36, %v5716_v4  ;;  %v5102_v36 = vmul.f32 %v16002_v16, %v16013_v2  ;;  %v16016_v4 = vld [vmem:[#allocation129_spill] sm:$0xff] }
 0x8b4   : > { %7870 = vmatmul.msk.bf16.gmra.mxu2 %vm1607_vm5, %v16008_v9  ;;  %7887 = vmatmul.msk.bf16.gmra.mxu1 %vm1607_vm5, %v5788_v10  ;;  %v5101_v5 = vmul.f32 %v16005_v30, %v16016_v4  ;;  %v16017_v10 = vld [vmem:[#allocation93_spill] sm:$0xff]  ;;  %v16026_v4 = vld [vmem:[#allocation131_spill] sm:$0xff] }
 0x8b5   : > { %v5248_v26 = vpop.f32.mrf.mxu0 }
 0x8b6   : > { %v5386_v55 = vpop.f32.mrf.mxu3 }
 0x8b7   : > { %v5387_v13 = vadd.f32 %v5386_v55, %v5246_v50  ;;  %v5640_v43 = vpop.f32.mrf.mxu2  ;;  %v5123_v55 = vpack.c.bf16 %v5102_v36, %v5101_v5  ;;  %v16023_v36 = vld [vmem:[#allocation239_spill] sm:$0xff] }
 0x8b9   : > { %v5717_v12 = vadd.f32 %v5640_v43, %v5387_v13  ;;  %v5864_v46 = vpop.f32.mrf.mxu1  ;;  %v16019_v13 = vld [vmem:[#allocation234_spill] sm:$0xff]  ;;  %v16020_v43 = vld [vmem:[#allocation73_spill] sm:$0xff] }
 0x8bb   : > { %v13162_v41 = vadd.f32 %v5862_v11, %v5717_v12  ;;  %v16018_v11 = vld [vmem:[#allocation58_spill] sm:$0xff]  ;;  %v16021_v12 = vpack.c.bf16 %v16019_v13, %v16020_v43 }
 0x8bc   : > { %v5767_v3 = vmul.f32 %v16018_v11, %v16017_v10  ;;  %v16029_v43 = vld [vmem:[#allocation138_spill] sm:$0xff] }
 0x8bd   : > { %v5251_v32 = vpop.f32.mrf.mxu0 }
 0x8be   : > { %v5388_v40 = vpop.f32.mrf.mxu3  ;;  %v5789_v16 = vpack.c.bf16 %v5768_v1, %v5767_v3  ;;  %v16027_v3 = vld [vmem:[#allocation114_spill] sm:$0xff] }
 0x8bf   : > { %v5389_v50 = vadd.f32 %v5388_v40, %v5248_v26  ;;  %v5642_v0 = vpop.f32.mrf.mxu2  ;;  %v16022_v40 = vld [vmem:[#allocation24_spill] sm:$0xff] }
 0x8c0   : > { %7838 = vmatmul.msk.bf16.gmra.mxu0 %vm1607_vm5, %v5173_v28  ;;  %v5154_v15 = vmul.f32 %v16023_v36, %v16022_v40 }
 0x8c1   : > { %v5718_v57 = vadd.f32 %v5642_v0, %v5389_v50  ;;  %v5867_v9 = vpop.f32.mrf.mxu1  ;;  %v16024_v50 = vld [vmem:[#allocation33_spill] sm:$0xff]  ;;  %v16025_v0 = vld [vmem:[#allocation74_spill] sm:$0xff] }
 0x8c2   : > { %v5153_v28 = vmul.f32 %v16025_v0, %v16024_v50  ;;  %v16032_v50 = vld [vmem:[#allocation79_spill] sm:$0xff] }
 0x8c3   : > { %7854 = vmatmul.msk.bf16.gmra.mxu3 %vm1607_vm5, %v5123_v55  ;;  %v13180_v26 = vadd.f32 %v5864_v46, %v5718_v57  ;;  %v5104_v46 = vmul.f32 %v16015_v17, %v16026_v4  ;;  %v16028_v57 = vld [vmem:[#allocation261_spill] sm:$0xff]  ;;  %v16033_v4 = vld [vmem:[#allocation80_spill] sm:$0xff] }
 0x8c4   : > { %7871 = vmatmul.msk.bf16.gmra.mxu2 %vm1607_vm5, %v16021_v12  ;;  %7888 = vmatmul.msk.bf16.gmra.mxu1 %vm1607_vm5, %v5789_v16  ;;  %v5770_v55 = vmul.f32 %v16028_v57, %v16027_v3  ;;  %v5174_v13 = vpack.c.bf16 %v5154_v15, %v5153_v28  ;;  %v5103_v12 = vmul.f32 %v16018_v11, %v16029_v43 }
 0x8c5   : > { %v5253_v30 = vpop.f32.mrf.mxu0  ;;  %v16034_v3 = vpack.c.bf16 %v16032_v50, %v16033_v4  ;;  %v16041_v4 = vld [vmem:[#allocation91_spill] sm:$0xff] }
 0x8c6   : > { %v5391_v39 = vpop.f32.mrf.mxu3  ;;  %v5124_v40 = vpack.c.bf16 %v5104_v46, %v5103_v12  ;;  %v16036_v46 = vld [vmem:[#allocation215_spill] sm:$0xff]  ;;  %v16037_v12 = vld [vmem:[#allocation38_spill] sm:$0xff] }
 0x8c7   : > { %v5392_v18 = vadd.f32 %v5391_v39, %v5251_v32  ;;  %v5645_v48 = vpop.f32.mrf.mxu2  ;;  %v16030_v39 = vld [vmem:[#allocation99_spill] sm:$0xff] }
 0x8c9   : > { %v5719_v27 = vadd.f32 %v5645_v48, %v5392_v18  ;;  %v5869_v2 = vpop.f32.mrf.mxu1 }
 0x8cb   : > { %v13185_v1 = vadd.f32 %v5867_v9, %v5719_v27  ;;  %v16031_v9 = vld [vmem:[#allocation249_spill] sm:$0xff] }
 0x8cc   : > { %v5769_v18 = vmul.f32 %v16031_v9, %v16030_v39  ;;  %v16038_v39 = vld [vmem:[#allocation251_spill] sm:$0xff] }
 0x8cd   : > { %v5256_v5 = vpop.f32.mrf.mxu0 }
 0x8ce   : > { %v5393_v10 = vpop.f32.mrf.mxu3  ;;  %v5790_v17 = vpack.c.bf16 %v5770_v55, %v5769_v18  ;;  %v5155_v18 = vmul.f32 %v16038_v39, %v16037_v12 }
 0x8cf   : > { %v5394_v32 = vadd.f32 %v5393_v10, %v5253_v30  ;;  %v5647_v16 = vpop.f32.mrf.mxu2 }
 0x8d0   : > { %7839 = vmatmul.msk.bf16.gmra.mxu0 %vm1607_vm5, %v5174_v13  ;;  %v16035_v13 = vld [vmem:[#allocation36_spill] sm:$0xff] }
 0x8d1   : > { %v5720_v48 = vadd.f32 %v5647_v16, %v5394_v32  ;;  %v5872_v27 = vpop.f32.mrf.mxu1  ;;  %v5156_v55 = vmul.f32 %v16036_v46, %v16035_v13  ;;  %v16043_v13 = vld [vmem:[#allocation106_spill] sm:$0xff] }
 0x8d3   : > { %7855 = vmatmul.msk.bf16.gmra.mxu3 %vm1607_vm5, %v5124_v40  ;;  %v13203_v30 = vadd.f32 %v5869_v2, %v5720_v48  ;;  %v16039_v40 = vld [vmem:[#allocation140_spill] sm:$0xff] }
 0x8d4   : > { %7872 = vmatmul.msk.bf16.gmra.mxu2 %vm1607_vm5, %v16034_v3  ;;  %7889 = vmatmul.msk.bf16.gmra.mxu1 %vm1607_vm5, %v5790_v17  ;;  %v5106_v2 = vmul.f32 %v16028_v57, %v16039_v40  ;;  %v16040_v17 = vld [vmem:[#allocation120_spill] sm:$0xff]  ;;  %v7894_v57 = vld [vmem:[%s14075_s4 + $0x12] sm:$0x3] }
 0x8d5   : > { %v5258_v11 = vpop.f32.mrf.mxu0  ;;  %v5772_v3 = vmul.f32 %v16041_v4, %v16040_v17 }
 0x8d6   : > { %v5396_v15 = vpop.f32.mrf.mxu3 }
 0x8d7   : > { %v5397_v28 = vadd.f32 %v5396_v15, %v5256_v5  ;;  %v5650_v10 = vpop.f32.mrf.mxu2 }
 0x8d9   : > { %v5721_v32 = vadd.f32 %v5650_v10, %v5397_v28  ;;  %v5874_v16 = vpop.f32.mrf.mxu1  ;;  %v5175_v28 = vpack.c.bf16 %v5156_v55, %v5155_v18  ;;  %v16042_v10 = vld [vmem:[#allocation145_spill] sm:$0xff]  ;;  %v16045_v55 = vld [vmem:[#allocation256_spill] sm:$0xff]  ;;  %v16046_v18 = vld [vmem:[#allocation278_spill] sm:$0xff] }
 0x8da   : > { %v5105_v42 = vmul.f32 %v16031_v9, %v16042_v10  ;;  %v16047_v9 = vpack.c.bf16 %v16045_v55, %v16046_v18  ;;  %v16049_v10 = vld [vmem:[#allocation284_spill] sm:$0xff]  ;;  %v16052_v18 = vld [vmem:[#allocation47_spill] sm:$0xff] }
 0x8db   : > { %v13208_v43 = vadd.f32 %v5872_v27, %v5721_v32  ;;  %v16044_v27 = vld [vmem:[#allocation279_spill] sm:$0xff] }
 0x8dc   : > { %v5771_v32 = vmul.f32 %v16044_v27, %v16043_v13  ;;  %v5125_v52 = vpack.c.bf16 %v5106_v2, %v5105_v42 }
 0x8dd   : > { %v5261_v48 = vpop.f32.mrf.mxu0 }
 0x8de   : > { %v5398_v50 = vpop.f32.mrf.mxu3  ;;  %v5791_v40 = vpack.c.bf16 %v5772_v3, %v5771_v32  ;;  %v16050_v32 = vld [vmem:[#allocation27_spill] sm:$0xff] }
 0x8df   : > { %v5399_v5 = vadd.f32 %v5398_v50, %v5258_v11  ;;  %v5652_v15 = vpop.f32.mrf.mxu2  ;;  %v6036_v11 = vsel %vm1656_vm4, %v7894_v57, 0  ;;  %v16051_v57 = vld [vmem:[#allocation270_spill] sm:$0xff] }
 0x8e0   : > { %7840 = vmatmul.msk.bf16.gmra.mxu0 %vm1607_vm5, %v5175_v28  ;;  %v16048_v28 = vld [vmem:[#allocation41_spill] sm:$0xff]  ;;  %v5157_v55 = vmul.f32 %v16051_v57, %v16050_v32 }
 0x8e1   : > { %v5722_v21 = vadd.f32 %v5652_v15, %v5399_v5  ;;  %v5877_v12 = vpop.f32.mrf.mxu1  ;;  %6045 = vmatpush.bf16.msra.mxu0 %v6036_v11  ;;  %v5158_v13 = vmul.f32 %v16049_v10, %v16048_v28  ;;  %v16053_v11 = vld [vmem:[#allocation130_spill] sm:$0xff]  ;;  %v16056_v28 = vld [vmem:[#allocation115_spill] sm:$0xff] }
 0x8e3   : > { %7856 = vmatmul.msk.bf16.gmra.mxu3 %vm1607_vm5, %v5125_v52  ;;  %v13230_v50 = vadd.f32 %v5874_v16, %v5722_v21  ;;  %v5108_v21 = vmul.f32 %v16041_v4, %v16052_v18  ;;  %v16058_v18 = vld [vmem:[#allocation281_spill] sm:$0xff] }
 0x8e4   : > { %7873 = vmatmul.msk.bf16.gmra.mxu2 %vm1607_vm5, %v16047_v9  ;;  %7890 = vmatmul.msk.bf16.gmra.mxu1 %vm1607_vm5, %v5791_v40  ;;  %v16054_v9 = vld [vmem:[#allocation296_spill] sm:$0xff] }
 0x8e5   : > { %v5263_v42 = vpop.f32.mrf.mxu0  ;;  %v5774_v20 = vmul.f32 %v16054_v9, %v16053_v11  ;;  %v16060_v11 = vpack.c.bf16 %v16058_v18, %v16059_v22 }
 0x8e6   : > { %v5401_v2 = vpop.f32.mrf.mxu3 }
 0x8e7   : > { %v5402_v17 = vadd.f32 %v5401_v2, %v5261_v48  ;;  %v5655_v5 = vpop.f32.mrf.mxu2 }
 0x8e9   : > { %v5723_v15 = vadd.f32 %v5655_v5, %v5402_v17  ;;  %v5879_v3 = vpop.f32.mrf.mxu1  ;;  %v5176_v17 = vpack.c.bf16 %v5158_v13, %v5157_v55  ;;  %v16055_v5 = vld [vmem:[#allocation34_spill] sm:$0xff] }
 0x8ea   : > { %v5107_v14 = vmul.f32 %v16044_v27, %v16055_v5  ;;  %v16064_v5 = vld [vmem:[#allocation105_spill] sm:$0xff] }
 0x8eb   : > { %v13235_v52 = vadd.f32 %v5877_v12, %v5723_v15  ;;  %v16057_v12 = vld [vmem:[#allocation294_spill] sm:$0xff] }
 0x8ec   : > { %v5773_v15 = vmul.f32 %v16057_v12, %v16056_v28  ;;  %v5126_v33 = vpack.c.bf16 %v5108_v21, %v5107_v14  ;;  %v16062_v14 = vld [vmem:[#allocation307_spill] sm:$0xff]  ;;  %v16065_v28 = vld [vmem:[#allocation37_spill] sm:$0xff] }
 0x8ed   : > { %v5266_v16 = vpop.f32.mrf.mxu0 }
 0x8ee   : > { %v5403_v40 = vpop.f32.mrf.mxu3  ;;  %v5792_v4 = vpack.c.bf16 %v5774_v20, %v5773_v15 }
 0x8ef   : > { %v5404_v48 = vadd.f32 %v5403_v40, %v5263_v42  ;;  %v5657_v2 = vpop.f32.mrf.mxu2 }
 0x8f0   : > { %7841 = vmatmul.msk.bf16.gmra.mxu0 %vm1607_vm5, %v5176_v17  ;;  %v16061_v17 = vld [vmem:[#allocation30_spill] sm:$0xff] }
 0x8f1   : > { %v5724_v60 = vadd.f32 %v5657_v2, %v5404_v48  ;;  %v5882_v32 = vpop.f32.mrf.mxu1  ;;  %v5160_v20 = vmul.f32 %v16062_v14, %v16061_v17 }
 0x8f3   : > { %7857 = vmatmul.msk.bf16.gmra.mxu3 %vm1607_vm5, %v5126_v33  ;;  %v13253_v42 = vadd.f32 %v5879_v3, %v5724_v60  ;;  %v16063_v33 = vld [vmem:[#allocation39_spill] sm:$0xff]  ;;  %v5110_v60 = vmul.f32 %v16054_v9, %v16065_v28  ;;  %v7928_v9 = vld [vmem:[%s14075_s4 + $0x1a] sm:$0x3] }
 0x8f4   : > { %7874 = vmatmul.msk.bf16.gmra.mxu2 %vm1607_vm5, %v16060_v11  ;;  %7891 = vmatmul.msk.bf16.gmra.mxu1 %vm1607_vm5, %v5792_v4  ;;  %v5159_v22 = vmul.f32 %v16064_v5, %v16063_v33  ;;  %v16067_v33 = vld [vmem:[#allocation103_spill] sm:$0xff] }
 0x8f5   : > { %v5268_v27 = vpop.f32.mrf.mxu0 }
 0x8f6   : > { %v5406_v13 = vpop.f32.mrf.mxu3  ;;  %v5177_v11 = vpack.c.bf16 %v5160_v20, %v5159_v22  ;;  %v16068_v22 = vld [vmem:[#allocation104_spill] sm:$0xff] }
 0x8f7   : > { %v5407_v55 = vadd.f32 %v5406_v13, %v5266_v16  ;;  %v5660_v40 = vpop.f32.mrf.mxu2  ;;  %v16066_v16 = vld [vmem:[#allocation45_spill] sm:$0xff]  ;;  %v16069_v28 = vpack.c.bf16 %v16067_v33, %v16068_v22 }
 0x8f8   : > { %v5109_v13 = vmul.f32 %v16057_v12, %v16066_v16  ;;  %v6480_v12 = vsel %vm1656_vm4, %v7928_v9, 0 }
 0x8f9   : > { %v5725_v48 = vadd.f32 %v5660_v40, %v5407_v55  ;;  %v5884_v2 = vpop.f32.mrf.mxu1  ;;  %6489 = vmatpush.bf16.msra.mxu2 %v6480_v12  ;;  %v16076_v12 = vld [vmem:[#allocation156_spill] sm:$0xff] }
 0x8fb   : > { %v13258_v21 = vadd.f32 %v5882_v32, %v5725_v48  ;;  %v5127_v32 = vpack.c.bf16 %v5110_v60, %v5109_v13  ;;  %v7911_v48 = vld [vmem:[%s14075_s4 + $0x16] sm:$0x3] }
 0x8fc   : > { %v6258_v17 = vsel %vm1656_vm4, %v7911_v48, 0 }
 0x8fd   : > { %v5271_v3 = vpop.f32.mrf.mxu0  ;;  %6267 = vmatpush.bf16.msra.mxu3 %v6258_v17 }
 0x8fe   : > { %v5408_v15 = vpop.f32.mrf.mxu3 }
 0x8ff   : > { %v5409_v4 = vadd.f32 %v5408_v15, %v5268_v27  ;;  %v5662_v18 = vpop.f32.mrf.mxu2  ;;  %v7945_v27 = vld [vmem:[%s14075_s4 + $0x1e] sm:$0x3] }
 0x900   : > { %7842 = vmatmul.msk.bf16.gmra.mxu0 %vm1607_vm5, %v5177_v11  ;;  %v6702_v20 = vsel %vm1656_vm4, %v7945_v27, 0  ;;  %v16070_v15 = vld [vmem:[#allocation324_spill] sm:$0xff] }
 0x901   : > { %v5726_v55 = vadd.f32 %v5662_v18, %v5409_v4  ;;  %v5887_v40 = vpop.f32.mrf.mxu1  ;;  %v16071_v4 = vld [vmem:[#allocation111_spill] sm:$0xff]  ;;  %6711 = vmatpush.bf16.msra.mxu1 %v6702_v20  ;;  %v16077_v20 = vld [vmem:[#allocation110_spill] sm:$0xff] }
 0x902   : > { %v16072_v18 = vpack.c.bf16 %v16070_v15, %v16071_v4  ;;  %v16074_v15 = vld [vmem:[#allocation316_spill] sm:$0xff] }
 0x903   : > { %7858 = vmatmul.msk.bf16.gmra.mxu3 %vm1607_vm5, %v5127_v32  ;;  %v13284_v60 = vadd.f32 %v5884_v2, %v5726_v55  ;;  %v16075_v4 = vpack.c.bf16 %v16073_v45, %v16074_v15 }
 0x904   : > { %7875 = vmatmul.msk.bf16.gmra.mxu2 %vm1607_vm5, %v16069_v28  ;;  %7892 = vmatmul.msk.bf16.gmra.mxu1 %vm1607_vm5, %v16072_v18  ;;  %v16078_v18 = vpack.c.bf16 %v16076_v12, %v16077_v20 }
 0x905   : > { %v5273_v11 = vpop.f32.mrf.mxu0 }
 0x906   : > { %v5411_v16 = vpop.f32.mrf.mxu3 }
 0x907   : > { %v5412_v13 = vadd.f32 %v5411_v16, %v5271_v3  ;;  %v5665_v48 = vpop.f32.mrf.mxu2  ;;  %v16079_v3 = vld [vmem:[#allocation117_spill] sm:$0xff]  ;;  %v16080_v16 = vld [vmem:[#allocation148_spill] sm:$0xff] }
 0x909   : > { %v5727_v32 = vadd.f32 %v5665_v48, %v5412_v13  ;;  %v5889_v9 = vpop.f32.mrf.mxu1 }
 0x90b   : > { %v13290_v27 = vadd.f32 %v5887_v40, %v5727_v32  ;;  %v16081_v40 = vpack.c.bf16 %v16079_v3, %v16080_v16 }
 0x90d   : > { %v5276_v33 = vpop.f32.mrf.mxu0 }
 0x90e   : > { %v5413_v22 = vpop.f32.mrf.mxu3 }
 0x90f   : > { %v5414_v2 = vadd.f32 %v5413_v22, %v5273_v11  ;;  %v5667_v55 = vpop.f32.mrf.mxu2  ;;  %v16082_v11 = vpack.c.bf16 %v12963_v54, %v12934_v35  ;;  %v16085_v35 = vld [vmem:[#allocation309_spill] sm:$0xff] }
 0x910   : > { %7843 = vmatmul.msk.bf16.gmra.mxu0 %vm1607_vm5, %v16075_v4  ;;  %v16086_v54 = vld [vmem:[#allocation305_spill] sm:$0xff] }
 0x911   : > { %v5728_v28 = vadd.f32 %v5667_v55, %v5414_v2  ;;  %v5892_v17 = vpop.f32.mrf.mxu1 }
 0x913   : > { %7859 = vmatmul.msk.bf16.gmra.mxu3 %vm1607_vm5, %v16078_v18  ;;  %v13304_v13 = vadd.f32 %v5889_v9, %v5728_v28  ;;  %v16083_v28 = vld [vmem:[#allocation285_spill] sm:$0xff] }
 0x914   : > { %7876 = vmatmul.msk.bf16.gmra.mxu2 %vm1607_vm5, %v16081_v40  ;;  %7893 = vmatmul.msk.bf16.gmra.mxu1 %vm1607_vm5, %v16082_v11  ;;  %v16084_v16 = vpack.c.bf16 %v16083_v28, %v11690_v6  ;;  %v16087_v40 = vpack.c.bf16 %v16085_v35, %v16086_v54  ;;  %v16089_v11 = vld [vmem:[#allocation194_spill] sm:$0xff] }
 0x915   : > { %v5278_v45 = vpop.f32.mrf.mxu0 }
 0x916   : > { %v5416_v48 = vpop.f32.mrf.mxu3 }
 0x917   : > { %v5417_v32 = vadd.f32 %v5416_v48, %v5276_v33  ;;  %v5670_v22 = vpop.f32.mrf.mxu2  ;;  %v16088_v33 = vld [vmem:[#allocation136_spill] sm:$0xff] }
 0x919   : > { %v5729_v2 = vadd.f32 %v5670_v22, %v5417_v32  ;;  %v5894_v55 = vpop.f32.mrf.mxu1  ;;  %v16093_v32 = vld [vmem:[#allocation318_spill] sm:$0xff] }
 0x91b   : > { %v13310_v15 = vadd.f32 %v5892_v17, %v5729_v2  ;;  %v16090_v17 = vpack.c.bf16 %v16088_v33, %v16089_v11 }
 0x91d   : > { %v5281_v4 = vpop.f32.mrf.mxu0 }
 0x91e   : > { %v5418_v12 = vpop.f32.mrf.mxu3 }
 0x91f   : > { %v5419_v20 = vadd.f32 %v5418_v12, %v5278_v45  ;;  %v5672_v18 = vpop.f32.mrf.mxu2  ;;  %v16092_v45 = vld [vmem:[#allocation317_spill] sm:$0xff] }
 0x920   : > { %7895 = vmatmul.msk.bf16.vlgmr.msra.gmra.mxu0 %vm1607_vm5, %v16084_v16  ;;  %v16094_v22 = vpack.c.bf16 %v16092_v45, %v16093_v32  ;;  %v16099_v45 = vld [vmem:[#allocation195_spill] sm:$0xff] }
 0x921   : > { %v5730_v3 = vadd.f32 %v5672_v18, %v5419_v20  ;;  %v5897_v9 = vpop.f32.mrf.mxu1  ;;  %v16100_v32 = vld [vmem:[#allocation147_spill] sm:$0xff] }
 0x923   : > { %7912 = vmatmul.msk.bf16.vlgmr.msra.gmra.mxu3 %vm1607_vm5, %v16087_v40  ;;  %v13324_v48 = vadd.f32 %v5894_v55, %v5730_v3  ;;  %v16096_v3 = vld [vmem:[#allocation132_spill] sm:$0xff] }
 0x924   : > { %7929 = vmatmul.msk.bf16.vlgmr.msra.gmra.mxu2 %vm1607_vm5, %v16090_v17  ;;  %7946 = vmatmul.msk.bf16.vlgmr.msra.gmra.mxu1 %vm1607_vm5, %v16094_v22  ;;  %v16097_v17 = vld [vmem:[#allocation302_spill] sm:$0xff]  ;;  %v16101_v22 = vpack.c.bf16 %v16099_v45, %v16100_v32 }
 0x925   : > { %16091 = vst [vmem:[#allocation126_spill] sm:$0xff] %v13324_v48  ;;  %v5283_v6 = vpop.f32.mrf.mxu0  ;;  %v16098_v48 = vpack.c.bf16 %v16096_v3, %v16097_v17 }
 0x926   : > { %v5421_v2 = vpop.f32.mrf.mxu3 }
 0x927   : > { %v5422_v12 = vadd.f32 %v5421_v2, %v5281_v4  ;;  %v5675_v20 = vpop.f32.mrf.mxu2  ;;  %v16102_v4 = vld [vmem:[#allocation330_spill] sm:$0xff]  ;;  %v16103_v2 = vld [vmem:[#allocation143_spill] sm:$0xff] }
 0x929   : > { %v5731_v18 = vadd.f32 %v5675_v20, %v5422_v12  ;;  %v5899_v28 = vpop.f32.mrf.mxu1  ;;  %v16107_v20 = vld [vmem:[#allocation165_spill] sm:$0xff] }
 0x92b   : > { %v13330_v16 = vadd.f32 %v5897_v9, %v5731_v18  ;;  %v16104_v9 = vpack.c.bf16 %v16102_v4, %v16103_v2 }
 0x92d   : > { %16095 = vst [vmem:[#allocation125_spill] sm:$0xff] %v13330_v16  ;;  %v5286_v35 = vpop.f32.mrf.mxu0 }
 0x92e   : > { %v5423_v54 = vpop.f32.mrf.mxu3 }
 0x92f   : > { %v5424_v40 = vadd.f32 %v5423_v54, %v5283_v6  ;;  %v5677_v33 = vpop.f32.mrf.mxu2  ;;  %v16106_v6 = vld [vmem:[#allocation206_spill] sm:$0xff] }
 0x930   : > { %7896 = vmatmul.msk.bf16.gmra.mxu0 %vm1607_vm5, %v16098_v48  ;;  %v16108_v18 = vpack.c.bf16 %v16106_v6, %v16107_v20  ;;  %v16113_v6 = vld [vmem:[#allocation200_spill] sm:$0xff] }
 0x931   : > { %v5732_v11 = vadd.f32 %v5677_v33, %v5424_v40  ;;  %v5902_v55 = vpop.f32.mrf.mxu1  ;;  %v16114_v20 = vld [vmem:[#allocation216_spill] sm:$0xff] }
 0x933   : > { %7913 = vmatmul.msk.bf16.gmra.mxu3 %vm1607_vm5, %v16101_v22  ;;  %v13344_v12 = vadd.f32 %v5899_v28, %v5732_v11  ;;  %v16110_v11 = vld [vmem:[#allocation328_spill] sm:$0xff] }
 0x934   : > { %7930 = vmatmul.msk.bf16.gmra.mxu2 %vm1607_vm5, %v16104_v9  ;;  %7947 = vmatmul.msk.bf16.gmra.mxu1 %vm1607_vm5, %v16108_v18  ;;  %v16115_v18 = vpack.c.bf16 %v16113_v6, %v16114_v20 }
 0x935   : > { %16105 = vst [vmem:[#allocation211_spill] sm:$0xff] %v13344_v12  ;;  %v5288_v54 = vpop.f32.mrf.mxu0  ;;  %v16111_v12 = vld [vmem:[#allocation321_spill] sm:$0xff] }
 0x936   : > { %v5426_v40 = vpop.f32.mrf.mxu3  ;;  %v16112_v16 = vpack.c.bf16 %v16110_v11, %v16111_v12 }
 0x937   : > { %v5427_v48 = vadd.f32 %v5426_v40, %v5286_v35  ;;  %v5680_v33 = vpop.f32.mrf.mxu2  ;;  %v16116_v35 = vld [vmem:[#allocation171_spill] sm:$0xff]  ;;  %v16117_v40 = vld [vmem:[#allocation237_spill] sm:$0xff] }
 0x939   : > { %v5733_v3 = vadd.f32 %v5680_v33, %v5427_v48  ;;  %v5904_v17 = vpop.f32.mrf.mxu1  ;;  %v16121_v33 = vld [vmem:[#allocation217_spill] sm:$0xff] }
 0x93b   : > { %v13350_v45 = vadd.f32 %v5902_v55, %v5733_v3  ;;  %v16118_v55 = vpack.c.bf16 %v16116_v35, %v16117_v40 }
 0x93d   : > { %16109 = vst [vmem:[#allocation128_spill] sm:$0xff] %v13350_v45  ;;  %v5291_v32 = vpop.f32.mrf.mxu0 }
 0x93e   : > { %v5428_v22 = vpop.f32.mrf.mxu3 }
 0x93f   : > { %v5429_v4 = vadd.f32 %v5428_v22, %v5288_v54  ;;  %v5682_v2 = vpop.f32.mrf.mxu2  ;;  %v16120_v54 = vld [vmem:[#allocation168_spill] sm:$0xff] }
 0x940   : > { %7897 = vmatmul.msk.bf16.gmra.mxu0 %vm1607_vm5, %v16112_v16  ;;  %v16122_v3 = vpack.c.bf16 %v16120_v54, %v16121_v33  ;;  %v16126_v54 = vld [vmem:[#allocation174_spill] sm:$0xff]  ;;  %v16127_v33 = vld [vmem:[#allocation259_spill] sm:$0xff] }
 0x941   : > { %v5734_v9 = vadd.f32 %v5682_v2, %v5429_v4  ;;  %v5907_v28 = vpop.f32.mrf.mxu1 }
 0x943   : > { %7914 = vmatmul.msk.bf16.gmra.mxu3 %vm1607_vm5, %v16115_v18  ;;  %v13364_v48 = vadd.f32 %v5904_v17, %v5734_v9  ;;  %v16123_v9 = vld [vmem:[#allocation275_spill] sm:$0xff] }
 0x944   : > { %7931 = vmatmul.msk.bf16.gmra.mxu2 %vm1607_vm5, %v16118_v55  ;;  %7948 = vmatmul.msk.bf16.gmra.mxu1 %vm1607_vm5, %v16122_v3  ;;  %v16128_v3 = vpack.c.bf16 %v16126_v54, %v16127_v33 }
 0x945   : > { %16119 = vst [vmem:[#allocation160_spill] sm:$0xff] %v13364_v48  ;;  %v5293_v12 = vpop.f32.mrf.mxu0  ;;  %v16124_v48 = vld [vmem:[#allocation166_spill] sm:$0xff] }
 0x946   : > { %v5431_v22 = vpop.f32.mrf.mxu3  ;;  %v16125_v45 = vpack.c.bf16 %v16123_v9, %v16124_v48 }
 0x947   : > { %v5432_v16 = vadd.f32 %v5431_v22, %v5291_v32  ;;  %v5685_v4 = vpop.f32.mrf.mxu2  ;;  %v16129_v32 = vld [vmem:[#allocation167_spill] sm:$0xff]  ;;  %v16130_v22 = vld [vmem:[#allocation290_spill] sm:$0xff] }
 0x949   : > { %v5735_v2 = vadd.f32 %v5685_v4, %v5432_v16  ;;  %v5909_v11 = vpop.f32.mrf.mxu1  ;;  %v16133_v4 = vld [vmem:[#allocation177_spill] sm:$0xff] }
 0x94b   : > { %v13370_v6 = vadd.f32 %v5907_v28, %v5735_v2  ;;  %v16131_v28 = vpack.c.bf16 %v16129_v32, %v16130_v22 }
 0x94d   : > { %v5296_v20 = vpop.f32.mrf.mxu0 }
 0x94e   : > { %v5433_v18 = vpop.f32.mrf.mxu3 }
 0x94f   : > { %v5434_v35 = vadd.f32 %v5433_v18, %v5293_v12  ;;  %v5687_v40 = vpop.f32.mrf.mxu2  ;;  %v16132_v12 = vld [vmem:[#allocation327_spill] sm:$0xff] }
 0x950   : > { %7898 = vmatmul.msk.bf16.gmra.mxu0 %vm1607_vm5, %v16125_v45  ;;  %v16134_v2 = vpack.c.bf16 %v16132_v12, %v16133_v4  ;;  %v16136_v12 = vld [vmem:[#allocation181_spill] sm:$0xff]  ;;  %v16137_v4 = vld [vmem:[#allocation266_spill] sm:$0xff] }
 0x951   : > { %v5736_v55 = vadd.f32 %v5687_v40, %v5434_v35  ;;  %v5912_v17 = vpop.f32.mrf.mxu1 }
 0x953   : > { %7915 = vmatmul.msk.bf16.gmra.mxu3 %vm1607_vm5, %v16128_v3  ;;  %v13384_v16 = vadd.f32 %v5909_v11, %v5736_v55  ;;  %v16135_v55 = vpack.c.bf16 %v12055_v19, %v15946_v44 }
 0x954   : > { %7932 = vmatmul.msk.bf16.gmra.mxu2 %vm1607_vm5, %v16131_v28  ;;  %7949 = vmatmul.msk.bf16.gmra.mxu1 %vm1607_vm5, %v16134_v2  ;;  %v16138_v2 = vpack.c.bf16 %v16136_v12, %v16137_v4 }
 0x955   : > { %v5298_v48 = vpop.f32.mrf.mxu0 }
 0x956   : > { %v5436_v18 = vpop.f32.mrf.mxu3 }
 0x957   : > { %v5437_v45 = vadd.f32 %v5436_v18, %v5296_v20  ;;  %v5690_v35 = vpop.f32.mrf.mxu2  ;;  %v16139_v20 = vld [vmem:[#allocation188_spill] sm:$0xff]  ;;  %v16140_v18 = vld [vmem:[#allocation183_spill] sm:$0xff] }
 0x959   : > { %v5737_v40 = vadd.f32 %v5690_v35, %v5437_v45  ;;  %v5914_v9 = vpop.f32.mrf.mxu1  ;;  %v16143_v35 = vld [vmem:[#allocation241_spill] sm:$0xff] }
 0x95b   : > { %v13390_v54 = vadd.f32 %v5912_v17, %v5737_v40  ;;  %v16141_v17 = vpack.c.bf16 %v16139_v20, %v16140_v18 }
 0x95d   : > { %v5301_v33 = vpop.f32.mrf.mxu0 }
 0x95e   : > { %v5438_v3 = vpop.f32.mrf.mxu3 }
 0x95f   : > { %v5439_v32 = vadd.f32 %v5438_v3, %v5298_v48  ;;  %v5692_v22 = vpop.f32.mrf.mxu2  ;;  %v16142_v48 = vld [vmem:[#allocation255_spill] sm:$0xff] }
 0x960   : > { %7899 = vmatmul.msk.bf16.gmra.mxu0 %vm1607_vm5, %v16135_v55  ;;  %v16144_v40 = vpack.c.bf16 %v16142_v48, %v16143_v35  ;;  %v16146_v48 = vld [vmem:[#allocation187_spill] sm:$0xff]  ;;  %v16147_v35 = vld [vmem:[#allocation184_spill] sm:$0xff] }
 0x961   : > { %v5738_v28 = vadd.f32 %v5692_v22, %v5439_v32  ;;  %v5917_v11 = vpop.f32.mrf.mxu1 }
 0x963   : > { %7916 = vmatmul.msk.bf16.gmra.mxu3 %vm1607_vm5, %v16138_v2  ;;  %v13404_v45 = vadd.f32 %v5914_v9, %v5738_v28  ;;  %v16145_v28 = vpack.c.bf16 %v15958_v51, %v15960_v49 }
 0x964   : > { %7933 = vmatmul.msk.bf16.gmra.mxu2 %vm1607_vm5, %v16141_v17  ;;  %7950 = vmatmul.msk.bf16.gmra.mxu1 %vm1607_vm5, %v16144_v40  ;;  %v16148_v40 = vpack.c.bf16 %v16146_v48, %v16147_v35 }
 0x965   : > { %v5303_v19 = vpop.f32.mrf.mxu0 }
 0x966   : > { %v5441_v44 = vpop.f32.mrf.mxu3 }
 0x967   : > { %v5442_v3 = vadd.f32 %v5441_v44, %v5301_v33  ;;  %v5695_v32 = vpop.f32.mrf.mxu2  ;;  %v16149_v33 = vld [vmem:[#allocation46_spill] sm:$0xff] }
 0x968   : > { %v16150_v44 = vld [vmem:[#allocation122_spill] sm:$0xff] }
 0x969   : > { %v5739_v22 = vadd.f32 %v5695_v32, %v5442_v3  ;;  %v5919_v55 = vpop.f32.mrf.mxu1  ;;  %v16153_v32 = vld [vmem:[#allocation283_spill] sm:$0xff] }
 0x96b   : > { %v13410_v12 = vadd.f32 %v5917_v11, %v5739_v22  ;;  %v16151_v11 = vpack.c.bf16 %v16149_v33, %v16150_v44 }
 0x96d   : > { %v5306_v4 = vpop.f32.mrf.mxu0 }
 0x96e   : > { %v5443_v2 = vpop.f32.mrf.mxu3 }
 0x96f   : > { %v5444_v20 = vadd.f32 %v5443_v2, %v5303_v19  ;;  %v5697_v18 = vpop.f32.mrf.mxu2  ;;  %v16152_v19 = vld [vmem:[#allocation273_spill] sm:$0xff] }
 0x970   : > { %7900 = vmatmul.msk.bf16.gmra.mxu0 %vm1607_vm5, %v16145_v28  ;;  %v16154_v22 = vpack.c.bf16 %v16152_v19, %v16153_v32  ;;  %v16156_v19 = vld [vmem:[#allocation144_spill] sm:$0xff]  ;;  %v16157_v32 = vld [vmem:[#allocation10_spill] sm:$0xff] }
 0x971   : > { %v5740_v17 = vadd.f32 %v5697_v18, %v5444_v20  ;;  %v5922_v9 = vpop.f32.mrf.mxu1 }
 0x973   : > { %7917 = vmatmul.msk.bf16.gmra.mxu3 %vm1607_vm5, %v16148_v40  ;;  %v13424_v3 = vadd.f32 %v5919_v55, %v5740_v17  ;;  %v16155_v17 = vpack.c.bf16 %v15970_v47, %v15972_v58 }
 0x974   : > { %7934 = vmatmul.msk.bf16.gmra.mxu2 %vm1607_vm5, %v16151_v11  ;;  %7951 = vmatmul.msk.bf16.gmra.mxu1 %vm1607_vm5, %v16154_v22  ;;  %v16158_v22 = vpack.c.bf16 %v16156_v19, %v16157_v32 }
 0x975   : > { %v5308_v51 = vpop.f32.mrf.mxu0 }
 0x976   : > { %v5446_v49 = vpop.f32.mrf.mxu3 }
 0x977   : > { %v5447_v2 = vadd.f32 %v5446_v49, %v5306_v4  ;;  %v5700_v20 = vpop.f32.mrf.mxu2  ;;  %v16159_v4 = vld [vmem:[#allocation198_spill] sm:$0xff]  ;;  %v16160_v49 = vld [vmem:[#allocation60_spill] sm:$0xff] }
 0x979   : > { %v5741_v18 = vadd.f32 %v5700_v20, %v5447_v2  ;;  %v5924_v28 = vpop.f32.mrf.mxu1  ;;  %v16163_v20 = vld [vmem:[#allocation62_spill] sm:$0xff] }
 0x97b   : > { %v13430_v48 = vadd.f32 %v5922_v9, %v5741_v18  ;;  %v16161_v9 = vpack.c.bf16 %v16159_v4, %v16160_v49 }
 0x97d   : > { %v5311_v35 = vpop.f32.mrf.mxu0 }
 0x97e   : > { %v5448_v40 = vpop.f32.mrf.mxu3 }
 0x97f   : > { %v5449_v33 = vadd.f32 %v5448_v40, %v5308_v51  ;;  %v5702_v44 = vpop.f32.mrf.mxu2  ;;  %v16162_v51 = vld [vmem:[#allocation76_spill] sm:$0xff] }
 0x980   : > { %7901 = vmatmul.msk.bf16.gmra.mxu0 %vm1607_vm5, %v16155_v17  ;;  %v16164_v18 = vpack.c.bf16 %v16162_v51, %v16163_v20  ;;  %v16166_v51 = vld [vmem:[#allocation161_spill] sm:$0xff]  ;;  %v16167_v20 = vld [vmem:[#allocation18_spill] sm:$0xff] }
 0x981   : > { %v5742_v11 = vadd.f32 %v5702_v44, %v5449_v33  ;;  %v5927_v55 = vpop.f32.mrf.mxu1 }
 0x983   : > { %7918 = vmatmul.msk.bf16.gmra.mxu3 %vm1607_vm5, %v16158_v22  ;;  %v13444_v2 = vadd.f32 %v5924_v28, %v5742_v11  ;;  %v16165_v11 = vpack.c.bf16 %v15984_v29, %v15986_v61 }
 0x984   : > { %7935 = vmatmul.msk.bf16.gmra.mxu2 %vm1607_vm5, %v16161_v9  ;;  %7952 = vmatmul.msk.bf16.gmra.mxu1 %vm1607_vm5, %v16164_v18  ;;  %v16168_v18 = vpack.c.bf16 %v16166_v51, %v16167_v20 }
 0x985   : > { %v5313_v47 = vpop.f32.mrf.mxu0 }
 0x986   : > { %v5451_v58 = vpop.f32.mrf.mxu3 }
 0x987   : > { %v5452_v40 = vadd.f32 %v5451_v58, %v5311_v35  ;;  %v5705_v33 = vpop.f32.mrf.mxu2  ;;  %v16169_v35 = vld [vmem:[#allocation67_spill] sm:$0xff]  ;;  %v16170_v58 = vld [vmem:[#allocation68_spill] sm:$0xff] }
 0x989   : > { %v5743_v44 = vadd.f32 %v5705_v33, %v5452_v40  ;;  %v5929_v17 = vpop.f32.mrf.mxu1  ;;  %v16173_v33 = vld [vmem:[#allocation212_spill] sm:$0xff] }
 0x98b   : > { %v13450_v19 = vadd.f32 %v5927_v55, %v5743_v44  ;;  %v16171_v55 = vpack.c.bf16 %v16169_v35, %v16170_v58 }
 0x98d   : > { %v5316_v32 = vpop.f32.mrf.mxu0 }
 0x98e   : > { %v5453_v22 = vpop.f32.mrf.mxu3 }
 0x98f   : > { %v5454_v4 = vadd.f32 %v5453_v22, %v5313_v47  ;;  %v5707_v49 = vpop.f32.mrf.mxu2  ;;  %v16172_v47 = vld [vmem:[#allocation72_spill] sm:$0xff] }
 0x990   : > { %7902 = vmatmul.msk.bf16.gmra.mxu0 %vm1607_vm5, %v16165_v11  ;;  %v16174_v44 = vpack.c.bf16 %v16172_v47, %v16173_v33  ;;  %v16176_v33 = vld [vmem:[#allocation11_spill] sm:$0xff] }
 0x991   : > { %v5744_v9 = vadd.f32 %v5707_v49, %v5454_v4  ;;  %v5932_v28 = vpop.f32.mrf.mxu1 }
 0x993   : > { %7919 = vmatmul.msk.bf16.gmra.mxu3 %vm1607_vm5, %v16168_v18  ;;  %v13464_v40 = vadd.f32 %v5929_v17, %v5744_v9 }
 0x994   : > { %7936 = vmatmul.msk.bf16.gmra.mxu2 %vm1607_vm5, %v16171_v55  ;;  %7953 = vmatmul.msk.bf16.gmra.mxu1 %vm1607_vm5, %v16174_v44  ;;  %v16175_v55 = vpack.c.bf16 %v15997_v8, %v15999_v34 }
 0x995   : > { %v5318_v29 = vpop.f32.mrf.mxu0 }
 0x996   : > { %v5456_v61 = vpop.f32.mrf.mxu3 }
 0x997   : > { %v5457_v22 = vadd.f32 %v5456_v61, %v5316_v32  ;;  %v5710_v4 = vpop.f32.mrf.mxu2  ;;  %v16177_v32 = vld [vmem:[#allocation213_spill] sm:$0xff] }
 0x998   : > { %v16178_v44 = vpack.c.bf16 %v16176_v33, %v16177_v32  ;;  %v16180_v61 = vld [vmem:[#allocation233_spill] sm:$0xff] }
 0x999   : > { %v5745_v49 = vadd.f32 %v5710_v4, %v5457_v22  ;;  %v5934_v11 = vpop.f32.mrf.mxu1  ;;  %v16183_v4 = vld [vmem:[#allocation78_spill] sm:$0xff] }
 0x99b   : > { %v13470_v51 = vadd.f32 %v5932_v28, %v5745_v49  ;;  %v16179_v28 = vld [vmem:[#allocation228_spill] sm:$0xff] }
 0x99c   : > { %v16181_v22 = vpack.c.bf16 %v16179_v28, %v16180_v61 }
 0x99d   : > { %v6047_v20 = vpop.f32.mrf.mxu0 }
 0x99e   : > { %v5458_v18 = vpop.f32.mrf.mxu3  ;;  %v6127_v35 = vadd.f32 %v6047_v20, %v13139_v25 }
 0x99f   : > { %v5459_v58 = vadd.f32 %v5458_v18, %v5318_v29  ;;  %v5712_v17 = vpop.f32.mrf.mxu2  ;;  %v16182_v29 = vld [vmem:[#allocation219_spill] sm:$0xff] }
 0x9a0   : > { %7903 = vmatmul.msk.bf16.gmra.mxu0 %vm1607_vm5, %v16175_v55  ;;  %v16184_v49 = vpack.c.bf16 %v16182_v29, %v16183_v4 }
 0x9a1   : > { %v5746_v9 = vadd.f32 %v5712_v17, %v5459_v58  ;;  %v6713_v47 = vpop.f32.mrf.mxu1 }
 0x9a3   : > { %7920 = vmatmul.msk.bf16.gmra.mxu3 %vm1607_vm5, %v16178_v44  ;;  %v13485_v25 = vadd.f32 %v5934_v11, %v5746_v9 }
 0x9a4   : > { %7937 = vmatmul.msk.bf16.gmra.mxu2 %vm1607_vm5, %v16181_v22  ;;  %7954 = vmatmul.msk.bf16.gmra.mxu1 %vm1607_vm5, %v16184_v49  ;;  %v16185_v22 = vpack.c.bf16 %v16010_v53, %v16012_v63  ;;  %v16190_v49 = vld [vmem:[#allocation84_spill] sm:$0xff] }
 0x9a5   : > { %v6049_v8 = vpop.f32.mrf.mxu0 }
 0x9a6   : > { %v6269_v34 = vpop.f32.mrf.mxu3  ;;  %v6128_v20 = vadd.f32 %v6049_v8, %v13157_v24  ;;  %v16186_v24 = vld [vmem:[#allocation222_spill] sm:$0xff] }
 0x9a7   : > { %v6349_v18 = vadd.f32 %v6269_v34, %v6127_v35  ;;  %v6491_v58 = vpop.f32.mrf.mxu2  ;;  %v16187_v35 = vld [vmem:[#allocation236_spill] sm:$0xff]  ;;  %v16192_v34 = vld [vmem:[#allocation230_spill] sm:$0xff] }
 0x9a8   : > { %v16188_v4 = vpack.c.bf16 %v16186_v24, %v16187_v35 }
 0x9a9   : > { %v6571_v17 = vadd.f32 %v6491_v58, %v6349_v18  ;;  %v6715_v55 = vpop.f32.mrf.mxu1 }
 0x9ab   : > { %v13492_v33 = vadd.f32 %v6713_v47, %v6571_v17  ;;  %v16189_v47 = vld [vmem:[#allocation243_spill] sm:$0xff] }
 0x9ac   : > { %v16191_v8 = vpack.c.bf16 %v16189_v47, %v16190_v49  ;;  %v16195_v47 = vpack.c.bf16 %v16023_v36, %v16025_v0 }
 0x9ad   : > { %v6052_v32 = vpop.f32.mrf.mxu0 }
 0x9ae   : > { %v6271_v44 = vpop.f32.mrf.mxu3  ;;  %v6129_v11 = vadd.f32 %v6052_v32, %v13162_v41 }
 0x9af   : > { %v6350_v9 = vadd.f32 %v6271_v44, %v6128_v20  ;;  %v6493_v28 = vpop.f32.mrf.mxu2  ;;  %v16193_v20 = vld [vmem:[#allocation71_spill] sm:$0xff] }
 0x9b0   : > { %7904 = vmatmul.msk.bf16.gmra.mxu0 %vm1607_vm5, %v16185_v22  ;;  %v16194_v18 = vpack.c.bf16 %v16192_v34, %v16193_v20  ;;  %v16200_v34 = vld [vmem:[#allocation86_spill] sm:$0xff] }
 0x9b1   : > { %v6572_v61 = vadd.f32 %v6493_v28, %v6350_v9  ;;  %v6718_v29 = vpop.f32.mrf.mxu1 }
 0x9b3   : > { %7921 = vmatmul.msk.bf16.gmra.mxu3 %vm1607_vm5, %v16188_v4  ;;  %v13507_v41 = vadd.f32 %v6715_v55, %v6572_v61 }
 0x9b4   : > { %7938 = vmatmul.msk.bf16.gmra.mxu2 %vm1607_vm5, %v16191_v8  ;;  %7955 = vmatmul.msk.bf16.gmra.mxu1 %vm1607_vm5, %v16194_v18  ;;  %v16202_v18 = vld [vmem:[#allocation248_spill] sm:$0xff] }
 0x9b5   : > { %v6054_v53 = vpop.f32.mrf.mxu0 }
 0x9b6   : > { %v6274_v63 = vpop.f32.mrf.mxu3  ;;  %v6130_v58 = vadd.f32 %v6054_v53, %v13180_v26  ;;  %v16196_v26 = vld [vmem:[#allocation254_spill] sm:$0xff]  ;;  %v16203_v53 = vld [vmem:[#allocation264_spill] sm:$0xff] }
 0x9b7   : > { %v6351_v17 = vadd.f32 %v6274_v63, %v6129_v11  ;;  %v6496_v32 = vpop.f32.mrf.mxu2  ;;  %v16197_v11 = vld [vmem:[#allocation257_spill] sm:$0xff]  ;;  %v16204_v63 = vpack.c.bf16 %v16202_v18, %v16203_v53  ;;  %v16212_v18 = vld [vmem:[#allocation92_spill] sm:$0xff]  ;;  %v16213_v53 = vld [vmem:[#allocation286_spill] sm:$0xff] }
 0x9b8   : > { %v16198_v8 = vpack.c.bf16 %v16196_v26, %v16197_v11  ;;  %v16205_v11 = vpack.c.bf16 %v16036_v46, %v16038_v39 }
 0x9b9   : > { %v6573_v44 = vadd.f32 %v6496_v32, %v6351_v17  ;;  %v6720_v9 = vpop.f32.mrf.mxu1 }
 0x9bb   : > { %v13514_v28 = vadd.f32 %v6718_v29, %v6573_v44  ;;  %v16199_v29 = vld [vmem:[#allocation85_spill] sm:$0xff] }
 0x9bc   : > { %v16201_v20 = vpack.c.bf16 %v16199_v29, %v16200_v34  ;;  %v16210_v34 = vld [vmem:[#allocation288_spill] sm:$0xff] }
 0x9bd   : > { %v6057_v22 = vpop.f32.mrf.mxu0 }
 0x9be   : > { %v6276_v24 = vpop.f32.mrf.mxu3  ;;  %v6131_v55 = vadd.f32 %v6057_v22, %v13185_v1 }
 0x9bf   : > { %v6352_v61 = vadd.f32 %v6276_v24, %v6130_v58  ;;  %v6498_v35 = vpop.f32.mrf.mxu2 }
 0x9c0   : > { %7905 = vmatmul.msk.bf16.gmra.mxu0 %vm1607_vm5, %v16195_v47 }
 0x9c1   : > { %v6574_v4 = vadd.f32 %v6498_v35, %v6352_v61  ;;  %v6723_v49 = vpop.f32.mrf.mxu1 }
 0x9c3   : > { %7922 = vmatmul.msk.bf16.gmra.mxu3 %vm1607_vm5, %v16198_v8  ;;  %v13529_v1 = vadd.f32 %v6720_v9, %v6574_v4 }
 0x9c4   : > { %7939 = vmatmul.msk.bf16.gmra.mxu2 %vm1607_vm5, %v16201_v20  ;;  %7956 = vmatmul.msk.bf16.gmra.mxu1 %vm1607_vm5, %v16204_v63  ;;  %v16214_v63 = vpack.c.bf16 %v16212_v18, %v16213_v53 }
 0x9c5   : > { %v6059_v36 = vpop.f32.mrf.mxu0 }
 0x9c6   : > { %v6279_v0 = vpop.f32.mrf.mxu3  ;;  %v6132_v58 = vadd.f32 %v6059_v36, %v13203_v30  ;;  %v16206_v30 = vld [vmem:[#allocation229_spill] sm:$0xff] }
 0x9c7   : > { %v6353_v17 = vadd.f32 %v6279_v0, %v6131_v55  ;;  %v6501_v32 = vpop.f32.mrf.mxu2  ;;  %v16207_v55 = vld [vmem:[#allocation265_spill] sm:$0xff] }
 0x9c8   : > { %v16208_v29 = vpack.c.bf16 %v16206_v30, %v16207_v55  ;;  %v16217_v55 = vld [vmem:[#allocation295_spill] sm:$0xff] }
 0x9c9   : > { %v6575_v44 = vadd.f32 %v6501_v32, %v6353_v17  ;;  %v6725_v22 = vpop.f32.mrf.mxu1 }
 0x9cb   : > { %v13536_v24 = vadd.f32 %v6723_v49, %v6575_v44  ;;  %v16209_v49 = vld [vmem:[#allocation276_spill] sm:$0xff] }
 0x9cc   : > { %v16211_v20 = vpack.c.bf16 %v16209_v49, %v16210_v34  ;;  %v16220_v49 = vld [vmem:[#allocation310_spill] sm:$0xff] }
 0x9cd   : > { %v6062_v61 = vpop.f32.mrf.mxu0 }
 0x9ce   : > { %v6281_v35 = vpop.f32.mrf.mxu3  ;;  %v6133_v9 = vadd.f32 %v6062_v61, %v13208_v43 }
 0x9cf   : > { %v6354_v4 = vadd.f32 %v6281_v35, %v6132_v58  ;;  %v6503_v47 = vpop.f32.mrf.mxu2 }
 0x9d0   : > { %7906 = vmatmul.msk.bf16.gmra.mxu0 %vm1607_vm5, %v16205_v11  ;;  %v16215_v11 = vpack.c.bf16 %v16049_v10, %v16051_v57  ;;  %v16222_v57 = vld [vmem:[#allocation304_spill] sm:$0xff] }
 0x9d1   : > { %v6576_v26 = vadd.f32 %v6503_v47, %v6354_v4  ;;  %v6728_v8 = vpop.f32.mrf.mxu1 }
 0x9d3   : > { %7923 = vmatmul.msk.bf16.gmra.mxu3 %vm1607_vm5, %v16208_v29  ;;  %v13551_v43 = vadd.f32 %v6725_v22, %v6576_v26 }
 0x9d4   : > { %7940 = vmatmul.msk.bf16.gmra.mxu2 %vm1607_vm5, %v16211_v20  ;;  %7957 = vmatmul.msk.bf16.gmra.mxu1 %vm1607_vm5, %v16214_v63  ;;  %v16223_v20 = vld [vmem:[#allocation301_spill] sm:$0xff] }
 0x9d5   : > { %v6064_v46 = vpop.f32.mrf.mxu0  ;;  %v16224_v18 = vpack.c.bf16 %v16222_v57, %v16223_v20 }
 0x9d6   : > { %v6284_v39 = vpop.f32.mrf.mxu3  ;;  %v6134_v36 = vadd.f32 %v6064_v46, %v13230_v50  ;;  %v7962_v50 = vld [vmem:[%s14075_s4 + $0x22] sm:$0x3] }
 0x9d7   : > { %v6355_v0 = vadd.f32 %v6284_v39, %v6133_v9  ;;  %v6506_v58 = vpop.f32.mrf.mxu2  ;;  %v6924_v9 = vsel %vm1656_vm4, %v7962_v50, 0  ;;  %v16233_v50 = vld [vmem:[#allocation196_spill] sm:$0xff] }
 0x9d8   : > { %6933 = vmatpush.bf16.msrb.mxu0 %v6924_v9 }
 0x9d9   : > { %v6577_v17 = vadd.f32 %v6506_v58, %v6355_v0  ;;  %v6730_v32 = vpop.f32.mrf.mxu1 }
 0x9db   : > { %v13558_v44 = vadd.f32 %v6728_v8, %v6577_v17  ;;  %v16216_v8 = vld [vmem:[#allocation303_spill] sm:$0xff] }
 0x9dc   : > { %v16218_v29 = vpack.c.bf16 %v16216_v8, %v16217_v55  ;;  %v16236_v8 = vld [vmem:[#allocation164_spill] sm:$0xff] }
 0x9dd   : > { %v6067_v61 = vpop.f32.mrf.mxu0 }
 0x9de   : > { %v6286_v35 = vpop.f32.mrf.mxu3  ;;  %v6135_v22 = vadd.f32 %v6067_v61, %v13235_v52  ;;  %v16219_v52 = vld [vmem:[#allocation300_spill] sm:$0xff] }
 0x9df   : > { %v6356_v4 = vadd.f32 %v6286_v35, %v6134_v36  ;;  %v6508_v47 = vpop.f32.mrf.mxu2  ;;  %v16221_v34 = vpack.c.bf16 %v16219_v52, %v16220_v49 }
 0x9e0   : > { %7907 = vmatmul.msk.bf16.gmra.mxu0 %vm1607_vm5, %v16215_v11 }
 0x9e1   : > { %v6578_v26 = vadd.f32 %v6508_v47, %v6356_v4  ;;  %v6733_v30 = vpop.f32.mrf.mxu1  ;;  %v16227_v47 = vpack.c.bf16 %v16062_v14, %v16064_v5 }
 0x9e3   : > { %7924 = vmatmul.msk.bf16.gmra.mxu3 %vm1607_vm5, %v16218_v29  ;;  %v13577_v10 = vadd.f32 %v6730_v32, %v6578_v26  ;;  %v16230_v26 = vld [vmem:[#allocation315_spill] sm:$0xff] }
 0x9e4   : > { %7941 = vmatmul.msk.bf16.gmra.mxu2 %vm1607_vm5, %v16221_v34  ;;  %7958 = vmatmul.msk.bf16.gmra.mxu1 %vm1607_vm5, %v16224_v18 }
 0x9e5   : > { %v6069_v53 = vpop.f32.mrf.mxu0 }
 0x9e6   : > { %v6289_v63 = vpop.f32.mrf.mxu3  ;;  %v13584_v46 = vadd.f32 %v6069_v53, %v13253_v42  ;;  %v16240_v53 = vld [vmem:[#allocation314_spill] sm:$0xff] }
 0x9e7   : > { %v6357_v39 = vadd.f32 %v6289_v63, %v6135_v22  ;;  %v6511_v36 = vpop.f32.mrf.mxu2  ;;  %v16229_v22 = vld [vmem:[#allocation319_spill] sm:$0xff] }
 0x9e8   : > { %v16231_v11 = vpack.c.bf16 %v16229_v22, %v16230_v26  ;;  %v16241_v63 = vld [vmem:[#allocation311_spill] sm:$0xff] }
 0x9e9   : > { %v6579_v0 = vadd.f32 %v6511_v36, %v6357_v39  ;;  %v13586_v58 = vpop.f32.mrf.mxu1  ;;  %v16242_v39 = vpack.c.bf16 %v16240_v53, %v16241_v63 }
 0x9ea   : > { %16225 = vst [vmem:[#allocation121_spill] sm:$0xff] %v13586_v58 }
 0x9eb   : > { %v13588_v17 = vadd.f32 %v6733_v30, %v6579_v0  ;;  %v16232_v30 = vld [vmem:[#allocation322_spill] sm:$0xff]  ;;  %v16245_v0 = vld [vmem:[#allocation116_spill] sm:$0xff] }
 0x9ec   : > { %v16234_v9 = vpack.c.bf16 %v16232_v30, %v16233_v50 }
 0x9ed   : > { %v6072_v32 = vpop.f32.mrf.mxu0 }
 0x9ee   : > { %v13590_v61 = vpop.f32.mrf.mxu3  ;;  %v13593_v35 = vadd.f32 %v6072_v32, %v13258_v21  ;;  %v16235_v21 = vld [vmem:[#allocation320_spill] sm:$0xff] }
 0x9ef   : > { %v13595_v4 = vpop.f32.mrf.mxu2  ;;  %v16237_v55 = vpack.c.bf16 %v16235_v21, %v16236_v8 }
 0x9f0   : > { %16226 = vst [vmem:[#allocation210_spill] sm:$0xff] %v13595_v4  ;;  %7908 = vmatmul.msk.bf16.gmra.mxu0 %vm1607_vm5, %v16227_v47  ;;  %v16247_v47 = vpack.c.bf16 %v12966_v7, %v12937_v37 }
 0x9f1   : > { %v13601_v42 = vpop.f32.mrf.mxu1 }
 0x9f2   : > { %16228 = vst [vmem:[#allocation220_spill] sm:$0xff] %v13601_v42 }
 0x9f3   : > { %7925 = vmatmul.msk.bf16.gmra.mxu3 %vm1607_vm5, %v16231_v11 }
 0x9f4   : > { %7942 = vmatmul.msk.bf16.gmra.mxu2 %vm1607_vm5, %v16234_v9  ;;  %7959 = vmatmul.msk.bf16.gmra.mxu1 %vm1607_vm5, %v16237_v55 }
 0x9f5   : > { %v6074_v14 = vpop.f32.mrf.mxu0 }
 0x9f6   : > { %v13615_v5 = vpop.f32.mrf.mxu3  ;;  %v13618_v29 = vadd.f32 %v6074_v14, %v13284_v60  ;;  %v16244_v60 = vld [vmem:[#allocation332_spill] sm:$0xff]  ;;  %v16254_v14 = vpack.c.bf16 %v12926_v23, %v12984_v59  ;;  %v16259_v23 = vld [vmem:[#allocation125_spill] sm:$0xff] }
 0x9f7   : > { %v13620_v52 = vpop.f32.mrf.mxu2  ;;  %v16246_v32 = vpack.c.bf16 %v16244_v60, %v16245_v0  ;;  %v16258_v60 = vld [vmem:[#allocation126_spill] sm:$0xff] }
 0x9f8   : > { %16238 = vst [vmem:[#allocation221_spill] sm:$0xff] %v13620_v52 }
 0x9f9   : > { %v13622_v49 = vpop.f32.mrf.mxu1 }
 0x9fa   : > { %16239 = vst [vmem:[#allocation135_spill] sm:$0xff] %v13622_v49 }
 0x9fd   : > { %v6077_v34 = vpop.f32.mrf.mxu0 }
 0x9fe   : > { %v13624_v57 = vpop.f32.mrf.mxu3  ;;  %v13627_v20 = vadd.f32 %v6077_v34, %v13290_v27  ;;  %v16248_v27 = vpack.c.bf16 %v12941_v31, %v12922_v38  ;;  %v16250_v31 = vld [vmem:[#allocation152_spill] sm:$0xff]  ;;  %v16251_v38 = vld [vmem:[#allocation326_spill] sm:$0xff] }
 0x9ff   : > { %v13629_v18 = vpop.f32.mrf.mxu2  ;;  %v16252_v8 = vpack.c.bf16 %v16250_v31, %v16251_v38  ;;  %v16256_v34 = vld [vmem:[#allocation292_spill] sm:$0xff]  ;;  %v16261_v31 = vld [vmem:[#allocation163_spill] sm:$0xff] }
 0xa00   : > { %7909 = vmatmul.msk.bf16.gmra.mxu0 %vm1607_vm5, %v16242_v39 }
 0xa01   : > { %v13635_v36 = vpop.f32.mrf.mxu1 }
 0xa02   : > { %16243 = vst [vmem:[#allocation134_spill] sm:$0xff] %v13635_v36 }
 0xa03   : > { %7926 = vmatmul.msk.bf16.gmra.mxu3 %vm1607_vm5, %v16246_v32 }
 0xa04   : > { %7943 = vmatmul.msk.bf16.gmra.mxu2 %vm1607_vm5, %v16247_v47  ;;  %7960 = vmatmul.msk.bf16.gmra.mxu1 %vm1607_vm5, %v16248_v27 }
 0xa05   : > { %v6079_v22 = vpop.f32.mrf.mxu0 }
 0xa06   : > { %v13649_v26 = vpop.f32.mrf.mxu3  ;;  %v13652_v11 = vadd.f32 %v6079_v22, %v13304_v13  ;;  %v16253_v13 = vpack.c.bf16 %v12981_v56, %v12972_v62 }
 0xa07   : > { %v13654_v30 = vpop.f32.mrf.mxu2 }
 0xa09   : > { %v13656_v50 = vpop.f32.mrf.mxu1 }
 0xa0a   : > { %16249 = vst [vmem:[#allocation226_spill] sm:$0xff] %v13656_v50 }
 0xa0d   : > { %v6082_v9 = vpop.f32.mrf.mxu0 }
 0xa0e   : > { %v13658_v21 = vpop.f32.mrf.mxu3  ;;  %v13661_v7 = vadd.f32 %v6082_v9, %v13310_v15  ;;  %v16255_v15 = vld [vmem:[#allocation297_spill] sm:$0xff] }
 0xa0f   : > { %v13663_v37 = vpop.f32.mrf.mxu2  ;;  %v16257_v53 = vpack.c.bf16 %v16255_v15, %v16256_v34  ;;  %v16260_v9 = vld [vmem:[#allocation157_spill] sm:$0xff] }
 0xa10   : > { %7910 = vmatmul.msk.bf16.gmra.mxu0 %vm1607_vm5, %v16252_v8  ;;  %v16262_v38 = vpack.c.bf16 %v16260_v9, %v16261_v31  ;;  %v16266_v31 = vld [vmem:[#allocation227_spill] sm:$0xff] }
 0xa11   : > { %v13669_v55 = vpop.f32.mrf.mxu1 }
 0xa13   : > { %7927 = vmatmul.msk.bf16.gmra.mxu3 %vm1607_vm5, %v16253_v13 }
 0xa14   : > { %7944 = vmatmul.msk.bf16.gmra.mxu2 %vm1607_vm5, %v16254_v14  ;;  %7961 = vmatmul.msk.bf16.gmra.mxu1 %vm1607_vm5, %v16257_v53  ;;  %v16263_v14 = vld [vmem:[#allocation211_spill] sm:$0xff] }
 0xa15   : > { %v6084_v63 = vpop.f32.mrf.mxu0 }
 0xa16   : > { %v13683_v39 = vpop.f32.mrf.mxu3  ;;  %v13686_v0 = vadd.f32 %v6084_v63, %v16258_v60 }
 0xa17   : > { %v13688_v32 = vpop.f32.mrf.mxu2 }
 0xa19   : > { %v13690_v62 = vpop.f32.mrf.mxu1 }
 0xa1d   : > { %v6087_v56 = vpop.f32.mrf.mxu0 }
 0xa1e   : > { %v13692_v47 = vpop.f32.mrf.mxu3  ;;  %v6143_v59 = vadd.f32 %v6087_v56, %v16259_v23  ;;  %v16265_v23 = vld [vmem:[#allocation128_spill] sm:$0xff] }
 0xa1f   : > { %v13695_v27 = vpop.f32.mrf.mxu2 }
 0xa20   : > { %7963 = vmatmul.msk.bf16.vlgmr.msrb.gmra.mxu0 %vm1607_vm5, %v16262_v38  ;;  %v16267_v38 = vld [vmem:[#allocation123_spill] sm:$0xff] }
 0xa21   : > { %v6753_v22 = vpop.f32.mrf.mxu1  ;;  %v16268_v50 = vpack.c.bf16 %v16266_v31, %v16267_v38 }
 0xa25   : > { %v6089_v8 = vpop.f32.mrf.mxu0 }
 0xa26   : > { %v6309_v13 = vpop.f32.mrf.mxu3  ;;  %v6144_v15 = vadd.f32 %v6089_v8, %v16263_v14  ;;  %v16269_v14 = vld [vmem:[#allocation160_spill] sm:$0xff] }
 0xa27   : > { %v6365_v34 = vadd.f32 %v6309_v13, %v6143_v59  ;;  %v6531_v53 = vpop.f32.mrf.mxu2 }
 0xa29   : > { %v6587_v63 = vadd.f32 %v6531_v53, %v6365_v34  ;;  %v6755_v60 = vpop.f32.mrf.mxu1 }
 0xa2b   : > { %v13702_v58 = vadd.f32 %v6753_v22, %v6587_v63 }
 0xa2d   : > { %16264 = vst [vmem:[#allocation333_spill] sm:$0xff] %v13702_v58  ;;  %v6092_v42 = vpop.f32.mrf.mxu0 }
 0xa2e   : > { %v6311_v56 = vpop.f32.mrf.mxu3  ;;  %v6145_v49 = vadd.f32 %v6092_v42, %v16265_v23 }
 0xa2f   : > { %v6366_v4 = vadd.f32 %v6311_v56, %v6144_v15  ;;  %v6533_v36 = vpop.f32.mrf.mxu2 }
 0xa30   : > { %7964 = vmatmul.msk.bf16.gmra.mxu0 %vm1607_vm5, %v16268_v50 }
 0xa31   : > { %v6588_v52 = vadd.f32 %v6533_v36, %v6366_v4  ;;  %v6758_v9 = vpop.f32.mrf.mxu1 }
 0xa33   : > { %v13709_v8 = vadd.f32 %v6755_v60, %v6588_v52  ;;  %v16270_v52 = vld [vmem:[#allocation268_spill] sm:$0xff]  ;;  %v16271_v60 = vld [vmem:[#allocation155_spill] sm:$0xff] }
 0xa34   : > { %v16272_v38 = vpack.c.bf16 %v16270_v52, %v16271_v60  ;;  %v16273_v60 = vld [vmem:[#allocation287_spill] sm:$0xff] }
 0xa35   : > { %v6094_v59 = vpop.f32.mrf.mxu0 }
 0xa36   : > { %v6314_v13 = vpop.f32.mrf.mxu3  ;;  %v6146_v22 = vadd.f32 %v6094_v59, %v16269_v14 }
 0xa37   : > { %v6367_v34 = vadd.f32 %v6314_v13, %v6145_v49  ;;  %v6536_v53 = vpop.f32.mrf.mxu2 }
 0xa39   : > { %v6589_v63 = vadd.f32 %v6536_v53, %v6367_v34  ;;  %v6760_v58 = vpop.f32.mrf.mxu1 }
 0xa3b   : > { %v13712_v42 = vadd.f32 %v6758_v9, %v6589_v63 }
 0xa3d   : > { %v6097_v15 = vpop.f32.mrf.mxu0 }
 0xa3e   : > { %v6316_v4 = vpop.f32.mrf.mxu3  ;;  %v6147_v36 = vadd.f32 %v6097_v15, %v13370_v6 }
 0xa3f   : > { %v6368_v56 = vadd.f32 %v6316_v4, %v6146_v22  ;;  %v6538_v23 = vpop.f32.mrf.mxu2 }
 0xa40   : > { %7965 = vmatmul.msk.bf16.gmra.mxu0 %vm1607_vm5, %v16272_v38 }
 0xa41   : > { %v6590_v31 = vadd.f32 %v6538_v23, %v6368_v56  ;;  %v6763_v50 = vpop.f32.mrf.mxu1 }
 0xa43   : > { %v13719_v59 = vadd.f32 %v6760_v58, %v6590_v31  ;;  %v16274_v58 = vld [vmem:[#allocation298_spill] sm:$0xff] }
 0xa44   : > { %v16275_v31 = vpack.c.bf16 %v16273_v60, %v16274_v58 }
 0xa45   : > { %v6099_v49 = vpop.f32.mrf.mxu0 }
 0xa46   : > { %v6319_v13 = vpop.f32.mrf.mxu3  ;;  %v6148_v9 = vadd.f32 %v6099_v49, %v13384_v16 }
 0xa47   : > { %v6369_v14 = vadd.f32 %v6319_v13, %v6147_v36  ;;  %v6541_v34 = vpop.f32.mrf.mxu2 }
 0xa49   : > { %v6591_v53 = vadd.f32 %v6541_v34, %v6369_v14  ;;  %v6765_v63 = vpop.f32.mrf.mxu1 }
 0xa4b   : > { %v13722_v6 = vadd.f32 %v6763_v50, %v6591_v53 }
 0xa4d   : > { %v6102_v22 = vpop.f32.mrf.mxu0 }
 0xa4e   : > { %v6321_v15 = vpop.f32.mrf.mxu3  ;;  %v6149_v4 = vadd.f32 %v6102_v22, %v13390_v54 }
 0xa4f   : > { %v6370_v56 = vadd.f32 %v6321_v15, %v6148_v9  ;;  %v6543_v23 = vpop.f32.mrf.mxu2 }
 0xa50   : > { %7966 = vmatmul.msk.bf16.gmra.mxu0 %vm1607_vm5, %v16275_v31 }
 0xa51   : > { %v6592_v52 = vadd.f32 %v6543_v23, %v6370_v56  ;;  %v6768_v16 = vpop.f32.mrf.mxu1 }
 0xa53   : > { %v13729_v38 = vadd.f32 %v6765_v63, %v6592_v52  ;;  %v16276_v63 = vld [vmem:[#allocation280_spill] sm:$0xff]  ;;  %v16277_v52 = vld [vmem:[#allocation182_spill] sm:$0xff] }
 0xa54   : > { %v16278_v58 = vpack.c.bf16 %v16276_v63, %v16277_v52  ;;  %v16283_v63 = vld [vmem:[#allocation57_spill] sm:$0xff] }
 0xa55   : > { %v6104_v36 = vpop.f32.mrf.mxu0 }
 0xa56   : > { %v6324_v49 = vpop.f32.mrf.mxu3  ;;  %v6150_v50 = vadd.f32 %v6104_v36, %v13404_v45 }
 0xa57   : > { %v6371_v13 = vadd.f32 %v6324_v49, %v6149_v4  ;;  %v6546_v14 = vpop.f32.mrf.mxu2 }
 0xa59   : > { %v6593_v34 = vadd.f32 %v6546_v14, %v6371_v13  ;;  %v6770_v23 = vpop.f32.mrf.mxu1 }
 0xa5b   : > { %v13732_v53 = vadd.f32 %v6768_v16, %v6593_v34 }
 0xa5d   : > { %v6107_v54 = vpop.f32.mrf.mxu0 }
 0xa5e   : > { %v6326_v9 = vpop.f32.mrf.mxu3  ;;  %v6151_v22 = vadd.f32 %v6107_v54, %v13410_v12  ;;  %v16279_v54 = vld [vmem:[#allocation158_spill] sm:$0xff] }
 0xa5f   : > { %v6372_v15 = vadd.f32 %v6326_v9, %v6150_v50  ;;  %v6548_v56 = vpop.f32.mrf.mxu2  ;;  %v16280_v9 = vld [vmem:[#allocation56_spill] sm:$0xff] }
 0xa60   : > { %7967 = vmatmul.msk.bf16.gmra.mxu0 %vm1607_vm5, %v16278_v58 }
 0xa61   : > { %v6594_v60 = vadd.f32 %v6548_v56, %v6372_v15  ;;  %v6773_v12 = vpop.f32.mrf.mxu1  ;;  %v16281_v15 = vpack.c.bf16 %v16279_v54, %v16280_v9  ;;  %v16288_v54 = vld [vmem:[#allocation203_spill] sm:$0xff] }
 0xa63   : > { %v13739_v31 = vadd.f32 %v6770_v23, %v6594_v60  ;;  %v16282_v60 = vld [vmem:[#allocation82_spill] sm:$0xff] }
 0xa64   : > { %v16284_v52 = vpack.c.bf16 %v16282_v60, %v16283_v63  ;;  %v16291_v60 = vld [vmem:[#allocation242_spill] sm:$0xff] }
 0xa65   : > { %v6109_v45 = vpop.f32.mrf.mxu0 }
 0xa66   : > { %v6329_v4 = vpop.f32.mrf.mxu3  ;;  %v13742_v16 = vadd.f32 %v6109_v45, %v13424_v3 }
 0xa67   : > { %v6373_v36 = vadd.f32 %v6329_v4, %v6151_v22  ;;  %v6551_v49 = vpop.f32.mrf.mxu2 }
 0xa69   : > { %v6595_v13 = vadd.f32 %v6551_v49, %v6373_v36  ;;  %v16285_v36 = vld [vmem:[#allocation214_spill] sm:$0xff] }
 0xa6b   : > { %v13744_v50 = vadd.f32 %v6773_v12, %v6595_v13 }
 0xa6d   : > { %v6112_v14 = vpop.f32.mrf.mxu0 }
 0xa6e   : > { %v13747_v34 = vadd.f32 %v6112_v14, %v13430_v48 }
 0xa70   : > { %7968 = vmatmul.msk.bf16.gmra.mxu0 %vm1607_vm5, %v16281_v15 }
 0xa75   : > { %v6114_v56 = vpop.f32.mrf.mxu0 }
 0xa76   : > { %v13754_v23 = vadd.f32 %v6114_v56, %v13444_v2  ;;  %v16286_v2 = vld [vmem:[#allocation23_spill] sm:$0xff] }
 0xa77   : > { %v16287_v49 = vpack.c.bf16 %v16285_v36, %v16286_v2  ;;  %v16294_v36 = vld [vmem:[#allocation271_spill] sm:$0xff] }
 0xa7d   : > { %v6117_v3 = vpop.f32.mrf.mxu0 }
 0xa7e   : > { %v13757_v22 = vadd.f32 %v6117_v3, %v13450_v19 }
 0xa80   : > { %7969 = vmatmul.msk.bf16.gmra.mxu0 %vm1607_vm5, %v16284_v52 }
 0xa85   : > { %v6119_v48 = vpop.f32.mrf.mxu0 }
 0xa86   : > { %v13764_v58 = vadd.f32 %v6119_v48, %v13464_v40  ;;  %v16289_v40 = vld [vmem:[#allocation224_spill] sm:$0xff] }
 0xa87   : > { %v16290_v9 = vpack.c.bf16 %v16288_v54, %v16289_v40  ;;  %v16297_v54 = vld [vmem:[#allocation97_spill] sm:$0xff]  ;;  %v16298_v40 = vld [vmem:[#allocation98_spill] sm:$0xff] }
 0xa8d   : > { %v6122_v45 = vpop.f32.mrf.mxu0 }
 0xa8e   : > { %v13767_v4 = vadd.f32 %v6122_v45, %v13470_v51 }
 0xa90   : > { %7970 = vmatmul.msk.bf16.gmra.mxu0 %vm1607_vm5, %v16287_v49 }
 0xa95   : > { %v6124_v19 = vpop.f32.mrf.mxu0 }
 0xa96   : > { %v13774_v13 = vadd.f32 %v6124_v19, %v13485_v25  ;;  %v16292_v25 = vld [vmem:[#allocation244_spill] sm:$0xff] }
 0xa97   : > { %v16293_v63 = vpack.c.bf16 %v16291_v60, %v16292_v25  ;;  %v16300_v60 = vld [vmem:[#allocation312_spill] sm:$0xff]  ;;  %v16301_v25 = vld [vmem:[#allocation306_spill] sm:$0xff] }
 0xa9d   : > { %v6935_v12 = vpop.f32.mrf.mxu0 }
 0xa9e   : > { %v13777_v14 = vadd.f32 %v6935_v12, %v13492_v33 }
 0xaa0   : > { %7971 = vmatmul.msk.bf16.gmra.mxu0 %vm1607_vm5, %v16290_v9  ;;  %v16299_v9 = vpack.c.bf16 %v16297_v54, %v16298_v40  ;;  %v6364_v54 = vadd.f32 %v13692_v47, %v13686_v0  ;;  %v6360_v0 = vadd.f32 %v13624_v57, %v13618_v29 }
 0xaa5   : > { %v6937_v51 = vpop.f32.mrf.mxu0 }
 0xaa6   : > { %v13784_v15 = vadd.f32 %v6937_v51, %v13507_v41  ;;  %v16295_v41 = vld [vmem:[#allocation267_spill] sm:$0xff] }
 0xaa7   : > { %v16296_v2 = vpack.c.bf16 %v16294_v36, %v16295_v41 }
 0xaad   : > { %v6940_v56 = vpop.f32.mrf.mxu0 }
 0xaae   : > { %v13787_v3 = vadd.f32 %v6940_v56, %v13514_v28 }
 0xab0   : > { %7972 = vmatmul.msk.bf16.gmra.mxu0 %vm1607_vm5, %v16293_v63  ;;  %v16302_v63 = vpack.c.bf16 %v16300_v60, %v16301_v25  ;;  %v16309_v60 = vld [vmem:[#allocation127_spill] sm:$0xff]  ;;  %v16310_v25 = vld [vmem:[#allocation313_spill] sm:$0xff] }
 0xab5   : > { %v6942_v33 = vpop.f32.mrf.mxu0 }
 0xab6   : > { %v13794_v52 = vadd.f32 %v6942_v33, %v13529_v1 }
 0xabd   : > { %v6945_v48 = vpop.f32.mrf.mxu0 }
 0xabe   : > { %v13797_v45 = vadd.f32 %v6945_v48, %v13536_v24  ;;  %v16303_v48 = vld [vmem:[#allocation325_spill] sm:$0xff] }
 0xac0   : > { %7973 = vmatmul.msk.bf16.gmra.mxu0 %vm1607_vm5, %v16296_v2 }
 0xac5   : > { %v6947_v28 = vpop.f32.mrf.mxu0 }
 0xac6   : > { %v7020_v49 = vadd.f32 %v6947_v28, %v13551_v43  ;;  %v16306_v28 = vld [vmem:[#allocation207_spill] sm:$0xff] }
 0xacd   : > { %v6950_v19 = vpop.f32.mrf.mxu0 }
 0xace   : > { %v7021_v12 = vadd.f32 %v6950_v19, %v13558_v44  ;;  %v16304_v44 = vld [vmem:[#allocation329_spill] sm:$0xff] }
 0xacf   : > { %v16305_v36 = vpack.c.bf16 %v16303_v48, %v16304_v44  ;;  %v16307_v19 = vld [vmem:[#allocation197_spill] sm:$0xff]  ;;  %v6361_v48 = vadd.f32 %v13649_v26, %v13627_v20  ;;  %v6358_v20 = vadd.f32 %v13590_v61, %v13584_v46  ;;  %v6582_v26 = vadd.f32 %v13629_v18, %v6360_v0  ;;  %v16317_v46 = vld [vmem:[#allocation220_spill] sm:$0xff] }
 0xad0   : > { %7974 = vmatmul.msk.bf16.gmra.mxu0 %vm1607_vm5, %v16299_v9  ;;  %v6363_v9 = vadd.f32 %v13683_v39, %v13661_v7 }
 0xad1   : > { %v6583_v47 = vadd.f32 %v13654_v30, %v6361_v48  ;;  %v16316_v30 = vld [vmem:[#allocation135_spill] sm:$0xff] }
 0xad2   : > { %v6585_v44 = vadd.f32 %v13688_v32, %v6363_v9  ;;  %v16312_v32 = vld [vmem:[#allocation226_spill] sm:$0xff] }
 0xad5   : > { %v6952_v1 = vpop.f32.mrf.mxu0 }
 0xad6   : > { %v7022_v24 = vadd.f32 %v6952_v1, %v13577_v10  ;;  %v16308_v10 = vpack.c.bf16 %v16306_v28, %v16307_v19  ;;  %v6362_v1 = vadd.f32 %v13658_v21, %v13652_v11  ;;  %v6359_v21 = vadd.f32 %v13615_v5, %v13593_v35  ;;  %v16314_v28 = vld [vmem:[#allocation134_spill] sm:$0xff] }
 0xad7   : > { %v6805_v19 = vadd.f32 %v16314_v28, %v6583_v47  ;;  %v16315_v35 = vld [vmem:[#allocation210_spill] sm:$0xff] }
 0xad8   : > { %v6584_v7 = vadd.f32 %v13663_v37, %v6362_v1  ;;  %v16313_v37 = vld [vmem:[#allocation221_spill] sm:$0xff]  ;;  %v6580_v5 = vadd.f32 %v16315_v35, %v6358_v20 }
 0xad9   : > { %v16318_v1 = vld [vmem:[#allocation333_spill] sm:$0xff] }
 0xada   : > { %v6806_v29 = vadd.f32 %v16312_v32, %v6584_v7  ;;  %v8124_v7 = vld [vmem:[%s14085_s14 + $0x40] sm:$0xff] }
 0xadb   : > { %v8126_v20 = vld [vmem:[%s14085_s14 + $0x60] sm:$0xff] }
 0xadd   : > { %v6955_v51 = vpop.f32.mrf.mxu0 }
 0xade   : > { %v7023_v56 = vadd.f32 %v6955_v51, %v13588_v17  ;;  %v6586_v51 = vadd.f32 %v13695_v27, %v6364_v54  ;;  %v6807_v27 = vadd.f32 %v13669_v55, %v6585_v44  ;;  %v6804_v55 = vadd.f32 %v16316_v30, %v6582_v26  ;;  %v13893_v44 = vpop.f32.mrf.mxu1 }
 0xae0   : > { %7975 = vmatmul.msk.bf16.gmra.mxu0 %vm1607_vm5, %v16302_v63  ;;  %v16311_v63 = vpack.c.bf16 %v16309_v60, %v16310_v25  ;;  %v6808_v39 = vadd.f32 %v13690_v62, %v6586_v51  ;;  %v6581_v62 = vadd.f32 %v16313_v37, %v6359_v21  ;;  %v8125_v21 = vld [vmem:[%s14085_s14 + $0x50] sm:$0xff] }
 0xae2   : > { %v6803_v61 = vadd.f32 %v16317_v46, %v6581_v62 }
 0xae5   : > { %v6957_v43 = vpop.f32.mrf.mxu0 }
 0xae6   : > { %v6778_v47 = vpop.f32.mrf.mxu1 }
 0xaed   : > { %v6960_v33 = vpop.f32.mrf.mxu0 }
 0xaee   : > { %v7025_v25 = vadd.f32 %v6960_v33, %v6803_v61  ;;  %v6780_v26 = vpop.f32.mrf.mxu1 }
 0xaf0   : > { %7976 = vmatmul.msk.bf16.gmra.mxu0 %vm1607_vm5, %v16305_v36 }
 0xaf5   : > { %v6962_v41 = vpop.f32.mrf.mxu0 }
 0xaf6   : > { %v7026_v18 = vadd.f32 %v6962_v41, %v6804_v55  ;;  %v6783_v37 = vpop.f32.mrf.mxu1 }
 0xafd   : > { %v6965_v2 = vpop.f32.mrf.mxu0 }
 0xafe   : > { %v7027_v54 = vadd.f32 %v6965_v2, %v6805_v19  ;;  %v6785_v35 = vpop.f32.mrf.mxu1 }
 0xb00   : > { %7977 = vmatmul.msk.bf16.gmra.mxu0 %vm1607_vm5, %v16308_v10 }
 0xb05   : > { %v6967_v17 = vpop.f32.mrf.mxu0 }
 0xb06   : > { %v7028_v10 = vadd.f32 %v6967_v17, %v6806_v29 }
 0xb0d   : > { %v6970_v40 = vpop.f32.mrf.mxu0 }
 0xb0e   : > { %v7029_v57 = vadd.f32 %v6970_v40, %v6807_v27  ;;  %v16319_v40 = vld [vmem:[#allocation121_spill] sm:$0xff] }
 0xb0f   : > { %v6802_v60 = vadd.f32 %v16319_v40, %v6580_v5 }
 0xb10   : > { %7978 = vmatmul.msk.bf16.gmra.mxu0 %vm1607_vm5, %v16311_v63 }
 0xb11   : > { %v7024_v17 = vadd.f32 %v6957_v43, %v6802_v60 }
 0xb15   : > { %v6972_v11 = vpop.f32.mrf.mxu0 }
 0xb16   : > { %v7030_v36 = vadd.f32 %v6972_v11, %v6808_v39 }
 0xb18   : > { %7047 = vmatpush.msrb.mxu3 %v7030_v36 }
 0xb1a   : > { %7048 = vmatpush.msrb.mxu3 %v7029_v57 }
 0xb1c   : > { %7049 = vmatpush.msrb.mxu3 %v7028_v10 }
 0xb1d   : > { %v6975_v9 = vpop.f32.mrf.mxu0 }
 0xb1e   : > { %v13855_v51 = vadd.f32 %v6975_v9, %v16318_v1  ;;  %7050 = vmatpush.msrb.mxu3 %v7027_v54  ;;  %v6788_v54 = vpop.f32.mrf.mxu1 }
 0xb20   : > { %7051 = vmatpush.msrb.mxu3 %v7026_v18 }
 0xb22   : > { %7052 = vmatpush.msrb.mxu3 %v7025_v25 }
 0xb24   : > { %7053 = vmatpush.msrb.mxu3 %v7024_v17 }
 0xb25   : > { %v6977_v63 = vpop.f32.mrf.mxu0 }
 0xb26   : > { %v13859_v48 = vadd.f32 %v6977_v63, %v13709_v8  ;;  %7054 = vmatpush.msrb.mxu3 %v7023_v56  ;;  %v6553_v56 = vpop.f32.mrf.mxu2  ;;  %v6790_v63 = vpop.f32.mrf.mxu1 }
 0xb28   : > { %7055 = vmatpush.msrb.mxu3 %v7022_v24 }
 0xb2a   : > { %7056 = vmatpush.msrb.mxu3 %v7021_v12 }
 0xb2c   : > { %7057 = vmatpush.msrb.mxu3 %v7020_v49  ;;  %v8120_v49 = vld [vmem:[%s14085_s14] sm:$0xff] }
 0xb2d   : > { %v6980_v41 = vpop.f32.mrf.mxu0 }
 0xb2e   : > { %v13862_v2 = vadd.f32 %v6980_v41, %v13712_v42  ;;  %7058 = vmatpush.msrb.mxu3 %v13797_v45 }
 0xb30   : > { %7059 = vmatpush.msrb.mxu3 %v13794_v52  ;;  %v6331_v52 = vpop.f32.mrf.mxu3 }
 0xb32   : > { %7060 = vmatpush.msrb.mxu3 %v13787_v3  ;;  %v8121_v3 = vld [vmem:[%s14085_s14 + $0x10] sm:$0xff] }
 0xb34   : > { %7061 = vmatpush.msrb.mxu3 %v13784_v15 }
 0xb35   : > { %v6982_v43 = vpop.f32.mrf.mxu0 }
 0xb36   : > { %v13869_v8 = vadd.f32 %v6982_v43, %v13719_v59  ;;  %7062 = vmatpush.msrb.mxu3 %v13777_v14  ;;  %v8122_v14 = vld [vmem:[%s14085_s14 + $0x20] sm:$0xff] }
 0xb37   : > { %7063 = vmatmul.f32.vlgmr.msrb.gmra.mxu3 %v8120_v49 }
 0xb38   : > { %v6334_v0 = vpop.f32.mrf.mxu3 }
 0xb3d   : > { %v6985_v42 = vpop.f32.mrf.mxu0 }
 0xb3e   : > { %v13876_v45 = vadd.f32 %v6985_v42, %v13722_v6  ;;  %v8123_v6 = vld [vmem:[%s14085_s14 + $0x30] sm:$0xff] }
 0xb3f   : > { %7066 = vmatmul.f32.gmra.mxu3 %v8121_v3  ;;  %v6375_v3 = vadd.f32 %v6334_v0, %v13747_v34 }
 0xb40   : > { %v6336_v27 = vpop.f32.mrf.mxu3 }
 0xb41   : > { %v6376_v41 = vadd.f32 %v6336_v27, %v13754_v23 }
 0xb45   : > { %v6987_v15 = vpop.f32.mrf.mxu0 }
 0xb46   : > { %v13882_v59 = vadd.f32 %v6987_v15, %v13729_v38 }
 0xb47   : > { %7069 = vmatmul.f32.gmra.mxu3 %v8122_v14 }
 0xb48   : > { %v6339_v32 = vpop.f32.mrf.mxu3 }
 0xb49   : > { %v6377_v25 = vadd.f32 %v6339_v32, %v13757_v22  ;;  %v8082_v32 = vld [vmem:[%s14077_s6 + $0x1] ss:$0 sm:$0xff] }
 0xb4d   : > { %v6990_v12 = vpop.f32.mrf.mxu0 }
 0xb4e   : > { %v13888_v24 = vadd.f32 %v6990_v12, %v13732_v53  ;;  %v6556_v53 = vpop.f32.mrf.mxu2 }
 0xb4f   : > { %7072 = vmatmul.f32.gmra.mxu3 %v8123_v6 }
 0xb50   : > { %v6341_v62 = vpop.f32.mrf.mxu3 }
 0xb51   : > { %v6378_v40 = vadd.f32 %v6341_v62, %v13764_v58 }
 0xb55   : > { %v6992_v33 = vpop.f32.mrf.mxu0 }
 0xb56   : > { %v13896_v38 = vadd.f32 %v6992_v33, %v13739_v31  ;;  %v6558_v36 = vpop.f32.mrf.mxu2  ;;  %v6597_v33 = vadd.f32 %v6556_v53, %v6375_v3 }
 0xb57   : > { %7075 = vmatmul.f32.gmra.mxu3 %v8124_v7  ;;  %v6598_v12 = vadd.f32 %v6558_v36, %v6376_v41 }
 0xb58   : > { %v6344_v5 = vpop.f32.mrf.mxu3  ;;  %v6819_v27 = vadd.f32 %v6778_v47, %v6597_v33 }
 0xb59   : > { %v6379_v18 = vadd.f32 %v6344_v5, %v13767_v4  ;;  %v6374_v4 = vadd.f32 %v6331_v52, %v13742_v16  ;;  %v6820_v23 = vadd.f32 %v6780_v26, %v6598_v12  ;;  %v8128_v52 = vld [vmem:[%s14085_s14 + $0x8] sm:$0xff] }
 0xb5d   : > { %v6995_v39 = vpop.f32.mrf.mxu0 }
 0xb5e   : > { %v13902_v11 = vadd.f32 %v6995_v39, %v13744_v50  ;;  %v8127_v50 = vld [vmem:[%s14085_s14 + $0x70] sm:$0xff]  ;;  %v6561_v57 = vpop.f32.mrf.mxu2  ;;  %v6596_v39 = vadd.f32 %v6553_v56, %v6374_v4 }
 0xb5f   : > { %7078 = vmatmul.f32.gmra.mxu3 %v8125_v21  ;;  %v6599_v15 = vadd.f32 %v6561_v57, %v6377_v25 }
 0xb60   : > { %v6346_v9 = vpop.f32.mrf.mxu3  ;;  %v6818_v34 = vadd.f32 %v13893_v44, %v6596_v39  ;;  %v7981_v44 = vld [vmem:[%s14078_s7 + $0x2] sm:$0x3] }
 0xb61   : > { %v6380_v46 = vadd.f32 %v6346_v9, %v13774_v13  ;;  %v6821_v22 = vadd.f32 %v6783_v37, %v6599_v15 }
 0xb65   : > { %v6997_v31 = vpop.f32.mrf.mxu0 }
 0xb66   : > { %v6563_v19 = vpop.f32.mrf.mxu2  ;;  %v7040_v16 = vadd.f32 %v6997_v31, %v6818_v34  ;;  %v8081_v31 = vld [vmem:[%s14076_s5 + $0x1] ss:$0 sm:$0xff] }
 0xb67   : > { %7081 = vmatmul.f32.gmra.mxu3 %v8126_v20  ;;  %v6600_v43 = vadd.f32 %v6563_v19, %v6378_v40 }
 0xb69   : > { %v6822_v6 = vadd.f32 %v6785_v35, %v6600_v43 }
 0xb6d   : > { %v7000_v29 = vpop.f32.mrf.mxu0 }
 0xb6e   : > { %v6566_v30 = vpop.f32.mrf.mxu2  ;;  %v7041_v0 = vadd.f32 %v7000_v29, %v6819_v27 }
 0xb6f   : > { %7084 = vmatmul.f32.gmra.mxu3 %v8127_v50  ;;  %v6601_v17 = vadd.f32 %v6566_v30, %v6379_v18 }
 0xb71   : > { %v6823_v13 = vadd.f32 %v6788_v54, %v6601_v17 }
 0xb75   : > { %v7002_v28 = vpop.f32.mrf.mxu0 }
 0xb76   : > { %v6568_v1 = vpop.f32.mrf.mxu2  ;;  %v7042_v20 = vadd.f32 %v7002_v28, %v6820_v23 }
 0xb77   : > { %v6602_v60 = vadd.f32 %v6568_v1, %v6380_v46 }
 0xb79   : > { %v6824_v49 = vadd.f32 %v6790_v63, %v6602_v60 }
 0xb7d   : > { %v7005_v10 = vpop.f32.mrf.mxu0 }
 0xb7e   : > { %v7043_v21 = vadd.f32 %v7005_v10, %v6821_v22 }
 0xb85   : > { %v7007_v55 = vpop.f32.mrf.mxu0 }
 0xb86   : > { %v7044_v7 = vadd.f32 %v7007_v55, %v6822_v6 }
 0xb8d   : > { %v7010_v61 = vpop.f32.mrf.mxu0 }
 0xb8e   : > { %v7045_v58 = vadd.f32 %v7010_v61, %v6823_v13 }
 0xb95   : > { %v7012_v42 = vpop.f32.mrf.mxu0 }
 0xb96   : > { %v7046_v14 = vadd.f32 %v7012_v42, %v6824_v49 }
 0xb98   : > { %7088 = vmatpush.msrb.mxu2 %v7046_v14 }
 0xb9a   : > { %7089 = vmatpush.msrb.mxu2 %v7045_v58 }
 0xb9c   : > { %7090 = vmatpush.msrb.mxu2 %v7044_v7 }
 0xb9e   : > { %7091 = vmatpush.msrb.mxu2 %v7043_v21 }
 0xba0   : > { %7092 = vmatpush.msrb.mxu2 %v7042_v20 }
 0xba2   : > { %7093 = vmatpush.msrb.mxu2 %v7041_v0 }
 0xba4   : > { %7094 = vmatpush.msrb.mxu2 %v7040_v16 }
 0xba6   : > { %7095 = vmatpush.msrb.mxu2 %v13902_v11 }
 0xba8   : > { %7096 = vmatpush.msrb.mxu2 %v13896_v38  ;;  %v7182_v38 = vsel %vm1656_vm4, %v7981_v44, 0  ;;  %v16322_v44 = vld [vmem:[#allocation193_spill] sm:$0xff] }
 0xba9   : > { %7191 = vmatpush.bf16.msra.mxu3 %v7182_v38 }
 0xbaa   : > { %7097 = vmatpush.msrb.mxu2 %v13888_v24  ;;  %v8129_v24 = vld [vmem:[%s14085_s14 + $0x18] sm:$0xff] }
 0xbac   : > { %7098 = vmatpush.msrb.mxu2 %v13882_v59  ;;  %v8135_v59 = vld [vmem:[%s14085_s14 + $0x78] sm:$0xff] }
 0xbae   : > { %7099 = vmatpush.msrb.mxu2 %v13876_v45  ;;  %v8134_v45 = vld [vmem:[%s14085_s14 + $0x68] sm:$0xff] }
 0xbb0   : > { %7100 = vmatpush.msrb.mxu2 %v13869_v8  ;;  %v8130_v8 = vld [vmem:[%s14085_s14 + $0x28] sm:$0xff] }
 0xbb2   : > { %7101 = vmatpush.msrb.mxu2 %v13862_v2  ;;  %v8133_v2 = vld [vmem:[%s14085_s14 + $0x58] sm:$0xff] }
 0xbb4   : > { %7102 = vmatpush.msrb.mxu2 %v13859_v48  ;;  %v8131_v48 = vld [vmem:[%s14085_s14 + $0x38] sm:$0xff] }
 0xbb6   : > { %7103 = vmatpush.msrb.mxu2 %v13855_v51  ;;  %v8132_v51 = vld [vmem:[%s14085_s14 + $0x48] sm:$0xff] }
 0xbb7   : > { %7104 = vmatmul.f32.vlgmr.msrb.gmra.mxu2 %v8128_v52 }
 0xbba   : > { %v7064_v56 = vpop.f32.mrf.mxu3 }
 0xbbf   : > { %7107 = vmatmul.f32.gmra.mxu2 %v8129_v24  ;;  %v13972_v24 = vld [vmem:[%s14079_s8] ss:$0 sm:$0xff] }
 0xbc0   : > { %v4802_v38 = vmul.f32 %v13972_v24, %v16322_v44 }
 0xbc2   : > { %v7067_v53 = vpop.f32.mrf.mxu3 }
 0xbc7   : > { %7110 = vmatmul.f32.gmra.mxu2 %v8130_v8 }
 0xbca   : > { %v7070_v36 = vpop.f32.mrf.mxu3 }
 0xbcf   : > { %7113 = vmatmul.f32.gmra.mxu2 %v8131_v48  ;;  %v13978_v48 = vld [vmem:[%s14080_s9] ss:$0 sm:$0xff] }
 0xbd2   : > { %v7073_v28 = vpop.f32.mrf.mxu3 }
 0xbd7   : > { %7116 = vmatmul.f32.gmra.mxu2 %v8132_v51  ;;  %v8137_v51 = vld [vmem:[%s14082_s11] ss:$0 sm:$0xff] }
 0xbda   : > { %v7076_v9 = vpop.f32.mrf.mxu3 }
 0xbdf   : > { %7119 = vmatmul.f32.gmra.mxu2 %v8133_v2  ;;  %v16320_v2 = vld [vmem:[#allocation209_spill] sm:$0xff] }
 0xbe2   : > { %v7079_v63 = vpop.f32.mrf.mxu3 }
 0xbe7   : > { %7122 = vmatmul.f32.gmra.mxu2 %v8134_v45  ;;  %v712_v45 = vmul.f32 %v8137_v51, %v16320_v2 }
 0xbea   : > { %v7082_v13 = vpop.f32.mrf.mxu3 }
 0xbef   : > { %7125 = vmatmul.f32.gmra.mxu2 %v8135_v59  ;;  %v16321_v59 = vld [vmem:[#allocation308_spill] sm:$0xff] }
 0xbf2   : > { %v7085_v22 = vpop.f32.mrf.mxu3 }
 0xc3a   : > { %v7105_v11 = vpop.f32.mrf.mxu2 }
 0xc3b   : > { %v7106_v47 = vadd.f32 %v7105_v11, %v7064_v56  ;;  %v8138_v11 = vld [vmem:[%s14083_s12] ss:$0 sm:$0xff] }
 0xc3d   : > { %v7134_v26 = vmul.f32 %v8081_v31, %v7106_v47  ;;  %v724_v47 = vadd.f32 %v8138_v11, %v712_v45 }
 0xc3f   : > { %v7147_v57 = vadd.f32 %v8082_v32, %v7134_v26  ;;  %v4810_v26 = vadd.f32 %v4802_v38, %v724_v47 }
 0xc41   : > { %v7155_v19 = vmax.f32 %v7147_v57, 0.0 }
 0xc42   : > { %v7108_v29 = vpop.f32.mrf.mxu2 }
 0xc43   : > { %v7109_v50 = vadd.f32 %v7108_v29, %v7067_v53 }
 0xc45   : > { %v7135_v37 = vmul.f32 %v8081_v31, %v7109_v50 }
 0xc47   : > { %v7148_v62 = vadd.f32 %v8082_v32, %v7135_v37 }
 0xc49   : > { %v7156_v10 = vmax.f32 %v7148_v62, 0.0 }
 0xc4a   : > { %v7111_v35 = vpop.f32.mrf.mxu2 }
 0xc4b   : > { %v7163_v5 = vpack.c.bf16 %v7156_v10, %v7155_v19  ;;  %v7112_v30 = vadd.f32 %v7111_v35, %v7070_v36  ;;  %v16324_v10 = vld [vmem:[#allocation186_spill] sm:$0xff] }
 0xc4d   : > { %7982 = vmatmul.msk.bf16.vlgmr.msra.gmra.mxu3 %vm1607_vm5, %v7163_v5  ;;  %v7136_v55 = vmul.f32 %v8081_v31, %v7112_v30  ;;  %v16325_v5 = vld [vmem:[#allocation191_spill] sm:$0xff] }
 0xc4e   : > { %v4804_v30 = vmul.f32 %v13972_v24, %v16325_v5 }
 0xc4f   : > { %v7149_v61 = vadd.f32 %v8082_v32, %v7136_v55 }
 0xc51   : > { %v7157_v40 = vmax.f32 %v7149_v61, 0.0 }
 0xc52   : > { %v7114_v54 = vpop.f32.mrf.mxu2 }
 0xc53   : > { %v7115_v46 = vadd.f32 %v7114_v54, %v7073_v28  ;;  %v16323_v28 = vld [vmem:[#allocation223_spill] sm:$0xff] }
 0xc54   : > { %v714_v19 = vmul.f32 %v8137_v51, %v16323_v28 }
 0xc55   : > { %v7137_v18 = vmul.f32 %v8081_v31, %v7115_v46 }
 0xc56   : > { %v726_v54 = vadd.f32 %v8138_v11, %v714_v19 }
 0xc57   : > { %v7150_v1 = vadd.f32 %v8082_v32, %v7137_v18 }
 0xc58   : > { %v4812_v61 = vadd.f32 %v4804_v30, %v726_v54 }
 0xc59   : > { %v7158_v60 = vmax.f32 %v7150_v1, 0.0 }
 0xc5a   : > { %v7117_v25 = vpop.f32.mrf.mxu2 }
 0xc5b   : > { %v7164_v17 = vpack.c.bf16 %v7158_v60, %v7157_v40  ;;  %v7118_v41 = vadd.f32 %v7117_v25, %v7076_v9 }
 0xc5d   : > { %7983 = vmatmul.msk.bf16.gmra.mxu3 %vm1607_vm5, %v7164_v17  ;;  %v7138_v43 = vmul.f32 %v8081_v31, %v7118_v41 }
 0xc5f   : > { %v7151_v3 = vadd.f32 %v8082_v32, %v7138_v43  ;;  %v16327_v43 = vld [vmem:[#allocation59_spill] sm:$0xff] }
 0xc61   : > { %v7159_v4 = vmax.f32 %v7151_v3, 0.0 }
 0xc62   : > { %v7120_v49 = vpop.f32.mrf.mxu2 }
 0xc63   : > { %v7121_v42 = vadd.f32 %v7120_v49, %v7079_v63  ;;  %v16326_v63 = vld [vmem:[#allocation235_spill] sm:$0xff] }
 0xc64   : > { %v716_v41 = vmul.f32 %v8137_v51, %v16326_v63 }
 0xc65   : > { %v7139_v15 = vmul.f32 %v8081_v31, %v7121_v42  ;;  %v16328_v42 = vld [vmem:[#allocation151_spill] sm:$0xff] }
 0xc66   : > { %v4806_v3 = vmul.f32 %v13972_v24, %v16328_v42 }
 0xc67   : > { %v7152_v14 = vadd.f32 %v8082_v32, %v7139_v15 }
 0xc69   : > { %v7160_v12 = vmax.f32 %v7152_v14, 0.0 }
 0xc6a   : > { %v7123_v6 = vpop.f32.mrf.mxu2 }
 0xc6b   : > { %v7165_v58 = vpack.c.bf16 %v7160_v12, %v7159_v4  ;;  %v7124_v33 = vadd.f32 %v7123_v6, %v7082_v13  ;;  %v728_v13 = vadd.f32 %v8138_v11, %v716_v41 }
 0xc6d   : > { %7984 = vmatmul.msk.bf16.gmra.mxu3 %vm1607_vm5, %v7165_v58  ;;  %v7140_v7 = vmul.f32 %v8081_v31, %v7124_v33  ;;  %v4814_v12 = vadd.f32 %v4806_v3, %v728_v13 }
 0xc6f   : > { %v7153_v21 = vadd.f32 %v8082_v32, %v7140_v7 }
 0xc71   : > { %v7161_v34 = vmax.f32 %v7153_v21, 0.0 }
 0xc72   : > { %v7126_v39 = vpop.f32.mrf.mxu2 }
 0xc73   : > { %v7127_v23 = vadd.f32 %v7126_v39, %v7085_v22 }
 0xc75   : > { %v7141_v27 = vmul.f32 %v8081_v31, %v7127_v23  ;;  %v16329_v23 = vld [vmem:[#allocation109_spill] sm:$0xff] }
 0xc76   : > { %v718_v21 = vmul.f32 %v8137_v51, %v16329_v23 }
 0xc77   : > { %v7154_v20 = vadd.f32 %v8082_v32, %v7141_v27  ;;  %v16330_v27 = vld [vmem:[#allocation159_spill] sm:$0xff] }
 0xc79   : > { %v7162_v0 = vmax.f32 %v7154_v20, 0.0 }
 0xc7b   : > { %v7166_v16 = vpack.c.bf16 %v7162_v0, %v7161_v34  ;;  %v16331_v34 = vld [vmem:[#allocation201_spill] sm:$0xff] }
 0xc7c   : > { %v4808_v0 = vmul.f32 %v13972_v24, %v16331_v34 }
 0xc7d   : > { %7985 = vmatmul.msk.bf16.gmra.mxu3 %vm1607_vm5, %v7166_v16 }
 0xcd0   : > { %v7193_v52 = vpop.f32.mrf.mxu3 }
 0xcd1   : > { %v7213_v8 = vmul.f32 %v13972_v24, %v7193_v52  ;;  %v730_v52 = vadd.f32 %v8138_v11, %v718_v21 }
 0xcd3   : > { %v7221_v56 = vadd.f32 %v7213_v8, %v16321_v59  ;;  %v4816_v45 = vadd.f32 %v4808_v0, %v730_v52 }
 0xcd5   : > { %v7233_v53 = vadd.f32 %v13978_v48, %v7221_v56 }
 0xcd7   : > { %v7241_v31 = vmax.f32 %v7233_v53, 0.0 }
 0xcd8   : > { %v7195_v36 = vpop.f32.mrf.mxu3 }
 0xcd9   : > { %7250 = vst.msk [vmem:[%s13993_s16] sm:$0xff] %vm7249_vm6, %v7241_v31  ;;  %v7214_v32 = vmul.f32 %v13972_v24, %v7195_v36 }
 0xcdb   : > { %v7222_v29 = vadd.f32 %v7214_v32, %v4810_v26 }
 0xcdd   : > { %v7234_v50 = vadd.f32 %v13978_v48, %v7222_v29 }
 0xcdf   : > { %v7242_v57 = vmax.f32 %v7234_v50, 0.0 }
 0xce0   : > { %v7198_v37 = vpop.f32.mrf.mxu3 }
 0xce1   : > { %7251 = vst.msk [vmem:[%s13993_s16 + $0x8] sm:$0xff] %vm7249_vm6, %v7242_v57  ;;  %v7215_v62 = vmul.f32 %v13972_v24, %v7198_v37 }
 0xce3   : > { %v7223_v35 = vadd.f32 %v7215_v62, %v16324_v10 }
 0xce5   : > { %v7235_v55 = vadd.f32 %v13978_v48, %v7223_v35 }
 0xce7   : > { %v7243_v9 = vmax.f32 %v7235_v55, 0.0 }
 0xce8   : > { %v7200_v46 = vpop.f32.mrf.mxu3 }
 0xce9   : > { %7252 = vst.msk [vmem:[%s13993_s16 + $0x10] sm:$0xff] %vm7249_vm6, %v7243_v9  ;;  %v7216_v18 = vmul.f32 %v13972_v24, %v7200_v46 }
 0xceb   : > { %v7224_v1 = vadd.f32 %v7216_v18, %v4812_v61 }
 0xced   : > { %v7236_v40 = vadd.f32 %v13978_v48, %v7224_v1 }
 0xcef   : > { %v7244_v60 = vmax.f32 %v7236_v40, 0.0 }
 0xcf0   : > { %v7203_v25 = vpop.f32.mrf.mxu3 }
 0xcf1   : > { %7253 = vst.msk [vmem:[%s13993_s16 + $0x18] sm:$0xff] %vm7249_vm6, %v7244_v60  ;;  %v7217_v17 = vmul.f32 %v13972_v24, %v7203_v25 }
 0xcf3   : > { %v7225_v49 = vadd.f32 %v7217_v17, %v16327_v43 }
 0xcf5   : > { %v7237_v15 = vadd.f32 %v13978_v48, %v7225_v49 }
 0xcf7   : > { %v7245_v14 = vmax.f32 %v7237_v15, 0.0 }
 0xcf8   : > { %v7205_v4 = vpop.f32.mrf.mxu3 }
 0xcf9   : > { %7254 = vst.msk [vmem:[%s13993_s16 + $0x20] sm:$0xff] %vm7249_vm6, %v7245_v14  ;;  %v7218_v6 = vmul.f32 %v13972_v24, %v7205_v4 }
 0xcfb   : > { %v7226_v58 = vadd.f32 %v7218_v6, %v4814_v12 }
 0xcfd   : > { %v7238_v33 = vadd.f32 %v13978_v48, %v7226_v58 }
 0xcff   : > { %v7246_v22 = vmax.f32 %v7238_v33, 0.0 }
 0xd00   : > { %v7208_v7 = vpop.f32.mrf.mxu3 }
 0xd01   : > { %7255 = vst.msk [vmem:[%s13993_s16 + $0x28] sm:$0xff] %vm7249_vm6, %v7246_v22  ;;  %v7219_v39 = vmul.f32 %v13972_v24, %v7208_v7 }
 0xd03   : > { %v7227_v20 = vadd.f32 %v7219_v39, %v16330_v27 }
 0xd05   : > { %v7239_v16 = vadd.f32 %v13978_v48, %v7227_v20 }
 0xd07   : > { %v7247_v8 = vmax.f32 %v7239_v16, 0.0 }
 0xd08   : > { %v7210_v2 = vpop.f32.mrf.mxu3 }
 0xd09   : > { %7256 = vst.msk [vmem:[%s13993_s16 + $0x30] sm:$0xff] %vm7249_vm6, %v7247_v8  ;;  %v7220_v59 = vmul.f32 %v13972_v24, %v7210_v2 }
 0xd0b   : > { %v7228_v51 = vadd.f32 %v7220_v59, %v4816_v45 }
 0xd0d   : > { %v7240_v56 = vadd.f32 %v13978_v48, %v7228_v51 }
 0xd0f   : > { %v7248_v44 = vmax.f32 %v7240_v56, 0.0 }
 0xd11   : > { %7257 = vst.msk [vmem:[%s13993_s16 + $0x38] sm:$0xff] %vm7249_vm6, %v7248_v44 }
 0xd12   : > { %8166 = shalt.err (!%p8163_p3)
}
 0xd13   : > { %s8204_s0 = smov 128   ;;  %s8205_s16 = smov 8  }
 0xd14   : > { %8027 = dma.vmem_to_hbm [thread:$0]  (%p8324_p5), %s7272_s23, 1024, %s7274_s24, %s7259_s22, %s8204_s0, %s8204_s0, %s8205_s16  }
 0xd15 PF: > { %p8033_p4 = scmp.ge.s32.totalorder %s8201_s21, 2  ;;  %s7288_s30 = sand.u32 1, %s8189_s18  }
 0xd16   : > { %s7289_s29 = scalar_lea.sflag [#allocation3], %s7288_s30 }
 0xd17   : > { %p8030_p7 = pnand %p8033_p4, %p8328_p6 }
 0xd19   : > { %p8031_p8 = pneg %p8030_p7 }
 0xd1b   : > { %8184 = dma.done.wait (%p8031_p8), %s7289_s29, 1024  }
 0xd1c   : > { %8186 = vsyncadd (%p8031_p8), %s7289_s29, 4294966272  ;;  %s16333_s21 = sld [smem:[#allocation6_spill]]  ;;  %s16336_s18 = smov %s8193_s19 }
 0xd1d   : > { %s16334_s25 = sld [smem:[#allocation5_spill]] }
 0xd1e   : > { %s16335_s20 = sld [smem:[#allocation7_spill]] }
 0xd22   : > { %p25_p9 = scmp.ge.s32.totalorder %s16333_s21, 4  }
 0xd23   : > { %s16337_s19 = smov %s16334_s25 }
 0xd24   :  { %27 = sbr.rel (!%p25_p9) target bundleno = 6 (0x6), region = 145 }
 0xd29   :  { %7295 = vsyncpa [#allocation3], 1 }
 0xd2a   :  { %7297 = vsyncpa [#allocation3 + $0x1], 1 }

</bundles_post_ra>
